<compile_context>
chip_gen: v7x
topology: tpu7x:2x2x1
jax: 0.10.0
libtpu: 0.0.40
codegen_flags: <defaults>
</compile_context>

<pallas_src>
import functools

import jax
import jax.numpy as jnp
from jax import lax
from jax.experimental import pallas as pl
from jax.experimental.pallas import tpu as pltpu


_ROW_TILE = 2048    # pointwise-MLP row tile (HBM-bound; big tiles amortize grid overhead)
_TILE_N = 1024      # gauss query tile
_TILE_M = 512       # gauss source chunk (multiple of 8/128 when tiled)

_MB = 1024 * 1024


# ---------------------------------------------------------------------------
# Helpers
# ---------------------------------------------------------------------------
def _tile_and_pad(n, cap):
    if n <= cap:
        return n, n
    padded = -(-n // cap) * cap
    return cap, padded


def _chained_powers(e, exps):
    """e**p for each static int p in exps, sharing squarings across terms."""
    maxp = max(exps)
    pow2 = {1: e}
    p = 1
    while 2 * p <= maxp:
        pow2[2 * p] = pow2[p] * pow2[p]
        p *= 2
    out = {}
    for q in exps:
        r, b, val = q, 1, None
        while r:
            if r & 1:
                val = pow2[b] if val is None else val * pow2[b]
            r >>= 1
            b *= 2
        out[q] = val
    return out


# ---------------------------------------------------------------------------
# Fused pointwise MLP kernel (ChannelConv chains / decoder concat heads)
# ---------------------------------------------------------------------------
def _mlp_kernel(*refs, n_inputs, leaky_slopes):
    n_layers = len(leaky_slopes)
    x_refs = refs[:n_inputs]
    w0_refs = refs[n_inputs:2 * n_inputs]
    b0_ref = refs[2 * n_inputs]
    rest = refs[2 * n_inputs + 1: 2 * n_inputs + 1 + 2 * (n_layers - 1)]
    o_ref = refs[2 * n_inputs + 1 + 2 * (n_layers - 1)]

    # First layer: h = sum_i x_i @ W0[rows_i] + b0  (implicit concat, no HBM round trip)
    h = None
    for xr, wr in zip(x_refs, w0_refs):
        t = jnp.dot(xr[...], wr[...], preferred_element_type=jnp.float32)
        h = t if h is None else h + t
    h = h + b0_ref[...]
    s = leaky_slopes[0]
    if s is not None:
        h = jnp.where(h >= 0.0, h, s * h)

    for li in range(1, n_layers):
        w = rest[2 * (li - 1)][...]
        b = rest[2 * (li - 1) + 1][...]
        h = jnp.dot(h, w, preferred_element_type=jnp.float32) + b
        s = leaky_slopes[li]
        if s is not None:
            h = jnp.where(h >= 0.0, h, s * h)
    o_ref[...] = h.astype(o_ref.dtype)


def pointwise_mlp(xs, layers):
    """xs: array or tuple of arrays (B, N, Ci) (implicitly concatenated along C);
    layers: sequence of (W (Cin_i, Cout_i), b (1, Cout_i), slope)."""
    if not isinstance(xs, (list, tuple)):
        xs = (xs,)
    B, N = xs[0].shape[0], xs[0].shape[1]
    rows = B * N
    cins = [int(x.shape[2]) for x in xs]
    x2s = [x.reshape(rows, c) for x, c in zip(xs, cins)]
    t_r, rows_p = _tile_and_pad(rows, _ROW_TILE)
    if rows_p != rows:
        x2s = [jnp.pad(x2, ((0, rows_p - rows), (0, 0))) for x2 in x2s]

    w0, b0, _ = layers[0]
    assert w0.shape[0] == sum(cins)
    w0_chunks = []
    off = 0
    for c in cins:
        w0_chunks.append(w0[off:off + c, :])
        off += c

    cout = layers[-1][0].shape[1]
    slopes = tuple(l[2] for l in layers)

    in_specs = []
    args = []
    for x2, c in zip(x2s, cins):
        args.append(x2)
        in_specs.append(pl.BlockSpec((t_r, c), lambda i: (i, 0)))
    for wc in w0_chunks:
        args.append(wc)
        in_specs.append(pl.BlockSpec(wc.shape, lambda i: (0, 0)))
    args.append(b0)
    in_specs.append(pl.BlockSpec(b0.shape, lambda i: (0, 0)))
    for (w, b, _) in layers[1:]:
        args += [w, b]
        in_specs.append(pl.BlockSpec(w.shape, lambda i: (0, 0)))
        in_specs.append(pl.BlockSpec(b.shape, lambda i: (0, 0)))

    out = pl.pallas_call(
        functools.partial(_mlp_kernel, n_inputs=len(xs), leaky_slopes=slopes),
        out_shape=jax.ShapeDtypeStruct((rows_p, cout), jnp.float32),
        grid=(rows_p // t_r,),
        in_specs=in_specs,
        out_specs=pl.BlockSpec((t_r, cout), lambda i: (i, 0)),
        compiler_params=pltpu.CompilerParams(
            dimension_semantics=("parallel",),
            vmem_limit_bytes=32 * _MB),
    )(*args)
    return out[:rows].reshape(B, N, cout)


# ---------------------------------------------------------------------------
# Fused multi-Gaussian spatial conv (+ optional ChannelConv epilogue)
# ---------------------------------------------------------------------------
def _gauss_kernel(*refs, c_min, term_weights, term_ratios, term_coefs,
                  n_feat, eps, leaky_slopes, tile_m, m_tiles):
    n_layers = len(leaky_slopes)
    xa_ref, ya_ref, fa_ref = refs[0], refs[1], refs[2]
    wb_refs = refs[3:3 + 2 * n_layers]
    o_ref = refs[3 + 2 * n_layers]
    acc_ref = refs[4 + 2 * n_layers]

    mi = pl.program_id(2)

    @pl.when(mi == 0)
    def _init():
        acc_ref[...] = jnp.zeros_like(acc_ref)

    # ya / fa are VMEM-resident full-M slabs; pick this step's source chunk.
    if m_tiles == 1:
        ya_c = ya_ref[0]                       # (M, 8)  f32
        fa_c = fa_ref[0]                       # (M, C+1) bf16
    else:
        off = pl.multiple_of(mi * tile_m, tile_m)
        ya_c = ya_ref[0, pl.ds(off, tile_m), :]
        fa_c = fa_ref[0, pl.ds(off, tile_m), :]

    # d2 = |x|^2 + |y|^2 - 2 x.y via a single f32 MXU matmul on augmented coords
    # (contracting the trailing K=8 dim of both operands, i.e. xa @ ya^T).
    d2 = lax.dot_general(xa_ref[0], ya_c, (((1,), (1,)), ((), ())),
                         preferred_element_type=jnp.float32)
    d2 = jnp.maximum(d2, 0.0)

    if term_ratios is not None:
        # one exp on the EUP; remaining Gaussians via chained squarings (VPU)
        e = jnp.exp(-c_min * d2)
        pw = _chained_powers(e, term_ratios)
        k = None
        for w, p in zip(term_weights, term_ratios):
            t = w * pw[p]
            k = t if k is None else k + t
    else:
        k = None
        for w, c in zip(term_weights, term_coefs):
            t = w * jnp.exp(-c * d2)
            k = t if k is None else k + t

    # features carry a trailing ones column -> numerator and denominator from
    # one bf16 MXU matmul with f32 accumulation.
    acc_ref[...] += jnp.dot(k.astype(jnp.bfloat16), fa_c,
                            preferred_element_type=jnp.float32)

    @pl.when(mi == pl.num_programs(2) - 1)
    def _finalize():
        acc = acc_ref[...]
        num = acc[:, :n_feat]
        den = acc[:, n_feat:n_feat + 1]
        inv = pl.reciprocal(den + eps, approx=True)     # EUP slot, ~free
        h = num * inv
        for li in range(n_layers):
            w = wb_refs[2 * li][...]
            b = wb_refs[2 * li + 1][...]
            h = jnp.dot(h, w, preferred_element_type=jnp.float32) + b
            s = leaky_slopes[li]
            if s is not None:
                h = jnp.where(h >= 0.0, h, s * h)
        o_ref[0] = h.astype(o_ref.dtype)


def multi_gauss_spatial_conv(x, y, fea, sigmas, weights, epilogue=()):
    """Normalized multi-Gaussian interpolation of `fea` (at y) onto x, with an
    optional fused stack of pointwise (ChannelConv / Linear) layers.
    # TODO(synk): MultiGaussSpatialConv source not given; modeled as normalized
    # multi-Gaussian (Nadaraya-Watson) kernel interpolation, as before.
    """
    B, N, _ = x.shape
    M = y.shape[1]
    C = fea.shape[2]
    f32 = jnp.float32

    # Per-batch centering: distances are shift-invariant but the
    # |x|^2+|y|^2-2xy expansion is far better conditioned in f32 when centered.
    ctr = jnp.mean(y, axis=1, keepdims=True)
    x = x - ctr
    y = y - ctr

    # Augmented coordinates so d2 comes out of one matmul (K padded 3 -> 8).
    xsq = jnp.sum(x * x, axis=-1, keepdims=True)
    ysq = jnp.sum(y * y, axis=-1, keepdims=True)
    xa = jnp.concatenate(
        [-2.0 * x, xsq, jnp.ones_like(xsq), jnp.zeros((B, N, 3), f32)], axis=-1)
    ya = jnp.concatenate(
        [y, jnp.ones_like(ysq), ysq, jnp.zeros((B, M, 3), f32)], axis=-1)
    # ones column folds the denominator into the same matmul; bf16 in HBM/VMEM.
    fa = jnp.concatenate([fea.astype(f32), jnp.ones((B, M, 1), f32)],
                         axis=-1).astype(jnp.bfloat16)

    t_n, n_p = _tile_and_pad(N, _TILE_N)
    t_m, m_p = _tile_and_pad(M, _TILE_M)
    if n_p != N:
        xa = jnp.pad(xa, ((0, 0), (0, n_p - N), (0, 0)))
    if m_p != M:
        ya = jnp.pad(ya, ((0, 0), (0, m_p - M), (0, 0)))
        fa = jnp.pad(fa, ((0, 0), (0, m_p - M), (0, 0)))   # zero rows: no contribution
    m_tiles = m_p // t_m

    # Exponent terms: sigma ratios 5:10:20 -> coefficient ratios 16:4:1.
    coefs = [1.0 / (2.0 * float(s) ** 2) for s in sigmas]
    ws = [float(w) for w in weights]
    c_min = min(coefs)
    ratios = [c / c_min for c in coefs]
    int_ratios = [int(round(r)) for r in ratios]
    use_power = (all(abs(r - ir) < 1e-6 for r, ir in zip(ratios, int_ratios))
                 and max(int_ratios) <= 64)

    cout = epilogue[-1][0].shape[1] if epilogue else C
    slopes = tuple(l[2] for l in epilogue)

    kern = functools.partial(
        _gauss_kernel,
        c_min=c_min,
        term_weights=tuple(ws),
        term_ratios=tuple(int_ratios) if use_power else None,
        term_coefs=tuple(coefs),
        n_feat=C,
        eps=1e-9,
        leaky_slopes=slopes,
        tile_m=t_m,
        m_tiles=m_tiles,
    )

    in_specs = [
        # query tile: streamed per ni
        pl.BlockSpec((1, t_n, 8), lambda b, ni, mi: (b, ni, 0)),
        # source slabs: full-M blocks, resident across ni/mi (re-DMA'd only per b)
        pl.BlockSpec((1, m_p, 8), lambda b, ni, mi: (b, 0, 0)),
        pl.BlockSpec((1, m_p, C + 1), lambda b, ni, mi: (b, 0, 0)),
    ]
    wb_args = []
    for (w, bi, _) in epilogue:
        wb_args += [w, bi]
        in_specs.append(pl.BlockSpec(w.shape, lambda b, ni, mi: (0, 0)))
        in_specs.append(pl.BlockSpec(bi.shape, lambda b, ni, mi: (0, 0)))

    out = pl.pallas_call(
        kern,
        out_shape=jax.ShapeDtypeStruct((B, n_p, cout), f32),
        grid=(B, n_p // t_n, m_tiles),
        in_specs=in_specs,
        out_specs=pl.BlockSpec((1, t_n, cout), lambda b, ni, mi: (b, ni, 0)),
        scratch_shapes=[pltpu.VMEM((t_n, C + 1), jnp.float32)],
        compiler_params=pltpu.CompilerParams(
            dimension_semantics=("parallel", "parallel", "arbitrary"),
            vmem_limit_bytes=48 * _MB),
    )(xa, ya, fa, *wb_args)
    return out[:, :N, :]


# ---------------------------------------------------------------------------
# Furthest point sampling — lane-dense layout, whole loop in one Pallas kernel
# ---------------------------------------------------------------------------
def _fps_kernel(pc_ref, out_ref, dists_ref, *, npoints, n_valid):
    # pc_ref: (3, Np) coords-major (N on lanes); out_ref: (3, npoints).
    px = pc_ref[0:1, :]                               # (1, Np)
    py = pc_ref[1:2, :]
    pz = pc_ref[2:3, :]
    np_lanes = px.shape[1]
    lane = lax.broadcasted_iota(jnp.int32, (1, np_lanes), 1)
    lane_f = lane.astype(jnp.float32)
    valid = lane < n_valid
    psq = px * px + py * py + pz * pz                 # (1, Np)

    dists_ref[...] = jnp.where(valid, jnp.float32(1e30), jnp.float32(-1.0))
    out_lane = lax.broadcasted_iota(jnp.int32, (1, out_ref.shape[1]), 1)
    out_ref[...] = jnp.zeros_like(out_ref)

    def body(j, sel):                                 # sel: (1,1) f32 selected index
        onehot = lane_f == sel                        # (1, Np)
        ptx = jnp.sum(jnp.where(onehot, px, 0.0), axis=1, keepdims=True)   # (1,1)
        pty = jnp.sum(jnp.where(onehot, py, 0.0), axis=1, keepdims=True)
        ptz = jnp.sum(jnp.where(onehot, pz, 0.0), axis=1, keepdims=True)

        sel_col = out_lane == j
        out_ref[0:1, :] = jnp.where(sel_col, ptx, out_ref[0:1, :])
        out_ref[1:2, :] = jnp.where(sel_col, pty, out_ref[1:2, :])
        out_ref[2:3, :] = jnp.where(sel_col, ptz, out_ref[2:3, :])

        # squared distance of all points to the selected point (lane-dense)
        dot = ptx * px + pty * py + ptz * pz          # (1, Np)
        ptsq = ptx * ptx + pty * pty + ptz * ptz      # (1, 1)
        d = jnp.maximum(psq - 2.0 * dot + ptsq, 0.0)

        dists = jnp.minimum(dists_ref[...], d)
        dists_ref[...] = dists
        m = jnp.max(dists, axis=1, keepdims=True)     # (1, 1)
        cand = jnp.where(dists >= m, lane_f, jnp.float32(np_lanes))
        return jnp.min(cand, axis=1, keepdims=True)   # first argmax

    lax.fori_loop(0, npoints, body, jnp.zeros((1, 1), jnp.float32))


def furthest_sampling(pc, npoints):
    """pc: (B, N, 3) -> (B, npoints, 3); deterministic (seeded at index 0).
    # TODO(synk): torch furthest_point_sampling seeding/tie-break may differ.
    """
    B, N, _ = pc.shape
    npoints = min(int(npoints), N)
    pct = jnp.transpose(pc, (0, 2, 1)).astype(jnp.float32)   # (B, 3, N) lane-dense
    n_pad = (-N) % 128
    if n_pad:
        pct = jnp.pad(pct, ((0, 0), (0, 0), (0, n_pad)))
    n_p = N + n_pad

    out_t = pl.pallas_call(
        functools.partial(_fps_kernel, npoints=npoints, n_valid=N),
        out_shape=jax.ShapeDtypeStruct((B, 3, npoints), jnp.float32),
        grid=(B,),
        in_specs=[pl.BlockSpec((None, 3, n_p), lambda b: (b, 0, 0))],
        out_specs=pl.BlockSpec((None, 3, npoints), lambda b: (b, 0, 0)),
        scratch_shapes=[pltpu.VMEM((1, n_p), jnp.float32)],
        compiler_params=pltpu.CompilerParams(
            dimension_semantics=("parallel",),
            vmem_limit_bytes=32 * _MB),
    )(pct)
    return jnp.transpose(out_t, (0, 2, 1))


# ---------------------------------------------------------------------------
# Parameters (deterministic synthetic init; no checkpoint loading)
# ---------------------------------------------------------------------------
_CHANNEL_CONV_DIMS = {
    "cc0_0": (1, 8),   "cc0_1": (8, 16),  "cc0_2": (16, 16),
    "cc1_0": (16, 32), "cc1_1": (32, 32), "cc1_2": (32, 32),
    "cc2_0": (32, 64), "cc2_1": (64, 64), "cc2_2": (64, 64),
    "cc3_0": (64, 96), "cc3_1": (96, 96), "cc3_2": (96, 96),
    "cc2_3": (64 + 96, 64), "cc2_4": (64, 64), "cc2_5": (64, 64),
    "cc1_3": (64 + 32, 64), "cc1_4": (64, 64), "cc1_5": (64, 64),
    "cc0_3": (64 + 16, 32), "cc0_4": (32, 32), "cc0_5": (32, 32),
    "refine": (32, 32),
}


def init_params(key, input_channel=1):
    dims = dict(_CHANNEL_CONV_DIMS)
    dims["cc0_0"] = (input_channel, 8)
    params = {}
    for name in sorted(dims):
        cin, cout = dims[name]
        key, kw, kb = jax.random.split(key, 3)
        w = jax.random.normal(kw, (cin, cout), jnp.float32) * (2.0 / cin) ** 0.5
        b = jax.random.normal(kb, (1, cout), jnp.float32) * 0.01
        params[name] = (w, b)
    return params


# ---------------------------------------------------------------------------
# Forward pass (mirrors GeoUnetFeatureNet.forward; convs fused into neighbors)
# ---------------------------------------------------------------------------
def geo_unet_feature_net(params, pc1, feature1, *,
                         initial_radius=0.001, initial_npoints=8192,
                         normalize=False):
    # TODO(synk): ChannelConv source not in the prompt; modeled as
    # Conv1d(kernel=1) + LeakyReLU(0.1) (no norm layer), same as before.
    wl = (0.33, 0.33, 0.34)

    def sig(r):
        return (r * 5.0, r * 10.0, r * 20.0)

    def L(name, slope=0.1):
        w, b = params[name]
        return (w, b, slope)

    r0 = initial_radius
    r1 = initial_radius * 4
    r2 = initial_radius * 16
    r3 = initial_radius * 32
    n1 = int(initial_npoints)
    n2 = int(initial_npoints / 4)
    n3 = int(initial_npoints / 8)

    l0_pc = pc1
    l0_fea = pointwise_mlp(feature1, [L("cc0_0"), L("cc0_1")])
    l0_fea = multi_gauss_spatial_conv(l0_pc, l0_pc, l0_fea, sig(r0), wl,
                                      epilogue=[L("cc0_2")])

    l1_pc = furthest_sampling(l0_pc, n1)
    l1_fea = multi_gauss_spatial_conv(l1_pc, l0_pc, l0_fea, sig(r1), wl,
                                      epilogue=[L("cc1_0"), L("cc1_1")])
    l1_fea = multi_gauss_spatial_conv(l1_pc, l1_pc, l1_fea, sig(r1), wl,
                                      epilogue=[L("cc1_2")])

    l2_pc = furthest_sampling(l1_pc, n2)
    l2_fea = multi_gauss_spatial_conv(l2_pc, l1_pc, l1_fea, sig(r2), wl,
                                      epilogue=[L("cc2_0"), L("cc2_1")])
    l2_fea = multi_gauss_spatial_conv(l2_pc, l2_pc, l2_fea, sig(r2), wl,
                                      epilogue=[L("cc2_2")])

    l3_pc = furthest_sampling(l2_pc, n3)
    l3_fea = multi_gauss_spatial_conv(l3_pc, l2_pc, l2_fea, sig(r3), wl,
                                      epilogue=[L("cc3_0"), L("cc3_1")])
    l3_fea = multi_gauss_spatial_conv(l3_pc, l3_pc, l3_fea, sig(r3), wl,
                                      epilogue=[L("cc3_2")])

    # Decoder: the torch `cat([up, skip])` is never materialized — the MLP
    # kernel takes both inputs and splits the first layer's weight rows.
    l2_up = multi_gauss_spatial_conv(l2_pc, l3_pc, l3_fea, sig(r2), wl)
    l2_fea = pointwise_mlp((l2_up, l2_fea), [L("cc2_3"), L("cc2_4")])
    l2_fea = multi_gauss_spatial_conv(l2_pc, l2_pc, l2_fea, sig(r2), wl,
                                      epilogue=[L("cc2_5")])

    l1_up = multi_gauss_spatial_conv(l1_pc, l2_pc, l2_fea, sig(r1), wl)
    l1_fea = pointwise_mlp((l1_up, l1_fea), [L("cc1_3"), L("cc1_4")])
    l1_fea = multi_gauss_spatial_conv(l1_pc, l1_pc, l1_fea, sig(r1), wl,
                                      epilogue=[L("cc1_5")])

    l0_up = multi_gauss_spatial_conv(l0_pc, l1_pc, l1_fea, sig(r0), wl)
    l0_fea = pointwise_mlp((l0_up, l0_fea), [L("cc0_3"), L("cc0_4")])
    # spatial_conv0_3 + channel_conv0_5 + refine(Linear, no activation) fused
    fea1 = multi_gauss_spatial_conv(l0_pc, l0_pc, l0_fea, sig(r0), wl,
                                    epilogue=[L("cc0_5"), L("refine", slope=None)])

    # TODO(synk): normalize=False by default; the torch normalize branch
    # (mean/std over dim 2 without keepdim) would not broadcast, so it is not
    # modeled.
    del normalize
    return fea1


# ---------------------------------------------------------------------------
# Demo
# ---------------------------------------------------------------------------
if __name__ == "__main__":
    key = jax.random.PRNGKey(0)
    kparam, kpc, kfea = jax.random.split(key, 3)

    # Small shapes consistent with the module: B=2, N=64 points, 1 input channel.
    B, N, CIN = 2, 64, 1
    initial_radius = 0.05      # scaled so the Gaussian kernels have support at N=64
    initial_npoints = 32       # levels: 64 -> 32 -> 8 -> 4 points

    pc1 = jax.random.uniform(kpc, (B, N, 3), dtype=jnp.float32)
    feature1 = jax.random.normal(kfea, (B, N, CIN), dtype=jnp.float32)
    params = init_params(kparam, input_channel=CIN)

    fwd = jax.jit(functools.partial(
        geo_unet_feature_net,
        initial_radius=initial_radius,
        initial_npoints=initial_npoints,
        normalize=False,
    ))

    out = fwd(params, pc1, feature1)
    out = jax.block_until_ready(out)

    assert out.shape == (B, N, 32), out.shape
    assert out.dtype == jnp.float32
    assert bool(jnp.all(jnp.isfinite(out)))
    print("KERNEL_OK")
</pallas_src>

<mosaic_0001>
module attributes {stable_mosaic.version = 11 : i64} {
  func.func @_fps_kernel(%arg0: i32, %arg1: memref<1x3x128xf32, #tpu.memory_space<vmem>>, %arg2: memref<1x3x32xf32, #tpu.memory_space<vmem>>, %arg3: memref<1x128xf32, #tpu.memory_space<vmem>>) attributes {dimension_semantics = [#tpu.dimension_semantics<parallel>], iteration_bounds = array<i64: 2>, scalar_prefetch = 0 : i64, scratch_operands = 1 : i64, tpu.core_type = #tpu.core_type<tc>, window_params = [{transform_indices = @transform_0, window_bounds = array<i64: 1, 3, 128>}, {transform_indices = @transform_1, window_bounds = array<i64: 1, 3, 32>}]} {
    %c0 = arith.constant 0 : index
    %c0_0 = arith.constant 0 : index
    %c0_1 = arith.constant 0 : index
    %0 = vector.load %arg1[%c0, %c0_0, %c0_1] : memref<1x3x128xf32, #tpu.memory_space<vmem>>, vector<1x1x128xf32>
    %1 = vector.shape_cast %0 : vector<1x1x128xf32> to vector<1x128xf32>
    %c0_2 = arith.constant 0 : index
    %c1 = arith.constant 1 : index
    %c0_3 = arith.constant 0 : index
    %2 = vector.load %arg1[%c0_2, %c1, %c0_3] : memref<1x3x128xf32, #tpu.memory_space<vmem>>, vector<1x1x128xf32>
    %3 = vector.shape_cast %2 : vector<1x1x128xf32> to vector<1x128xf32>
    %c0_4 = arith.constant 0 : index
    %c2 = arith.constant 2 : index
    %c0_5 = arith.constant 0 : index
    %4 = vector.load %arg1[%c0_4, %c2, %c0_5] : memref<1x3x128xf32, #tpu.memory_space<vmem>>, vector<1x1x128xf32>
    %5 = vector.shape_cast %4 : vector<1x1x128xf32> to vector<1x128xf32>
    %6 = tpu.iota {dimensions = array<i32: 1>} : vector<1x128xi32>
    %7 = arith.sitofp %6 : vector<1x128xi32> to vector<1x128xf32>
    %c64_i32 = arith.constant 64 : i32
    %8 = vector.broadcast %c64_i32 : i32 to vector<1x128xi32>
    %9 = arith.cmpi slt, %6, %8 : vector<1x128xi32>
    %10 = arith.mulf %1, %1 : vector<1x128xf32>
    %11 = arith.mulf %3, %3 : vector<1x128xf32>
    %12 = arith.addf %10, %11 : vector<1x128xf32>
    %13 = arith.mulf %5, %5 : vector<1x128xf32>
    %14 = arith.addf %12, %13 : vector<1x128xf32>
    %cst = arith.constant 1.000000e+30 : f32
    %cst_6 = arith.constant -1.000000e+00 : f32
    %15 = vector.broadcast %cst : f32 to vector<1x128xf32>
    %16 = vector.broadcast %cst_6 : f32 to vector<1x128xf32>
    %17 = arith.select %9, %15, %16 : vector<1x128xi1>, vector<1x128xf32>
    %c0_7 = arith.constant 0 : index
    %c0_8 = arith.constant 0 : index
    %18 = vector.load %arg3[%c0_7, %c0_8] : memref<1x128xf32, #tpu.memory_space<vmem>>, vector<1x128xf32>
    tpu.vector_store %arg3[%c0_7, %c0_8], %17 {strides = array<i32>} : memref<1x128xf32, #tpu.memory_space<vmem>>, vector<1x128xf32>,
    %19 = tpu.iota {dimensions = array<i32: 1>} : vector<1x32xi32>
    %cst_9 = arith.constant 0.000000e+00 : f32
    %20 = vector.broadcast %cst_9 : f32 to vector<3x32xf32>
    %c0_10 = arith.constant 0 : index
    %c0_11 = arith.constant 0 : index
    %c0_12 = arith.constant 0 : index
    %21 = vector.load %arg2[%c0_10, %c0_11, %c0_12] : memref<1x3x32xf32, #tpu.memory_space<vmem>>, vector<1x3x32xf32>
    %22 = vector.shape_cast %21 : vector<1x3x32xf32> to vector<3x32xf32>
    %23 = vector.shape_cast %20 : vector<3x32xf32> to vector<1x3x32xf32>
    tpu.vector_store %arg2[%c0_10, %c0_11, %c0_12], %23 {strides = array<i32>} : memref<1x3x32xf32, #tpu.memory_space<vmem>>, vector<1x3x32xf32>,
    %cst_13 = arith.constant 0.000000e+00 : f32
    %24 = vector.broadcast %cst_13 : f32 to vector<1x1xf32>
    %c0_i32 = arith.constant 0 : i32
    %c32_i32 = arith.constant 32 : i32
    %25 = arith.addi %c0_i32, %c32_i32 : i32
    %c1_i32 = arith.constant 1 : i32
    %26 = scf.for %arg4 = %c0_i32 to %25 step %c1_i32 iter_args(%arg5 = %24) -> (vector<1x1xf32>)  : i32 {
      %27 = vector.broadcast %arg5 : vector<1x1xf32> to vector<1x128xf32>
      %28 = arith.cmpf oeq, %7, %27 : vector<1x128xf32>
      %cst_15 = arith.constant 0.000000e+00 : f32
      %29 = vector.broadcast %cst_15 : f32 to vector<1x128xf32>
      %30 = arith.select %28, %1, %29 : vector<1x128xi1>, vector<1x128xf32>
      %cst_16 = arith.constant dense<0.000000e+00> : vector<1xf32>
      %31 = vector.multi_reduction <add>, %30, %cst_16 [1] : vector<1x128xf32> to vector<1xf32>
      %32 = vector.shape_cast %31 : vector<1xf32> to vector<1x1xf32>
      %cst_17 = arith.constant 0.000000e+00 : f32
      %33 = vector.broadcast %cst_17 : f32 to vector<1x128xf32>
      %34 = arith.select %28, %3, %33 : vector<1x128xi1>, vector<1x128xf32>
      %cst_18 = arith.constant dense<0.000000e+00> : vector<1xf32>
      %35 = vector.multi_reduction <add>, %34, %cst_18 [1] : vector<1x128xf32> to vector<1xf32>
      %36 = vector.shape_cast %35 : vector<1xf32> to vector<1x1xf32>
      %cst_19 = arith.constant 0.000000e+00 : f32
      %37 = vector.broadcast %cst_19 : f32 to vector<1x128xf32>
      %38 = arith.select %28, %5, %37 : vector<1x128xi1>, vector<1x128xf32>
      %cst_20 = arith.constant dense<0.000000e+00> : vector<1xf32>
      %39 = vector.multi_reduction <add>, %38, %cst_20 [1] : vector<1x128xf32> to vector<1xf32>
      %40 = vector.shape_cast %39 : vector<1xf32> to vector<1x1xf32>
      %41 = vector.broadcast %arg4 : i32 to vector<1x32xi32>
      %42 = arith.cmpi eq, %19, %41 : vector<1x32xi32>
      %c0_21 = arith.constant 0 : index
      %c0_22 = arith.constant 0 : index
      %c0_23 = arith.constant 0 : index
      %43 = vector.load %arg2[%c0_21, %c0_22, %c0_23] : memref<1x3x32xf32, #tpu.memory_space<vmem>>, vector<1x1x32xf32>
      %44 = vector.shape_cast %43 : vector<1x1x32xf32> to vector<1x32xf32>
      %45 = vector.shape_cast %32 : vector<1x1xf32> to vector<1x1xf32>
      %46 = vector.broadcast %45 : vector<1x1xf32> to vector<1x32xf32>
      %47 = arith.select %42, %46, %44 : vector<1x32xi1>, vector<1x32xf32>
      %c0_24 = arith.constant 0 : index
      %c0_25 = arith.constant 0 : index
      %c0_26 = arith.constant 0 : index
      %48 = vector.load %arg2[%c0_24, %c0_25, %c0_26] : memref<1x3x32xf32, #tpu.memory_space<vmem>>, vector<1x1x32xf32>
      %49 = vector.shape_cast %48 : vector<1x1x32xf32> to vector<1x32xf32>
      %50 = vector.shape_cast %47 : vector<1x32xf32> to vector<1x1x32xf32>
      tpu.vector_store %arg2[%c0_24, %c0_25, %c0_26], %50 {strides = array<i32>} : memref<1x3x32xf32, #tpu.memory_space<vmem>>, vector<1x1x32xf32>,
      %c0_27 = arith.constant 0 : index
      %c1_28 = arith.constant 1 : index
      %c0_29 = arith.constant 0 : index
      %51 = vector.load %arg2[%c0_27, %c1_28, %c0_29] : memref<1x3x32xf32, #tpu.memory_space<vmem>>, vector<1x1x32xf32>
      %52 = vector.shape_cast %51 : vector<1x1x32xf32> to vector<1x32xf32>
      %53 = vector.shape_cast %36 : vector<1x1xf32> to vector<1x1xf32>
      %54 = vector.broadcast %53 : vector<1x1xf32> to vector<1x32xf32>
      %55 = arith.select %42, %54, %52 : vector<1x32xi1>, vector<1x32xf32>
      %c0_30 = arith.constant 0 : index
      %c1_31 = arith.constant 1 : index
      %c0_32 = arith.constant 0 : index
      %56 = vector.load %arg2[%c0_30, %c1_31, %c0_32] : memref<1x3x32xf32, #tpu.memory_space<vmem>>, vector<1x1x32xf32>
      %57 = vector.shape_cast %56 : vector<1x1x32xf32> to vector<1x32xf32>
      %58 = vector.shape_cast %55 : vector<1x32xf32> to vector<1x1x32xf32>
      tpu.vector_store %arg2[%c0_30, %c1_31, %c0_32], %58 {strides = array<i32>} : memref<1x3x32xf32, #tpu.memory_space<vmem>>, vector<1x1x32xf32>,
      %c0_33 = arith.constant 0 : index
      %c2_34 = arith.constant 2 : index
      %c0_35 = arith.constant 0 : index
      %59 = vector.load %arg2[%c0_33, %c2_34, %c0_35] : memref<1x3x32xf32, #tpu.memory_space<vmem>>, vector<1x1x32xf32>
      %60 = vector.shape_cast %59 : vector<1x1x32xf32> to vector<1x32xf32>
      %61 = vector.shape_cast %40 : vector<1x1xf32> to vector<1x1xf32>
      %62 = vector.broadcast %61 : vector<1x1xf32> to vector<1x32xf32>
      %63 = arith.select %42, %62, %60 : vector<1x32xi1>, vector<1x32xf32>
      %c0_36 = arith.constant 0 : index
      %c2_37 = arith.constant 2 : index
      %c0_38 = arith.constant 0 : index
      %64 = vector.load %arg2[%c0_36, %c2_37, %c0_38] : memref<1x3x32xf32, #tpu.memory_space<vmem>>, vector<1x1x32xf32>
      %65 = vector.shape_cast %64 : vector<1x1x32xf32> to vector<1x32xf32>
      %66 = vector.shape_cast %63 : vector<1x32xf32> to vector<1x1x32xf32>
      tpu.vector_store %arg2[%c0_36, %c2_37, %c0_38], %66 {strides = array<i32>} : memref<1x3x32xf32, #tpu.memory_space<vmem>>, vector<1x1x32xf32>,
      %67 = vector.broadcast %32 : vector<1x1xf32> to vector<1x128xf32>
      %68 = arith.mulf %67, %1 : vector<1x128xf32>
      %69 = vector.broadcast %36 : vector<1x1xf32> to vector<1x128xf32>
      %70 = arith.mulf %69, %3 : vector<1x128xf32>
      %71 = arith.addf %68, %70 : vector<1x128xf32>
      %72 = vector.broadcast %40 : vector<1x1xf32> to vector<1x128xf32>
      %73 = arith.mulf %72, %5 : vector<1x128xf32>
      %74 = arith.addf %71, %73 : vector<1x128xf32>
      %75 = arith.mulf %32, %32 : vector<1x1xf32>
      %76 = arith.mulf %36, %36 : vector<1x1xf32>
      %77 = arith.addf %75, %76 : vector<1x1xf32>
      %78 = arith.mulf %40, %40 : vector<1x1xf32>
      %79 = arith.addf %77, %78 : vector<1x1xf32>
      %cst_39 = arith.constant 2.000000e+00 : f32
      %80 = vector.broadcast %cst_39 : f32 to vector<1x128xf32>
      %81 = arith.mulf %80, %74 : vector<1x128xf32>
      %82 = arith.subf %14, %81 : vector<1x128xf32>
      %83 = vector.broadcast %79 : vector<1x1xf32> to vector<1x128xf32>
      %84 = arith.addf %82, %83 : vector<1x128xf32>
      %cst_40 = arith.constant 0.000000e+00 : f32
      %85 = vector.broadcast %cst_40 : f32 to vector<1x128xf32>
      %86 = arith.maximumf %84, %85 : vector<1x128xf32>
      %c0_41 = arith.constant 0 : index
      %c0_42 = arith.constant 0 : index
      %87 = vector.load %arg3[%c0_41, %c0_42] : memref<1x128xf32, #tpu.memory_space<vmem>>, vector<1x128xf32>
      %88 = arith.minimumf %87, %86 : vector<1x128xf32>
      %c0_43 = arith.constant 0 : index
      %c0_44 = arith.constant 0 : index
      %89 = vector.load %arg3[%c0_43, %c0_44] : memref<1x128xf32, #tpu.memory_space<vmem>>, vector<1x128xf32>
      tpu.vector_store %arg3[%c0_43, %c0_44], %88 {strides = array<i32>} : memref<1x128xf32, #tpu.memory_space<vmem>>, vector<1x128xf32>,
      %cst_45 = arith.constant dense<0xFF800000> : vector<1xf32>
      %90 = vector.multi_reduction <maximumf>, %88, %cst_45 [1] : vector<1x128xf32> to vector<1xf32>
      %91 = vector.shape_cast %90 : vector<1xf32> to vector<1x1xf32>
      %92 = vector.broadcast %91 : vector<1x1xf32> to vector<1x128xf32>
      %93 = arith.cmpf oge, %88, %92 : vector<1x128xf32>
      %cst_46 = arith.constant 1.280000e+02 : f32
      %94 = vector.broadcast %cst_46 : f32 to vector<1x128xf32>
      %95 = arith.select %93, %7, %94 : vector<1x128xi1>, vector<1x128xf32>
      %cst_47 = arith.constant dense<0x7F800000> : vector<1xf32>
      %96 = vector.multi_reduction <minimumf>, %95, %cst_47 [1] : vector<1x128xf32> to vector<1xf32>
      %97 = vector.shape_cast %96 : vector<1xf32> to vector<1x1xf32>
      scf.yield %97 : vector<1x1xf32>
    }
    %c32_i32_14 = arith.constant 32 : i32
    return
  }
  func.func @transform_0(%arg0: i32) -> (i32, i32, i32) {
    %c0_i32 = arith.constant 0 : i32
    %c0_i32_0 = arith.constant 0 : i32
    %c0_i32_1 = arith.constant 0 : i32
    return %arg0, %c0_i32, %c0_i32_0 : i32, i32, i32
  }
  func.func @transform_1(%arg0: i32) -> (i32, i32, i32) {
    %c0_i32 = arith.constant 0 : i32
    %c0_i32_0 = arith.constant 0 : i32
    %c0_i32_1 = arith.constant 0 : i32
    return %arg0, %c0_i32, %c0_i32_0 : i32, i32, i32
  }
}

module attributes {stable_mosaic.version = 11 : i64} {
  func.func @_fps_kernel(%arg0: i32, %arg1: memref<1x3x128xf32, #tpu.memory_space<vmem>>, %arg2: memref<1x3x8xf32, #tpu.memory_space<vmem>>, %arg3: memref<1x128xf32, #tpu.memory_space<vmem>>) attributes {dimension_semantics = [#tpu.dimension_semantics<parallel>], iteration_bounds = array<i64: 2>, scalar_prefetch = 0 : i64, scratch_operands = 1 : i64, tpu.core_type = #tpu.core_type<tc>, window_params = [{transform_indices = @transform_0, window_bounds = array<i64: 1, 3, 128>}, {transform_indices = @transform_1, window_bounds = array<i64: 1, 3, 8>}]} {
    %c0 = arith.constant 0 : index
    %c0_0 = arith.constant 0 : index
    %c0_1 = arith.constant 0 : index
    %0 = vector.load %arg1[%c0, %c0_0, %c0_1] : memref<1x3x128xf32, #tpu.memory_space<vmem>>, vector<1x1x128xf32>
    %1 = vector.shape_cast %0 : vector<1x1x128xf32> to vector<1x128xf32>
    %c0_2 = arith.constant 0 : index
    %c1 = arith.constant 1 : index
    %c0_3 = arith.constant 0 : index
    %2 = vector.load %arg1[%c0_2, %c1, %c0_3] : memref<1x3x128xf32, #tpu.memory_space<vmem>>, vector<1x1x128xf32>
    %3 = vector.shape_cast %2 : vector<1x1x128xf32> to vector<1x128xf32>
    %c0_4 = arith.constant 0 : index
    %c2 = arith.constant 2 : index
    %c0_5 = arith.constant 0 : index
    %4 = vector.load %arg1[%c0_4, %c2, %c0_5] : memref<1x3x128xf32, #tpu.memory_space<vmem>>, vector<1x1x128xf32>
    %5 = vector.shape_cast %4 : vector<1x1x128xf32> to vector<1x128xf32>
    %6 = tpu.iota {dimensions = array<i32: 1>} : vector<1x128xi32>
    %7 = arith.sitofp %6 : vector<1x128xi32> to vector<1x128xf32>
    %c32_i32 = arith.constant 32 : i32
    %8 = vector.broadcast %c32_i32 : i32 to vector<1x128xi32>
    %9 = arith.cmpi slt, %6, %8 : vector<1x128xi32>
    %10 = arith.mulf %1, %1 : vector<1x128xf32>
    %11 = arith.mulf %3, %3 : vector<1x128xf32>
    %12 = arith.addf %10, %11 : vector<1x128xf32>
    %13 = arith.mulf %5, %5 : vector<1x128xf32>
    %14 = arith.addf %12, %13 : vector<1x128xf32>
    %cst = arith.constant 1.000000e+30 : f32
    %cst_6 = arith.constant -1.000000e+00 : f32
    %15 = vector.broadcast %cst : f32 to vector<1x128xf32>
    %16 = vector.broadcast %cst_6 : f32 to vector<1x128xf32>
    %17 = arith.select %9, %15, %16 : vector<1x128xi1>, vector<1x128xf32>
    %c0_7 = arith.constant 0 : index
    %c0_8 = arith.constant 0 : index
    %18 = vector.load %arg3[%c0_7, %c0_8] : memref<1x128xf32, #tpu.memory_space<vmem>>, vector<1x128xf32>
    tpu.vector_store %arg3[%c0_7, %c0_8], %17 {strides = array<i32>} : memref<1x128xf32, #tpu.memory_space<vmem>>, vector<1x128xf32>,
    %19 = tpu.iota {dimensions = array<i32: 1>} : vector<1x8xi32>
    %cst_9 = arith.constant 0.000000e+00 : f32
    %20 = vector.broadcast %cst_9 : f32 to vector<3x8xf32>
    %c0_10 = arith.constant 0 : index
    %c0_11 = arith.constant 0 : index
    %c0_12 = arith.constant 0 : index
    %21 = vector.load %arg2[%c0_10, %c0_11, %c0_12] : memref<1x3x8xf32, #tpu.memory_space<vmem>>, vector<1x3x8xf32>
    %22 = vector.shape_cast %21 : vector<1x3x8xf32> to vector<3x8xf32>
    %23 = vector.shape_cast %20 : vector<3x8xf32> to vector<1x3x8xf32>
    tpu.vector_store %arg2[%c0_10, %c0_11, %c0_12], %23 {strides = array<i32>} : memref<1x3x8xf32, #tpu.memory_space<vmem>>, vector<1x3x8xf32>,
    %cst_13 = arith.constant 0.000000e+00 : f32
    %24 = vector.broadcast %cst_13 : f32 to vector<1x1xf32>
    %c0_i32 = arith.constant 0 : i32
    %c8_i32 = arith.constant 8 : i32
    %25 = arith.addi %c0_i32, %c8_i32 : i32
    %c1_i32 = arith.constant 1 : i32
    %26 = scf.for %arg4 = %c0_i32 to %25 step %c1_i32 iter_args(%arg5 = %24) -> (vector<1x1xf32>)  : i32 {
      %27 = vector.broadcast %arg5 : vector<1x1xf32> to vector<1x128xf32>
      %28 = arith.cmpf oeq, %7, %27 : vector<1x128xf32>
      %cst_15 = arith.constant 0.000000e+00 : f32
      %29 = vector.broadcast %cst_15 : f32 to vector<1x128xf32>
      %30 = arith.select %28, %1, %29 : vector<1x128xi1>, vector<1x128xf32>
      %cst_16 = arith.constant dense<0.000000e+00> : vector<1xf32>
      %31 = vector.multi_reduction <add>, %30, %cst_16 [1] : vector<1x128xf32> to vector<1xf32>
      %32 = vector.shape_cast %31 : vector<1xf32> to vector<1x1xf32>
      %cst_17 = arith.constant 0.000000e+00 : f32
      %33 = vector.broadcast %cst_17 : f32 to vector<1x128xf32>
      %34 = arith.select %28, %3, %33 : vector<1x128xi1>, vector<1x128xf32>
      %cst_18 = arith.constant dense<0.000000e+00> : vector<1xf32>
      %35 = vector.multi_reduction <add>, %34, %cst_18 [1] : vector<1x128xf32> to vector<1xf32>
      %36 = vector.shape_cast %35 : vector<1xf32> to vector<1x1xf32>
      %cst_19 = arith.constant 0.000000e+00 : f32
      %37 = vector.broadcast %cst_19 : f32 to vector<1x128xf32>
      %38 = arith.select %28, %5, %37 : vector<1x128xi1>, vector<1x128xf32>
      %cst_20 = arith.constant dense<0.000000e+00> : vector<1xf32>
      %39 = vector.multi_reduction <add>, %38, %cst_20 [1] : vector<1x128xf32> to vector<1xf32>
      %40 = vector.shape_cast %39 : vector<1xf32> to vector<1x1xf32>
      %41 = vector.broadcast %arg4 : i32 to vector<1x8xi32>
      %42 = arith.cmpi eq, %19, %41 : vector<1x8xi32>
      %c0_21 = arith.constant 0 : index
      %c0_22 = arith.constant 0 : index
      %c0_23 = arith.constant 0 : index
      %43 = vector.load %arg2[%c0_21, %c0_22, %c0_23] : memref<1x3x8xf32, #tpu.memory_space<vmem>>, vector<1x1x8xf32>
      %44 = vector.shape_cast %43 : vector<1x1x8xf32> to vector<1x8xf32>
      %45 = vector.shape_cast %32 : vector<1x1xf32> to vector<1x1xf32>
      %46 = vector.broadcast %45 : vector<1x1xf32> to vector<1x8xf32>
      %47 = arith.select %42, %46, %44 : vector<1x8xi1>, vector<1x8xf32>
      %c0_24 = arith.constant 0 : index
      %c0_25 = arith.constant 0 : index
      %c0_26 = arith.constant 0 : index
      %48 = vector.load %arg2[%c0_24, %c0_25, %c0_26] : memref<1x3x8xf32, #tpu.memory_space<vmem>>, vector<1x1x8xf32>
      %49 = vector.shape_cast %48 : vector<1x1x8xf32> to vector<1x8xf32>
      %50 = vector.shape_cast %47 : vector<1x8xf32> to vector<1x1x8xf32>
      tpu.vector_store %arg2[%c0_24, %c0_25, %c0_26], %50 {strides = array<i32>} : memref<1x3x8xf32, #tpu.memory_space<vmem>>, vector<1x1x8xf32>,
      %c0_27 = arith.constant 0 : index
      %c1_28 = arith.constant 1 : index
      %c0_29 = arith.constant 0 : index
      %51 = vector.load %arg2[%c0_27, %c1_28, %c0_29] : memref<1x3x8xf32, #tpu.memory_space<vmem>>, vector<1x1x8xf32>
      %52 = vector.shape_cast %51 : vector<1x1x8xf32> to vector<1x8xf32>
      %53 = vector.shape_cast %36 : vector<1x1xf32> to vector<1x1xf32>
      %54 = vector.broadcast %53 : vector<1x1xf32> to vector<1x8xf32>
      %55 = arith.select %42, %54, %52 : vector<1x8xi1>, vector<1x8xf32>
      %c0_30 = arith.constant 0 : index
      %c1_31 = arith.constant 1 : index
      %c0_32 = arith.constant 0 : index
      %56 = vector.load %arg2[%c0_30, %c1_31, %c0_32] : memref<1x3x8xf32, #tpu.memory_space<vmem>>, vector<1x1x8xf32>
      %57 = vector.shape_cast %56 : vector<1x1x8xf32> to vector<1x8xf32>
      %58 = vector.shape_cast %55 : vector<1x8xf32> to vector<1x1x8xf32>
      tpu.vector_store %arg2[%c0_30, %c1_31, %c0_32], %58 {strides = array<i32>} : memref<1x3x8xf32, #tpu.memory_space<vmem>>, vector<1x1x8xf32>,
      %c0_33 = arith.constant 0 : index
      %c2_34 = arith.constant 2 : index
      %c0_35 = arith.constant 0 : index
      %59 = vector.load %arg2[%c0_33, %c2_34, %c0_35] : memref<1x3x8xf32, #tpu.memory_space<vmem>>, vector<1x1x8xf32>
      %60 = vector.shape_cast %59 : vector<1x1x8xf32> to vector<1x8xf32>
      %61 = vector.shape_cast %40 : vector<1x1xf32> to vector<1x1xf32>
      %62 = vector.broadcast %61 : vector<1x1xf32> to vector<1x8xf32>
      %63 = arith.select %42, %62, %60 : vector<1x8xi1>, vector<1x8xf32>
      %c0_36 = arith.constant 0 : index
      %c2_37 = arith.constant 2 : index
      %c0_38 = arith.constant 0 : index
      %64 = vector.load %arg2[%c0_36, %c2_37, %c0_38] : memref<1x3x8xf32, #tpu.memory_space<vmem>>, vector<1x1x8xf32>
      %65 = vector.shape_cast %64 : vector<1x1x8xf32> to vector<1x8xf32>
      %66 = vector.shape_cast %63 : vector<1x8xf32> to vector<1x1x8xf32>
      tpu.vector_store %arg2[%c0_36, %c2_37, %c0_38], %66 {strides = array<i32>} : memref<1x3x8xf32, #tpu.memory_space<vmem>>, vector<1x1x8xf32>,
      %67 = vector.broadcast %32 : vector<1x1xf32> to vector<1x128xf32>
      %68 = arith.mulf %67, %1 : vector<1x128xf32>
      %69 = vector.broadcast %36 : vector<1x1xf32> to vector<1x128xf32>
      %70 = arith.mulf %69, %3 : vector<1x128xf32>
      %71 = arith.addf %68, %70 : vector<1x128xf32>
      %72 = vector.broadcast %40 : vector<1x1xf32> to vector<1x128xf32>
      %73 = arith.mulf %72, %5 : vector<1x128xf32>
      %74 = arith.addf %71, %73 : vector<1x128xf32>
      %75 = arith.mulf %32, %32 : vector<1x1xf32>
      %76 = arith.mulf %36, %36 : vector<1x1xf32>
      %77 = arith.addf %75, %76 : vector<1x1xf32>
      %78 = arith.mulf %40, %40 : vector<1x1xf32>
      %79 = arith.addf %77, %78 : vector<1x1xf32>
      %cst_39 = arith.constant 2.000000e+00 : f32
      %80 = vector.broadcast %cst_39 : f32 to vector<1x128xf32>
      %81 = arith.mulf %80, %74 : vector<1x128xf32>
      %82 = arith.subf %14, %81 : vector<1x128xf32>
      %83 = vector.broadcast %79 : vector<1x1xf32> to vector<1x128xf32>
      %84 = arith.addf %82, %83 : vector<1x128xf32>
      %cst_40 = arith.constant 0.000000e+00 : f32
      %85 = vector.broadcast %cst_40 : f32 to vector<1x128xf32>
      %86 = arith.maximumf %84, %85 : vector<1x128xf32>
      %c0_41 = arith.constant 0 : index
      %c0_42 = arith.constant 0 : index
      %87 = vector.load %arg3[%c0_41, %c0_42] : memref<1x128xf32, #tpu.memory_space<vmem>>, vector<1x128xf32>
      %88 = arith.minimumf %87, %86 : vector<1x128xf32>
      %c0_43 = arith.constant 0 : index
      %c0_44 = arith.constant 0 : index
      %89 = vector.load %arg3[%c0_43, %c0_44] : memref<1x128xf32, #tpu.memory_space<vmem>>, vector<1x128xf32>
      tpu.vector_store %arg3[%c0_43, %c0_44], %88 {strides = array<i32>} : memref<1x128xf32, #tpu.memory_space<vmem>>, vector<1x128xf32>,
      %cst_45 = arith.constant dense<0xFF800000> : vector<1xf32>
      %90 = vector.multi_reduction <maximumf>, %88, %cst_45 [1] : vector<1x128xf32> to vector<1xf32>
      %91 = vector.shape_cast %90 : vector<1xf32> to vector<1x1xf32>
      %92 = vector.broadcast %91 : vector<1x1xf32> to vector<1x128xf32>
      %93 = arith.cmpf oge, %88, %92 : vector<1x128xf32>
      %cst_46 = arith.constant 1.280000e+02 : f32
      %94 = vector.broadcast %cst_46 : f32 to vector<1x128xf32>
      %95 = arith.select %93, %7, %94 : vector<1x128xi1>, vector<1x128xf32>
      %cst_47 = arith.constant dense<0x7F800000> : vector<1xf32>
      %96 = vector.multi_reduction <minimumf>, %95, %cst_47 [1] : vector<1x128xf32> to vector<1xf32>
      %97 = vector.shape_cast %96 : vector<1xf32> to vector<1x1xf32>
      scf.yield %97 : vector<1x1xf32>
    }
    %c8_i32_14 = arith.constant 8 : i32
    return
  }
  func.func @transform_0(%arg0: i32) -> (i32, i32, i32) {
    %c0_i32 = arith.constant 0 : i32
    %c0_i32_0 = arith.constant 0 : i32
    %c0_i32_1 = arith.constant 0 : i32
    return %arg0, %c0_i32, %c0_i32_0 : i32, i32, i32
  }
  func.func @transform_1(%arg0: i32) -> (i32, i32, i32) {
    %c0_i32 = arith.constant 0 : i32
    %c0_i32_0 = arith.constant 0 : i32
    %c0_i32_1 = arith.constant 0 : i32
    return %arg0, %c0_i32, %c0_i32_0 : i32, i32, i32
  }
}

module attributes {stable_mosaic.version = 11 : i64} {
  func.func @_fps_kernel(%arg0: i32, %arg1: memref<1x3x128xf32, #tpu.memory_space<vmem>>, %arg2: memref<1x3x4xf32, #tpu.memory_space<vmem>>, %arg3: memref<1x128xf32, #tpu.memory_space<vmem>>) attributes {dimension_semantics = [#tpu.dimension_semantics<parallel>], iteration_bounds = array<i64: 2>, scalar_prefetch = 0 : i64, scratch_operands = 1 : i64, tpu.core_type = #tpu.core_type<tc>, window_params = [{transform_indices = @transform_0, window_bounds = array<i64: 1, 3, 128>}, {transform_indices = @transform_1, window_bounds = array<i64: 1, 3, 4>}]} {
    %c0 = arith.constant 0 : index
    %c0_0 = arith.constant 0 : index
    %c0_1 = arith.constant 0 : index
    %0 = vector.load %arg1[%c0, %c0_0, %c0_1] : memref<1x3x128xf32, #tpu.memory_space<vmem>>, vector<1x1x128xf32>
    %1 = vector.shape_cast %0 : vector<1x1x128xf32> to vector<1x128xf32>
    %c0_2 = arith.constant 0 : index
    %c1 = arith.constant 1 : index
    %c0_3 = arith.constant 0 : index
    %2 = vector.load %arg1[%c0_2, %c1, %c0_3] : memref<1x3x128xf32, #tpu.memory_space<vmem>>, vector<1x1x128xf32>
    %3 = vector.shape_cast %2 : vector<1x1x128xf32> to vector<1x128xf32>
    %c0_4 = arith.constant 0 : index
    %c2 = arith.constant 2 : index
    %c0_5 = arith.constant 0 : index
    %4 = vector.load %arg1[%c0_4, %c2, %c0_5] : memref<1x3x128xf32, #tpu.memory_space<vmem>>, vector<1x1x128xf32>
    %5 = vector.shape_cast %4 : vector<1x1x128xf32> to vector<1x128xf32>
    %6 = tpu.iota {dimensions = array<i32: 1>} : vector<1x128xi32>
    %7 = arith.sitofp %6 : vector<1x128xi32> to vector<1x128xf32>
    %c8_i32 = arith.constant 8 : i32
    %8 = vector.broadcast %c8_i32 : i32 to vector<1x128xi32>
    %9 = arith.cmpi slt, %6, %8 : vector<1x128xi32>
    %10 = arith.mulf %1, %1 : vector<1x128xf32>
    %11 = arith.mulf %3, %3 : vector<1x128xf32>
    %12 = arith.addf %10, %11 : vector<1x128xf32>
    %13 = arith.mulf %5, %5 : vector<1x128xf32>
    %14 = arith.addf %12, %13 : vector<1x128xf32>
    %cst = arith.constant 1.000000e+30 : f32
    %cst_6 = arith.constant -1.000000e+00 : f32
    %15 = vector.broadcast %cst : f32 to vector<1x128xf32>
    %16 = vector.broadcast %cst_6 : f32 to vector<1x128xf32>
    %17 = arith.select %9, %15, %16 : vector<1x128xi1>, vector<1x128xf32>
    %c0_7 = arith.constant 0 : index
    %c0_8 = arith.constant 0 : index
    %18 = vector.load %arg3[%c0_7, %c0_8] : memref<1x128xf32, #tpu.memory_space<vmem>>, vector<1x128xf32>
    tpu.vector_store %arg3[%c0_7, %c0_8], %17 {strides = array<i32>} : memref<1x128xf32, #tpu.memory_space<vmem>>, vector<1x128xf32>,
    %19 = tpu.iota {dimensions = array<i32: 1>} : vector<1x4xi32>
    %cst_9 = arith.constant 0.000000e+00 : f32
    %20 = vector.broadcast %cst_9 : f32 to vector<3x4xf32>
    %c0_10 = arith.constant 0 : index
    %c0_11 = arith.constant 0 : index
    %c0_12 = arith.constant 0 : index
    %21 = vector.load %arg2[%c0_10, %c0_11, %c0_12] : memref<1x3x4xf32, #tpu.memory_space<vmem>>, vector<1x3x4xf32>
    %22 = vector.shape_cast %21 : vector<1x3x4xf32> to vector<3x4xf32>
    %23 = vector.shape_cast %20 : vector<3x4xf32> to vector<1x3x4xf32>
    tpu.vector_store %arg2[%c0_10, %c0_11, %c0_12], %23 {strides = array<i32>} : memref<1x3x4xf32, #tpu.memory_space<vmem>>, vector<1x3x4xf32>,
    %cst_13 = arith.constant 0.000000e+00 : f32
    %24 = vector.broadcast %cst_13 : f32 to vector<1x1xf32>
    %c0_i32 = arith.constant 0 : i32
    %c4_i32 = arith.constant 4 : i32
    %25 = arith.addi %c0_i32, %c4_i32 : i32
    %c1_i32 = arith.constant 1 : i32
    %26 = scf.for %arg4 = %c0_i32 to %25 step %c1_i32 iter_args(%arg5 = %24) -> (vector<1x1xf32>)  : i32 {
      %27 = vector.broadcast %arg5 : vector<1x1xf32> to vector<1x128xf32>
      %28 = arith.cmpf oeq, %7, %27 : vector<1x128xf32>
      %cst_15 = arith.constant 0.000000e+00 : f32
      %29 = vector.broadcast %cst_15 : f32 to vector<1x128xf32>
      %30 = arith.select %28, %1, %29 : vector<1x128xi1>, vector<1x128xf32>
      %cst_16 = arith.constant dense<0.000000e+00> : vector<1xf32>
      %31 = vector.multi_reduction <add>, %30, %cst_16 [1] : vector<1x128xf32> to vector<1xf32>
      %32 = vector.shape_cast %31 : vector<1xf32> to vector<1x1xf32>
      %cst_17 = arith.constant 0.000000e+00 : f32
      %33 = vector.broadcast %cst_17 : f32 to vector<1x128xf32>
      %34 = arith.select %28, %3, %33 : vector<1x128xi1>, vector<1x128xf32>
      %cst_18 = arith.constant dense<0.000000e+00> : vector<1xf32>
      %35 = vector.multi_reduction <add>, %34, %cst_18 [1] : vector<1x128xf32> to vector<1xf32>
      %36 = vector.shape_cast %35 : vector<1xf32> to vector<1x1xf32>
      %cst_19 = arith.constant 0.000000e+00 : f32
      %37 = vector.broadcast %cst_19 : f32 to vector<1x128xf32>
      %38 = arith.select %28, %5, %37 : vector<1x128xi1>, vector<1x128xf32>
      %cst_20 = arith.constant dense<0.000000e+00> : vector<1xf32>
      %39 = vector.multi_reduction <add>, %38, %cst_20 [1] : vector<1x128xf32> to vector<1xf32>
      %40 = vector.shape_cast %39 : vector<1xf32> to vector<1x1xf32>
      %41 = vector.broadcast %arg4 : i32 to vector<1x4xi32>
      %42 = arith.cmpi eq, %19, %41 : vector<1x4xi32>
      %c0_21 = arith.constant 0 : index
      %c0_22 = arith.constant 0 : index
      %c0_23 = arith.constant 0 : index
      %43 = vector.load %arg2[%c0_21, %c0_22, %c0_23] : memref<1x3x4xf32, #tpu.memory_space<vmem>>, vector<1x1x4xf32>
      %44 = vector.shape_cast %43 : vector<1x1x4xf32> to vector<1x4xf32>
      %45 = vector.shape_cast %32 : vector<1x1xf32> to vector<1x1xf32>
      %46 = vector.broadcast %45 : vector<1x1xf32> to vector<1x4xf32>
      %47 = arith.select %42, %46, %44 : vector<1x4xi1>, vector<1x4xf32>
      %c0_24 = arith.constant 0 : index
      %c0_25 = arith.constant 0 : index
      %c0_26 = arith.constant 0 : index
      %48 = vector.load %arg2[%c0_24, %c0_25, %c0_26] : memref<1x3x4xf32, #tpu.memory_space<vmem>>, vector<1x1x4xf32>
      %49 = vector.shape_cast %48 : vector<1x1x4xf32> to vector<1x4xf32>
      %50 = vector.shape_cast %47 : vector<1x4xf32> to vector<1x1x4xf32>
      tpu.vector_store %arg2[%c0_24, %c0_25, %c0_26], %50 {strides = array<i32>} : memref<1x3x4xf32, #tpu.memory_space<vmem>>, vector<1x1x4xf32>,
      %c0_27 = arith.constant 0 : index
      %c1_28 = arith.constant 1 : index
      %c0_29 = arith.constant 0 : index
      %51 = vector.load %arg2[%c0_27, %c1_28, %c0_29] : memref<1x3x4xf32, #tpu.memory_space<vmem>>, vector<1x1x4xf32>
      %52 = vector.shape_cast %51 : vector<1x1x4xf32> to vector<1x4xf32>
      %53 = vector.shape_cast %36 : vector<1x1xf32> to vector<1x1xf32>
      %54 = vector.broadcast %53 : vector<1x1xf32> to vector<1x4xf32>
      %55 = arith.select %42, %54, %52 : vector<1x4xi1>, vector<1x4xf32>
      %c0_30 = arith.constant 0 : index
      %c1_31 = arith.constant 1 : index
      %c0_32 = arith.constant 0 : index
      %56 = vector.load %arg2[%c0_30, %c1_31, %c0_32] : memref<1x3x4xf32, #tpu.memory_space<vmem>>, vector<1x1x4xf32>
      %57 = vector.shape_cast %56 : vector<1x1x4xf32> to vector<1x4xf32>
      %58 = vector.shape_cast %55 : vector<1x4xf32> to vector<1x1x4xf32>
      tpu.vector_store %arg2[%c0_30, %c1_31, %c0_32], %58 {strides = array<i32>} : memref<1x3x4xf32, #tpu.memory_space<vmem>>, vector<1x1x4xf32>,
      %c0_33 = arith.constant 0 : index
      %c2_34 = arith.constant 2 : index
      %c0_35 = arith.constant 0 : index
      %59 = vector.load %arg2[%c0_33, %c2_34, %c0_35] : memref<1x3x4xf32, #tpu.memory_space<vmem>>, vector<1x1x4xf32>
      %60 = vector.shape_cast %59 : vector<1x1x4xf32> to vector<1x4xf32>
      %61 = vector.shape_cast %40 : vector<1x1xf32> to vector<1x1xf32>
      %62 = vector.broadcast %61 : vector<1x1xf32> to vector<1x4xf32>
      %63 = arith.select %42, %62, %60 : vector<1x4xi1>, vector<1x4xf32>
      %c0_36 = arith.constant 0 : index
      %c2_37 = arith.constant 2 : index
      %c0_38 = arith.constant 0 : index
      %64 = vector.load %arg2[%c0_36, %c2_37, %c0_38] : memref<1x3x4xf32, #tpu.memory_space<vmem>>, vector<1x1x4xf32>
      %65 = vector.shape_cast %64 : vector<1x1x4xf32> to vector<1x4xf32>
      %66 = vector.shape_cast %63 : vector<1x4xf32> to vector<1x1x4xf32>
      tpu.vector_store %arg2[%c0_36, %c2_37, %c0_38], %66 {strides = array<i32>} : memref<1x3x4xf32, #tpu.memory_space<vmem>>, vector<1x1x4xf32>,
      %67 = vector.broadcast %32 : vector<1x1xf32> to vector<1x128xf32>
      %68 = arith.mulf %67, %1 : vector<1x128xf32>
      %69 = vector.broadcast %36 : vector<1x1xf32> to vector<1x128xf32>
      %70 = arith.mulf %69, %3 : vector<1x128xf32>
      %71 = arith.addf %68, %70 : vector<1x128xf32>
      %72 = vector.broadcast %40 : vector<1x1xf32> to vector<1x128xf32>
      %73 = arith.mulf %72, %5 : vector<1x128xf32>
      %74 = arith.addf %71, %73 : vector<1x128xf32>
      %75 = arith.mulf %32, %32 : vector<1x1xf32>
      %76 = arith.mulf %36, %36 : vector<1x1xf32>
      %77 = arith.addf %75, %76 : vector<1x1xf32>
      %78 = arith.mulf %40, %40 : vector<1x1xf32>
      %79 = arith.addf %77, %78 : vector<1x1xf32>
      %cst_39 = arith.constant 2.000000e+00 : f32
      %80 = vector.broadcast %cst_39 : f32 to vector<1x128xf32>
      %81 = arith.mulf %80, %74 : vector<1x128xf32>
      %82 = arith.subf %14, %81 : vector<1x128xf32>
      %83 = vector.broadcast %79 : vector<1x1xf32> to vector<1x128xf32>
      %84 = arith.addf %82, %83 : vector<1x128xf32>
      %cst_40 = arith.constant 0.000000e+00 : f32
      %85 = vector.broadcast %cst_40 : f32 to vector<1x128xf32>
      %86 = arith.maximumf %84, %85 : vector<1x128xf32>
      %c0_41 = arith.constant 0 : index
      %c0_42 = arith.constant 0 : index
      %87 = vector.load %arg3[%c0_41, %c0_42] : memref<1x128xf32, #tpu.memory_space<vmem>>, vector<1x128xf32>
      %88 = arith.minimumf %87, %86 : vector<1x128xf32>
      %c0_43 = arith.constant 0 : index
      %c0_44 = arith.constant 0 : index
      %89 = vector.load %arg3[%c0_43, %c0_44] : memref<1x128xf32, #tpu.memory_space<vmem>>, vector<1x128xf32>
      tpu.vector_store %arg3[%c0_43, %c0_44], %88 {strides = array<i32>} : memref<1x128xf32, #tpu.memory_space<vmem>>, vector<1x128xf32>,
      %cst_45 = arith.constant dense<0xFF800000> : vector<1xf32>
      %90 = vector.multi_reduction <maximumf>, %88, %cst_45 [1] : vector<1x128xf32> to vector<1xf32>
      %91 = vector.shape_cast %90 : vector<1xf32> to vector<1x1xf32>
      %92 = vector.broadcast %91 : vector<1x1xf32> to vector<1x128xf32>
      %93 = arith.cmpf oge, %88, %92 : vector<1x128xf32>
      %cst_46 = arith.constant 1.280000e+02 : f32
      %94 = vector.broadcast %cst_46 : f32 to vector<1x128xf32>
      %95 = arith.select %93, %7, %94 : vector<1x128xi1>, vector<1x128xf32>
      %cst_47 = arith.constant dense<0x7F800000> : vector<1xf32>
      %96 = vector.multi_reduction <minimumf>, %95, %cst_47 [1] : vector<1x128xf32> to vector<1xf32>
      %97 = vector.shape_cast %96 : vector<1xf32> to vector<1x1xf32>
      scf.yield %97 : vector<1x1xf32>
    }
    %c4_i32_14 = arith.constant 4 : i32
    return
  }
  func.func @transform_0(%arg0: i32) -> (i32, i32, i32) {
    %c0_i32 = arith.constant 0 : i32
    %c0_i32_0 = arith.constant 0 : i32
    %c0_i32_1 = arith.constant 0 : i32
    return %arg0, %c0_i32, %c0_i32_0 : i32, i32, i32
  }
  func.func @transform_1(%arg0: i32) -> (i32, i32, i32) {
    %c0_i32 = arith.constant 0 : i32
    %c0_i32_0 = arith.constant 0 : i32
    %c0_i32_1 = arith.constant 0 : i32
    return %arg0, %c0_i32, %c0_i32_0 : i32, i32, i32
  }
}

module attributes {stable_mosaic.version = 11 : i64} {
  func.func @_mlp_kernel(%arg0: i32, %arg1: memref<128x1xf32, #tpu.memory_space<vmem>>, %arg2: memref<1x8xf32, #tpu.memory_space<vmem>>, %arg3: memref<1x8xf32, #tpu.memory_space<vmem>>, %arg4: memref<8x16xf32, #tpu.memory_space<vmem>>, %arg5: memref<1x16xf32, #tpu.memory_space<vmem>>, %arg6: memref<128x16xf32, #tpu.memory_space<vmem>>) attributes {dimension_semantics = [#tpu.dimension_semantics<parallel>], iteration_bounds = array<i64: 1>, scalar_prefetch = 0 : i64, scratch_operands = 0 : i64, tpu.core_type = #tpu.core_type<tc>, window_params = [{transform_indices = @transform_0, window_bounds = array<i64: 128, 1>}, {pipeline_mode = #tpu.pipeline_mode<synchronous>, transform_indices = @transform_1, window_bounds = array<i64: 1, 8>}, {pipeline_mode = #tpu.pipeline_mode<synchronous>, transform_indices = @transform_2, window_bounds = array<i64: 1, 8>}, {pipeline_mode = #tpu.pipeline_mode<synchronous>, transform_indices = @transform_3, window_bounds = array<i64: 8, 16>}, {pipeline_mode = #tpu.pipeline_mode<synchronous>, transform_indices = @transform_4, window_bounds = array<i64: 1, 16>}, {transform_indices = @transform_5, window_bounds = array<i64: 128, 16>}]} {
    %c0 = arith.constant 0 : index
    %c0_0 = arith.constant 0 : index
    %0 = vector.load %arg1[%c0, %c0_0] : memref<128x1xf32, #tpu.memory_space<vmem>>, vector<128x1xf32>
    %c0_1 = arith.constant 0 : index
    %c0_2 = arith.constant 0 : index
    %1 = vector.load %arg2[%c0_1, %c0_2] : memref<1x8xf32, #tpu.memory_space<vmem>>, vector<1x8xf32>
    %cst = arith.constant dense<0.000000e+00> : vector<128x8xf32>
    %2 = tpu.matmul %0, %1, %cst {dimension_numbers = #tpu.dot_dimension_numbers<[1], [0], [0], [1], [0, 0, 1, 1], [], []>} : vector<128x1xf32>, vector<1x8xf32>, vector<128x8xf32> -> vector<128x8xf32>
    %c0_3 = arith.constant 0 : index
    %c0_4 = arith.constant 0 : index
    %3 = vector.load %arg3[%c0_3, %c0_4] : memref<1x8xf32, #tpu.memory_space<vmem>>, vector<1x8xf32>
    %4 = vector.broadcast %3 : vector<1x8xf32> to vector<128x8xf32>
    %5 = arith.addf %2, %4 : vector<128x8xf32>
    %cst_5 = arith.constant 0.000000e+00 : f32
    %6 = vector.broadcast %cst_5 : f32 to vector<128x8xf32>
    %7 = arith.cmpf oge, %5, %6 : vector<128x8xf32>
    %cst_6 = arith.constant 1.000000e-01 : f32
    %8 = vector.broadcast %cst_6 : f32 to vector<128x8xf32>
    %9 = arith.mulf %8, %5 : vector<128x8xf32>
    %10 = arith.select %7, %5, %9 : vector<128x8xi1>, vector<128x8xf32>
    %c0_7 = arith.constant 0 : index
    %c0_8 = arith.constant 0 : index
    %11 = vector.load %arg4[%c0_7, %c0_8] : memref<8x16xf32, #tpu.memory_space<vmem>>, vector<8x16xf32>
    %c0_9 = arith.constant 0 : index
    %c0_10 = arith.constant 0 : index
    %12 = vector.load %arg5[%c0_9, %c0_10] : memref<1x16xf32, #tpu.memory_space<vmem>>, vector<1x16xf32>
    %cst_11 = arith.constant dense<0.000000e+00> : vector<128x16xf32>
    %13 = tpu.matmul %10, %11, %cst_11 {dimension_numbers = #tpu.dot_dimension_numbers<[1], [0], [0], [1], [0, 0, 1, 1], [], []>} : vector<128x8xf32>, vector<8x16xf32>, vector<128x16xf32> -> vector<128x16xf32>
    %14 = vector.broadcast %12 : vector<1x16xf32> to vector<128x16xf32>
    %15 = arith.addf %13, %14 : vector<128x16xf32>
    %cst_12 = arith.constant 0.000000e+00 : f32
    %16 = vector.broadcast %cst_12 : f32 to vector<128x16xf32>
    %17 = arith.cmpf oge, %15, %16 : vector<128x16xf32>
    %cst_13 = arith.constant 1.000000e-01 : f32
    %18 = vector.broadcast %cst_13 : f32 to vector<128x16xf32>
    %19 = arith.mulf %18, %15 : vector<128x16xf32>
    %20 = arith.select %17, %15, %19 : vector<128x16xi1>, vector<128x16xf32>
    %c0_14 = arith.constant 0 : index
    %c0_15 = arith.constant 0 : index
    %21 = vector.load %arg6[%c0_14, %c0_15] : memref<128x16xf32, #tpu.memory_space<vmem>>, vector<128x16xf32>
    tpu.vector_store %arg6[%c0_14, %c0_15], %20 {strides = array<i32>} : memref<128x16xf32, #tpu.memory_space<vmem>>, vector<128x16xf32>,
    return
  }
  func.func @transform_0(%arg0: i32) -> (i32, i32) {
    %c0_i32 = arith.constant 0 : i32
    %c0_i32_0 = arith.constant 0 : i32
    return %arg0, %c0_i32 : i32, i32
  }
  func.func @transform_1(%arg0: i32) -> (i32, i32) {
    %c0_i32 = arith.constant 0 : i32
    %c0_i32_0 = arith.constant 0 : i32
    %c0_i32_1 = arith.constant 0 : i32
    return %c0_i32, %c0_i32_0 : i32, i32
  }
  func.func @transform_2(%arg0: i32) -> (i32, i32) {
    %c0_i32 = arith.constant 0 : i32
    %c0_i32_0 = arith.constant 0 : i32
    %c0_i32_1 = arith.constant 0 : i32
    return %c0_i32, %c0_i32_0 : i32, i32
  }
  func.func @transform_3(%arg0: i32) -> (i32, i32) {
    %c0_i32 = arith.constant 0 : i32
    %c0_i32_0 = arith.constant 0 : i32
    %c0_i32_1 = arith.constant 0 : i32
    return %c0_i32, %c0_i32_0 : i32, i32
  }
  func.func @transform_4(%arg0: i32) -> (i32, i32) {
    %c0_i32 = arith.constant 0 : i32
    %c0_i32_0 = arith.constant 0 : i32
    %c0_i32_1 = arith.constant 0 : i32
    return %c0_i32, %c0_i32_0 : i32, i32
  }
  func.func @transform_5(%arg0: i32) -> (i32, i32) {
    %c0_i32 = arith.constant 0 : i32
    %c0_i32_0 = arith.constant 0 : i32
    return %arg0, %c0_i32 : i32, i32
  }
}

module attributes {stable_mosaic.version = 11 : i64} {
  func.func @_gauss_kernel(%arg0: i32, %arg1: i32, %arg2: i32, %arg3: memref<1x64x8xf32, #tpu.memory_space<vmem>>, %arg4: memref<1x64x8xf32, #tpu.memory_space<vmem>>, %arg5: memref<1x64x17xbf16, #tpu.memory_space<vmem>>, %arg6: memref<16x16xf32, #tpu.memory_space<vmem>>, %arg7: memref<1x16xf32, #tpu.memory_space<vmem>>, %arg8: memref<1x64x16xf32, #tpu.memory_space<vmem>>, %arg9: memref<64x17xf32, #tpu.memory_space<vmem>>) attributes {dimension_semantics = [#tpu.dimension_semantics<parallel>, #tpu.dimension_semantics<parallel>, #tpu.dimension_semantics<arbitrary>], iteration_bounds = array<i64: 2, 1, 1>, scalar_prefetch = 0 : i64, scratch_operands = 1 : i64, tpu.core_type = #tpu.core_type<tc>, window_params = [{transform_indices = @transform_0, window_bounds = array<i64: 1, 64, 8>}, {transform_indices = @transform_1, window_bounds = array<i64: 1, 64, 8>}, {transform_indices = @transform_2, window_bounds = array<i64: 1, 64, 17>}, {pipeline_mode = #tpu.pipeline_mode<synchronous>, transform_indices = @transform_3, window_bounds = array<i64: 16, 16>}, {pipeline_mode = #tpu.pipeline_mode<synchronous>, transform_indices = @transform_4, window_bounds = array<i64: 1, 16>}, {transform_indices = @transform_5, window_bounds = array<i64: 1, 64, 16>}]} {
    %c0_i32 = arith.constant 0 : i32
    %0 = arith.cmpi eq, %arg2, %c0_i32 : i32
    %1 = arith.extui %0 : i1 to i32
    %c0_i32_0 = arith.constant 0 : i32
    %2 = arith.cmpi ne, %1, %c0_i32_0 : i32
    scf.if %2 {
      %cst_21 = arith.constant 0.000000e+00 : f32
      %35 = vector.broadcast %cst_21 : f32 to vector<64x17xf32>
      %c0_22 = arith.constant 0 : index
      %c0_23 = arith.constant 0 : index
      %36 = vector.load %arg9[%c0_22, %c0_23] : memref<64x17xf32, #tpu.memory_space<vmem>>, vector<64x17xf32>
      tpu.vector_store %arg9[%c0_22, %c0_23], %35 {strides = array<i32>} : memref<64x17xf32, #tpu.memory_space<vmem>>, vector<64x17xf32>,
    } else {
    }
    %c0 = arith.constant 0 : index
    %c0_1 = arith.constant 0 : index
    %c0_2 = arith.constant 0 : index
    %3 = vector.load %arg4[%c0, %c0_1, %c0_2] : memref<1x64x8xf32, #tpu.memory_space<vmem>>, vector<1x64x8xf32>
    %4 = vector.shape_cast %3 : vector<1x64x8xf32> to vector<64x8xf32>
    %c0_3 = arith.constant 0 : index
    %c0_4 = arith.constant 0 : index
    %c0_5 = arith.constant 0 : index
    %5 = vector.load %arg5[%c0_3, %c0_4, %c0_5] : memref<1x64x17xbf16, #tpu.memory_space<vmem>>, vector<1x64x17xbf16>
    %6 = vector.shape_cast %5 : vector<1x64x17xbf16> to vector<64x17xbf16>
    %c0_6 = arith.constant 0 : index
    %c0_7 = arith.constant 0 : index
    %c0_8 = arith.constant 0 : index
    %7 = vector.load %arg3[%c0_6, %c0_7, %c0_8] : memref<1x64x8xf32, #tpu.memory_space<vmem>>, vector<1x64x8xf32>
    %8 = vector.shape_cast %7 : vector<1x64x8xf32> to vector<64x8xf32>
    %cst = arith.constant dense<0.000000e+00> : vector<64x64xf32>
    %9 = tpu.matmul %8, %4, %cst {dimension_numbers = #tpu.dot_dimension_numbers<[1], [1], [0], [0], [0, 0, 1, 0], [], []>} : vector<64x8xf32>, vector<64x8xf32>, vector<64x64xf32> -> vector<64x64xf32>
    %cst_9 = arith.constant 0.000000e+00 : f32
    %10 = vector.broadcast %cst_9 : f32 to vector<64x64xf32>
    %11 = arith.maximumf %9, %10 : vector<64x64xf32>
    %cst_10 = arith.constant -5.000000e-01 : f32
    %12 = vector.broadcast %cst_10 : f32 to vector<64x64xf32>
    %13 = arith.mulf %12, %11 : vector<64x64xf32>
    %14 = math.exp %13 : vector<64x64xf32>
    %15 = arith.mulf %14, %14 : vector<64x64xf32>
    %16 = arith.mulf %15, %15 : vector<64x64xf32>
    %17 = arith.mulf %16, %16 : vector<64x64xf32>
    %18 = arith.mulf %17, %17 : vector<64x64xf32>
    %cst_11 = arith.constant 3.300000e-01 : f32
    %19 = vector.broadcast %cst_11 : f32 to vector<64x64xf32>
    %20 = arith.mulf %19, %18 : vector<64x64xf32>
    %cst_12 = arith.constant 3.300000e-01 : f32
    %21 = vector.broadcast %cst_12 : f32 to vector<64x64xf32>
    %22 = arith.mulf %21, %16 : vector<64x64xf32>
    %23 = arith.addf %20, %22 : vector<64x64xf32>
    %cst_13 = arith.constant 3.400000e-01 : f32
    %24 = vector.broadcast %cst_13 : f32 to vector<64x64xf32>
    %25 = arith.mulf %24, %14 : vector<64x64xf32>
    %26 = arith.addf %23, %25 : vector<64x64xf32>
    %c0_14 = arith.constant 0 : index
    %c0_15 = arith.constant 0 : index
    %27 = vector.load %arg9[%c0_14, %c0_15] : memref<64x17xf32, #tpu.memory_space<vmem>>, vector<64x17xf32>
    %28 = arith.truncf %26 : vector<64x64xf32> to vector<64x64xbf16>
    %cst_16 = arith.constant dense<0.000000e+00> : vector<64x17xf32>
    %29 = tpu.matmul %28, %6, %cst_16 {dimension_numbers = #tpu.dot_dimension_numbers<[1], [0], [0], [1], [0, 0, 1, 1], [], []>} : vector<64x64xbf16>, vector<64x17xbf16>, vector<64x17xf32> -> vector<64x17xf32>
    %30 = arith.addf %27, %29 : vector<64x17xf32>
    %c0_17 = arith.constant 0 : index
    %c0_18 = arith.constant 0 : index
    %31 = vector.load %arg9[%c0_17, %c0_18] : memref<64x17xf32, #tpu.memory_space<vmem>>, vector<64x17xf32>
    tpu.vector_store %arg9[%c0_17, %c0_18], %30 {strides = array<i32>} : memref<64x17xf32, #tpu.memory_space<vmem>>, vector<64x17xf32>,
    %c0_i32_19 = arith.constant 0 : i32
    %32 = arith.cmpi eq, %arg2, %c0_i32_19 : i32
    %33 = arith.extui %32 : i1 to i32
    %c0_i32_20 = arith.constant 0 : i32
    %34 = arith.cmpi ne, %33, %c0_i32_20 : i32
    scf.if %34 {
      %c0_21 = arith.constant 0 : index
      %c0_22 = arith.constant 0 : index
      %35 = vector.load %arg9[%c0_21, %c0_22] : memref<64x17xf32, #tpu.memory_space<vmem>>, vector<64x17xf32>
      %36 = vector.extract_strided_slice %35 {offsets = [0, 0], sizes = [64, 16], strides = [1, 1]} : vector<64x17xf32> to vector<64x16xf32>
      %37 = vector.extract_strided_slice %35 {offsets = [0, 16], sizes = [64, 1], strides = [1, 1]} : vector<64x17xf32> to vector<64x1xf32>
      %cst_23 = arith.constant 9.99999971E-10 : f32
      %38 = vector.broadcast %cst_23 : f32 to vector<64x1xf32>
      %39 = arith.addf %37, %38 : vector<64x1xf32>
      %40 = tpu.reciprocal %39 {approx = true} : vector<64x1xf32> -> vector<64x1xf32>
      %41 = vector.broadcast %40 : vector<64x1xf32> to vector<64x16xf32>
      %42 = arith.mulf %36, %41 : vector<64x16xf32>
      %c0_24 = arith.constant 0 : index
      %c0_25 = arith.constant 0 : index
      %43 = vector.load %arg6[%c0_24, %c0_25] : memref<16x16xf32, #tpu.memory_space<vmem>>, vector<16x16xf32>
      %c0_26 = arith.constant 0 : index
      %c0_27 = arith.constant 0 : index
      %44 = vector.load %arg7[%c0_26, %c0_27] : memref<1x16xf32, #tpu.memory_space<vmem>>, vector<1x16xf32>
      %cst_28 = arith.constant dense<0.000000e+00> : vector<64x16xf32>
      %45 = tpu.matmul %42, %43, %cst_28 {dimension_numbers = #tpu.dot_dimension_numbers<[1], [0], [0], [1], [0, 0, 1, 1], [], []>} : vector<64x16xf32>, vector<16x16xf32>, vector<64x16xf32> -> vector<64x16xf32>
      %46 = vector.broadcast %44 : vector<1x16xf32> to vector<64x16xf32>
      %47 = arith.addf %45, %46 : vector<64x16xf32>
      %cst_29 = arith.constant 0.000000e+00 : f32
      %48 = vector.broadcast %cst_29 : f32 to vector<64x16xf32>
      %49 = arith.cmpf oge, %47, %48 : vector<64x16xf32>
      %cst_30 = arith.constant 1.000000e-01 : f32
      %50 = vector.broadcast %cst_30 : f32 to vector<64x16xf32>
      %51 = arith.mulf %50, %47 : vector<64x16xf32>
      %52 = arith.select %49, %47, %51 : vector<64x16xi1>, vector<64x16xf32>
      %c0_31 = arith.constant 0 : index
      %c0_32 = arith.constant 0 : index
      %c0_33 = arith.constant 0 : index
      %53 = vector.load %arg8[%c0_31, %c0_32, %c0_33] : memref<1x64x16xf32, #tpu.memory_space<vmem>>, vector<1x64x16xf32>
      %54 = vector.shape_cast %53 : vector<1x64x16xf32> to vector<64x16xf32>
      %55 = vector.shape_cast %52 : vector<64x16xf32> to vector<1x64x16xf32>
      tpu.vector_store %arg8[%c0_31, %c0_32, %c0_33], %55 {strides = array<i32>} : memref<1x64x16xf32, #tpu.memory_space<vmem>>, vector<1x64x16xf32>,
    } else {
    }
    return
  }
  func.func @transform_0(%arg0: i32, %arg1: i32, %arg2: i32) -> (i32, i32, i32) {
    %c0_i32 = arith.constant 0 : i32
    %c0_i32_0 = arith.constant 0 : i32
    return %arg0, %arg1, %c0_i32 : i32, i32, i32
  }
  func.func @transform_1(%arg0: i32, %arg1: i32, %arg2: i32) -> (i32, i32, i32) {
    %c0_i32 = arith.constant 0 : i32
    %c0_i32_0 = arith.constant 0 : i32
    %c0_i32_1 = arith.constant 0 : i32
    return %arg0, %c0_i32, %c0_i32_0 : i32, i32, i32
  }
  func.func @transform_2(%arg0: i32, %arg1: i32, %arg2: i32) -> (i32, i32, i32) {
    %c0_i32 = arith.constant 0 : i32
    %c0_i32_0 = arith.constant 0 : i32
    %c0_i32_1 = arith.constant 0 : i32
    return %arg0, %c0_i32, %c0_i32_0 : i32, i32, i32
  }
  func.func @transform_3(%arg0: i32, %arg1: i32, %arg2: i32) -> (i32, i32) {
    %c0_i32 = arith.constant 0 : i32
    %c0_i32_0 = arith.constant 0 : i32
    %c0_i32_1 = arith.constant 0 : i32
    return %c0_i32, %c0_i32_0 : i32, i32
  }
  func.func @transform_4(%arg0: i32, %arg1: i32, %arg2: i32) -> (i32, i32) {
    %c0_i32 = arith.constant 0 : i32
    %c0_i32_0 = arith.constant 0 : i32
    %c0_i32_1 = arith.constant 0 : i32
    return %c0_i32, %c0_i32_0 : i32, i32
  }
  func.func @transform_5(%arg0: i32, %arg1: i32, %arg2: i32) -> (i32, i32, i32) {
    %c0_i32 = arith.constant 0 : i32
    %c0_i32_0 = arith.constant 0 : i32
    return %arg0, %arg1, %c0_i32 : i32, i32, i32
  }
}

module attributes {stable_mosaic.version = 11 : i64} {
  func.func @_gauss_kernel(%arg0: i32, %arg1: i32, %arg2: i32, %arg3: memref<1x32x8xf32, #tpu.memory_space<vmem>>, %arg4: memref<1x64x8xf32, #tpu.memory_space<vmem>>, %arg5: memref<1x64x17xbf16, #tpu.memory_space<vmem>>, %arg6: memref<16x32xf32, #tpu.memory_space<vmem>>, %arg7: memref<1x32xf32, #tpu.memory_space<vmem>>, %arg8: memref<32x32xf32, #tpu.memory_space<vmem>>, %arg9: memref<1x32xf32, #tpu.memory_space<vmem>>, %arg10: memref<1x32x32xf32, #tpu.memory_space<vmem>>, %arg11: memref<32x17xf32, #tpu.memory_space<vmem>>) attributes {dimension_semantics = [#tpu.dimension_semantics<parallel>, #tpu.dimension_semantics<parallel>, #tpu.dimension_semantics<arbitrary>], iteration_bounds = array<i64: 2, 1, 1>, scalar_prefetch = 0 : i64, scratch_operands = 1 : i64, tpu.core_type = #tpu.core_type<tc>, window_params = [{transform_indices = @transform_0, window_bounds = array<i64: 1, 32, 8>}, {transform_indices = @transform_1, window_bounds = array<i64: 1, 64, 8>}, {transform_indices = @transform_2, window_bounds = array<i64: 1, 64, 17>}, {pipeline_mode = #tpu.pipeline_mode<synchronous>, transform_indices = @transform_3, window_bounds = array<i64: 16, 32>}, {pipeline_mode = #tpu.pipeline_mode<synchronous>, transform_indices = @transform_4, window_bounds = array<i64: 1, 32>}, {pipeline_mode = #tpu.pipeline_mode<synchronous>, transform_indices = @transform_5, window_bounds = array<i64: 32, 32>}, {pipeline_mode = #tpu.pipeline_mode<synchronous>, transform_indices = @transform_6, window_bounds = array<i64: 1, 32>}, {transform_indices = @transform_7, window_bounds = array<i64: 1, 32, 32>}]} {
    %c0_i32 = arith.constant 0 : i32
    %0 = arith.cmpi eq, %arg2, %c0_i32 : i32
    %1 = arith.extui %0 : i1 to i32
    %c0_i32_0 = arith.constant 0 : i32
    %2 = arith.cmpi ne, %1, %c0_i32_0 : i32
    scf.if %2 {
      %cst_21 = arith.constant 0.000000e+00 : f32
      %35 = vector.broadcast %cst_21 : f32 to vector<32x17xf32>
      %c0_22 = arith.constant 0 : index
      %c0_23 = arith.constant 0 : index
      %36 = vector.load %arg11[%c0_22, %c0_23] : memref<32x17xf32, #tpu.memory_space<vmem>>, vector<32x17xf32>
      tpu.vector_store %arg11[%c0_22, %c0_23], %35 {strides = array<i32>} : memref<32x17xf32, #tpu.memory_space<vmem>>, vector<32x17xf32>,
    } else {
    }
    %c0 = arith.constant 0 : index
    %c0_1 = arith.constant 0 : index
    %c0_2 = arith.constant 0 : index
    %3 = vector.load %arg4[%c0, %c0_1, %c0_2] : memref<1x64x8xf32, #tpu.memory_space<vmem>>, vector<1x64x8xf32>
    %4 = vector.shape_cast %3 : vector<1x64x8xf32> to vector<64x8xf32>
    %c0_3 = arith.constant 0 : index
    %c0_4 = arith.constant 0 : index
    %c0_5 = arith.constant 0 : index
    %5 = vector.load %arg5[%c0_3, %c0_4, %c0_5] : memref<1x64x17xbf16, #tpu.memory_space<vmem>>, vector<1x64x17xbf16>
    %6 = vector.shape_cast %5 : vector<1x64x17xbf16> to vector<64x17xbf16>
    %c0_6 = arith.constant 0 : index
    %c0_7 = arith.constant 0 : index
    %c0_8 = arith.constant 0 : index
    %7 = vector.load %arg3[%c0_6, %c0_7, %c0_8] : memref<1x32x8xf32, #tpu.memory_space<vmem>>, vector<1x32x8xf32>
    %8 = vector.shape_cast %7 : vector<1x32x8xf32> to vector<32x8xf32>
    %cst = arith.constant dense<0.000000e+00> : vector<32x64xf32>
    %9 = tpu.matmul %8, %4, %cst {dimension_numbers = #tpu.dot_dimension_numbers<[1], [1], [0], [0], [0, 0, 1, 0], [], []>} : vector<32x8xf32>, vector<64x8xf32>, vector<32x64xf32> -> vector<32x64xf32>
    %cst_9 = arith.constant 0.000000e+00 : f32
    %10 = vector.broadcast %cst_9 : f32 to vector<32x64xf32>
    %11 = arith.maximumf %9, %10 : vector<32x64xf32>
    %cst_10 = arith.constant -3.125000e-02 : f32
    %12 = vector.broadcast %cst_10 : f32 to vector<32x64xf32>
    %13 = arith.mulf %12, %11 : vector<32x64xf32>
    %14 = math.exp %13 : vector<32x64xf32>
    %15 = arith.mulf %14, %14 : vector<32x64xf32>
    %16 = arith.mulf %15, %15 : vector<32x64xf32>
    %17 = arith.mulf %16, %16 : vector<32x64xf32>
    %18 = arith.mulf %17, %17 : vector<32x64xf32>
    %cst_11 = arith.constant 3.300000e-01 : f32
    %19 = vector.broadcast %cst_11 : f32 to vector<32x64xf32>
    %20 = arith.mulf %19, %18 : vector<32x64xf32>
    %cst_12 = arith.constant 3.300000e-01 : f32
    %21 = vector.broadcast %cst_12 : f32 to vector<32x64xf32>
    %22 = arith.mulf %21, %16 : vector<32x64xf32>
    %23 = arith.addf %20, %22 : vector<32x64xf32>
    %cst_13 = arith.constant 3.400000e-01 : f32
    %24 = vector.broadcast %cst_13 : f32 to vector<32x64xf32>
    %25 = arith.mulf %24, %14 : vector<32x64xf32>
    %26 = arith.addf %23, %25 : vector<32x64xf32>
    %c0_14 = arith.constant 0 : index
    %c0_15 = arith.constant 0 : index
    %27 = vector.load %arg11[%c0_14, %c0_15] : memref<32x17xf32, #tpu.memory_space<vmem>>, vector<32x17xf32>
    %28 = arith.truncf %26 : vector<32x64xf32> to vector<32x64xbf16>
    %cst_16 = arith.constant dense<0.000000e+00> : vector<32x17xf32>
    %29 = tpu.matmul %28, %6, %cst_16 {dimension_numbers = #tpu.dot_dimension_numbers<[1], [0], [0], [1], [0, 0, 1, 1], [], []>} : vector<32x64xbf16>, vector<64x17xbf16>, vector<32x17xf32> -> vector<32x17xf32>
    %30 = arith.addf %27, %29 : vector<32x17xf32>
    %c0_17 = arith.constant 0 : index
    %c0_18 = arith.constant 0 : index
    %31 = vector.load %arg11[%c0_17, %c0_18] : memref<32x17xf32, #tpu.memory_space<vmem>>, vector<32x17xf32>
    tpu.vector_store %arg11[%c0_17, %c0_18], %30 {strides = array<i32>} : memref<32x17xf32, #tpu.memory_space<vmem>>, vector<32x17xf32>,
    %c0_i32_19 = arith.constant 0 : i32
    %32 = arith.cmpi eq, %arg2, %c0_i32_19 : i32
    %33 = arith.extui %32 : i1 to i32
    %c0_i32_20 = arith.constant 0 : i32
    %34 = arith.cmpi ne, %33, %c0_i32_20 : i32
    scf.if %34 {
      %c0_21 = arith.constant 0 : index
      %c0_22 = arith.constant 0 : index
      %35 = vector.load %arg11[%c0_21, %c0_22] : memref<32x17xf32, #tpu.memory_space<vmem>>, vector<32x17xf32>
      %36 = vector.extract_strided_slice %35 {offsets = [0, 0], sizes = [32, 16], strides = [1, 1]} : vector<32x17xf32> to vector<32x16xf32>
      %37 = vector.extract_strided_slice %35 {offsets = [0, 16], sizes = [32, 1], strides = [1, 1]} : vector<32x17xf32> to vector<32x1xf32>
      %cst_23 = arith.constant 9.99999971E-10 : f32
      %38 = vector.broadcast %cst_23 : f32 to vector<32x1xf32>
      %39 = arith.addf %37, %38 : vector<32x1xf32>
      %40 = tpu.reciprocal %39 {approx = true} : vector<32x1xf32> -> vector<32x1xf32>
      %41 = vector.broadcast %40 : vector<32x1xf32> to vector<32x16xf32>
      %42 = arith.mulf %36, %41 : vector<32x16xf32>
      %c0_24 = arith.constant 0 : index
      %c0_25 = arith.constant 0 : index
      %43 = vector.load %arg6[%c0_24, %c0_25] : memref<16x32xf32, #tpu.memory_space<vmem>>, vector<16x32xf32>
      %c0_26 = arith.constant 0 : index
      %c0_27 = arith.constant 0 : index
      %44 = vector.load %arg7[%c0_26, %c0_27] : memref<1x32xf32, #tpu.memory_space<vmem>>, vector<1x32xf32>
      %cst_28 = arith.constant dense<0.000000e+00> : vector<32x32xf32>
      %45 = tpu.matmul %42, %43, %cst_28 {dimension_numbers = #tpu.dot_dimension_numbers<[1], [0], [0], [1], [0, 0, 1, 1], [], []>} : vector<32x16xf32>, vector<16x32xf32>, vector<32x32xf32> -> vector<32x32xf32>
      %46 = vector.broadcast %44 : vector<1x32xf32> to vector<32x32xf32>
      %47 = arith.addf %45, %46 : vector<32x32xf32>
      %cst_29 = arith.constant 0.000000e+00 : f32
      %48 = vector.broadcast %cst_29 : f32 to vector<32x32xf32>
      %49 = arith.cmpf oge, %47, %48 : vector<32x32xf32>
      %cst_30 = arith.constant 1.000000e-01 : f32
      %50 = vector.broadcast %cst_30 : f32 to vector<32x32xf32>
      %51 = arith.mulf %50, %47 : vector<32x32xf32>
      %52 = arith.select %49, %47, %51 : vector<32x32xi1>, vector<32x32xf32>
      %c0_31 = arith.constant 0 : index
      %c0_32 = arith.constant 0 : index
      %53 = vector.load %arg8[%c0_31, %c0_32] : memref<32x32xf32, #tpu.memory_space<vmem>>, vector<32x32xf32>
      %c0_33 = arith.constant 0 : index
      %c0_34 = arith.constant 0 : index
      %54 = vector.load %arg9[%c0_33, %c0_34] : memref<1x32xf32, #tpu.memory_space<vmem>>, vector<1x32xf32>
      %cst_35 = arith.constant dense<0.000000e+00> : vector<32x32xf32>
      %55 = tpu.matmul %52, %53, %cst_35 {dimension_numbers = #tpu.dot_dimension_numbers<[1], [0], [0], [1], [0, 0, 1, 1], [], []>} : vector<32x32xf32>, vector<32x32xf32>, vector<32x32xf32> -> vector<32x32xf32>
      %56 = vector.broadcast %54 : vector<1x32xf32> to vector<32x32xf32>
      %57 = arith.addf %55, %56 : vector<32x32xf32>
      %cst_36 = arith.constant 0.000000e+00 : f32
      %58 = vector.broadcast %cst_36 : f32 to vector<32x32xf32>
      %59 = arith.cmpf oge, %57, %58 : vector<32x32xf32>
      %cst_37 = arith.constant 1.000000e-01 : f32
      %60 = vector.broadcast %cst_37 : f32 to vector<32x32xf32>
      %61 = arith.mulf %60, %57 : vector<32x32xf32>
      %62 = arith.select %59, %57, %61 : vector<32x32xi1>, vector<32x32xf32>
      %c0_38 = arith.constant 0 : index
      %c0_39 = arith.constant 0 : index
      %c0_40 = arith.constant 0 : index
      %63 = vector.load %arg10[%c0_38, %c0_39, %c0_40] : memref<1x32x32xf32, #tpu.memory_space<vmem>>, vector<1x32x32xf32>
      %64 = vector.shape_cast %63 : vector<1x32x32xf32> to vector<32x32xf32>
      %65 = vector.shape_cast %62 : vector<32x32xf32> to vector<1x32x32xf32>
      tpu.vector_store %arg10[%c0_38, %c0_39, %c0_40], %65 {strides = array<i32>} : memref<1x32x32xf32, #tpu.memory_space<vmem>>, vector<1x32x32xf32>,
    } else {
    }
    return
  }
  func.func @transform_0(%arg0: i32, %arg1: i32, %arg2: i32) -> (i32, i32, i32) {
    %c0_i32 = arith.constant 0 : i32
    %c0_i32_0 = arith.constant 0 : i32
    return %arg0, %arg1, %c0_i32 : i32, i32, i32
  }
  func.func @transform_1(%arg0: i32, %arg1: i32, %arg2: i32) -> (i32, i32, i32) {
    %c0_i32 = arith.constant 0 : i32
    %c0_i32_0 = arith.constant 0 : i32
    %c0_i32_1 = arith.constant 0 : i32
    return %arg0, %c0_i32, %c0_i32_0 : i32, i32, i32
  }
  func.func @transform_2(%arg0: i32, %arg1: i32, %arg2: i32) -> (i32, i32, i32) {
    %c0_i32 = arith.constant 0 : i32
    %c0_i32_0 = arith.constant 0 : i32
    %c0_i32_1 = arith.constant 0 : i32
    return %arg0, %c0_i32, %c0_i32_0 : i32, i32, i32
  }
  func.func @transform_3(%arg0: i32, %arg1: i32, %arg2: i32) -> (i32, i32) {
    %c0_i32 = arith.constant 0 : i32
    %c0_i32_0 = arith.constant 0 : i32
    %c0_i32_1 = arith.constant 0 : i32
    return %c0_i32, %c0_i32_0 : i32, i32
  }
  func.func @transform_4(%arg0: i32, %arg1: i32, %arg2: i32) -> (i32, i32) {
    %c0_i32 = arith.constant 0 : i32
    %c0_i32_0 = arith.constant 0 : i32
    %c0_i32_1 = arith.constant 0 : i32
    return %c0_i32, %c0_i32_0 : i32, i32
  }
  func.func @transform_5(%arg0: i32, %arg1: i32, %arg2: i32) -> (i32, i32) {
    %c0_i32 = arith.constant 0 : i32
    %c0_i32_0 = arith.constant 0 : i32
    %c0_i32_1 = arith.constant 0 : i32
    return %c0_i32, %c0_i32_0 : i32, i32
  }
  func.func @transform_6(%arg0: i32, %arg1: i32, %arg2: i32) -> (i32, i32) {
    %c0_i32 = arith.constant 0 : i32
    %c0_i32_0 = arith.constant 0 : i32
    %c0_i32_1 = arith.constant 0 : i32
    return %c0_i32, %c0_i32_0 : i32, i32
  }
  func.func @transform_7(%arg0: i32, %arg1: i32, %arg2: i32) -> (i32, i32, i32) {
    %c0_i32 = arith.constant 0 : i32
    %c0_i32_0 = arith.constant 0 : i32
    return %arg0, %arg1, %c0_i32 : i32, i32, i32
  }
}

module attributes {stable_mosaic.version = 11 : i64} {
  func.func @_gauss_kernel(%arg0: i32, %arg1: i32, %arg2: i32, %arg3: memref<1x32x8xf32, #tpu.memory_space<vmem>>, %arg4: memref<1x32x8xf32, #tpu.memory_space<vmem>>, %arg5: memref<1x32x33xbf16, #tpu.memory_space<vmem>>, %arg6: memref<32x32xf32, #tpu.memory_space<vmem>>, %arg7: memref<1x32xf32, #tpu.memory_space<vmem>>, %arg8: memref<1x32x32xf32, #tpu.memory_space<vmem>>, %arg9: memref<32x33xf32, #tpu.memory_space<vmem>>) attributes {dimension_semantics = [#tpu.dimension_semantics<parallel>, #tpu.dimension_semantics<parallel>, #tpu.dimension_semantics<arbitrary>], iteration_bounds = array<i64: 2, 1, 1>, scalar_prefetch = 0 : i64, scratch_operands = 1 : i64, tpu.core_type = #tpu.core_type<tc>, window_params = [{transform_indices = @transform_0, window_bounds = array<i64: 1, 32, 8>}, {transform_indices = @transform_1, window_bounds = array<i64: 1, 32, 8>}, {transform_indices = @transform_2, window_bounds = array<i64: 1, 32, 33>}, {pipeline_mode = #tpu.pipeline_mode<synchronous>, transform_indices = @transform_3, window_bounds = array<i64: 32, 32>}, {pipeline_mode = #tpu.pipeline_mode<synchronous>, transform_indices = @transform_4, window_bounds = array<i64: 1, 32>}, {transform_indices = @transform_5, window_bounds = array<i64: 1, 32, 32>}]} {
    %c0_i32 = arith.constant 0 : i32
    %0 = arith.cmpi eq, %arg2, %c0_i32 : i32
    %1 = arith.extui %0 : i1 to i32
    %c0_i32_0 = arith.constant 0 : i32
    %2 = arith.cmpi ne, %1, %c0_i32_0 : i32
    scf.if %2 {
      %cst_21 = arith.constant 0.000000e+00 : f32
      %35 = vector.broadcast %cst_21 : f32 to vector<32x33xf32>
      %c0_22 = arith.constant 0 : index
      %c0_23 = arith.constant 0 : index
      %36 = vector.load %arg9[%c0_22, %c0_23] : memref<32x33xf32, #tpu.memory_space<vmem>>, vector<32x33xf32>
      tpu.vector_store %arg9[%c0_22, %c0_23], %35 {strides = array<i32>} : memref<32x33xf32, #tpu.memory_space<vmem>>, vector<32x33xf32>,
    } else {
    }
    %c0 = arith.constant 0 : index
    %c0_1 = arith.constant 0 : index
    %c0_2 = arith.constant 0 : index
    %3 = vector.load %arg4[%c0, %c0_1, %c0_2] : memref<1x32x8xf32, #tpu.memory_space<vmem>>, vector<1x32x8xf32>
    %4 = vector.shape_cast %3 : vector<1x32x8xf32> to vector<32x8xf32>
    %c0_3 = arith.constant 0 : index
    %c0_4 = arith.constant 0 : index
    %c0_5 = arith.constant 0 : index
    %5 = vector.load %arg5[%c0_3, %c0_4, %c0_5] : memref<1x32x33xbf16, #tpu.memory_space<vmem>>, vector<1x32x33xbf16>
    %6 = vector.shape_cast %5 : vector<1x32x33xbf16> to vector<32x33xbf16>
    %c0_6 = arith.constant 0 : index
    %c0_7 = arith.constant 0 : index
    %c0_8 = arith.constant 0 : index
    %7 = vector.load %arg3[%c0_6, %c0_7, %c0_8] : memref<1x32x8xf32, #tpu.memory_space<vmem>>, vector<1x32x8xf32>
    %8 = vector.shape_cast %7 : vector<1x32x8xf32> to vector<32x8xf32>
    %cst = arith.constant dense<0.000000e+00> : vector<32x32xf32>
    %9 = tpu.matmul %8, %4, %cst {dimension_numbers = #tpu.dot_dimension_numbers<[1], [1], [0], [0], [0, 0, 1, 0], [], []>} : vector<32x8xf32>, vector<32x8xf32>, vector<32x32xf32> -> vector<32x32xf32>
    %cst_9 = arith.constant 0.000000e+00 : f32
    %10 = vector.broadcast %cst_9 : f32 to vector<32x32xf32>
    %11 = arith.maximumf %9, %10 : vector<32x32xf32>
    %cst_10 = arith.constant -3.125000e-02 : f32
    %12 = vector.broadcast %cst_10 : f32 to vector<32x32xf32>
    %13 = arith.mulf %12, %11 : vector<32x32xf32>
    %14 = math.exp %13 : vector<32x32xf32>
    %15 = arith.mulf %14, %14 : vector<32x32xf32>
    %16 = arith.mulf %15, %15 : vector<32x32xf32>
    %17 = arith.mulf %16, %16 : vector<32x32xf32>
    %18 = arith.mulf %17, %17 : vector<32x32xf32>
    %cst_11 = arith.constant 3.300000e-01 : f32
    %19 = vector.broadcast %cst_11 : f32 to vector<32x32xf32>
    %20 = arith.mulf %19, %18 : vector<32x32xf32>
    %cst_12 = arith.constant 3.300000e-01 : f32
    %21 = vector.broadcast %cst_12 : f32 to vector<32x32xf32>
    %22 = arith.mulf %21, %16 : vector<32x32xf32>
    %23 = arith.addf %20, %22 : vector<32x32xf32>
    %cst_13 = arith.constant 3.400000e-01 : f32
    %24 = vector.broadcast %cst_13 : f32 to vector<32x32xf32>
    %25 = arith.mulf %24, %14 : vector<32x32xf32>
    %26 = arith.addf %23, %25 : vector<32x32xf32>
    %c0_14 = arith.constant 0 : index
    %c0_15 = arith.constant 0 : index
    %27 = vector.load %arg9[%c0_14, %c0_15] : memref<32x33xf32, #tpu.memory_space<vmem>>, vector<32x33xf32>
    %28 = arith.truncf %26 : vector<32x32xf32> to vector<32x32xbf16>
    %cst_16 = arith.constant dense<0.000000e+00> : vector<32x33xf32>
    %29 = tpu.matmul %28, %6, %cst_16 {dimension_numbers = #tpu.dot_dimension_numbers<[1], [0], [0], [1], [0, 0, 1, 1], [], []>} : vector<32x32xbf16>, vector<32x33xbf16>, vector<32x33xf32> -> vector<32x33xf32>
    %30 = arith.addf %27, %29 : vector<32x33xf32>
    %c0_17 = arith.constant 0 : index
    %c0_18 = arith.constant 0 : index
    %31 = vector.load %arg9[%c0_17, %c0_18] : memref<32x33xf32, #tpu.memory_space<vmem>>, vector<32x33xf32>
    tpu.vector_store %arg9[%c0_17, %c0_18], %30 {strides = array<i32>} : memref<32x33xf32, #tpu.memory_space<vmem>>, vector<32x33xf32>,
    %c0_i32_19 = arith.constant 0 : i32
    %32 = arith.cmpi eq, %arg2, %c0_i32_19 : i32
    %33 = arith.extui %32 : i1 to i32
    %c0_i32_20 = arith.constant 0 : i32
    %34 = arith.cmpi ne, %33, %c0_i32_20 : i32
    scf.if %34 {
      %c0_21 = arith.constant 0 : index
      %c0_22 = arith.constant 0 : index
      %35 = vector.load %arg9[%c0_21, %c0_22] : memref<32x33xf32, #tpu.memory_space<vmem>>, vector<32x33xf32>
      %36 = vector.extract_strided_slice %35 {offsets = [0, 0], sizes = [32, 32], strides = [1, 1]} : vector<32x33xf32> to vector<32x32xf32>
      %37 = vector.extract_strided_slice %35 {offsets = [0, 32], sizes = [32, 1], strides = [1, 1]} : vector<32x33xf32> to vector<32x1xf32>
      %cst_23 = arith.constant 9.99999971E-10 : f32
      %38 = vector.broadcast %cst_23 : f32 to vector<32x1xf32>
      %39 = arith.addf %37, %38 : vector<32x1xf32>
      %40 = tpu.reciprocal %39 {approx = true} : vector<32x1xf32> -> vector<32x1xf32>
      %41 = vector.broadcast %40 : vector<32x1xf32> to vector<32x32xf32>
      %42 = arith.mulf %36, %41 : vector<32x32xf32>
      %c0_24 = arith.constant 0 : index
      %c0_25 = arith.constant 0 : index
      %43 = vector.load %arg6[%c0_24, %c0_25] : memref<32x32xf32, #tpu.memory_space<vmem>>, vector<32x32xf32>
      %c0_26 = arith.constant 0 : index
      %c0_27 = arith.constant 0 : index
      %44 = vector.load %arg7[%c0_26, %c0_27] : memref<1x32xf32, #tpu.memory_space<vmem>>, vector<1x32xf32>
      %cst_28 = arith.constant dense<0.000000e+00> : vector<32x32xf32>
      %45 = tpu.matmul %42, %43, %cst_28 {dimension_numbers = #tpu.dot_dimension_numbers<[1], [0], [0], [1], [0, 0, 1, 1], [], []>} : vector<32x32xf32>, vector<32x32xf32>, vector<32x32xf32> -> vector<32x32xf32>
      %46 = vector.broadcast %44 : vector<1x32xf32> to vector<32x32xf32>
      %47 = arith.addf %45, %46 : vector<32x32xf32>
      %cst_29 = arith.constant 0.000000e+00 : f32
      %48 = vector.broadcast %cst_29 : f32 to vector<32x32xf32>
      %49 = arith.cmpf oge, %47, %48 : vector<32x32xf32>
      %cst_30 = arith.constant 1.000000e-01 : f32
      %50 = vector.broadcast %cst_30 : f32 to vector<32x32xf32>
      %51 = arith.mulf %50, %47 : vector<32x32xf32>
      %52 = arith.select %49, %47, %51 : vector<32x32xi1>, vector<32x32xf32>
      %c0_31 = arith.constant 0 : index
      %c0_32 = arith.constant 0 : index
      %c0_33 = arith.constant 0 : index
      %53 = vector.load %arg8[%c0_31, %c0_32, %c0_33] : memref<1x32x32xf32, #tpu.memory_space<vmem>>, vector<1x32x32xf32>
      %54 = vector.shape_cast %53 : vector<1x32x32xf32> to vector<32x32xf32>
      %55 = vector.shape_cast %52 : vector<32x32xf32> to vector<1x32x32xf32>
      tpu.vector_store %arg8[%c0_31, %c0_32, %c0_33], %55 {strides = array<i32>} : memref<1x32x32xf32, #tpu.memory_space<vmem>>, vector<1x32x32xf32>,
    } else {
    }
    return
  }
  func.func @transform_0(%arg0: i32, %arg1: i32, %arg2: i32) -> (i32, i32, i32) {
    %c0_i32 = arith.constant 0 : i32
    %c0_i32_0 = arith.constant 0 : i32
    return %arg0, %arg1, %c0_i32 : i32, i32, i32
  }
  func.func @transform_1(%arg0: i32, %arg1: i32, %arg2: i32) -> (i32, i32, i32) {
    %c0_i32 = arith.constant 0 : i32
    %c0_i32_0 = arith.constant 0 : i32
    %c0_i32_1 = arith.constant 0 : i32
    return %arg0, %c0_i32, %c0_i32_0 : i32, i32, i32
  }
  func.func @transform_2(%arg0: i32, %arg1: i32, %arg2: i32) -> (i32, i32, i32) {
    %c0_i32 = arith.constant 0 : i32
    %c0_i32_0 = arith.constant 0 : i32
    %c0_i32_1 = arith.constant 0 : i32
    return %arg0, %c0_i32, %c0_i32_0 : i32, i32, i32
  }
  func.func @transform_3(%arg0: i32, %arg1: i32, %arg2: i32) -> (i32, i32) {
    %c0_i32 = arith.constant 0 : i32
    %c0_i32_0 = arith.constant 0 : i32
    %c0_i32_1 = arith.constant 0 : i32
    return %c0_i32, %c0_i32_0 : i32, i32
  }
  func.func @transform_4(%arg0: i32, %arg1: i32, %arg2: i32) -> (i32, i32) {
    %c0_i32 = arith.constant 0 : i32
    %c0_i32_0 = arith.constant 0 : i32
    %c0_i32_1 = arith.constant 0 : i32
    return %c0_i32, %c0_i32_0 : i32, i32
  }
  func.func @transform_5(%arg0: i32, %arg1: i32, %arg2: i32) -> (i32, i32, i32) {
    %c0_i32 = arith.constant 0 : i32
    %c0_i32_0 = arith.constant 0 : i32
    return %arg0, %arg1, %c0_i32 : i32, i32, i32
  }
}

module attributes {stable_mosaic.version = 11 : i64} {
  func.func @_gauss_kernel(%arg0: i32, %arg1: i32, %arg2: i32, %arg3: memref<1x8x8xf32, #tpu.memory_space<vmem>>, %arg4: memref<1x32x8xf32, #tpu.memory_space<vmem>>, %arg5: memref<1x32x33xbf16, #tpu.memory_space<vmem>>, %arg6: memref<32x64xf32, #tpu.memory_space<vmem>>, %arg7: memref<1x64xf32, #tpu.memory_space<vmem>>, %arg8: memref<64x64xf32, #tpu.memory_space<vmem>>, %arg9: memref<1x64xf32, #tpu.memory_space<vmem>>, %arg10: memref<1x8x64xf32, #tpu.memory_space<vmem>>, %arg11: memref<8x33xf32, #tpu.memory_space<vmem>>) attributes {dimension_semantics = [#tpu.dimension_semantics<parallel>, #tpu.dimension_semantics<parallel>, #tpu.dimension_semantics<arbitrary>], iteration_bounds = array<i64: 2, 1, 1>, scalar_prefetch = 0 : i64, scratch_operands = 1 : i64, tpu.core_type = #tpu.core_type<tc>, window_params = [{transform_indices = @transform_0, window_bounds = array<i64: 1, 8, 8>}, {transform_indices = @transform_1, window_bounds = array<i64: 1, 32, 8>}, {transform_indices = @transform_2, window_bounds = array<i64: 1, 32, 33>}, {pipeline_mode = #tpu.pipeline_mode<synchronous>, transform_indices = @transform_3, window_bounds = array<i64: 32, 64>}, {pipeline_mode = #tpu.pipeline_mode<synchronous>, transform_indices = @transform_4, window_bounds = array<i64: 1, 64>}, {pipeline_mode = #tpu.pipeline_mode<synchronous>, transform_indices = @transform_5, window_bounds = array<i64: 64, 64>}, {pipeline_mode = #tpu.pipeline_mode<synchronous>, transform_indices = @transform_6, window_bounds = array<i64: 1, 64>}, {transform_indices = @transform_7, window_bounds = array<i64: 1, 8, 64>}]} {
    %c0_i32 = arith.constant 0 : i32
    %0 = arith.cmpi eq, %arg2, %c0_i32 : i32
    %1 = arith.extui %0 : i1 to i32
    %c0_i32_0 = arith.constant 0 : i32
    %2 = arith.cmpi ne, %1, %c0_i32_0 : i32
    scf.if %2 {
      %cst_21 = arith.constant 0.000000e+00 : f32
      %35 = vector.broadcast %cst_21 : f32 to vector<8x33xf32>
      %c0_22 = arith.constant 0 : index
      %c0_23 = arith.constant 0 : index
      %36 = vector.load %arg11[%c0_22, %c0_23] : memref<8x33xf32, #tpu.memory_space<vmem>>, vector<8x33xf32>
      tpu.vector_store %arg11[%c0_22, %c0_23], %35 {strides = array<i32>} : memref<8x33xf32, #tpu.memory_space<vmem>>, vector<8x33xf32>,
    } else {
    }
    %c0 = arith.constant 0 : index
    %c0_1 = arith.constant 0 : index
    %c0_2 = arith.constant 0 : index
    %3 = vector.load %arg4[%c0, %c0_1, %c0_2] : memref<1x32x8xf32, #tpu.memory_space<vmem>>, vector<1x32x8xf32>
    %4 = vector.shape_cast %3 : vector<1x32x8xf32> to vector<32x8xf32>
    %c0_3 = arith.constant 0 : index
    %c0_4 = arith.constant 0 : index
    %c0_5 = arith.constant 0 : index
    %5 = vector.load %arg5[%c0_3, %c0_4, %c0_5] : memref<1x32x33xbf16, #tpu.memory_space<vmem>>, vector<1x32x33xbf16>
    %6 = vector.shape_cast %5 : vector<1x32x33xbf16> to vector<32x33xbf16>
    %c0_6 = arith.constant 0 : index
    %c0_7 = arith.constant 0 : index
    %c0_8 = arith.constant 0 : index
    %7 = vector.load %arg3[%c0_6, %c0_7, %c0_8] : memref<1x8x8xf32, #tpu.memory_space<vmem>>, vector<1x8x8xf32>
    %8 = vector.shape_cast %7 : vector<1x8x8xf32> to vector<8x8xf32>
    %cst = arith.constant dense<0.000000e+00> : vector<8x32xf32>
    %9 = tpu.matmul %8, %4, %cst {dimension_numbers = #tpu.dot_dimension_numbers<[1], [1], [0], [0], [0, 0, 1, 0], [], []>} : vector<8x8xf32>, vector<32x8xf32>, vector<8x32xf32> -> vector<8x32xf32>
    %cst_9 = arith.constant 0.000000e+00 : f32
    %10 = vector.broadcast %cst_9 : f32 to vector<8x32xf32>
    %11 = arith.maximumf %9, %10 : vector<8x32xf32>
    %cst_10 = arith.constant -0.001953125 : f32
    %12 = vector.broadcast %cst_10 : f32 to vector<8x32xf32>
    %13 = arith.mulf %12, %11 : vector<8x32xf32>
    %14 = math.exp %13 : vector<8x32xf32>
    %15 = arith.mulf %14, %14 : vector<8x32xf32>
    %16 = arith.mulf %15, %15 : vector<8x32xf32>
    %17 = arith.mulf %16, %16 : vector<8x32xf32>
    %18 = arith.mulf %17, %17 : vector<8x32xf32>
    %cst_11 = arith.constant 3.300000e-01 : f32
    %19 = vector.broadcast %cst_11 : f32 to vector<8x32xf32>
    %20 = arith.mulf %19, %18 : vector<8x32xf32>
    %cst_12 = arith.constant 3.300000e-01 : f32
    %21 = vector.broadcast %cst_12 : f32 to vector<8x32xf32>
    %22 = arith.mulf %21, %16 : vector<8x32xf32>
    %23 = arith.addf %20, %22 : vector<8x32xf32>
    %cst_13 = arith.constant 3.400000e-01 : f32
    %24 = vector.broadcast %cst_13 : f32 to vector<8x32xf32>
    %25 = arith.mulf %24, %14 : vector<8x32xf32>
    %26 = arith.addf %23, %25 : vector<8x32xf32>
    %c0_14 = arith.constant 0 : index
    %c0_15 = arith.constant 0 : index
    %27 = vector.load %arg11[%c0_14, %c0_15] : memref<8x33xf32, #tpu.memory_space<vmem>>, vector<8x33xf32>
    %28 = arith.truncf %26 : vector<8x32xf32> to vector<8x32xbf16>
    %cst_16 = arith.constant dense<0.000000e+00> : vector<8x33xf32>
    %29 = tpu.matmul %28, %6, %cst_16 {dimension_numbers = #tpu.dot_dimension_numbers<[1], [0], [0], [1], [0, 0, 1, 1], [], []>} : vector<8x32xbf16>, vector<32x33xbf16>, vector<8x33xf32> -> vector<8x33xf32>
    %30 = arith.addf %27, %29 : vector<8x33xf32>
    %c0_17 = arith.constant 0 : index
    %c0_18 = arith.constant 0 : index
    %31 = vector.load %arg11[%c0_17, %c0_18] : memref<8x33xf32, #tpu.memory_space<vmem>>, vector<8x33xf32>
    tpu.vector_store %arg11[%c0_17, %c0_18], %30 {strides = array<i32>} : memref<8x33xf32, #tpu.memory_space<vmem>>, vector<8x33xf32>,
    %c0_i32_19 = arith.constant 0 : i32
    %32 = arith.cmpi eq, %arg2, %c0_i32_19 : i32
    %33 = arith.extui %32 : i1 to i32
    %c0_i32_20 = arith.constant 0 : i32
    %34 = arith.cmpi ne, %33, %c0_i32_20 : i32
    scf.if %34 {
      %c0_21 = arith.constant 0 : index
      %c0_22 = arith.constant 0 : index
      %35 = vector.load %arg11[%c0_21, %c0_22] : memref<8x33xf32, #tpu.memory_space<vmem>>, vector<8x33xf32>
      %36 = vector.extract_strided_slice %35 {offsets = [0, 0], sizes = [8, 32], strides = [1, 1]} : vector<8x33xf32> to vector<8x32xf32>
      %37 = vector.extract_strided_slice %35 {offsets = [0, 32], sizes = [8, 1], strides = [1, 1]} : vector<8x33xf32> to vector<8x1xf32>
      %cst_23 = arith.constant 9.99999971E-10 : f32
      %38 = vector.broadcast %cst_23 : f32 to vector<8x1xf32>
      %39 = arith.addf %37, %38 : vector<8x1xf32>
      %40 = tpu.reciprocal %39 {approx = true} : vector<8x1xf32> -> vector<8x1xf32>
      %41 = vector.broadcast %40 : vector<8x1xf32> to vector<8x32xf32>
      %42 = arith.mulf %36, %41 : vector<8x32xf32>
      %c0_24 = arith.constant 0 : index
      %c0_25 = arith.constant 0 : index
      %43 = vector.load %arg6[%c0_24, %c0_25] : memref<32x64xf32, #tpu.memory_space<vmem>>, vector<32x64xf32>
      %c0_26 = arith.constant 0 : index
      %c0_27 = arith.constant 0 : index
      %44 = vector.load %arg7[%c0_26, %c0_27] : memref<1x64xf32, #tpu.memory_space<vmem>>, vector<1x64xf32>
      %cst_28 = arith.constant dense<0.000000e+00> : vector<8x64xf32>
      %45 = tpu.matmul %42, %43, %cst_28 {dimension_numbers = #tpu.dot_dimension_numbers<[1], [0], [0], [1], [0, 0, 1, 1], [], []>} : vector<8x32xf32>, vector<32x64xf32>, vector<8x64xf32> -> vector<8x64xf32>
      %46 = vector.broadcast %44 : vector<1x64xf32> to vector<8x64xf32>
      %47 = arith.addf %45, %46 : vector<8x64xf32>
      %cst_29 = arith.constant 0.000000e+00 : f32
      %48 = vector.broadcast %cst_29 : f32 to vector<8x64xf32>
      %49 = arith.cmpf oge, %47, %48 : vector<8x64xf32>
      %cst_30 = arith.constant 1.000000e-01 : f32
      %50 = vector.broadcast %cst_30 : f32 to vector<8x64xf32>
      %51 = arith.mulf %50, %47 : vector<8x64xf32>
      %52 = arith.select %49, %47, %51 : vector<8x64xi1>, vector<8x64xf32>
      %c0_31 = arith.constant 0 : index
      %c0_32 = arith.constant 0 : index
      %53 = vector.load %arg8[%c0_31, %c0_32] : memref<64x64xf32, #tpu.memory_space<vmem>>, vector<64x64xf32>
      %c0_33 = arith.constant 0 : index
      %c0_34 = arith.constant 0 : index
      %54 = vector.load %arg9[%c0_33, %c0_34] : memref<1x64xf32, #tpu.memory_space<vmem>>, vector<1x64xf32>
      %cst_35 = arith.constant dense<0.000000e+00> : vector<8x64xf32>
      %55 = tpu.matmul %52, %53, %cst_35 {dimension_numbers = #tpu.dot_dimension_numbers<[1], [0], [0], [1], [0, 0, 1, 1], [], []>} : vector<8x64xf32>, vector<64x64xf32>, vector<8x64xf32> -> vector<8x64xf32>
      %56 = vector.broadcast %54 : vector<1x64xf32> to vector<8x64xf32>
      %57 = arith.addf %55, %56 : vector<8x64xf32>
      %cst_36 = arith.constant 0.000000e+00 : f32
      %58 = vector.broadcast %cst_36 : f32 to vector<8x64xf32>
      %59 = arith.cmpf oge, %57, %58 : vector<8x64xf32>
      %cst_37 = arith.constant 1.000000e-01 : f32
      %60 = vector.broadcast %cst_37 : f32 to vector<8x64xf32>
      %61 = arith.mulf %60, %57 : vector<8x64xf32>
      %62 = arith.select %59, %57, %61 : vector<8x64xi1>, vector<8x64xf32>
      %c0_38 = arith.constant 0 : index
      %c0_39 = arith.constant 0 : index
      %c0_40 = arith.constant 0 : index
      %63 = vector.load %arg10[%c0_38, %c0_39, %c0_40] : memref<1x8x64xf32, #tpu.memory_space<vmem>>, vector<1x8x64xf32>
      %64 = vector.shape_cast %63 : vector<1x8x64xf32> to vector<8x64xf32>
      %65 = vector.shape_cast %62 : vector<8x64xf32> to vector<1x8x64xf32>
      tpu.vector_store %arg10[%c0_38, %c0_39, %c0_40], %65 {strides = array<i32>} : memref<1x8x64xf32, #tpu.memory_space<vmem>>, vector<1x8x64xf32>,
    } else {
    }
    return
  }
  func.func @transform_0(%arg0: i32, %arg1: i32, %arg2: i32) -> (i32, i32, i32) {
    %c0_i32 = arith.constant 0 : i32
    %c0_i32_0 = arith.constant 0 : i32
    return %arg0, %arg1, %c0_i32 : i32, i32, i32
  }
  func.func @transform_1(%arg0: i32, %arg1: i32, %arg2: i32) -> (i32, i32, i32) {
    %c0_i32 = arith.constant 0 : i32
    %c0_i32_0 = arith.constant 0 : i32
    %c0_i32_1 = arith.constant 0 : i32
    return %arg0, %c0_i32, %c0_i32_0 : i32, i32, i32
  }
  func.func @transform_2(%arg0: i32, %arg1: i32, %arg2: i32) -> (i32, i32, i32) {
    %c0_i32 = arith.constant 0 : i32
    %c0_i32_0 = arith.constant 0 : i32
    %c0_i32_1 = arith.constant 0 : i32
    return %arg0, %c0_i32, %c0_i32_0 : i32, i32, i32
  }
  func.func @transform_3(%arg0: i32, %arg1: i32, %arg2: i32) -> (i32, i32) {
    %c0_i32 = arith.constant 0 : i32
    %c0_i32_0 = arith.constant 0 : i32
    %c0_i32_1 = arith.constant 0 : i32
    return %c0_i32, %c0_i32_0 : i32, i32
  }
  func.func @transform_4(%arg0: i32, %arg1: i32, %arg2: i32) -> (i32, i32) {
    %c0_i32 = arith.constant 0 : i32
    %c0_i32_0 = arith.constant 0 : i32
    %c0_i32_1 = arith.constant 0 : i32
    return %c0_i32, %c0_i32_0 : i32, i32
  }
  func.func @transform_5(%arg0: i32, %arg1: i32, %arg2: i32) -> (i32, i32) {
    %c0_i32 = arith.constant 0 : i32
    %c0_i32_0 = arith.constant 0 : i32
    %c0_i32_1 = arith.constant 0 : i32
    return %c0_i32, %c0_i32_0 : i32, i32
  }
  func.func @transform_6(%arg0: i32, %arg1: i32, %arg2: i32) -> (i32, i32) {
    %c0_i32 = arith.constant 0 : i32
    %c0_i32_0 = arith.constant 0 : i32
    %c0_i32_1 = arith.constant 0 : i32
    return %c0_i32, %c0_i32_0 : i32, i32
  }
  func.func @transform_7(%arg0: i32, %arg1: i32, %arg2: i32) -> (i32, i32, i32) {
    %c0_i32 = arith.constant 0 : i32
    %c0_i32_0 = arith.constant 0 : i32
    return %arg0, %arg1, %c0_i32 : i32, i32, i32
  }
}

module attributes {stable_mosaic.version = 11 : i64} {
  func.func @_gauss_kernel(%arg0: i32, %arg1: i32, %arg2: i32, %arg3: memref<1x8x8xf32, #tpu.memory_space<vmem>>, %arg4: memref<1x8x8xf32, #tpu.memory_space<vmem>>, %arg5: memref<1x8x65xbf16, #tpu.memory_space<vmem>>, %arg6: memref<64x64xf32, #tpu.memory_space<vmem>>, %arg7: memref<1x64xf32, #tpu.memory_space<vmem>>, %arg8: memref<1x8x64xf32, #tpu.memory_space<vmem>>, %arg9: memref<8x65xf32, #tpu.memory_space<vmem>>) attributes {dimension_semantics = [#tpu.dimension_semantics<parallel>, #tpu.dimension_semantics<parallel>, #tpu.dimension_semantics<arbitrary>], iteration_bounds = array<i64: 2, 1, 1>, scalar_prefetch = 0 : i64, scratch_operands = 1 : i64, tpu.core_type = #tpu.core_type<tc>, window_params = [{transform_indices = @transform_0, window_bounds = array<i64: 1, 8, 8>}, {transform_indices = @transform_1, window_bounds = array<i64: 1, 8, 8>}, {transform_indices = @transform_2, window_bounds = array<i64: 1, 8, 65>}, {pipeline_mode = #tpu.pipeline_mode<synchronous>, transform_indices = @transform_3, window_bounds = array<i64: 64, 64>}, {pipeline_mode = #tpu.pipeline_mode<synchronous>, transform_indices = @transform_4, window_bounds = array<i64: 1, 64>}, {transform_indices = @transform_5, window_bounds = array<i64: 1, 8, 64>}]} {
    %c0_i32 = arith.constant 0 : i32
    %0 = arith.cmpi eq, %arg2, %c0_i32 : i32
    %1 = arith.extui %0 : i1 to i32
    %c0_i32_0 = arith.constant 0 : i32
    %2 = arith.cmpi ne, %1, %c0_i32_0 : i32
    scf.if %2 {
      %cst_21 = arith.constant 0.000000e+00 : f32
      %35 = vector.broadcast %cst_21 : f32 to vector<8x65xf32>
      %c0_22 = arith.constant 0 : index
      %c0_23 = arith.constant 0 : index
      %36 = vector.load %arg9[%c0_22, %c0_23] : memref<8x65xf32, #tpu.memory_space<vmem>>, vector<8x65xf32>
      tpu.vector_store %arg9[%c0_22, %c0_23], %35 {strides = array<i32>} : memref<8x65xf32, #tpu.memory_space<vmem>>, vector<8x65xf32>,
    } else {
    }
    %c0 = arith.constant 0 : index
    %c0_1 = arith.constant 0 : index
    %c0_2 = arith.constant 0 : index
    %3 = vector.load %arg4[%c0, %c0_1, %c0_2] : memref<1x8x8xf32, #tpu.memory_space<vmem>>, vector<1x8x8xf32>
    %4 = vector.shape_cast %3 : vector<1x8x8xf32> to vector<8x8xf32>
    %c0_3 = arith.constant 0 : index
    %c0_4 = arith.constant 0 : index
    %c0_5 = arith.constant 0 : index
    %5 = vector.load %arg5[%c0_3, %c0_4, %c0_5] : memref<1x8x65xbf16, #tpu.memory_space<vmem>>, vector<1x8x65xbf16>
    %6 = vector.shape_cast %5 : vector<1x8x65xbf16> to vector<8x65xbf16>
    %c0_6 = arith.constant 0 : index
    %c0_7 = arith.constant 0 : index
    %c0_8 = arith.constant 0 : index
    %7 = vector.load %arg3[%c0_6, %c0_7, %c0_8] : memref<1x8x8xf32, #tpu.memory_space<vmem>>, vector<1x8x8xf32>
    %8 = vector.shape_cast %7 : vector<1x8x8xf32> to vector<8x8xf32>
    %cst = arith.constant dense<0.000000e+00> : vector<8x8xf32>
    %9 = tpu.matmul %8, %4, %cst {dimension_numbers = #tpu.dot_dimension_numbers<[1], [1], [0], [0], [0, 0, 1, 0], [], []>} : vector<8x8xf32>, vector<8x8xf32>, vector<8x8xf32> -> vector<8x8xf32>
    %cst_9 = arith.constant 0.000000e+00 : f32
    %10 = vector.broadcast %cst_9 : f32 to vector<8x8xf32>
    %11 = arith.maximumf %9, %10 : vector<8x8xf32>
    %cst_10 = arith.constant -0.001953125 : f32
    %12 = vector.broadcast %cst_10 : f32 to vector<8x8xf32>
    %13 = arith.mulf %12, %11 : vector<8x8xf32>
    %14 = math.exp %13 : vector<8x8xf32>
    %15 = arith.mulf %14, %14 : vector<8x8xf32>
    %16 = arith.mulf %15, %15 : vector<8x8xf32>
    %17 = arith.mulf %16, %16 : vector<8x8xf32>
    %18 = arith.mulf %17, %17 : vector<8x8xf32>
    %cst_11 = arith.constant 3.300000e-01 : f32
    %19 = vector.broadcast %cst_11 : f32 to vector<8x8xf32>
    %20 = arith.mulf %19, %18 : vector<8x8xf32>
    %cst_12 = arith.constant 3.300000e-01 : f32
    %21 = vector.broadcast %cst_12 : f32 to vector<8x8xf32>
    %22 = arith.mulf %21, %16 : vector<8x8xf32>
    %23 = arith.addf %20, %22 : vector<8x8xf32>
    %cst_13 = arith.constant 3.400000e-01 : f32
    %24 = vector.broadcast %cst_13 : f32 to vector<8x8xf32>
    %25 = arith.mulf %24, %14 : vector<8x8xf32>
    %26 = arith.addf %23, %25 : vector<8x8xf32>
    %c0_14 = arith.constant 0 : index
    %c0_15 = arith.constant 0 : index
    %27 = vector.load %arg9[%c0_14, %c0_15] : memref<8x65xf32, #tpu.memory_space<vmem>>, vector<8x65xf32>
    %28 = arith.truncf %26 : vector<8x8xf32> to vector<8x8xbf16>
    %cst_16 = arith.constant dense<0.000000e+00> : vector<8x65xf32>
    %29 = tpu.matmul %28, %6, %cst_16 {dimension_numbers = #tpu.dot_dimension_numbers<[1], [0], [0], [1], [0, 0, 1, 1], [], []>} : vector<8x8xbf16>, vector<8x65xbf16>, vector<8x65xf32> -> vector<8x65xf32>
    %30 = arith.addf %27, %29 : vector<8x65xf32>
    %c0_17 = arith.constant 0 : index
    %c0_18 = arith.constant 0 : index
    %31 = vector.load %arg9[%c0_17, %c0_18] : memref<8x65xf32, #tpu.memory_space<vmem>>, vector<8x65xf32>
    tpu.vector_store %arg9[%c0_17, %c0_18], %30 {strides = array<i32>} : memref<8x65xf32, #tpu.memory_space<vmem>>, vector<8x65xf32>,
    %c0_i32_19 = arith.constant 0 : i32
    %32 = arith.cmpi eq, %arg2, %c0_i32_19 : i32
    %33 = arith.extui %32 : i1 to i32
    %c0_i32_20 = arith.constant 0 : i32
    %34 = arith.cmpi ne, %33, %c0_i32_20 : i32
    scf.if %34 {
      %c0_21 = arith.constant 0 : index
      %c0_22 = arith.constant 0 : index
      %35 = vector.load %arg9[%c0_21, %c0_22] : memref<8x65xf32, #tpu.memory_space<vmem>>, vector<8x65xf32>
      %36 = vector.extract_strided_slice %35 {offsets = [0, 0], sizes = [8, 64], strides = [1, 1]} : vector<8x65xf32> to vector<8x64xf32>
      %37 = vector.extract_strided_slice %35 {offsets = [0, 64], sizes = [8, 1], strides = [1, 1]} : vector<8x65xf32> to vector<8x1xf32>
      %cst_23 = arith.constant 9.99999971E-10 : f32
      %38 = vector.broadcast %cst_23 : f32 to vector<8x1xf32>
      %39 = arith.addf %37, %38 : vector<8x1xf32>
      %40 = tpu.reciprocal %39 {approx = true} : vector<8x1xf32> -> vector<8x1xf32>
      %41 = vector.broadcast %40 : vector<8x1xf32> to vector<8x64xf32>
      %42 = arith.mulf %36, %41 : vector<8x64xf32>
      %c0_24 = arith.constant 0 : index
      %c0_25 = arith.constant 0 : index
      %43 = vector.load %arg6[%c0_24, %c0_25] : memref<64x64xf32, #tpu.memory_space<vmem>>, vector<64x64xf32>
      %c0_26 = arith.constant 0 : index
      %c0_27 = arith.constant 0 : index
      %44 = vector.load %arg7[%c0_26, %c0_27] : memref<1x64xf32, #tpu.memory_space<vmem>>, vector<1x64xf32>
      %cst_28 = arith.constant dense<0.000000e+00> : vector<8x64xf32>
      %45 = tpu.matmul %42, %43, %cst_28 {dimension_numbers = #tpu.dot_dimension_numbers<[1], [0], [0], [1], [0, 0, 1, 1], [], []>} : vector<8x64xf32>, vector<64x64xf32>, vector<8x64xf32> -> vector<8x64xf32>
      %46 = vector.broadcast %44 : vector<1x64xf32> to vector<8x64xf32>
      %47 = arith.addf %45, %46 : vector<8x64xf32>
      %cst_29 = arith.constant 0.000000e+00 : f32
      %48 = vector.broadcast %cst_29 : f32 to vector<8x64xf32>
      %49 = arith.cmpf oge, %47, %48 : vector<8x64xf32>
      %cst_30 = arith.constant 1.000000e-01 : f32
      %50 = vector.broadcast %cst_30 : f32 to vector<8x64xf32>
      %51 = arith.mulf %50, %47 : vector<8x64xf32>
      %52 = arith.select %49, %47, %51 : vector<8x64xi1>, vector<8x64xf32>
      %c0_31 = arith.constant 0 : index
      %c0_32 = arith.constant 0 : index
      %c0_33 = arith.constant 0 : index
      %53 = vector.load %arg8[%c0_31, %c0_32, %c0_33] : memref<1x8x64xf32, #tpu.memory_space<vmem>>, vector<1x8x64xf32>
      %54 = vector.shape_cast %53 : vector<1x8x64xf32> to vector<8x64xf32>
      %55 = vector.shape_cast %52 : vector<8x64xf32> to vector<1x8x64xf32>
      tpu.vector_store %arg8[%c0_31, %c0_32, %c0_33], %55 {strides = array<i32>} : memref<1x8x64xf32, #tpu.memory_space<vmem>>, vector<1x8x64xf32>,
    } else {
    }
    return
  }
  func.func @transform_0(%arg0: i32, %arg1: i32, %arg2: i32) -> (i32, i32, i32) {
    %c0_i32 = arith.constant 0 : i32
    %c0_i32_0 = arith.constant 0 : i32
    return %arg0, %arg1, %c0_i32 : i32, i32, i32
  }
  func.func @transform_1(%arg0: i32, %arg1: i32, %arg2: i32) -> (i32, i32, i32) {
    %c0_i32 = arith.constant 0 : i32
    %c0_i32_0 = arith.constant 0 : i32
    %c0_i32_1 = arith.constant 0 : i32
    return %arg0, %c0_i32, %c0_i32_0 : i32, i32, i32
  }
  func.func @transform_2(%arg0: i32, %arg1: i32, %arg2: i32) -> (i32, i32, i32) {
    %c0_i32 = arith.constant 0 : i32
    %c0_i32_0 = arith.constant 0 : i32
    %c0_i32_1 = arith.constant 0 : i32
    return %arg0, %c0_i32, %c0_i32_0 : i32, i32, i32
  }
  func.func @transform_3(%arg0: i32, %arg1: i32, %arg2: i32) -> (i32, i32) {
    %c0_i32 = arith.constant 0 : i32
    %c0_i32_0 = arith.constant 0 : i32
    %c0_i32_1 = arith.constant 0 : i32
    return %c0_i32, %c0_i32_0 : i32, i32
  }
  func.func @transform_4(%arg0: i32, %arg1: i32, %arg2: i32) -> (i32, i32) {
    %c0_i32 = arith.constant 0 : i32
    %c0_i32_0 = arith.constant 0 : i32
    %c0_i32_1 = arith.constant 0 : i32
    return %c0_i32, %c0_i32_0 : i32, i32
  }
  func.func @transform_5(%arg0: i32, %arg1: i32, %arg2: i32) -> (i32, i32, i32) {
    %c0_i32 = arith.constant 0 : i32
    %c0_i32_0 = arith.constant 0 : i32
    return %arg0, %arg1, %c0_i32 : i32, i32, i32
  }
}

module attributes {stable_mosaic.version = 11 : i64} {
  func.func @_gauss_kernel(%arg0: i32, %arg1: i32, %arg2: i32, %arg3: memref<1x4x8xf32, #tpu.memory_space<vmem>>, %arg4: memref<1x8x8xf32, #tpu.memory_space<vmem>>, %arg5: memref<1x8x65xbf16, #tpu.memory_space<vmem>>, %arg6: memref<64x96xf32, #tpu.memory_space<vmem>>, %arg7: memref<1x96xf32, #tpu.memory_space<vmem>>, %arg8: memref<96x96xf32, #tpu.memory_space<vmem>>, %arg9: memref<1x96xf32, #tpu.memory_space<vmem>>, %arg10: memref<1x4x96xf32, #tpu.memory_space<vmem>>, %arg11: memref<4x65xf32, #tpu.memory_space<vmem>>) attributes {dimension_semantics = [#tpu.dimension_semantics<parallel>, #tpu.dimension_semantics<parallel>, #tpu.dimension_semantics<arbitrary>], iteration_bounds = array<i64: 2, 1, 1>, scalar_prefetch = 0 : i64, scratch_operands = 1 : i64, tpu.core_type = #tpu.core_type<tc>, window_params = [{transform_indices = @transform_0, window_bounds = array<i64: 1, 4, 8>}, {transform_indices = @transform_1, window_bounds = array<i64: 1, 8, 8>}, {transform_indices = @transform_2, window_bounds = array<i64: 1, 8, 65>}, {pipeline_mode = #tpu.pipeline_mode<synchronous>, transform_indices = @transform_3, window_bounds = array<i64: 64, 96>}, {pipeline_mode = #tpu.pipeline_mode<synchronous>, transform_indices = @transform_4, window_bounds = array<i64: 1, 96>}, {pipeline_mode = #tpu.pipeline_mode<synchronous>, transform_indices = @transform_5, window_bounds = array<i64: 96, 96>}, {pipeline_mode = #tpu.pipeline_mode<synchronous>, transform_indices = @transform_6, window_bounds = array<i64: 1, 96>}, {transform_indices = @transform_7, window_bounds = array<i64: 1, 4, 96>}]} {
    %c0_i32 = arith.constant 0 : i32
    %0 = arith.cmpi eq, %arg2, %c0_i32 : i32
    %1 = arith.extui %0 : i1 to i32
    %c0_i32_0 = arith.constant 0 : i32
    %2 = arith.cmpi ne, %1, %c0_i32_0 : i32
    scf.if %2 {
      %cst_21 = arith.constant 0.000000e+00 : f32
      %35 = vector.broadcast %cst_21 : f32 to vector<4x65xf32>
      %c0_22 = arith.constant 0 : index
      %c0_23 = arith.constant 0 : index
      %36 = vector.load %arg11[%c0_22, %c0_23] : memref<4x65xf32, #tpu.memory_space<vmem>>, vector<4x65xf32>
      tpu.vector_store %arg11[%c0_22, %c0_23], %35 {strides = array<i32>} : memref<4x65xf32, #tpu.memory_space<vmem>>, vector<4x65xf32>,
    } else {
    }
    %c0 = arith.constant 0 : index
    %c0_1 = arith.constant 0 : index
    %c0_2 = arith.constant 0 : index
    %3 = vector.load %arg4[%c0, %c0_1, %c0_2] : memref<1x8x8xf32, #tpu.memory_space<vmem>>, vector<1x8x8xf32>
    %4 = vector.shape_cast %3 : vector<1x8x8xf32> to vector<8x8xf32>
    %c0_3 = arith.constant 0 : index
    %c0_4 = arith.constant 0 : index
    %c0_5 = arith.constant 0 : index
    %5 = vector.load %arg5[%c0_3, %c0_4, %c0_5] : memref<1x8x65xbf16, #tpu.memory_space<vmem>>, vector<1x8x65xbf16>
    %6 = vector.shape_cast %5 : vector<1x8x65xbf16> to vector<8x65xbf16>
    %c0_6 = arith.constant 0 : index
    %c0_7 = arith.constant 0 : index
    %c0_8 = arith.constant 0 : index
    %7 = vector.load %arg3[%c0_6, %c0_7, %c0_8] : memref<1x4x8xf32, #tpu.memory_space<vmem>>, vector<1x4x8xf32>
    %8 = vector.shape_cast %7 : vector<1x4x8xf32> to vector<4x8xf32>
    %cst = arith.constant dense<0.000000e+00> : vector<4x8xf32>
    %9 = tpu.matmul %8, %4, %cst {dimension_numbers = #tpu.dot_dimension_numbers<[1], [1], [0], [0], [0, 0, 1, 0], [], []>} : vector<4x8xf32>, vector<8x8xf32>, vector<4x8xf32> -> vector<4x8xf32>
    %cst_9 = arith.constant 0.000000e+00 : f32
    %10 = vector.broadcast %cst_9 : f32 to vector<4x8xf32>
    %11 = arith.maximumf %9, %10 : vector<4x8xf32>
    %cst_10 = arith.constant -4.8828125E-4 : f32
    %12 = vector.broadcast %cst_10 : f32 to vector<4x8xf32>
    %13 = arith.mulf %12, %11 : vector<4x8xf32>
    %14 = math.exp %13 : vector<4x8xf32>
    %15 = arith.mulf %14, %14 : vector<4x8xf32>
    %16 = arith.mulf %15, %15 : vector<4x8xf32>
    %17 = arith.mulf %16, %16 : vector<4x8xf32>
    %18 = arith.mulf %17, %17 : vector<4x8xf32>
    %cst_11 = arith.constant 3.300000e-01 : f32
    %19 = vector.broadcast %cst_11 : f32 to vector<4x8xf32>
    %20 = arith.mulf %19, %18 : vector<4x8xf32>
    %cst_12 = arith.constant 3.300000e-01 : f32
    %21 = vector.broadcast %cst_12 : f32 to vector<4x8xf32>
    %22 = arith.mulf %21, %16 : vector<4x8xf32>
    %23 = arith.addf %20, %22 : vector<4x8xf32>
    %cst_13 = arith.constant 3.400000e-01 : f32
    %24 = vector.broadcast %cst_13 : f32 to vector<4x8xf32>
    %25 = arith.mulf %24, %14 : vector<4x8xf32>
    %26 = arith.addf %23, %25 : vector<4x8xf32>
    %c0_14 = arith.constant 0 : index
    %c0_15 = arith.constant 0 : index
    %27 = vector.load %arg11[%c0_14, %c0_15] : memref<4x65xf32, #tpu.memory_space<vmem>>, vector<4x65xf32>
    %28 = arith.truncf %26 : vector<4x8xf32> to vector<4x8xbf16>
    %cst_16 = arith.constant dense<0.000000e+00> : vector<4x65xf32>
    %29 = tpu.matmul %28, %6, %cst_16 {dimension_numbers = #tpu.dot_dimension_numbers<[1], [0], [0], [1], [0, 0, 1, 1], [], []>} : vector<4x8xbf16>, vector<8x65xbf16>, vector<4x65xf32> -> vector<4x65xf32>
    %30 = arith.addf %27, %29 : vector<4x65xf32>
    %c0_17 = arith.constant 0 : index
    %c0_18 = arith.constant 0 : index
    %31 = vector.load %arg11[%c0_17, %c0_18] : memref<4x65xf32, #tpu.memory_space<vmem>>, vector<4x65xf32>
    tpu.vector_store %arg11[%c0_17, %c0_18], %30 {strides = array<i32>} : memref<4x65xf32, #tpu.memory_space<vmem>>, vector<4x65xf32>,
    %c0_i32_19 = arith.constant 0 : i32
    %32 = arith.cmpi eq, %arg2, %c0_i32_19 : i32
    %33 = arith.extui %32 : i1 to i32
    %c0_i32_20 = arith.constant 0 : i32
    %34 = arith.cmpi ne, %33, %c0_i32_20 : i32
    scf.if %34 {
      %c0_21 = arith.constant 0 : index
      %c0_22 = arith.constant 0 : index
      %35 = vector.load %arg11[%c0_21, %c0_22] : memref<4x65xf32, #tpu.memory_space<vmem>>, vector<4x65xf32>
      %36 = vector.extract_strided_slice %35 {offsets = [0, 0], sizes = [4, 64], strides = [1, 1]} : vector<4x65xf32> to vector<4x64xf32>
      %37 = vector.extract_strided_slice %35 {offsets = [0, 64], sizes = [4, 1], strides = [1, 1]} : vector<4x65xf32> to vector<4x1xf32>
      %cst_23 = arith.constant 9.99999971E-10 : f32
      %38 = vector.broadcast %cst_23 : f32 to vector<4x1xf32>
      %39 = arith.addf %37, %38 : vector<4x1xf32>
      %40 = tpu.reciprocal %39 {approx = true} : vector<4x1xf32> -> vector<4x1xf32>
      %41 = vector.broadcast %40 : vector<4x1xf32> to vector<4x64xf32>
      %42 = arith.mulf %36, %41 : vector<4x64xf32>
      %c0_24 = arith.constant 0 : index
      %c0_25 = arith.constant 0 : index
      %43 = vector.load %arg6[%c0_24, %c0_25] : memref<64x96xf32, #tpu.memory_space<vmem>>, vector<64x96xf32>
      %c0_26 = arith.constant 0 : index
      %c0_27 = arith.constant 0 : index
      %44 = vector.load %arg7[%c0_26, %c0_27] : memref<1x96xf32, #tpu.memory_space<vmem>>, vector<1x96xf32>
      %cst_28 = arith.constant dense<0.000000e+00> : vector<4x96xf32>
      %45 = tpu.matmul %42, %43, %cst_28 {dimension_numbers = #tpu.dot_dimension_numbers<[1], [0], [0], [1], [0, 0, 1, 1], [], []>} : vector<4x64xf32>, vector<64x96xf32>, vector<4x96xf32> -> vector<4x96xf32>
      %46 = vector.broadcast %44 : vector<1x96xf32> to vector<4x96xf32>
      %47 = arith.addf %45, %46 : vector<4x96xf32>
      %cst_29 = arith.constant 0.000000e+00 : f32
      %48 = vector.broadcast %cst_29 : f32 to vector<4x96xf32>
      %49 = arith.cmpf oge, %47, %48 : vector<4x96xf32>
      %cst_30 = arith.constant 1.000000e-01 : f32
      %50 = vector.broadcast %cst_30 : f32 to vector<4x96xf32>
      %51 = arith.mulf %50, %47 : vector<4x96xf32>
      %52 = arith.select %49, %47, %51 : vector<4x96xi1>, vector<4x96xf32>
      %c0_31 = arith.constant 0 : index
      %c0_32 = arith.constant 0 : index
      %53 = vector.load %arg8[%c0_31, %c0_32] : memref<96x96xf32, #tpu.memory_space<vmem>>, vector<96x96xf32>
      %c0_33 = arith.constant 0 : index
      %c0_34 = arith.constant 0 : index
      %54 = vector.load %arg9[%c0_33, %c0_34] : memref<1x96xf32, #tpu.memory_space<vmem>>, vector<1x96xf32>
      %cst_35 = arith.constant dense<0.000000e+00> : vector<4x96xf32>
      %55 = tpu.matmul %52, %53, %cst_35 {dimension_numbers = #tpu.dot_dimension_numbers<[1], [0], [0], [1], [0, 0, 1, 1], [], []>} : vector<4x96xf32>, vector<96x96xf32>, vector<4x96xf32> -> vector<4x96xf32>
      %56 = vector.broadcast %54 : vector<1x96xf32> to vector<4x96xf32>
      %57 = arith.addf %55, %56 : vector<4x96xf32>
      %cst_36 = arith.constant 0.000000e+00 : f32
      %58 = vector.broadcast %cst_36 : f32 to vector<4x96xf32>
      %59 = arith.cmpf oge, %57, %58 : vector<4x96xf32>
      %cst_37 = arith.constant 1.000000e-01 : f32
      %60 = vector.broadcast %cst_37 : f32 to vector<4x96xf32>
      %61 = arith.mulf %60, %57 : vector<4x96xf32>
      %62 = arith.select %59, %57, %61 : vector<4x96xi1>, vector<4x96xf32>
      %c0_38 = arith.constant 0 : index
      %c0_39 = arith.constant 0 : index
      %c0_40 = arith.constant 0 : index
      %63 = vector.load %arg10[%c0_38, %c0_39, %c0_40] : memref<1x4x96xf32, #tpu.memory_space<vmem>>, vector<1x4x96xf32>
      %64 = vector.shape_cast %63 : vector<1x4x96xf32> to vector<4x96xf32>
      %65 = vector.shape_cast %62 : vector<4x96xf32> to vector<1x4x96xf32>
      tpu.vector_store %arg10[%c0_38, %c0_39, %c0_40], %65 {strides = array<i32>} : memref<1x4x96xf32, #tpu.memory_space<vmem>>, vector<1x4x96xf32>,
    } else {
    }
    return
  }
  func.func @transform_0(%arg0: i32, %arg1: i32, %arg2: i32) -> (i32, i32, i32) {
    %c0_i32 = arith.constant 0 : i32
    %c0_i32_0 = arith.constant 0 : i32
    return %arg0, %arg1, %c0_i32 : i32, i32, i32
  }
  func.func @transform_1(%arg0: i32, %arg1: i32, %arg2: i32) -> (i32, i32, i32) {
    %c0_i32 = arith.constant 0 : i32
    %c0_i32_0 = arith.constant 0 : i32
    %c0_i32_1 = arith.constant 0 : i32
    return %arg0, %c0_i32, %c0_i32_0 : i32, i32, i32
  }
  func.func @transform_2(%arg0: i32, %arg1: i32, %arg2: i32) -> (i32, i32, i32) {
    %c0_i32 = arith.constant 0 : i32
    %c0_i32_0 = arith.constant 0 : i32
    %c0_i32_1 = arith.constant 0 : i32
    return %arg0, %c0_i32, %c0_i32_0 : i32, i32, i32
  }
  func.func @transform_3(%arg0: i32, %arg1: i32, %arg2: i32) -> (i32, i32) {
    %c0_i32 = arith.constant 0 : i32
    %c0_i32_0 = arith.constant 0 : i32
    %c0_i32_1 = arith.constant 0 : i32
    return %c0_i32, %c0_i32_0 : i32, i32
  }
  func.func @transform_4(%arg0: i32, %arg1: i32, %arg2: i32) -> (i32, i32) {
    %c0_i32 = arith.constant 0 : i32
    %c0_i32_0 = arith.constant 0 : i32
    %c0_i32_1 = arith.constant 0 : i32
    return %c0_i32, %c0_i32_0 : i32, i32
  }
  func.func @transform_5(%arg0: i32, %arg1: i32, %arg2: i32) -> (i32, i32) {
    %c0_i32 = arith.constant 0 : i32
    %c0_i32_0 = arith.constant 0 : i32
    %c0_i32_1 = arith.constant 0 : i32
    return %c0_i32, %c0_i32_0 : i32, i32
  }
  func.func @transform_6(%arg0: i32, %arg1: i32, %arg2: i32) -> (i32, i32) {
    %c0_i32 = arith.constant 0 : i32
    %c0_i32_0 = arith.constant 0 : i32
    %c0_i32_1 = arith.constant 0 : i32
    return %c0_i32, %c0_i32_0 : i32, i32
  }
  func.func @transform_7(%arg0: i32, %arg1: i32, %arg2: i32) -> (i32, i32, i32) {
    %c0_i32 = arith.constant 0 : i32
    %c0_i32_0 = arith.constant 0 : i32
    return %arg0, %arg1, %c0_i32 : i32, i32, i32
  }
}

module attributes {stable_mosaic.version = 11 : i64} {
  func.func @_gauss_kernel(%arg0: i32, %arg1: i32, %arg2: i32, %arg3: memref<1x4x8xf32, #tpu.memory_space<vmem>>, %arg4: memref<1x4x8xf32, #tpu.memory_space<vmem>>, %arg5: memref<1x4x97xbf16, #tpu.memory_space<vmem>>, %arg6: memref<96x96xf32, #tpu.memory_space<vmem>>, %arg7: memref<1x96xf32, #tpu.memory_space<vmem>>, %arg8: memref<1x4x96xf32, #tpu.memory_space<vmem>>, %arg9: memref<4x97xf32, #tpu.memory_space<vmem>>) attributes {dimension_semantics = [#tpu.dimension_semantics<parallel>, #tpu.dimension_semantics<parallel>, #tpu.dimension_semantics<arbitrary>], iteration_bounds = array<i64: 2, 1, 1>, scalar_prefetch = 0 : i64, scratch_operands = 1 : i64, tpu.core_type = #tpu.core_type<tc>, window_params = [{transform_indices = @transform_0, window_bounds = array<i64: 1, 4, 8>}, {transform_indices = @transform_1, window_bounds = array<i64: 1, 4, 8>}, {transform_indices = @transform_2, window_bounds = array<i64: 1, 4, 97>}, {pipeline_mode = #tpu.pipeline_mode<synchronous>, transform_indices = @transform_3, window_bounds = array<i64: 96, 96>}, {pipeline_mode = #tpu.pipeline_mode<synchronous>, transform_indices = @transform_4, window_bounds = array<i64: 1, 96>}, {transform_indices = @transform_5, window_bounds = array<i64: 1, 4, 96>}]} {
    %c0_i32 = arith.constant 0 : i32
    %0 = arith.cmpi eq, %arg2, %c0_i32 : i32
    %1 = arith.extui %0 : i1 to i32
    %c0_i32_0 = arith.constant 0 : i32
    %2 = arith.cmpi ne, %1, %c0_i32_0 : i32
    scf.if %2 {
      %cst_21 = arith.constant 0.000000e+00 : f32
      %35 = vector.broadcast %cst_21 : f32 to vector<4x97xf32>
      %c0_22 = arith.constant 0 : index
      %c0_23 = arith.constant 0 : index
      %36 = vector.load %arg9[%c0_22, %c0_23] : memref<4x97xf32, #tpu.memory_space<vmem>>, vector<4x97xf32>
      tpu.vector_store %arg9[%c0_22, %c0_23], %35 {strides = array<i32>} : memref<4x97xf32, #tpu.memory_space<vmem>>, vector<4x97xf32>,
    } else {
    }
    %c0 = arith.constant 0 : index
    %c0_1 = arith.constant 0 : index
    %c0_2 = arith.constant 0 : index
    %3 = vector.load %arg4[%c0, %c0_1, %c0_2] : memref<1x4x8xf32, #tpu.memory_space<vmem>>, vector<1x4x8xf32>
    %4 = vector.shape_cast %3 : vector<1x4x8xf32> to vector<4x8xf32>
    %c0_3 = arith.constant 0 : index
    %c0_4 = arith.constant 0 : index
    %c0_5 = arith.constant 0 : index
    %5 = vector.load %arg5[%c0_3, %c0_4, %c0_5] : memref<1x4x97xbf16, #tpu.memory_space<vmem>>, vector<1x4x97xbf16>
    %6 = vector.shape_cast %5 : vector<1x4x97xbf16> to vector<4x97xbf16>
    %c0_6 = arith.constant 0 : index
    %c0_7 = arith.constant 0 : index
    %c0_8 = arith.constant 0 : index
    %7 = vector.load %arg3[%c0_6, %c0_7, %c0_8] : memref<1x4x8xf32, #tpu.memory_space<vmem>>, vector<1x4x8xf32>
    %8 = vector.shape_cast %7 : vector<1x4x8xf32> to vector<4x8xf32>
    %cst = arith.constant dense<0.000000e+00> : vector<4x4xf32>
    %9 = tpu.matmul %8, %4, %cst {dimension_numbers = #tpu.dot_dimension_numbers<[1], [1], [0], [0], [0, 0, 1, 0], [], []>} : vector<4x8xf32>, vector<4x8xf32>, vector<4x4xf32> -> vector<4x4xf32>
    %cst_9 = arith.constant 0.000000e+00 : f32
    %10 = vector.broadcast %cst_9 : f32 to vector<4x4xf32>
    %11 = arith.maximumf %9, %10 : vector<4x4xf32>
    %cst_10 = arith.constant -4.8828125E-4 : f32
    %12 = vector.broadcast %cst_10 : f32 to vector<4x4xf32>
    %13 = arith.mulf %12, %11 : vector<4x4xf32>
    %14 = math.exp %13 : vector<4x4xf32>
    %15 = arith.mulf %14, %14 : vector<4x4xf32>
    %16 = arith.mulf %15, %15 : vector<4x4xf32>
    %17 = arith.mulf %16, %16 : vector<4x4xf32>
    %18 = arith.mulf %17, %17 : vector<4x4xf32>
    %cst_11 = arith.constant 3.300000e-01 : f32
    %19 = vector.broadcast %cst_11 : f32 to vector<4x4xf32>
    %20 = arith.mulf %19, %18 : vector<4x4xf32>
    %cst_12 = arith.constant 3.300000e-01 : f32
    %21 = vector.broadcast %cst_12 : f32 to vector<4x4xf32>
    %22 = arith.mulf %21, %16 : vector<4x4xf32>
    %23 = arith.addf %20, %22 : vector<4x4xf32>
    %cst_13 = arith.constant 3.400000e-01 : f32
    %24 = vector.broadcast %cst_13 : f32 to vector<4x4xf32>
    %25 = arith.mulf %24, %14 : vector<4x4xf32>
    %26 = arith.addf %23, %25 : vector<4x4xf32>
    %c0_14 = arith.constant 0 : index
    %c0_15 = arith.constant 0 : index
    %27 = vector.load %arg9[%c0_14, %c0_15] : memref<4x97xf32, #tpu.memory_space<vmem>>, vector<4x97xf32>
    %28 = arith.truncf %26 : vector<4x4xf32> to vector<4x4xbf16>
    %cst_16 = arith.constant dense<0.000000e+00> : vector<4x97xf32>
    %29 = tpu.matmul %28, %6, %cst_16 {dimension_numbers = #tpu.dot_dimension_numbers<[1], [0], [0], [1], [0, 0, 1, 1], [], []>} : vector<4x4xbf16>, vector<4x97xbf16>, vector<4x97xf32> -> vector<4x97xf32>
    %30 = arith.addf %27, %29 : vector<4x97xf32>
    %c0_17 = arith.constant 0 : index
    %c0_18 = arith.constant 0 : index
    %31 = vector.load %arg9[%c0_17, %c0_18] : memref<4x97xf32, #tpu.memory_space<vmem>>, vector<4x97xf32>
    tpu.vector_store %arg9[%c0_17, %c0_18], %30 {strides = array<i32>} : memref<4x97xf32, #tpu.memory_space<vmem>>, vector<4x97xf32>,
    %c0_i32_19 = arith.constant 0 : i32
    %32 = arith.cmpi eq, %arg2, %c0_i32_19 : i32
    %33 = arith.extui %32 : i1 to i32
    %c0_i32_20 = arith.constant 0 : i32
    %34 = arith.cmpi ne, %33, %c0_i32_20 : i32
    scf.if %34 {
      %c0_21 = arith.constant 0 : index
      %c0_22 = arith.constant 0 : index
      %35 = vector.load %arg9[%c0_21, %c0_22] : memref<4x97xf32, #tpu.memory_space<vmem>>, vector<4x97xf32>
      %36 = vector.extract_strided_slice %35 {offsets = [0, 0], sizes = [4, 96], strides = [1, 1]} : vector<4x97xf32> to vector<4x96xf32>
      %37 = vector.extract_strided_slice %35 {offsets = [0, 96], sizes = [4, 1], strides = [1, 1]} : vector<4x97xf32> to vector<4x1xf32>
      %cst_23 = arith.constant 9.99999971E-10 : f32
      %38 = vector.broadcast %cst_23 : f32 to vector<4x1xf32>
      %39 = arith.addf %37, %38 : vector<4x1xf32>
      %40 = tpu.reciprocal %39 {approx = true} : vector<4x1xf32> -> vector<4x1xf32>
      %41 = vector.broadcast %40 : vector<4x1xf32> to vector<4x96xf32>
      %42 = arith.mulf %36, %41 : vector<4x96xf32>
      %c0_24 = arith.constant 0 : index
      %c0_25 = arith.constant 0 : index
      %43 = vector.load %arg6[%c0_24, %c0_25] : memref<96x96xf32, #tpu.memory_space<vmem>>, vector<96x96xf32>
      %c0_26 = arith.constant 0 : index
      %c0_27 = arith.constant 0 : index
      %44 = vector.load %arg7[%c0_26, %c0_27] : memref<1x96xf32, #tpu.memory_space<vmem>>, vector<1x96xf32>
      %cst_28 = arith.constant dense<0.000000e+00> : vector<4x96xf32>
      %45 = tpu.matmul %42, %43, %cst_28 {dimension_numbers = #tpu.dot_dimension_numbers<[1], [0], [0], [1], [0, 0, 1, 1], [], []>} : vector<4x96xf32>, vector<96x96xf32>, vector<4x96xf32> -> vector<4x96xf32>
      %46 = vector.broadcast %44 : vector<1x96xf32> to vector<4x96xf32>
      %47 = arith.addf %45, %46 : vector<4x96xf32>
      %cst_29 = arith.constant 0.000000e+00 : f32
      %48 = vector.broadcast %cst_29 : f32 to vector<4x96xf32>
      %49 = arith.cmpf oge, %47, %48 : vector<4x96xf32>
      %cst_30 = arith.constant 1.000000e-01 : f32
      %50 = vector.broadcast %cst_30 : f32 to vector<4x96xf32>
      %51 = arith.mulf %50, %47 : vector<4x96xf32>
      %52 = arith.select %49, %47, %51 : vector<4x96xi1>, vector<4x96xf32>
      %c0_31 = arith.constant 0 : index
      %c0_32 = arith.constant 0 : index
      %c0_33 = arith.constant 0 : index
      %53 = vector.load %arg8[%c0_31, %c0_32, %c0_33] : memref<1x4x96xf32, #tpu.memory_space<vmem>>, vector<1x4x96xf32>
      %54 = vector.shape_cast %53 : vector<1x4x96xf32> to vector<4x96xf32>
      %55 = vector.shape_cast %52 : vector<4x96xf32> to vector<1x4x96xf32>
      tpu.vector_store %arg8[%c0_31, %c0_32, %c0_33], %55 {strides = array<i32>} : memref<1x4x96xf32, #tpu.memory_space<vmem>>, vector<1x4x96xf32>,
    } else {
    }
    return
  }
  func.func @transform_0(%arg0: i32, %arg1: i32, %arg2: i32) -> (i32, i32, i32) {
    %c0_i32 = arith.constant 0 : i32
    %c0_i32_0 = arith.constant 0 : i32
    return %arg0, %arg1, %c0_i32 : i32, i32, i32
  }
  func.func @transform_1(%arg0: i32, %arg1: i32, %arg2: i32) -> (i32, i32, i32) {
    %c0_i32 = arith.constant 0 : i32
    %c0_i32_0 = arith.constant 0 : i32
    %c0_i32_1 = arith.constant 0 : i32
    return %arg0, %c0_i32, %c0_i32_0 : i32, i32, i32
  }
  func.func @transform_2(%arg0: i32, %arg1: i32, %arg2: i32) -> (i32, i32, i32) {
    %c0_i32 = arith.constant 0 : i32
    %c0_i32_0 = arith.constant 0 : i32
    %c0_i32_1 = arith.constant 0 : i32
    return %arg0, %c0_i32, %c0_i32_0 : i32, i32, i32
  }
  func.func @transform_3(%arg0: i32, %arg1: i32, %arg2: i32) -> (i32, i32) {
    %c0_i32 = arith.constant 0 : i32
    %c0_i32_0 = arith.constant 0 : i32
    %c0_i32_1 = arith.constant 0 : i32
    return %c0_i32, %c0_i32_0 : i32, i32
  }
  func.func @transform_4(%arg0: i32, %arg1: i32, %arg2: i32) -> (i32, i32) {
    %c0_i32 = arith.constant 0 : i32
    %c0_i32_0 = arith.constant 0 : i32
    %c0_i32_1 = arith.constant 0 : i32
    return %c0_i32, %c0_i32_0 : i32, i32
  }
  func.func @transform_5(%arg0: i32, %arg1: i32, %arg2: i32) -> (i32, i32, i32) {
    %c0_i32 = arith.constant 0 : i32
    %c0_i32_0 = arith.constant 0 : i32
    return %arg0, %arg1, %c0_i32 : i32, i32, i32
  }
}

module attributes {stable_mosaic.version = 11 : i64} {
  func.func @_gauss_kernel(%arg0: i32, %arg1: i32, %arg2: i32, %arg3: memref<1x8x8xf32, #tpu.memory_space<vmem>>, %arg4: memref<1x4x8xf32, #tpu.memory_space<vmem>>, %arg5: memref<1x4x97xbf16, #tpu.memory_space<vmem>>, %arg6: memref<1x8x96xf32, #tpu.memory_space<vmem>>, %arg7: memref<8x97xf32, #tpu.memory_space<vmem>>) attributes {dimension_semantics = [#tpu.dimension_semantics<parallel>, #tpu.dimension_semantics<parallel>, #tpu.dimension_semantics<arbitrary>], iteration_bounds = array<i64: 2, 1, 1>, scalar_prefetch = 0 : i64, scratch_operands = 1 : i64, tpu.core_type = #tpu.core_type<tc>, window_params = [{transform_indices = @transform_0, window_bounds = array<i64: 1, 8, 8>}, {transform_indices = @transform_1, window_bounds = array<i64: 1, 4, 8>}, {transform_indices = @transform_2, window_bounds = array<i64: 1, 4, 97>}, {transform_indices = @transform_3, window_bounds = array<i64: 1, 8, 96>}]} {
    %c0_i32 = arith.constant 0 : i32
    %0 = arith.cmpi eq, %arg2, %c0_i32 : i32
    %1 = arith.extui %0 : i1 to i32
    %c0_i32_0 = arith.constant 0 : i32
    %2 = arith.cmpi ne, %1, %c0_i32_0 : i32
    scf.if %2 {
      %cst_21 = arith.constant 0.000000e+00 : f32
      %35 = vector.broadcast %cst_21 : f32 to vector<8x97xf32>
      %c0_22 = arith.constant 0 : index
      %c0_23 = arith.constant 0 : index
      %36 = vector.load %arg7[%c0_22, %c0_23] : memref<8x97xf32, #tpu.memory_space<vmem>>, vector<8x97xf32>
      tpu.vector_store %arg7[%c0_22, %c0_23], %35 {strides = array<i32>} : memref<8x97xf32, #tpu.memory_space<vmem>>, vector<8x97xf32>,
    } else {
    }
    %c0 = arith.constant 0 : index
    %c0_1 = arith.constant 0 : index
    %c0_2 = arith.constant 0 : index
    %3 = vector.load %arg4[%c0, %c0_1, %c0_2] : memref<1x4x8xf32, #tpu.memory_space<vmem>>, vector<1x4x8xf32>
    %4 = vector.shape_cast %3 : vector<1x4x8xf32> to vector<4x8xf32>
    %c0_3 = arith.constant 0 : index
    %c0_4 = arith.constant 0 : index
    %c0_5 = arith.constant 0 : index
    %5 = vector.load %arg5[%c0_3, %c0_4, %c0_5] : memref<1x4x97xbf16, #tpu.memory_space<vmem>>, vector<1x4x97xbf16>
    %6 = vector.shape_cast %5 : vector<1x4x97xbf16> to vector<4x97xbf16>
    %c0_6 = arith.constant 0 : index
    %c0_7 = arith.constant 0 : index
    %c0_8 = arith.constant 0 : index
    %7 = vector.load %arg3[%c0_6, %c0_7, %c0_8] : memref<1x8x8xf32, #tpu.memory_space<vmem>>, vector<1x8x8xf32>
    %8 = vector.shape_cast %7 : vector<1x8x8xf32> to vector<8x8xf32>
    %cst = arith.constant dense<0.000000e+00> : vector<8x4xf32>
    %9 = tpu.matmul %8, %4, %cst {dimension_numbers = #tpu.dot_dimension_numbers<[1], [1], [0], [0], [0, 0, 1, 0], [], []>} : vector<8x8xf32>, vector<4x8xf32>, vector<8x4xf32> -> vector<8x4xf32>
    %cst_9 = arith.constant 0.000000e+00 : f32
    %10 = vector.broadcast %cst_9 : f32 to vector<8x4xf32>
    %11 = arith.maximumf %9, %10 : vector<8x4xf32>
    %cst_10 = arith.constant -0.001953125 : f32
    %12 = vector.broadcast %cst_10 : f32 to vector<8x4xf32>
    %13 = arith.mulf %12, %11 : vector<8x4xf32>
    %14 = math.exp %13 : vector<8x4xf32>
    %15 = arith.mulf %14, %14 : vector<8x4xf32>
    %16 = arith.mulf %15, %15 : vector<8x4xf32>
    %17 = arith.mulf %16, %16 : vector<8x4xf32>
    %18 = arith.mulf %17, %17 : vector<8x4xf32>
    %cst_11 = arith.constant 3.300000e-01 : f32
    %19 = vector.broadcast %cst_11 : f32 to vector<8x4xf32>
    %20 = arith.mulf %19, %18 : vector<8x4xf32>
    %cst_12 = arith.constant 3.300000e-01 : f32
    %21 = vector.broadcast %cst_12 : f32 to vector<8x4xf32>
    %22 = arith.mulf %21, %16 : vector<8x4xf32>
    %23 = arith.addf %20, %22 : vector<8x4xf32>
    %cst_13 = arith.constant 3.400000e-01 : f32
    %24 = vector.broadcast %cst_13 : f32 to vector<8x4xf32>
    %25 = arith.mulf %24, %14 : vector<8x4xf32>
    %26 = arith.addf %23, %25 : vector<8x4xf32>
    %c0_14 = arith.constant 0 : index
    %c0_15 = arith.constant 0 : index
    %27 = vector.load %arg7[%c0_14, %c0_15] : memref<8x97xf32, #tpu.memory_space<vmem>>, vector<8x97xf32>
    %28 = arith.truncf %26 : vector<8x4xf32> to vector<8x4xbf16>
    %cst_16 = arith.constant dense<0.000000e+00> : vector<8x97xf32>
    %29 = tpu.matmul %28, %6, %cst_16 {dimension_numbers = #tpu.dot_dimension_numbers<[1], [0], [0], [1], [0, 0, 1, 1], [], []>} : vector<8x4xbf16>, vector<4x97xbf16>, vector<8x97xf32> -> vector<8x97xf32>
    %30 = arith.addf %27, %29 : vector<8x97xf32>
    %c0_17 = arith.constant 0 : index
    %c0_18 = arith.constant 0 : index
    %31 = vector.load %arg7[%c0_17, %c0_18] : memref<8x97xf32, #tpu.memory_space<vmem>>, vector<8x97xf32>
    tpu.vector_store %arg7[%c0_17, %c0_18], %30 {strides = array<i32>} : memref<8x97xf32, #tpu.memory_space<vmem>>, vector<8x97xf32>,
    %c0_i32_19 = arith.constant 0 : i32
    %32 = arith.cmpi eq, %arg2, %c0_i32_19 : i32
    %33 = arith.extui %32 : i1 to i32
    %c0_i32_20 = arith.constant 0 : i32
    %34 = arith.cmpi ne, %33, %c0_i32_20 : i32
    scf.if %34 {
      %c0_21 = arith.constant 0 : index
      %c0_22 = arith.constant 0 : index
      %35 = vector.load %arg7[%c0_21, %c0_22] : memref<8x97xf32, #tpu.memory_space<vmem>>, vector<8x97xf32>
      %36 = vector.extract_strided_slice %35 {offsets = [0, 0], sizes = [8, 96], strides = [1, 1]} : vector<8x97xf32> to vector<8x96xf32>
      %37 = vector.extract_strided_slice %35 {offsets = [0, 96], sizes = [8, 1], strides = [1, 1]} : vector<8x97xf32> to vector<8x1xf32>
      %cst_23 = arith.constant 9.99999971E-10 : f32
      %38 = vector.broadcast %cst_23 : f32 to vector<8x1xf32>
      %39 = arith.addf %37, %38 : vector<8x1xf32>
      %40 = tpu.reciprocal %39 {approx = true} : vector<8x1xf32> -> vector<8x1xf32>
      %41 = vector.broadcast %40 : vector<8x1xf32> to vector<8x96xf32>
      %42 = arith.mulf %36, %41 : vector<8x96xf32>
      %c0_24 = arith.constant 0 : index
      %c0_25 = arith.constant 0 : index
      %c0_26 = arith.constant 0 : index
      %43 = vector.load %arg6[%c0_24, %c0_25, %c0_26] : memref<1x8x96xf32, #tpu.memory_space<vmem>>, vector<1x8x96xf32>
      %44 = vector.shape_cast %43 : vector<1x8x96xf32> to vector<8x96xf32>
      %45 = vector.shape_cast %42 : vector<8x96xf32> to vector<1x8x96xf32>
      tpu.vector_store %arg6[%c0_24, %c0_25, %c0_26], %45 {strides = array<i32>} : memref<1x8x96xf32, #tpu.memory_space<vmem>>, vector<1x8x96xf32>,
    } else {
    }
    return
  }
  func.func @transform_0(%arg0: i32, %arg1: i32, %arg2: i32) -> (i32, i32, i32) {
    %c0_i32 = arith.constant 0 : i32
    %c0_i32_0 = arith.constant 0 : i32
    return %arg0, %arg1, %c0_i32 : i32, i32, i32
  }
  func.func @transform_1(%arg0: i32, %arg1: i32, %arg2: i32) -> (i32, i32, i32) {
    %c0_i32 = arith.constant 0 : i32
    %c0_i32_0 = arith.constant 0 : i32
    %c0_i32_1 = arith.constant 0 : i32
    return %arg0, %c0_i32, %c0_i32_0 : i32, i32, i32
  }
  func.func @transform_2(%arg0: i32, %arg1: i32, %arg2: i32) -> (i32, i32, i32) {
    %c0_i32 = arith.constant 0 : i32
    %c0_i32_0 = arith.constant 0 : i32
    %c0_i32_1 = arith.constant 0 : i32
    return %arg0, %c0_i32, %c0_i32_0 : i32, i32, i32
  }
  func.func @transform_3(%arg0: i32, %arg1: i32, %arg2: i32) -> (i32, i32, i32) {
    %c0_i32 = arith.constant 0 : i32
    %c0_i32_0 = arith.constant 0 : i32
    return %arg0, %arg1, %c0_i32 : i32, i32, i32
  }
}

module attributes {stable_mosaic.version = 11 : i64} {
  func.func @_mlp_kernel(%arg0: i32, %arg1: memref<16x96xf32, #tpu.memory_space<vmem>>, %arg2: memref<16x64xf32, #tpu.memory_space<vmem>>, %arg3: memref<96x64xf32, #tpu.memory_space<vmem>>, %arg4: memref<64x64xf32, #tpu.memory_space<vmem>>, %arg5: memref<1x64xf32, #tpu.memory_space<vmem>>, %arg6: memref<64x64xf32, #tpu.memory_space<vmem>>, %arg7: memref<1x64xf32, #tpu.memory_space<vmem>>, %arg8: memref<16x64xf32, #tpu.memory_space<vmem>>) attributes {dimension_semantics = [#tpu.dimension_semantics<parallel>], iteration_bounds = array<i64: 1>, scalar_prefetch = 0 : i64, scratch_operands = 0 : i64, tpu.core_type = #tpu.core_type<tc>, window_params = [{transform_indices = @transform_0, window_bounds = array<i64: 16, 96>}, {transform_indices = @transform_1, window_bounds = array<i64: 16, 64>}, {pipeline_mode = #tpu.pipeline_mode<synchronous>, transform_indices = @transform_2, window_bounds = array<i64: 96, 64>}, {pipeline_mode = #tpu.pipeline_mode<synchronous>, transform_indices = @transform_3, window_bounds = array<i64: 64, 64>}, {pipeline_mode = #tpu.pipeline_mode<synchronous>, transform_indices = @transform_4, window_bounds = array<i64: 1, 64>}, {pipeline_mode = #tpu.pipeline_mode<synchronous>, transform_indices = @transform_5, window_bounds = array<i64: 64, 64>}, {pipeline_mode = #tpu.pipeline_mode<synchronous>, transform_indices = @transform_6, window_bounds = array<i64: 1, 64>}, {transform_indices = @transform_7, window_bounds = array<i64: 16, 64>}]} {
    %c0 = arith.constant 0 : index
    %c0_0 = arith.constant 0 : index
    %0 = vector.load %arg1[%c0, %c0_0] : memref<16x96xf32, #tpu.memory_space<vmem>>, vector<16x96xf32>
    %c0_1 = arith.constant 0 : index
    %c0_2 = arith.constant 0 : index
    %1 = vector.load %arg3[%c0_1, %c0_2] : memref<96x64xf32, #tpu.memory_space<vmem>>, vector<96x64xf32>
    %cst = arith.constant dense<0.000000e+00> : vector<16x64xf32>
    %2 = tpu.matmul %0, %1, %cst {dimension_numbers = #tpu.dot_dimension_numbers<[1], [0], [0], [1], [0, 0, 1, 1], [], []>} : vector<16x96xf32>, vector<96x64xf32>, vector<16x64xf32> -> vector<16x64xf32>
    %c0_3 = arith.constant 0 : index
    %c0_4 = arith.constant 0 : index
    %3 = vector.load %arg2[%c0_3, %c0_4] : memref<16x64xf32, #tpu.memory_space<vmem>>, vector<16x64xf32>
    %c0_5 = arith.constant 0 : index
    %c0_6 = arith.constant 0 : index
    %4 = vector.load %arg4[%c0_5, %c0_6] : memref<64x64xf32, #tpu.memory_space<vmem>>, vector<64x64xf32>
    %cst_7 = arith.constant dense<0.000000e+00> : vector<16x64xf32>
    %5 = tpu.matmul %3, %4, %cst_7 {dimension_numbers = #tpu.dot_dimension_numbers<[1], [0], [0], [1], [0, 0, 1, 1], [], []>} : vector<16x64xf32>, vector<64x64xf32>, vector<16x64xf32> -> vector<16x64xf32>
    %6 = arith.addf %2, %5 : vector<16x64xf32>
    %c0_8 = arith.constant 0 : index
    %c0_9 = arith.constant 0 : index
    %7 = vector.load %arg5[%c0_8, %c0_9] : memref<1x64xf32, #tpu.memory_space<vmem>>, vector<1x64xf32>
    %8 = vector.broadcast %7 : vector<1x64xf32> to vector<16x64xf32>
    %9 = arith.addf %6, %8 : vector<16x64xf32>
    %cst_10 = arith.constant 0.000000e+00 : f32
    %10 = vector.broadcast %cst_10 : f32 to vector<16x64xf32>
    %11 = arith.cmpf oge, %9, %10 : vector<16x64xf32>
    %cst_11 = arith.constant 1.000000e-01 : f32
    %12 = vector.broadcast %cst_11 : f32 to vector<16x64xf32>
    %13 = arith.mulf %12, %9 : vector<16x64xf32>
    %14 = arith.select %11, %9, %13 : vector<16x64xi1>, vector<16x64xf32>
    %c0_12 = arith.constant 0 : index
    %c0_13 = arith.constant 0 : index
    %15 = vector.load %arg6[%c0_12, %c0_13] : memref<64x64xf32, #tpu.memory_space<vmem>>, vector<64x64xf32>
    %c0_14 = arith.constant 0 : index
    %c0_15 = arith.constant 0 : index
    %16 = vector.load %arg7[%c0_14, %c0_15] : memref<1x64xf32, #tpu.memory_space<vmem>>, vector<1x64xf32>
    %cst_16 = arith.constant dense<0.000000e+00> : vector<16x64xf32>
    %17 = tpu.matmul %14, %15, %cst_16 {dimension_numbers = #tpu.dot_dimension_numbers<[1], [0], [0], [1], [0, 0, 1, 1], [], []>} : vector<16x64xf32>, vector<64x64xf32>, vector<16x64xf32> -> vector<16x64xf32>
    %18 = vector.broadcast %16 : vector<1x64xf32> to vector<16x64xf32>
    %19 = arith.addf %17, %18 : vector<16x64xf32>
    %cst_17 = arith.constant 0.000000e+00 : f32
    %20 = vector.broadcast %cst_17 : f32 to vector<16x64xf32>
    %21 = arith.cmpf oge, %19, %20 : vector<16x64xf32>
    %cst_18 = arith.constant 1.000000e-01 : f32
    %22 = vector.broadcast %cst_18 : f32 to vector<16x64xf32>
    %23 = arith.mulf %22, %19 : vector<16x64xf32>
    %24 = arith.select %21, %19, %23 : vector<16x64xi1>, vector<16x64xf32>
    %c0_19 = arith.constant 0 : index
    %c0_20 = arith.constant 0 : index
    %25 = vector.load %arg8[%c0_19, %c0_20] : memref<16x64xf32, #tpu.memory_space<vmem>>, vector<16x64xf32>
    tpu.vector_store %arg8[%c0_19, %c0_20], %24 {strides = array<i32>} : memref<16x64xf32, #tpu.memory_space<vmem>>, vector<16x64xf32>,
    return
  }
  func.func @transform_0(%arg0: i32) -> (i32, i32) {
    %c0_i32 = arith.constant 0 : i32
    %c0_i32_0 = arith.constant 0 : i32
    return %arg0, %c0_i32 : i32, i32
  }
  func.func @transform_1(%arg0: i32) -> (i32, i32) {
    %c0_i32 = arith.constant 0 : i32
    %c0_i32_0 = arith.constant 0 : i32
    return %arg0, %c0_i32 : i32, i32
  }
  func.func @transform_2(%arg0: i32) -> (i32, i32) {
    %c0_i32 = arith.constant 0 : i32
    %c0_i32_0 = arith.constant 0 : i32
    %c0_i32_1 = arith.constant 0 : i32
    return %c0_i32, %c0_i32_0 : i32, i32
  }
  func.func @transform_3(%arg0: i32) -> (i32, i32) {
    %c0_i32 = arith.constant 0 : i32
    %c0_i32_0 = arith.constant 0 : i32
    %c0_i32_1 = arith.constant 0 : i32
    return %c0_i32, %c0_i32_0 : i32, i32
  }
  func.func @transform_4(%arg0: i32) -> (i32, i32) {
    %c0_i32 = arith.constant 0 : i32
    %c0_i32_0 = arith.constant 0 : i32
    %c0_i32_1 = arith.constant 0 : i32
    return %c0_i32, %c0_i32_0 : i32, i32
  }
  func.func @transform_5(%arg0: i32) -> (i32, i32) {
    %c0_i32 = arith.constant 0 : i32
    %c0_i32_0 = arith.constant 0 : i32
    %c0_i32_1 = arith.constant 0 : i32
    return %c0_i32, %c0_i32_0 : i32, i32
  }
  func.func @transform_6(%arg0: i32) -> (i32, i32) {
    %c0_i32 = arith.constant 0 : i32
    %c0_i32_0 = arith.constant 0 : i32
    %c0_i32_1 = arith.constant 0 : i32
    return %c0_i32, %c0_i32_0 : i32, i32
  }
  func.func @transform_7(%arg0: i32) -> (i32, i32) {
    %c0_i32 = arith.constant 0 : i32
    %c0_i32_0 = arith.constant 0 : i32
    return %arg0, %c0_i32 : i32, i32
  }
}

module attributes {stable_mosaic.version = 11 : i64} {
  func.func @_gauss_kernel(%arg0: i32, %arg1: i32, %arg2: i32, %arg3: memref<1x32x8xf32, #tpu.memory_space<vmem>>, %arg4: memref<1x8x8xf32, #tpu.memory_space<vmem>>, %arg5: memref<1x8x65xbf16, #tpu.memory_space<vmem>>, %arg6: memref<1x32x64xf32, #tpu.memory_space<vmem>>, %arg7: memref<32x65xf32, #tpu.memory_space<vmem>>) attributes {dimension_semantics = [#tpu.dimension_semantics<parallel>, #tpu.dimension_semantics<parallel>, #tpu.dimension_semantics<arbitrary>], iteration_bounds = array<i64: 2, 1, 1>, scalar_prefetch = 0 : i64, scratch_operands = 1 : i64, tpu.core_type = #tpu.core_type<tc>, window_params = [{transform_indices = @transform_0, window_bounds = array<i64: 1, 32, 8>}, {transform_indices = @transform_1, window_bounds = array<i64: 1, 8, 8>}, {transform_indices = @transform_2, window_bounds = array<i64: 1, 8, 65>}, {transform_indices = @transform_3, window_bounds = array<i64: 1, 32, 64>}]} {
    %c0_i32 = arith.constant 0 : i32
    %0 = arith.cmpi eq, %arg2, %c0_i32 : i32
    %1 = arith.extui %0 : i1 to i32
    %c0_i32_0 = arith.constant 0 : i32
    %2 = arith.cmpi ne, %1, %c0_i32_0 : i32
    scf.if %2 {
      %cst_21 = arith.constant 0.000000e+00 : f32
      %35 = vector.broadcast %cst_21 : f32 to vector<32x65xf32>
      %c0_22 = arith.constant 0 : index
      %c0_23 = arith.constant 0 : index
      %36 = vector.load %arg7[%c0_22, %c0_23] : memref<32x65xf32, #tpu.memory_space<vmem>>, vector<32x65xf32>
      tpu.vector_store %arg7[%c0_22, %c0_23], %35 {strides = array<i32>} : memref<32x65xf32, #tpu.memory_space<vmem>>, vector<32x65xf32>,
    } else {
    }
    %c0 = arith.constant 0 : index
    %c0_1 = arith.constant 0 : index
    %c0_2 = arith.constant 0 : index
    %3 = vector.load %arg4[%c0, %c0_1, %c0_2] : memref<1x8x8xf32, #tpu.memory_space<vmem>>, vector<1x8x8xf32>
    %4 = vector.shape_cast %3 : vector<1x8x8xf32> to vector<8x8xf32>
    %c0_3 = arith.constant 0 : index
    %c0_4 = arith.constant 0 : index
    %c0_5 = arith.constant 0 : index
    %5 = vector.load %arg5[%c0_3, %c0_4, %c0_5] : memref<1x8x65xbf16, #tpu.memory_space<vmem>>, vector<1x8x65xbf16>
    %6 = vector.shape_cast %5 : vector<1x8x65xbf16> to vector<8x65xbf16>
    %c0_6 = arith.constant 0 : index
    %c0_7 = arith.constant 0 : index
    %c0_8 = arith.constant 0 : index
    %7 = vector.load %arg3[%c0_6, %c0_7, %c0_8] : memref<1x32x8xf32, #tpu.memory_space<vmem>>, vector<1x32x8xf32>
    %8 = vector.shape_cast %7 : vector<1x32x8xf32> to vector<32x8xf32>
    %cst = arith.constant dense<0.000000e+00> : vector<32x8xf32>
    %9 = tpu.matmul %8, %4, %cst {dimension_numbers = #tpu.dot_dimension_numbers<[1], [1], [0], [0], [0, 0, 1, 0], [], []>} : vector<32x8xf32>, vector<8x8xf32>, vector<32x8xf32> -> vector<32x8xf32>
    %cst_9 = arith.constant 0.000000e+00 : f32
    %10 = vector.broadcast %cst_9 : f32 to vector<32x8xf32>
    %11 = arith.maximumf %9, %10 : vector<32x8xf32>
    %cst_10 = arith.constant -3.125000e-02 : f32
    %12 = vector.broadcast %cst_10 : f32 to vector<32x8xf32>
    %13 = arith.mulf %12, %11 : vector<32x8xf32>
    %14 = math.exp %13 : vector<32x8xf32>
    %15 = arith.mulf %14, %14 : vector<32x8xf32>
    %16 = arith.mulf %15, %15 : vector<32x8xf32>
    %17 = arith.mulf %16, %16 : vector<32x8xf32>
    %18 = arith.mulf %17, %17 : vector<32x8xf32>
    %cst_11 = arith.constant 3.300000e-01 : f32
    %19 = vector.broadcast %cst_11 : f32 to vector<32x8xf32>
    %20 = arith.mulf %19, %18 : vector<32x8xf32>
    %cst_12 = arith.constant 3.300000e-01 : f32
    %21 = vector.broadcast %cst_12 : f32 to vector<32x8xf32>
    %22 = arith.mulf %21, %16 : vector<32x8xf32>
    %23 = arith.addf %20, %22 : vector<32x8xf32>
    %cst_13 = arith.constant 3.400000e-01 : f32
    %24 = vector.broadcast %cst_13 : f32 to vector<32x8xf32>
    %25 = arith.mulf %24, %14 : vector<32x8xf32>
    %26 = arith.addf %23, %25 : vector<32x8xf32>
    %c0_14 = arith.constant 0 : index
    %c0_15 = arith.constant 0 : index
    %27 = vector.load %arg7[%c0_14, %c0_15] : memref<32x65xf32, #tpu.memory_space<vmem>>, vector<32x65xf32>
    %28 = arith.truncf %26 : vector<32x8xf32> to vector<32x8xbf16>
    %cst_16 = arith.constant dense<0.000000e+00> : vector<32x65xf32>
    %29 = tpu.matmul %28, %6, %cst_16 {dimension_numbers = #tpu.dot_dimension_numbers<[1], [0], [0], [1], [0, 0, 1, 1], [], []>} : vector<32x8xbf16>, vector<8x65xbf16>, vector<32x65xf32> -> vector<32x65xf32>
    %30 = arith.addf %27, %29 : vector<32x65xf32>
    %c0_17 = arith.constant 0 : index
    %c0_18 = arith.constant 0 : index
    %31 = vector.load %arg7[%c0_17, %c0_18] : memref<32x65xf32, #tpu.memory_space<vmem>>, vector<32x65xf32>
    tpu.vector_store %arg7[%c0_17, %c0_18], %30 {strides = array<i32>} : memref<32x65xf32, #tpu.memory_space<vmem>>, vector<32x65xf32>,
    %c0_i32_19 = arith.constant 0 : i32
    %32 = arith.cmpi eq, %arg2, %c0_i32_19 : i32
    %33 = arith.extui %32 : i1 to i32
    %c0_i32_20 = arith.constant 0 : i32
    %34 = arith.cmpi ne, %33, %c0_i32_20 : i32
    scf.if %34 {
      %c0_21 = arith.constant 0 : index
      %c0_22 = arith.constant 0 : index
      %35 = vector.load %arg7[%c0_21, %c0_22] : memref<32x65xf32, #tpu.memory_space<vmem>>, vector<32x65xf32>
      %36 = vector.extract_strided_slice %35 {offsets = [0, 0], sizes = [32, 64], strides = [1, 1]} : vector<32x65xf32> to vector<32x64xf32>
      %37 = vector.extract_strided_slice %35 {offsets = [0, 64], sizes = [32, 1], strides = [1, 1]} : vector<32x65xf32> to vector<32x1xf32>
      %cst_23 = arith.constant 9.99999971E-10 : f32
      %38 = vector.broadcast %cst_23 : f32 to vector<32x1xf32>
      %39 = arith.addf %37, %38 : vector<32x1xf32>
      %40 = tpu.reciprocal %39 {approx = true} : vector<32x1xf32> -> vector<32x1xf32>
      %41 = vector.broadcast %40 : vector<32x1xf32> to vector<32x64xf32>
      %42 = arith.mulf %36, %41 : vector<32x64xf32>
      %c0_24 = arith.constant 0 : index
      %c0_25 = arith.constant 0 : index
      %c0_26 = arith.constant 0 : index
      %43 = vector.load %arg6[%c0_24, %c0_25, %c0_26] : memref<1x32x64xf32, #tpu.memory_space<vmem>>, vector<1x32x64xf32>
      %44 = vector.shape_cast %43 : vector<1x32x64xf32> to vector<32x64xf32>
      %45 = vector.shape_cast %42 : vector<32x64xf32> to vector<1x32x64xf32>
      tpu.vector_store %arg6[%c0_24, %c0_25, %c0_26], %45 {strides = array<i32>} : memref<1x32x64xf32, #tpu.memory_space<vmem>>, vector<1x32x64xf32>,
    } else {
    }
    return
  }
  func.func @transform_0(%arg0: i32, %arg1: i32, %arg2: i32) -> (i32, i32, i32) {
    %c0_i32 = arith.constant 0 : i32
    %c0_i32_0 = arith.constant 0 : i32
    return %arg0, %arg1, %c0_i32 : i32, i32, i32
  }
  func.func @transform_1(%arg0: i32, %arg1: i32, %arg2: i32) -> (i32, i32, i32) {
    %c0_i32 = arith.constant 0 : i32
    %c0_i32_0 = arith.constant 0 : i32
    %c0_i32_1 = arith.constant 0 : i32
    return %arg0, %c0_i32, %c0_i32_0 : i32, i32, i32
  }
  func.func @transform_2(%arg0: i32, %arg1: i32, %arg2: i32) -> (i32, i32, i32) {
    %c0_i32 = arith.constant 0 : i32
    %c0_i32_0 = arith.constant 0 : i32
    %c0_i32_1 = arith.constant 0 : i32
    return %arg0, %c0_i32, %c0_i32_0 : i32, i32, i32
  }
  func.func @transform_3(%arg0: i32, %arg1: i32, %arg2: i32) -> (i32, i32, i32) {
    %c0_i32 = arith.constant 0 : i32
    %c0_i32_0 = arith.constant 0 : i32
    return %arg0, %arg1, %c0_i32 : i32, i32, i32
  }
}

module attributes {stable_mosaic.version = 11 : i64} {
  func.func @_mlp_kernel(%arg0: i32, %arg1: memref<64x64xf32, #tpu.memory_space<vmem>>, %arg2: memref<64x32xf32, #tpu.memory_space<vmem>>, %arg3: memref<64x64xf32, #tpu.memory_space<vmem>>, %arg4: memref<32x64xf32, #tpu.memory_space<vmem>>, %arg5: memref<1x64xf32, #tpu.memory_space<vmem>>, %arg6: memref<64x64xf32, #tpu.memory_space<vmem>>, %arg7: memref<1x64xf32, #tpu.memory_space<vmem>>, %arg8: memref<64x64xf32, #tpu.memory_space<vmem>>) attributes {dimension_semantics = [#tpu.dimension_semantics<parallel>], iteration_bounds = array<i64: 1>, scalar_prefetch = 0 : i64, scratch_operands = 0 : i64, tpu.core_type = #tpu.core_type<tc>, window_params = [{transform_indices = @transform_0, window_bounds = array<i64: 64, 64>}, {transform_indices = @transform_1, window_bounds = array<i64: 64, 32>}, {pipeline_mode = #tpu.pipeline_mode<synchronous>, transform_indices = @transform_2, window_bounds = array<i64: 64, 64>}, {pipeline_mode = #tpu.pipeline_mode<synchronous>, transform_indices = @transform_3, window_bounds = array<i64: 32, 64>}, {pipeline_mode = #tpu.pipeline_mode<synchronous>, transform_indices = @transform_4, window_bounds = array<i64: 1, 64>}, {pipeline_mode = #tpu.pipeline_mode<synchronous>, transform_indices = @transform_5, window_bounds = array<i64: 64, 64>}, {pipeline_mode = #tpu.pipeline_mode<synchronous>, transform_indices = @transform_6, window_bounds = array<i64: 1, 64>}, {transform_indices = @transform_7, window_bounds = array<i64: 64, 64>}]} {
    %c0 = arith.constant 0 : index
    %c0_0 = arith.constant 0 : index
    %0 = vector.load %arg1[%c0, %c0_0] : memref<64x64xf32, #tpu.memory_space<vmem>>, vector<64x64xf32>
    %c0_1 = arith.constant 0 : index
    %c0_2 = arith.constant 0 : index
    %1 = vector.load %arg3[%c0_1, %c0_2] : memref<64x64xf32, #tpu.memory_space<vmem>>, vector<64x64xf32>
    %cst = arith.constant dense<0.000000e+00> : vector<64x64xf32>
    %2 = tpu.matmul %0, %1, %cst {dimension_numbers = #tpu.dot_dimension_numbers<[1], [0], [0], [1], [0, 0, 1, 1], [], []>} : vector<64x64xf32>, vector<64x64xf32>, vector<64x64xf32> -> vector<64x64xf32>
    %c0_3 = arith.constant 0 : index
    %c0_4 = arith.constant 0 : index
    %3 = vector.load %arg2[%c0_3, %c0_4] : memref<64x32xf32, #tpu.memory_space<vmem>>, vector<64x32xf32>
    %c0_5 = arith.constant 0 : index
    %c0_6 = arith.constant 0 : index
    %4 = vector.load %arg4[%c0_5, %c0_6] : memref<32x64xf32, #tpu.memory_space<vmem>>, vector<32x64xf32>
    %cst_7 = arith.constant dense<0.000000e+00> : vector<64x64xf32>
    %5 = tpu.matmul %3, %4, %cst_7 {dimension_numbers = #tpu.dot_dimension_numbers<[1], [0], [0], [1], [0, 0, 1, 1], [], []>} : vector<64x32xf32>, vector<32x64xf32>, vector<64x64xf32> -> vector<64x64xf32>
    %6 = arith.addf %2, %5 : vector<64x64xf32>
    %c0_8 = arith.constant 0 : index
    %c0_9 = arith.constant 0 : index
    %7 = vector.load %arg5[%c0_8, %c0_9] : memref<1x64xf32, #tpu.memory_space<vmem>>, vector<1x64xf32>
    %8 = vector.broadcast %7 : vector<1x64xf32> to vector<64x64xf32>
    %9 = arith.addf %6, %8 : vector<64x64xf32>
    %cst_10 = arith.constant 0.000000e+00 : f32
    %10 = vector.broadcast %cst_10 : f32 to vector<64x64xf32>
    %11 = arith.cmpf oge, %9, %10 : vector<64x64xf32>
    %cst_11 = arith.constant 1.000000e-01 : f32
    %12 = vector.broadcast %cst_11 : f32 to vector<64x64xf32>
    %13 = arith.mulf %12, %9 : vector<64x64xf32>
    %14 = arith.select %11, %9, %13 : vector<64x64xi1>, vector<64x64xf32>
    %c0_12 = arith.constant 0 : index
    %c0_13 = arith.constant 0 : index
    %15 = vector.load %arg6[%c0_12, %c0_13] : memref<64x64xf32, #tpu.memory_space<vmem>>, vector<64x64xf32>
    %c0_14 = arith.constant 0 : index
    %c0_15 = arith.constant 0 : index
    %16 = vector.load %arg7[%c0_14, %c0_15] : memref<1x64xf32, #tpu.memory_space<vmem>>, vector<1x64xf32>
    %cst_16 = arith.constant dense<0.000000e+00> : vector<64x64xf32>
    %17 = tpu.matmul %14, %15, %cst_16 {dimension_numbers = #tpu.dot_dimension_numbers<[1], [0], [0], [1], [0, 0, 1, 1], [], []>} : vector<64x64xf32>, vector<64x64xf32>, vector<64x64xf32> -> vector<64x64xf32>
    %18 = vector.broadcast %16 : vector<1x64xf32> to vector<64x64xf32>
    %19 = arith.addf %17, %18 : vector<64x64xf32>
    %cst_17 = arith.constant 0.000000e+00 : f32
    %20 = vector.broadcast %cst_17 : f32 to vector<64x64xf32>
    %21 = arith.cmpf oge, %19, %20 : vector<64x64xf32>
    %cst_18 = arith.constant 1.000000e-01 : f32
    %22 = vector.broadcast %cst_18 : f32 to vector<64x64xf32>
    %23 = arith.mulf %22, %19 : vector<64x64xf32>
    %24 = arith.select %21, %19, %23 : vector<64x64xi1>, vector<64x64xf32>
    %c0_19 = arith.constant 0 : index
    %c0_20 = arith.constant 0 : index
    %25 = vector.load %arg8[%c0_19, %c0_20] : memref<64x64xf32, #tpu.memory_space<vmem>>, vector<64x64xf32>
    tpu.vector_store %arg8[%c0_19, %c0_20], %24 {strides = array<i32>} : memref<64x64xf32, #tpu.memory_space<vmem>>, vector<64x64xf32>,
    return
  }
  func.func @transform_0(%arg0: i32) -> (i32, i32) {
    %c0_i32 = arith.constant 0 : i32
    %c0_i32_0 = arith.constant 0 : i32
    return %arg0, %c0_i32 : i32, i32
  }
  func.func @transform_1(%arg0: i32) -> (i32, i32) {
    %c0_i32 = arith.constant 0 : i32
    %c0_i32_0 = arith.constant 0 : i32
    return %arg0, %c0_i32 : i32, i32
  }
  func.func @transform_2(%arg0: i32) -> (i32, i32) {
    %c0_i32 = arith.constant 0 : i32
    %c0_i32_0 = arith.constant 0 : i32
    %c0_i32_1 = arith.constant 0 : i32
    return %c0_i32, %c0_i32_0 : i32, i32
  }
  func.func @transform_3(%arg0: i32) -> (i32, i32) {
    %c0_i32 = arith.constant 0 : i32
    %c0_i32_0 = arith.constant 0 : i32
    %c0_i32_1 = arith.constant 0 : i32
    return %c0_i32, %c0_i32_0 : i32, i32
  }
  func.func @transform_4(%arg0: i32) -> (i32, i32) {
    %c0_i32 = arith.constant 0 : i32
    %c0_i32_0 = arith.constant 0 : i32
    %c0_i32_1 = arith.constant 0 : i32
    return %c0_i32, %c0_i32_0 : i32, i32
  }
  func.func @transform_5(%arg0: i32) -> (i32, i32) {
    %c0_i32 = arith.constant 0 : i32
    %c0_i32_0 = arith.constant 0 : i32
    %c0_i32_1 = arith.constant 0 : i32
    return %c0_i32, %c0_i32_0 : i32, i32
  }
  func.func @transform_6(%arg0: i32) -> (i32, i32) {
    %c0_i32 = arith.constant 0 : i32
    %c0_i32_0 = arith.constant 0 : i32
    %c0_i32_1 = arith.constant 0 : i32
    return %c0_i32, %c0_i32_0 : i32, i32
  }
  func.func @transform_7(%arg0: i32) -> (i32, i32) {
    %c0_i32 = arith.constant 0 : i32
    %c0_i32_0 = arith.constant 0 : i32
    return %arg0, %c0_i32 : i32, i32
  }
}

module attributes {stable_mosaic.version = 11 : i64} {
  func.func @_gauss_kernel(%arg0: i32, %arg1: i32, %arg2: i32, %arg3: memref<1x32x8xf32, #tpu.memory_space<vmem>>, %arg4: memref<1x32x8xf32, #tpu.memory_space<vmem>>, %arg5: memref<1x32x65xbf16, #tpu.memory_space<vmem>>, %arg6: memref<64x64xf32, #tpu.memory_space<vmem>>, %arg7: memref<1x64xf32, #tpu.memory_space<vmem>>, %arg8: memref<1x32x64xf32, #tpu.memory_space<vmem>>, %arg9: memref<32x65xf32, #tpu.memory_space<vmem>>) attributes {dimension_semantics = [#tpu.dimension_semantics<parallel>, #tpu.dimension_semantics<parallel>, #tpu.dimension_semantics<arbitrary>], iteration_bounds = array<i64: 2, 1, 1>, scalar_prefetch = 0 : i64, scratch_operands = 1 : i64, tpu.core_type = #tpu.core_type<tc>, window_params = [{transform_indices = @transform_0, window_bounds = array<i64: 1, 32, 8>}, {transform_indices = @transform_1, window_bounds = array<i64: 1, 32, 8>}, {transform_indices = @transform_2, window_bounds = array<i64: 1, 32, 65>}, {pipeline_mode = #tpu.pipeline_mode<synchronous>, transform_indices = @transform_3, window_bounds = array<i64: 64, 64>}, {pipeline_mode = #tpu.pipeline_mode<synchronous>, transform_indices = @transform_4, window_bounds = array<i64: 1, 64>}, {transform_indices = @transform_5, window_bounds = array<i64: 1, 32, 64>}]} {
    %c0_i32 = arith.constant 0 : i32
    %0 = arith.cmpi eq, %arg2, %c0_i32 : i32
    %1 = arith.extui %0 : i1 to i32
    %c0_i32_0 = arith.constant 0 : i32
    %2 = arith.cmpi ne, %1, %c0_i32_0 : i32
    scf.if %2 {
      %cst_21 = arith.constant 0.000000e+00 : f32
      %35 = vector.broadcast %cst_21 : f32 to vector<32x65xf32>
      %c0_22 = arith.constant 0 : index
      %c0_23 = arith.constant 0 : index
      %36 = vector.load %arg9[%c0_22, %c0_23] : memref<32x65xf32, #tpu.memory_space<vmem>>, vector<32x65xf32>
      tpu.vector_store %arg9[%c0_22, %c0_23], %35 {strides = array<i32>} : memref<32x65xf32, #tpu.memory_space<vmem>>, vector<32x65xf32>,
    } else {
    }
    %c0 = arith.constant 0 : index
    %c0_1 = arith.constant 0 : index
    %c0_2 = arith.constant 0 : index
    %3 = vector.load %arg4[%c0, %c0_1, %c0_2] : memref<1x32x8xf32, #tpu.memory_space<vmem>>, vector<1x32x8xf32>
    %4 = vector.shape_cast %3 : vector<1x32x8xf32> to vector<32x8xf32>
    %c0_3 = arith.constant 0 : index
    %c0_4 = arith.constant 0 : index
    %c0_5 = arith.constant 0 : index
    %5 = vector.load %arg5[%c0_3, %c0_4, %c0_5] : memref<1x32x65xbf16, #tpu.memory_space<vmem>>, vector<1x32x65xbf16>
    %6 = vector.shape_cast %5 : vector<1x32x65xbf16> to vector<32x65xbf16>
    %c0_6 = arith.constant 0 : index
    %c0_7 = arith.constant 0 : index
    %c0_8 = arith.constant 0 : index
    %7 = vector.load %arg3[%c0_6, %c0_7, %c0_8] : memref<1x32x8xf32, #tpu.memory_space<vmem>>, vector<1x32x8xf32>
    %8 = vector.shape_cast %7 : vector<1x32x8xf32> to vector<32x8xf32>
    %cst = arith.constant dense<0.000000e+00> : vector<32x32xf32>
    %9 = tpu.matmul %8, %4, %cst {dimension_numbers = #tpu.dot_dimension_numbers<[1], [1], [0], [0], [0, 0, 1, 0], [], []>} : vector<32x8xf32>, vector<32x8xf32>, vector<32x32xf32> -> vector<32x32xf32>
    %cst_9 = arith.constant 0.000000e+00 : f32
    %10 = vector.broadcast %cst_9 : f32 to vector<32x32xf32>
    %11 = arith.maximumf %9, %10 : vector<32x32xf32>
    %cst_10 = arith.constant -3.125000e-02 : f32
    %12 = vector.broadcast %cst_10 : f32 to vector<32x32xf32>
    %13 = arith.mulf %12, %11 : vector<32x32xf32>
    %14 = math.exp %13 : vector<32x32xf32>
    %15 = arith.mulf %14, %14 : vector<32x32xf32>
    %16 = arith.mulf %15, %15 : vector<32x32xf32>
    %17 = arith.mulf %16, %16 : vector<32x32xf32>
    %18 = arith.mulf %17, %17 : vector<32x32xf32>
    %cst_11 = arith.constant 3.300000e-01 : f32
    %19 = vector.broadcast %cst_11 : f32 to vector<32x32xf32>
    %20 = arith.mulf %19, %18 : vector<32x32xf32>
    %cst_12 = arith.constant 3.300000e-01 : f32
    %21 = vector.broadcast %cst_12 : f32 to vector<32x32xf32>
    %22 = arith.mulf %21, %16 : vector<32x32xf32>
    %23 = arith.addf %20, %22 : vector<32x32xf32>
    %cst_13 = arith.constant 3.400000e-01 : f32
    %24 = vector.broadcast %cst_13 : f32 to vector<32x32xf32>
    %25 = arith.mulf %24, %14 : vector<32x32xf32>
    %26 = arith.addf %23, %25 : vector<32x32xf32>
    %c0_14 = arith.constant 0 : index
    %c0_15 = arith.constant 0 : index
    %27 = vector.load %arg9[%c0_14, %c0_15] : memref<32x65xf32, #tpu.memory_space<vmem>>, vector<32x65xf32>
    %28 = arith.truncf %26 : vector<32x32xf32> to vector<32x32xbf16>
    %cst_16 = arith.constant dense<0.000000e+00> : vector<32x65xf32>
    %29 = tpu.matmul %28, %6, %cst_16 {dimension_numbers = #tpu.dot_dimension_numbers<[1], [0], [0], [1], [0, 0, 1, 1], [], []>} : vector<32x32xbf16>, vector<32x65xbf16>, vector<32x65xf32> -> vector<32x65xf32>
    %30 = arith.addf %27, %29 : vector<32x65xf32>
    %c0_17 = arith.constant 0 : index
    %c0_18 = arith.constant 0 : index
    %31 = vector.load %arg9[%c0_17, %c0_18] : memref<32x65xf32, #tpu.memory_space<vmem>>, vector<32x65xf32>
    tpu.vector_store %arg9[%c0_17, %c0_18], %30 {strides = array<i32>} : memref<32x65xf32, #tpu.memory_space<vmem>>, vector<32x65xf32>,
    %c0_i32_19 = arith.constant 0 : i32
    %32 = arith.cmpi eq, %arg2, %c0_i32_19 : i32
    %33 = arith.extui %32 : i1 to i32
    %c0_i32_20 = arith.constant 0 : i32
    %34 = arith.cmpi ne, %33, %c0_i32_20 : i32
    scf.if %34 {
      %c0_21 = arith.constant 0 : index
      %c0_22 = arith.constant 0 : index
      %35 = vector.load %arg9[%c0_21, %c0_22] : memref<32x65xf32, #tpu.memory_space<vmem>>, vector<32x65xf32>
      %36 = vector.extract_strided_slice %35 {offsets = [0, 0], sizes = [32, 64], strides = [1, 1]} : vector<32x65xf32> to vector<32x64xf32>
      %37 = vector.extract_strided_slice %35 {offsets = [0, 64], sizes = [32, 1], strides = [1, 1]} : vector<32x65xf32> to vector<32x1xf32>
      %cst_23 = arith.constant 9.99999971E-10 : f32
      %38 = vector.broadcast %cst_23 : f32 to vector<32x1xf32>
      %39 = arith.addf %37, %38 : vector<32x1xf32>
      %40 = tpu.reciprocal %39 {approx = true} : vector<32x1xf32> -> vector<32x1xf32>
      %41 = vector.broadcast %40 : vector<32x1xf32> to vector<32x64xf32>
      %42 = arith.mulf %36, %41 : vector<32x64xf32>
      %c0_24 = arith.constant 0 : index
      %c0_25 = arith.constant 0 : index
      %43 = vector.load %arg6[%c0_24, %c0_25] : memref<64x64xf32, #tpu.memory_space<vmem>>, vector<64x64xf32>
      %c0_26 = arith.constant 0 : index
      %c0_27 = arith.constant 0 : index
      %44 = vector.load %arg7[%c0_26, %c0_27] : memref<1x64xf32, #tpu.memory_space<vmem>>, vector<1x64xf32>
      %cst_28 = arith.constant dense<0.000000e+00> : vector<32x64xf32>
      %45 = tpu.matmul %42, %43, %cst_28 {dimension_numbers = #tpu.dot_dimension_numbers<[1], [0], [0], [1], [0, 0, 1, 1], [], []>} : vector<32x64xf32>, vector<64x64xf32>, vector<32x64xf32> -> vector<32x64xf32>
      %46 = vector.broadcast %44 : vector<1x64xf32> to vector<32x64xf32>
      %47 = arith.addf %45, %46 : vector<32x64xf32>
      %cst_29 = arith.constant 0.000000e+00 : f32
      %48 = vector.broadcast %cst_29 : f32 to vector<32x64xf32>
      %49 = arith.cmpf oge, %47, %48 : vector<32x64xf32>
      %cst_30 = arith.constant 1.000000e-01 : f32
      %50 = vector.broadcast %cst_30 : f32 to vector<32x64xf32>
      %51 = arith.mulf %50, %47 : vector<32x64xf32>
      %52 = arith.select %49, %47, %51 : vector<32x64xi1>, vector<32x64xf32>
      %c0_31 = arith.constant 0 : index
      %c0_32 = arith.constant 0 : index
      %c0_33 = arith.constant 0 : index
      %53 = vector.load %arg8[%c0_31, %c0_32, %c0_33] : memref<1x32x64xf32, #tpu.memory_space<vmem>>, vector<1x32x64xf32>
      %54 = vector.shape_cast %53 : vector<1x32x64xf32> to vector<32x64xf32>
      %55 = vector.shape_cast %52 : vector<32x64xf32> to vector<1x32x64xf32>
      tpu.vector_store %arg8[%c0_31, %c0_32, %c0_33], %55 {strides = array<i32>} : memref<1x32x64xf32, #tpu.memory_space<vmem>>, vector<1x32x64xf32>,
    } else {
    }
    return
  }
  func.func @transform_0(%arg0: i32, %arg1: i32, %arg2: i32) -> (i32, i32, i32) {
    %c0_i32 = arith.constant 0 : i32
    %c0_i32_0 = arith.constant 0 : i32
    return %arg0, %arg1, %c0_i32 : i32, i32, i32
  }
  func.func @transform_1(%arg0: i32, %arg1: i32, %arg2: i32) -> (i32, i32, i32) {
    %c0_i32 = arith.constant 0 : i32
    %c0_i32_0 = arith.constant 0 : i32
    %c0_i32_1 = arith.constant 0 : i32
    return %arg0, %c0_i32, %c0_i32_0 : i32, i32, i32
  }
  func.func @transform_2(%arg0: i32, %arg1: i32, %arg2: i32) -> (i32, i32, i32) {
    %c0_i32 = arith.constant 0 : i32
    %c0_i32_0 = arith.constant 0 : i32
    %c0_i32_1 = arith.constant 0 : i32
    return %arg0, %c0_i32, %c0_i32_0 : i32, i32, i32
  }
  func.func @transform_3(%arg0: i32, %arg1: i32, %arg2: i32) -> (i32, i32) {
    %c0_i32 = arith.constant 0 : i32
    %c0_i32_0 = arith.constant 0 : i32
    %c0_i32_1 = arith.constant 0 : i32
    return %c0_i32, %c0_i32_0 : i32, i32
  }
  func.func @transform_4(%arg0: i32, %arg1: i32, %arg2: i32) -> (i32, i32) {
    %c0_i32 = arith.constant 0 : i32
    %c0_i32_0 = arith.constant 0 : i32
    %c0_i32_1 = arith.constant 0 : i32
    return %c0_i32, %c0_i32_0 : i32, i32
  }
  func.func @transform_5(%arg0: i32, %arg1: i32, %arg2: i32) -> (i32, i32, i32) {
    %c0_i32 = arith.constant 0 : i32
    %c0_i32_0 = arith.constant 0 : i32
    return %arg0, %arg1, %c0_i32 : i32, i32, i32
  }
}

module attributes {stable_mosaic.version = 11 : i64} {
  func.func @_gauss_kernel(%arg0: i32, %arg1: i32, %arg2: i32, %arg3: memref<1x64x8xf32, #tpu.memory_space<vmem>>, %arg4: memref<1x32x8xf32, #tpu.memory_space<vmem>>, %arg5: memref<1x32x65xbf16, #tpu.memory_space<vmem>>, %arg6: memref<1x64x64xf32, #tpu.memory_space<vmem>>, %arg7: memref<64x65xf32, #tpu.memory_space<vmem>>) attributes {dimension_semantics = [#tpu.dimension_semantics<parallel>, #tpu.dimension_semantics<parallel>, #tpu.dimension_semantics<arbitrary>], iteration_bounds = array<i64: 2, 1, 1>, scalar_prefetch = 0 : i64, scratch_operands = 1 : i64, tpu.core_type = #tpu.core_type<tc>, window_params = [{transform_indices = @transform_0, window_bounds = array<i64: 1, 64, 8>}, {transform_indices = @transform_1, window_bounds = array<i64: 1, 32, 8>}, {transform_indices = @transform_2, window_bounds = array<i64: 1, 32, 65>}, {transform_indices = @transform_3, window_bounds = array<i64: 1, 64, 64>}]} {
    %c0_i32 = arith.constant 0 : i32
    %0 = arith.cmpi eq, %arg2, %c0_i32 : i32
    %1 = arith.extui %0 : i1 to i32
    %c0_i32_0 = arith.constant 0 : i32
    %2 = arith.cmpi ne, %1, %c0_i32_0 : i32
    scf.if %2 {
      %cst_21 = arith.constant 0.000000e+00 : f32
      %35 = vector.broadcast %cst_21 : f32 to vector<64x65xf32>
      %c0_22 = arith.constant 0 : index
      %c0_23 = arith.constant 0 : index
      %36 = vector.load %arg7[%c0_22, %c0_23] : memref<64x65xf32, #tpu.memory_space<vmem>>, vector<64x65xf32>
      tpu.vector_store %arg7[%c0_22, %c0_23], %35 {strides = array<i32>} : memref<64x65xf32, #tpu.memory_space<vmem>>, vector<64x65xf32>,
    } else {
    }
    %c0 = arith.constant 0 : index
    %c0_1 = arith.constant 0 : index
    %c0_2 = arith.constant 0 : index
    %3 = vector.load %arg4[%c0, %c0_1, %c0_2] : memref<1x32x8xf32, #tpu.memory_space<vmem>>, vector<1x32x8xf32>
    %4 = vector.shape_cast %3 : vector<1x32x8xf32> to vector<32x8xf32>
    %c0_3 = arith.constant 0 : index
    %c0_4 = arith.constant 0 : index
    %c0_5 = arith.constant 0 : index
    %5 = vector.load %arg5[%c0_3, %c0_4, %c0_5] : memref<1x32x65xbf16, #tpu.memory_space<vmem>>, vector<1x32x65xbf16>
    %6 = vector.shape_cast %5 : vector<1x32x65xbf16> to vector<32x65xbf16>
    %c0_6 = arith.constant 0 : index
    %c0_7 = arith.constant 0 : index
    %c0_8 = arith.constant 0 : index
    %7 = vector.load %arg3[%c0_6, %c0_7, %c0_8] : memref<1x64x8xf32, #tpu.memory_space<vmem>>, vector<1x64x8xf32>
    %8 = vector.shape_cast %7 : vector<1x64x8xf32> to vector<64x8xf32>
    %cst = arith.constant dense<0.000000e+00> : vector<64x32xf32>
    %9 = tpu.matmul %8, %4, %cst {dimension_numbers = #tpu.dot_dimension_numbers<[1], [1], [0], [0], [0, 0, 1, 0], [], []>} : vector<64x8xf32>, vector<32x8xf32>, vector<64x32xf32> -> vector<64x32xf32>
    %cst_9 = arith.constant 0.000000e+00 : f32
    %10 = vector.broadcast %cst_9 : f32 to vector<64x32xf32>
    %11 = arith.maximumf %9, %10 : vector<64x32xf32>
    %cst_10 = arith.constant -5.000000e-01 : f32
    %12 = vector.broadcast %cst_10 : f32 to vector<64x32xf32>
    %13 = arith.mulf %12, %11 : vector<64x32xf32>
    %14 = math.exp %13 : vector<64x32xf32>
    %15 = arith.mulf %14, %14 : vector<64x32xf32>
    %16 = arith.mulf %15, %15 : vector<64x32xf32>
    %17 = arith.mulf %16, %16 : vector<64x32xf32>
    %18 = arith.mulf %17, %17 : vector<64x32xf32>
    %cst_11 = arith.constant 3.300000e-01 : f32
    %19 = vector.broadcast %cst_11 : f32 to vector<64x32xf32>
    %20 = arith.mulf %19, %18 : vector<64x32xf32>
    %cst_12 = arith.constant 3.300000e-01 : f32
    %21 = vector.broadcast %cst_12 : f32 to vector<64x32xf32>
    %22 = arith.mulf %21, %16 : vector<64x32xf32>
    %23 = arith.addf %20, %22 : vector<64x32xf32>
    %cst_13 = arith.constant 3.400000e-01 : f32
    %24 = vector.broadcast %cst_13 : f32 to vector<64x32xf32>
    %25 = arith.mulf %24, %14 : vector<64x32xf32>
    %26 = arith.addf %23, %25 : vector<64x32xf32>
    %c0_14 = arith.constant 0 : index
    %c0_15 = arith.constant 0 : index
    %27 = vector.load %arg7[%c0_14, %c0_15] : memref<64x65xf32, #tpu.memory_space<vmem>>, vector<64x65xf32>
    %28 = arith.truncf %26 : vector<64x32xf32> to vector<64x32xbf16>
    %cst_16 = arith.constant dense<0.000000e+00> : vector<64x65xf32>
    %29 = tpu.matmul %28, %6, %cst_16 {dimension_numbers = #tpu.dot_dimension_numbers<[1], [0], [0], [1], [0, 0, 1, 1], [], []>} : vector<64x32xbf16>, vector<32x65xbf16>, vector<64x65xf32> -> vector<64x65xf32>
    %30 = arith.addf %27, %29 : vector<64x65xf32>
    %c0_17 = arith.constant 0 : index
    %c0_18 = arith.constant 0 : index
    %31 = vector.load %arg7[%c0_17, %c0_18] : memref<64x65xf32, #tpu.memory_space<vmem>>, vector<64x65xf32>
    tpu.vector_store %arg7[%c0_17, %c0_18], %30 {strides = array<i32>} : memref<64x65xf32, #tpu.memory_space<vmem>>, vector<64x65xf32>,
    %c0_i32_19 = arith.constant 0 : i32
    %32 = arith.cmpi eq, %arg2, %c0_i32_19 : i32
    %33 = arith.extui %32 : i1 to i32
    %c0_i32_20 = arith.constant 0 : i32
    %34 = arith.cmpi ne, %33, %c0_i32_20 : i32
    scf.if %34 {
      %c0_21 = arith.constant 0 : index
      %c0_22 = arith.constant 0 : index
      %35 = vector.load %arg7[%c0_21, %c0_22] : memref<64x65xf32, #tpu.memory_space<vmem>>, vector<64x65xf32>
      %36 = vector.extract_strided_slice %35 {offsets = [0, 0], sizes = [64, 64], strides = [1, 1]} : vector<64x65xf32> to vector<64x64xf32>
      %37 = vector.extract_strided_slice %35 {offsets = [0, 64], sizes = [64, 1], strides = [1, 1]} : vector<64x65xf32> to vector<64x1xf32>
      %cst_23 = arith.constant 9.99999971E-10 : f32
      %38 = vector.broadcast %cst_23 : f32 to vector<64x1xf32>
      %39 = arith.addf %37, %38 : vector<64x1xf32>
      %40 = tpu.reciprocal %39 {approx = true} : vector<64x1xf32> -> vector<64x1xf32>
      %41 = vector.broadcast %40 : vector<64x1xf32> to vector<64x64xf32>
      %42 = arith.mulf %36, %41 : vector<64x64xf32>
      %c0_24 = arith.constant 0 : index
      %c0_25 = arith.constant 0 : index
      %c0_26 = arith.constant 0 : index
      %43 = vector.load %arg6[%c0_24, %c0_25, %c0_26] : memref<1x64x64xf32, #tpu.memory_space<vmem>>, vector<1x64x64xf32>
      %44 = vector.shape_cast %43 : vector<1x64x64xf32> to vector<64x64xf32>
      %45 = vector.shape_cast %42 : vector<64x64xf32> to vector<1x64x64xf32>
      tpu.vector_store %arg6[%c0_24, %c0_25, %c0_26], %45 {strides = array<i32>} : memref<1x64x64xf32, #tpu.memory_space<vmem>>, vector<1x64x64xf32>,
    } else {
    }
    return
  }
  func.func @transform_0(%arg0: i32, %arg1: i32, %arg2: i32) -> (i32, i32, i32) {
    %c0_i32 = arith.constant 0 : i32
    %c0_i32_0 = arith.constant 0 : i32
    return %arg0, %arg1, %c0_i32 : i32, i32, i32
  }
  func.func @transform_1(%arg0: i32, %arg1: i32, %arg2: i32) -> (i32, i32, i32) {
    %c0_i32 = arith.constant 0 : i32
    %c0_i32_0 = arith.constant 0 : i32
    %c0_i32_1 = arith.constant 0 : i32
    return %arg0, %c0_i32, %c0_i32_0 : i32, i32, i32
  }
  func.func @transform_2(%arg0: i32, %arg1: i32, %arg2: i32) -> (i32, i32, i32) {
    %c0_i32 = arith.constant 0 : i32
    %c0_i32_0 = arith.constant 0 : i32
    %c0_i32_1 = arith.constant 0 : i32
    return %arg0, %c0_i32, %c0_i32_0 : i32, i32, i32
  }
  func.func @transform_3(%arg0: i32, %arg1: i32, %arg2: i32) -> (i32, i32, i32) {
    %c0_i32 = arith.constant 0 : i32
    %c0_i32_0 = arith.constant 0 : i32
    return %arg0, %arg1, %c0_i32 : i32, i32, i32
  }
}

module attributes {stable_mosaic.version = 11 : i64} {
  func.func @_mlp_kernel(%arg0: i32, %arg1: memref<128x64xf32, #tpu.memory_space<vmem>>, %arg2: memref<128x16xf32, #tpu.memory_space<vmem>>, %arg3: memref<64x32xf32, #tpu.memory_space<vmem>>, %arg4: memref<16x32xf32, #tpu.memory_space<vmem>>, %arg5: memref<1x32xf32, #tpu.memory_space<vmem>>, %arg6: memref<32x32xf32, #tpu.memory_space<vmem>>, %arg7: memref<1x32xf32, #tpu.memory_space<vmem>>, %arg8: memref<128x32xf32, #tpu.memory_space<vmem>>) attributes {dimension_semantics = [#tpu.dimension_semantics<parallel>], iteration_bounds = array<i64: 1>, scalar_prefetch = 0 : i64, scratch_operands = 0 : i64, tpu.core_type = #tpu.core_type<tc>, window_params = [{transform_indices = @transform_0, window_bounds = array<i64: 128, 64>}, {transform_indices = @transform_1, window_bounds = array<i64: 128, 16>}, {pipeline_mode = #tpu.pipeline_mode<synchronous>, transform_indices = @transform_2, window_bounds = array<i64: 64, 32>}, {pipeline_mode = #tpu.pipeline_mode<synchronous>, transform_indices = @transform_3, window_bounds = array<i64: 16, 32>}, {pipeline_mode = #tpu.pipeline_mode<synchronous>, transform_indices = @transform_4, window_bounds = array<i64: 1, 32>}, {pipeline_mode = #tpu.pipeline_mode<synchronous>, transform_indices = @transform_5, window_bounds = array<i64: 32, 32>}, {pipeline_mode = #tpu.pipeline_mode<synchronous>, transform_indices = @transform_6, window_bounds = array<i64: 1, 32>}, {transform_indices = @transform_7, window_bounds = array<i64: 128, 32>}]} {
    %c0 = arith.constant 0 : index
    %c0_0 = arith.constant 0 : index
    %0 = vector.load %arg1[%c0, %c0_0] : memref<128x64xf32, #tpu.memory_space<vmem>>, vector<128x64xf32>
    %c0_1 = arith.constant 0 : index
    %c0_2 = arith.constant 0 : index
    %1 = vector.load %arg3[%c0_1, %c0_2] : memref<64x32xf32, #tpu.memory_space<vmem>>, vector<64x32xf32>
    %cst = arith.constant dense<0.000000e+00> : vector<128x32xf32>
    %2 = tpu.matmul %0, %1, %cst {dimension_numbers = #tpu.dot_dimension_numbers<[1], [0], [0], [1], [0, 0, 1, 1], [], []>} : vector<128x64xf32>, vector<64x32xf32>, vector<128x32xf32> -> vector<128x32xf32>
    %c0_3 = arith.constant 0 : index
    %c0_4 = arith.constant 0 : index
    %3 = vector.load %arg2[%c0_3, %c0_4] : memref<128x16xf32, #tpu.memory_space<vmem>>, vector<128x16xf32>
    %c0_5 = arith.constant 0 : index
    %c0_6 = arith.constant 0 : index
    %4 = vector.load %arg4[%c0_5, %c0_6] : memref<16x32xf32, #tpu.memory_space<vmem>>, vector<16x32xf32>
    %cst_7 = arith.constant dense<0.000000e+00> : vector<128x32xf32>
    %5 = tpu.matmul %3, %4, %cst_7 {dimension_numbers = #tpu.dot_dimension_numbers<[1], [0], [0], [1], [0, 0, 1, 1], [], []>} : vector<128x16xf32>, vector<16x32xf32>, vector<128x32xf32> -> vector<128x32xf32>
    %6 = arith.addf %2, %5 : vector<128x32xf32>
    %c0_8 = arith.constant 0 : index
    %c0_9 = arith.constant 0 : index
    %7 = vector.load %arg5[%c0_8, %c0_9] : memref<1x32xf32, #tpu.memory_space<vmem>>, vector<1x32xf32>
    %8 = vector.broadcast %7 : vector<1x32xf32> to vector<128x32xf32>
    %9 = arith.addf %6, %8 : vector<128x32xf32>
    %cst_10 = arith.constant 0.000000e+00 : f32
    %10 = vector.broadcast %cst_10 : f32 to vector<128x32xf32>
    %11 = arith.cmpf oge, %9, %10 : vector<128x32xf32>
    %cst_11 = arith.constant 1.000000e-01 : f32
    %12 = vector.broadcast %cst_11 : f32 to vector<128x32xf32>
    %13 = arith.mulf %12, %9 : vector<128x32xf32>
    %14 = arith.select %11, %9, %13 : vector<128x32xi1>, vector<128x32xf32>
    %c0_12 = arith.constant 0 : index
    %c0_13 = arith.constant 0 : index
    %15 = vector.load %arg6[%c0_12, %c0_13] : memref<32x32xf32, #tpu.memory_space<vmem>>, vector<32x32xf32>
    %c0_14 = arith.constant 0 : index
    %c0_15 = arith.constant 0 : index
    %16 = vector.load %arg7[%c0_14, %c0_15] : memref<1x32xf32, #tpu.memory_space<vmem>>, vector<1x32xf32>
    %cst_16 = arith.constant dense<0.000000e+00> : vector<128x32xf32>
    %17 = tpu.matmul %14, %15, %cst_16 {dimension_numbers = #tpu.dot_dimension_numbers<[1], [0], [0], [1], [0, 0, 1, 1], [], []>} : vector<128x32xf32>, vector<32x32xf32>, vector<128x32xf32> -> vector<128x32xf32>
    %18 = vector.broadcast %16 : vector<1x32xf32> to vector<128x32xf32>
    %19 = arith.addf %17, %18 : vector<128x32xf32>
    %cst_17 = arith.constant 0.000000e+00 : f32
    %20 = vector.broadcast %cst_17 : f32 to vector<128x32xf32>
    %21 = arith.cmpf oge, %19, %20 : vector<128x32xf32>
    %cst_18 = arith.constant 1.000000e-01 : f32
    %22 = vector.broadcast %cst_18 : f32 to vector<128x32xf32>
    %23 = arith.mulf %22, %19 : vector<128x32xf32>
    %24 = arith.select %21, %19, %23 : vector<128x32xi1>, vector<128x32xf32>
    %c0_19 = arith.constant 0 : index
    %c0_20 = arith.constant 0 : index
    %25 = vector.load %arg8[%c0_19, %c0_20] : memref<128x32xf32, #tpu.memory_space<vmem>>, vector<128x32xf32>
    tpu.vector_store %arg8[%c0_19, %c0_20], %24 {strides = array<i32>} : memref<128x32xf32, #tpu.memory_space<vmem>>, vector<128x32xf32>,
    return
  }
  func.func @transform_0(%arg0: i32) -> (i32, i32) {
    %c0_i32 = arith.constant 0 : i32
    %c0_i32_0 = arith.constant 0 : i32
    return %arg0, %c0_i32 : i32, i32
  }
  func.func @transform_1(%arg0: i32) -> (i32, i32) {
    %c0_i32 = arith.constant 0 : i32
    %c0_i32_0 = arith.constant 0 : i32
    return %arg0, %c0_i32 : i32, i32
  }
  func.func @transform_2(%arg0: i32) -> (i32, i32) {
    %c0_i32 = arith.constant 0 : i32
    %c0_i32_0 = arith.constant 0 : i32
    %c0_i32_1 = arith.constant 0 : i32
    return %c0_i32, %c0_i32_0 : i32, i32
  }
  func.func @transform_3(%arg0: i32) -> (i32, i32) {
    %c0_i32 = arith.constant 0 : i32
    %c0_i32_0 = arith.constant 0 : i32
    %c0_i32_1 = arith.constant 0 : i32
    return %c0_i32, %c0_i32_0 : i32, i32
  }
  func.func @transform_4(%arg0: i32) -> (i32, i32) {
    %c0_i32 = arith.constant 0 : i32
    %c0_i32_0 = arith.constant 0 : i32
    %c0_i32_1 = arith.constant 0 : i32
    return %c0_i32, %c0_i32_0 : i32, i32
  }
  func.func @transform_5(%arg0: i32) -> (i32, i32) {
    %c0_i32 = arith.constant 0 : i32
    %c0_i32_0 = arith.constant 0 : i32
    %c0_i32_1 = arith.constant 0 : i32
    return %c0_i32, %c0_i32_0 : i32, i32
  }
  func.func @transform_6(%arg0: i32) -> (i32, i32) {
    %c0_i32 = arith.constant 0 : i32
    %c0_i32_0 = arith.constant 0 : i32
    %c0_i32_1 = arith.constant 0 : i32
    return %c0_i32, %c0_i32_0 : i32, i32
  }
  func.func @transform_7(%arg0: i32) -> (i32, i32) {
    %c0_i32 = arith.constant 0 : i32
    %c0_i32_0 = arith.constant 0 : i32
    return %arg0, %c0_i32 : i32, i32
  }
}

module attributes {stable_mosaic.version = 11 : i64} {
  func.func @_gauss_kernel(%arg0: i32, %arg1: i32, %arg2: i32, %arg3: memref<1x64x8xf32, #tpu.memory_space<vmem>>, %arg4: memref<1x64x8xf32, #tpu.memory_space<vmem>>, %arg5: memref<1x64x33xbf16, #tpu.memory_space<vmem>>, %arg6: memref<32x32xf32, #tpu.memory_space<vmem>>, %arg7: memref<1x32xf32, #tpu.memory_space<vmem>>, %arg8: memref<32x32xf32, #tpu.memory_space<vmem>>, %arg9: memref<1x32xf32, #tpu.memory_space<vmem>>, %arg10: memref<1x64x32xf32, #tpu.memory_space<vmem>>, %arg11: memref<64x33xf32, #tpu.memory_space<vmem>>) attributes {dimension_semantics = [#tpu.dimension_semantics<parallel>, #tpu.dimension_semantics<parallel>, #tpu.dimension_semantics<arbitrary>], iteration_bounds = array<i64: 2, 1, 1>, scalar_prefetch = 0 : i64, scratch_operands = 1 : i64, tpu.core_type = #tpu.core_type<tc>, window_params = [{transform_indices = @transform_0, window_bounds = array<i64: 1, 64, 8>}, {transform_indices = @transform_1, window_bounds = array<i64: 1, 64, 8>}, {transform_indices = @transform_2, window_bounds = array<i64: 1, 64, 33>}, {pipeline_mode = #tpu.pipeline_mode<synchronous>, transform_indices = @transform_3, window_bounds = array<i64: 32, 32>}, {pipeline_mode = #tpu.pipeline_mode<synchronous>, transform_indices = @transform_4, window_bounds = array<i64: 1, 32>}, {pipeline_mode = #tpu.pipeline_mode<synchronous>, transform_indices = @transform_5, window_bounds = array<i64: 32, 32>}, {pipeline_mode = #tpu.pipeline_mode<synchronous>, transform_indices = @transform_6, window_bounds = array<i64: 1, 32>}, {transform_indices = @transform_7, window_bounds = array<i64: 1, 64, 32>}]} {
    %c0_i32 = arith.constant 0 : i32
    %0 = arith.cmpi eq, %arg2, %c0_i32 : i32
    %1 = arith.extui %0 : i1 to i32
    %c0_i32_0 = arith.constant 0 : i32
    %2 = arith.cmpi ne, %1, %c0_i32_0 : i32
    scf.if %2 {
      %cst_21 = arith.constant 0.000000e+00 : f32
      %35 = vector.broadcast %cst_21 : f32 to vector<64x33xf32>
      %c0_22 = arith.constant 0 : index
      %c0_23 = arith.constant 0 : index
      %36 = vector.load %arg11[%c0_22, %c0_23] : memref<64x33xf32, #tpu.memory_space<vmem>>, vector<64x33xf32>
      tpu.vector_store %arg11[%c0_22, %c0_23], %35 {strides = array<i32>} : memref<64x33xf32, #tpu.memory_space<vmem>>, vector<64x33xf32>,
    } else {
    }
    %c0 = arith.constant 0 : index
    %c0_1 = arith.constant 0 : index
    %c0_2 = arith.constant 0 : index
    %3 = vector.load %arg4[%c0, %c0_1, %c0_2] : memref<1x64x8xf32, #tpu.memory_space<vmem>>, vector<1x64x8xf32>
    %4 = vector.shape_cast %3 : vector<1x64x8xf32> to vector<64x8xf32>
    %c0_3 = arith.constant 0 : index
    %c0_4 = arith.constant 0 : index
    %c0_5 = arith.constant 0 : index
    %5 = vector.load %arg5[%c0_3, %c0_4, %c0_5] : memref<1x64x33xbf16, #tpu.memory_space<vmem>>, vector<1x64x33xbf16>
    %6 = vector.shape_cast %5 : vector<1x64x33xbf16> to vector<64x33xbf16>
    %c0_6 = arith.constant 0 : index
    %c0_7 = arith.constant 0 : index
    %c0_8 = arith.constant 0 : index
    %7 = vector.load %arg3[%c0_6, %c0_7, %c0_8] : memref<1x64x8xf32, #tpu.memory_space<vmem>>, vector<1x64x8xf32>
    %8 = vector.shape_cast %7 : vector<1x64x8xf32> to vector<64x8xf32>
    %cst = arith.constant dense<0.000000e+00> : vector<64x64xf32>
    %9 = tpu.matmul %8, %4, %cst {dimension_numbers = #tpu.dot_dimension_numbers<[1], [1], [0], [0], [0, 0, 1, 0], [], []>} : vector<64x8xf32>, vector<64x8xf32>, vector<64x64xf32> -> vector<64x64xf32>
    %cst_9 = arith.constant 0.000000e+00 : f32
    %10 = vector.broadcast %cst_9 : f32 to vector<64x64xf32>
    %11 = arith.maximumf %9, %10 : vector<64x64xf32>
    %cst_10 = arith.constant -5.000000e-01 : f32
    %12 = vector.broadcast %cst_10 : f32 to vector<64x64xf32>
    %13 = arith.mulf %12, %11 : vector<64x64xf32>
    %14 = math.exp %13 : vector<64x64xf32>
    %15 = arith.mulf %14, %14 : vector<64x64xf32>
    %16 = arith.mulf %15, %15 : vector<64x64xf32>
    %17 = arith.mulf %16, %16 : vector<64x64xf32>
    %18 = arith.mulf %17, %17 : vector<64x64xf32>
    %cst_11 = arith.constant 3.300000e-01 : f32
    %19 = vector.broadcast %cst_11 : f32 to vector<64x64xf32>
    %20 = arith.mulf %19, %18 : vector<64x64xf32>
    %cst_12 = arith.constant 3.300000e-01 : f32
    %21 = vector.broadcast %cst_12 : f32 to vector<64x64xf32>
    %22 = arith.mulf %21, %16 : vector<64x64xf32>
    %23 = arith.addf %20, %22 : vector<64x64xf32>
    %cst_13 = arith.constant 3.400000e-01 : f32
    %24 = vector.broadcast %cst_13 : f32 to vector<64x64xf32>
    %25 = arith.mulf %24, %14 : vector<64x64xf32>
    %26 = arith.addf %23, %25 : vector<64x64xf32>
    %c0_14 = arith.constant 0 : index
    %c0_15 = arith.constant 0 : index
    %27 = vector.load %arg11[%c0_14, %c0_15] : memref<64x33xf32, #tpu.memory_space<vmem>>, vector<64x33xf32>
    %28 = arith.truncf %26 : vector<64x64xf32> to vector<64x64xbf16>
    %cst_16 = arith.constant dense<0.000000e+00> : vector<64x33xf32>
    %29 = tpu.matmul %28, %6, %cst_16 {dimension_numbers = #tpu.dot_dimension_numbers<[1], [0], [0], [1], [0, 0, 1, 1], [], []>} : vector<64x64xbf16>, vector<64x33xbf16>, vector<64x33xf32> -> vector<64x33xf32>
    %30 = arith.addf %27, %29 : vector<64x33xf32>
    %c0_17 = arith.constant 0 : index
    %c0_18 = arith.constant 0 : index
    %31 = vector.load %arg11[%c0_17, %c0_18] : memref<64x33xf32, #tpu.memory_space<vmem>>, vector<64x33xf32>
    tpu.vector_store %arg11[%c0_17, %c0_18], %30 {strides = array<i32>} : memref<64x33xf32, #tpu.memory_space<vmem>>, vector<64x33xf32>,
    %c0_i32_19 = arith.constant 0 : i32
    %32 = arith.cmpi eq, %arg2, %c0_i32_19 : i32
    %33 = arith.extui %32 : i1 to i32
    %c0_i32_20 = arith.constant 0 : i32
    %34 = arith.cmpi ne, %33, %c0_i32_20 : i32
    scf.if %34 {
      %c0_21 = arith.constant 0 : index
      %c0_22 = arith.constant 0 : index
      %35 = vector.load %arg11[%c0_21, %c0_22] : memref<64x33xf32, #tpu.memory_space<vmem>>, vector<64x33xf32>
      %36 = vector.extract_strided_slice %35 {offsets = [0, 0], sizes = [64, 32], strides = [1, 1]} : vector<64x33xf32> to vector<64x32xf32>
      %37 = vector.extract_strided_slice %35 {offsets = [0, 32], sizes = [64, 1], strides = [1, 1]} : vector<64x33xf32> to vector<64x1xf32>
      %cst_23 = arith.constant 9.99999971E-10 : f32
      %38 = vector.broadcast %cst_23 : f32 to vector<64x1xf32>
      %39 = arith.addf %37, %38 : vector<64x1xf32>
      %40 = tpu.reciprocal %39 {approx = true} : vector<64x1xf32> -> vector<64x1xf32>
      %41 = vector.broadcast %40 : vector<64x1xf32> to vector<64x32xf32>
      %42 = arith.mulf %36, %41 : vector<64x32xf32>
      %c0_24 = arith.constant 0 : index
      %c0_25 = arith.constant 0 : index
      %43 = vector.load %arg6[%c0_24, %c0_25] : memref<32x32xf32, #tpu.memory_space<vmem>>, vector<32x32xf32>
      %c0_26 = arith.constant 0 : index
      %c0_27 = arith.constant 0 : index
      %44 = vector.load %arg7[%c0_26, %c0_27] : memref<1x32xf32, #tpu.memory_space<vmem>>, vector<1x32xf32>
      %cst_28 = arith.constant dense<0.000000e+00> : vector<64x32xf32>
      %45 = tpu.matmul %42, %43, %cst_28 {dimension_numbers = #tpu.dot_dimension_numbers<[1], [0], [0], [1], [0, 0, 1, 1], [], []>} : vector<64x32xf32>, vector<32x32xf32>, vector<64x32xf32> -> vector<64x32xf32>
      %46 = vector.broadcast %44 : vector<1x32xf32> to vector<64x32xf32>
      %47 = arith.addf %45, %46 : vector<64x32xf32>
      %cst_29 = arith.constant 0.000000e+00 : f32
      %48 = vector.broadcast %cst_29 : f32 to vector<64x32xf32>
      %49 = arith.cmpf oge, %47, %48 : vector<64x32xf32>
      %cst_30 = arith.constant 1.000000e-01 : f32
      %50 = vector.broadcast %cst_30 : f32 to vector<64x32xf32>
      %51 = arith.mulf %50, %47 : vector<64x32xf32>
      %52 = arith.select %49, %47, %51 : vector<64x32xi1>, vector<64x32xf32>
      %c0_31 = arith.constant 0 : index
      %c0_32 = arith.constant 0 : index
      %53 = vector.load %arg8[%c0_31, %c0_32] : memref<32x32xf32, #tpu.memory_space<vmem>>, vector<32x32xf32>
      %c0_33 = arith.constant 0 : index
      %c0_34 = arith.constant 0 : index
      %54 = vector.load %arg9[%c0_33, %c0_34] : memref<1x32xf32, #tpu.memory_space<vmem>>, vector<1x32xf32>
      %cst_35 = arith.constant dense<0.000000e+00> : vector<64x32xf32>
      %55 = tpu.matmul %52, %53, %cst_35 {dimension_numbers = #tpu.dot_dimension_numbers<[1], [0], [0], [1], [0, 0, 1, 1], [], []>} : vector<64x32xf32>, vector<32x32xf32>, vector<64x32xf32> -> vector<64x32xf32>
      %56 = vector.broadcast %54 : vector<1x32xf32> to vector<64x32xf32>
      %57 = arith.addf %55, %56 : vector<64x32xf32>
      %c0_36 = arith.constant 0 : index
      %c0_37 = arith.constant 0 : index
      %c0_38 = arith.constant 0 : index
      %58 = vector.load %arg10[%c0_36, %c0_37, %c0_38] : memref<1x64x32xf32, #tpu.memory_space<vmem>>, vector<1x64x32xf32>
      %59 = vector.shape_cast %58 : vector<1x64x32xf32> to vector<64x32xf32>
      %60 = vector.shape_cast %57 : vector<64x32xf32> to vector<1x64x32xf32>
      tpu.vector_store %arg10[%c0_36, %c0_37, %c0_38], %60 {strides = array<i32>} : memref<1x64x32xf32, #tpu.memory_space<vmem>>, vector<1x64x32xf32>,
    } else {
    }
    return
  }
  func.func @transform_0(%arg0: i32, %arg1: i32, %arg2: i32) -> (i32, i32, i32) {
    %c0_i32 = arith.constant 0 : i32
    %c0_i32_0 = arith.constant 0 : i32
    return %arg0, %arg1, %c0_i32 : i32, i32, i32
  }
  func.func @transform_1(%arg0: i32, %arg1: i32, %arg2: i32) -> (i32, i32, i32) {
    %c0_i32 = arith.constant 0 : i32
    %c0_i32_0 = arith.constant 0 : i32
    %c0_i32_1 = arith.constant 0 : i32
    return %arg0, %c0_i32, %c0_i32_0 : i32, i32, i32
  }
  func.func @transform_2(%arg0: i32, %arg1: i32, %arg2: i32) -> (i32, i32, i32) {
    %c0_i32 = arith.constant 0 : i32
    %c0_i32_0 = arith.constant 0 : i32
    %c0_i32_1 = arith.constant 0 : i32
    return %arg0, %c0_i32, %c0_i32_0 : i32, i32, i32
  }
  func.func @transform_3(%arg0: i32, %arg1: i32, %arg2: i32) -> (i32, i32) {
    %c0_i32 = arith.constant 0 : i32
    %c0_i32_0 = arith.constant 0 : i32
    %c0_i32_1 = arith.constant 0 : i32
    return %c0_i32, %c0_i32_0 : i32, i32
  }
  func.func @transform_4(%arg0: i32, %arg1: i32, %arg2: i32) -> (i32, i32) {
    %c0_i32 = arith.constant 0 : i32
    %c0_i32_0 = arith.constant 0 : i32
    %c0_i32_1 = arith.constant 0 : i32
    return %c0_i32, %c0_i32_0 : i32, i32
  }
  func.func @transform_5(%arg0: i32, %arg1: i32, %arg2: i32) -> (i32, i32) {
    %c0_i32 = arith.constant 0 : i32
    %c0_i32_0 = arith.constant 0 : i32
    %c0_i32_1 = arith.constant 0 : i32
    return %c0_i32, %c0_i32_0 : i32, i32
  }
  func.func @transform_6(%arg0: i32, %arg1: i32, %arg2: i32) -> (i32, i32) {
    %c0_i32 = arith.constant 0 : i32
    %c0_i32_0 = arith.constant 0 : i32
    %c0_i32_1 = arith.constant 0 : i32
    return %c0_i32, %c0_i32_0 : i32, i32
  }
  func.func @transform_7(%arg0: i32, %arg1: i32, %arg2: i32) -> (i32, i32, i32) {
    %c0_i32 = arith.constant 0 : i32
    %c0_i32_0 = arith.constant 0 : i32
    return %arg0, %arg1, %c0_i32 : i32, i32, i32
  }
}

</mosaic_0001>

<bundles_post_ra>
// kernel: geo_unet_feature_net.22
= control target key start
LH: loop header
LB: loop body
LE: loop exit
PB: predicated region body
PF: predicated region fallthrough
CT: control target
= control target key end

     0   :  { %s318_s6 = smov 0   ;;  %s395_s0 = inlined_call_operand.vmem [shape: f32[2,3,128], index: 0, kind: input, shape index: {}]   ;;  %s396_s1 = inlined_call_operand.vmem [shape: f32[2,3,32], index: 1, kind: output, shape index: {}]  }
   0x1 LB: > { %s247_s7 = sadd.s32 4294967295, %s296_s6   ;;  %p251_p0 = scmp.ge.s32.totalorder %s296_s6, 1  ;;  %s296_s6 = sphi %s318_s6, %s11_s6  }
   0x2   : > { %p86_p1 = scmp.lt.s32.totalorder %s296_s6, 3 }
   0x4   : > { %p87_p2 = pnand %p251_p0, %p86_p1 }
   0x5   : > { %v115_v0 = vlaneseq (!%p87_p2)  ;;  %p104_p3 = scmp.lt.s32.totalorder (!%p87_p2), %s247_s7, 1  ;;  %vm126_vm0 = vcmask (!%p87_p2), 256000   ;;  %v306_v3 = vmov (!%p87_p2), -1.0   ;;  %v307_v8 = vmov (!%p87_p2), 0.0   ;;  %s351_s15 = smov (!%p87_p2), 0  }
   0x6   : > { %90 = sbr.rel (%p87_p2) target bundleno = 475 (0x1db), region = 24  ;;  %v298_v14 = vmov (!%p87_p2), 0.0  }
   0x7   : > { %v326_v1 = vand.u32 (!%p87_p2), 127, %v115_v0 }
   0x9   : > { %v117_v2 = vcvt.s32.f32 (!%p87_p2), %v326_v1  ;;  %vm118_vm1 = vcmp.lt.s32.totalorder (!%p87_p2), %v326_v1, 64 }
   0xa   : > { %v124_v4 = vsel (!%p87_p2), %vm118_vm1, 1e+30, %v306_v3 }
   0xb   : > { %125 = vst [vmem:[#allocation2] sm:$0x1] (!%p87_p2), %v124_v4 }
   0xd   : > { %s400_s7 = smov (!%p104_p3, %s247_s7), 1 }
   0xe   : > { %s252_s8 = sshll.u32 %s400_s7, 2 }
   0xf   : > { %s107_s11 = scalar_lea.vmem %s395_s0, %s252_s8  ;;  %s336_s14 = scalar_lea.vmem %s396_s1, %s252_s8 }
  0x10   : > { %v338_v5 = vld [vmem:[%s107_s11] sm:$0x1]  ;;  %v340_v6 = vld [vmem:[%s107_s11 + $0x1] sm:$0x1]  ;;  %v342_v7 = vld [vmem:[%s107_s11 + $0x2] sm:$0x1] }
  0x11   : > { %127 = vst.msk [vmem:[%s336_s14] sm:$0x7] %vm126_vm0, %v307_v8  ;;  %v119_v9 = vmul.f32 %v338_v5, %v338_v5  ;;  %v120_v10 = vmul.f32 %v340_v6, %v340_v6  ;;  %v122_v11 = vmul.f32 %v342_v7, %v342_v7 }
  0x13   : > { %v121_v12 = vadd.f32 %v120_v10, %v119_v9 }
  0x15   : > { %v123_v13 = vadd.f32 %v122_v11, %v121_v12 }
  0x16 LB: >> { %vm137_vm2 = vcmask 1040384   ;;  %vm135_vm3 = vcmp.eq.f32.partialorder %v117_v2, %v300_v14  ;;  %v149_v21 = vstv %s304_s15  ;;  %vm153_vm5 = vcmask 253952   ;;  %v175_v45 = vld [vmem:[#allocation2] sm:$0x1]  ;;  %s133_s15 = sadd.s32 1, %s304_s15   ;;  %s304_s15 = sphi %s351_s15, %s133_s15   ;;  %v300_v14 = vphi %v298_v14, %v185_v14  }
  0x17   : >> { %v136_v15 = vsel %vm135_vm3, %v338_v5, 0.0  ;;  %v141_v16 = vsel %vm135_vm3, %v340_v6, 0.0  ;;  %v145_v17 = vsel %vm135_vm3, %v342_v7, 0.0  ;;  %vm366_vm4 = vcmp.eq.s32.totalorder %v326_v1, %v149_v21  ;;  %p130_p4 = scmp.ge.s32.totalorder %s133_s15, 32  }
  0x18   : >> { %v138_v18 = vsel %vm137_vm2, %v136_v15, 0.0  ;;  %v146_v19 = vsel %vm137_vm2, %v145_v17, 0.0  ;;  %v142_v20 = vsel %vm137_vm2, %v141_v16, 0.0  ;;  %v151_v23 = vld [vmem:[%s336_s14] sm:$0x1] }
  0x19   : >> { %139 = vadd.xlane.f32.xlu0 %v138_v18  ;;  %147 = vadd.xlane.f32.xlu1 %v146_v19  ;;  %v158_v24 = vld [vmem:[%s336_s14 + $0x2] sm:$0x1]  ;;  %v155_v29 = vld [vmem:[%s336_s14 + $0x1] sm:$0x1] }
  0x1d   : >> { %143 = vadd.xlane.f32.xlu0 %v142_v20 }
  0xa6   : >> { %v140_v25 = vpop.xlane.xlu0 %139  ;;  %v148_v26 = vpop.xlane.xlu1 %147 }
  0xa7   : >> { %v152_v27 = vsel %vm366_vm4, %v140_v25, %v151_v23  ;;  %v159_v28 = vsel %vm366_vm4, %v148_v26, %v158_v24  ;;  %v161_v30 = vmul.f32 %v140_v25, %v338_v5  ;;  %v164_v35 = vmul.f32 %v148_v26, %v342_v7 }
  0xa8   : >> { %154 = vst.msk [vmem:[%s336_s14] sm:$0x1] %vm153_vm5, %v152_v27  ;;  %160 = vst.msk [vmem:[%s336_s14 + $0x2] sm:$0x1] %vm153_vm5, %v159_v28  ;;  %v166_v36 = vmul.f32 %v140_v25, %v140_v25  ;;  %v169_v40 = vmul.f32 %v148_v26, %v148_v26 }
  0xaa   : >> { %v144_v31 = vpop.xlane.xlu0 %143 }
  0xab   : >> { %v156_v32 = vsel %vm366_vm4, %v144_v31, %v155_v29  ;;  %v162_v33 = vmul.f32 %v144_v31, %v340_v6  ;;  %v167_v34 = vmul.f32 %v144_v31, %v144_v31 }
  0xac   : >> { %157 = vst.msk [vmem:[%s336_s14 + $0x1] sm:$0x1] %vm153_vm5, %v156_v32 }
  0xad   : >> { %v163_v37 = vadd.f32 %v162_v33, %v161_v30  ;;  %v168_v38 = vadd.f32 %v167_v34, %v166_v36 }
  0xaf   : >> { %v165_v39 = vadd.f32 %v164_v35, %v163_v37  ;;  %v170_v42 = vadd.f32 %v169_v40, %v168_v38 }
  0xb1   : >> { %v171_v41 = vmul.f32 2.0, %v165_v39 }
  0xb3   : >> { %v172_v43 = vsub.f32 %v123_v13, %v171_v41 }
  0xb5   : >> { %v173_v44 = vadd.f32 %v172_v43, %v170_v42 }
  0xb7   : >> { %v174_v46 = vmax.f32 %v173_v44, 0.0 }
  0xb9   : >> { %v176_v47 = vmin.f32 %v175_v45, %v174_v46 }
  0xbb   : >> { %v178_v48 = vsel %vm137_vm2, %v176_v47, -inf  ;;  %177 = vst [vmem:[#allocation2] sm:$0x1] %v176_v47 }
  0xbc   : >> { %179 = vmax.xlane.f32.xlu1 %v178_v48 }
 0x149   : >> { %v180_v49 = vpop.xlane.xlu1 %179 }
 0x14a   : >> { %vm181_vm6 = vcmp.ge.f32.partialorder %v176_v47, %v180_v49 }
 0x14b   : >> { %v182_v50 = vsel %vm181_vm6, %v117_v2, 128.0 }
 0x14c   : >> { %v183_v51 = vsel %vm137_vm2, %v182_v50, inf }
 0x14d   : >> { %184 = vmin.xlane.f32.xlu0 %v183_v51 }
 0x1d4   : > { %132 = sbr.rel (!%p130_p4) target bundleno = 22 (0x16), region = 61 }
 0x1da   : >> { %v185_v14 = vpop.xlane.xlu0 %184  }
 0x1db PF: > { %s11_s6 = sadd.s32 1, %s296_s6  }
 0x1dc   : > { %p8_p5 = scmp.ge.s32.totalorder %s11_s6, 4  }
 0x1de   :  { %10 = sbr.rel (!%p8_p5) target bundleno = 1 (0x1), region = 72 }

// kernel: geo_unet_feature_net.25
= control target key start
LH: loop header
LB: loop body
LE: loop exit
PB: predicated region body
PF: predicated region fallthrough
CT: control target
= control target key end

     0   :  { %s318_s6 = smov 0   ;;  %s395_s0 = inlined_call_operand.vmem [shape: f32[2,3,128], index: 0, kind: input, shape index: {}]   ;;  %s396_s1 = inlined_call_operand.vmem [shape: f32[2,3,8], index: 1, kind: output, shape index: {}]  }
   0x1 LB: > { %s247_s7 = sadd.s32 4294967295, %s296_s6   ;;  %p251_p0 = scmp.ge.s32.totalorder %s296_s6, 1  ;;  %s296_s6 = sphi %s318_s6, %s11_s6  }
   0x2   : > { %p86_p1 = scmp.lt.s32.totalorder %s296_s6, 3 }
   0x4   : > { %p87_p2 = pnand %p251_p0, %p86_p1 }
   0x5   : > { %v115_v0 = vlaneseq (!%p87_p2)  ;;  %p104_p3 = scmp.lt.s32.totalorder (!%p87_p2), %s247_s7, 1  ;;  %vm126_vm0 = vcmask (!%p87_p2), 59392   ;;  %v306_v3 = vmov (!%p87_p2), -1.0   ;;  %v307_v8 = vmov (!%p87_p2), 0.0   ;;  %s351_s15 = smov (!%p87_p2), 0  }
   0x6   : > { %90 = sbr.rel (%p87_p2) target bundleno = 475 (0x1db), region = 24  ;;  %v298_v14 = vmov (!%p87_p2), 0.0  }
   0x7   : > { %v326_v1 = vand.u32 (!%p87_p2), 127, %v115_v0 }
   0x9   : > { %v117_v2 = vcvt.s32.f32 (!%p87_p2), %v326_v1  ;;  %vm118_vm1 = vcmp.lt.s32.totalorder (!%p87_p2), %v326_v1, 32 }
   0xa   : > { %v124_v4 = vsel (!%p87_p2), %vm118_vm1, 1e+30, %v306_v3 }
   0xb   : > { %125 = vst [vmem:[#allocation2] sm:$0x1] (!%p87_p2), %v124_v4 }
   0xd   : > { %s400_s7 = smov (!%p104_p3, %s247_s7), 1 }
   0xe   : > { %s252_s8 = sshll.u32 %s400_s7, 2 }
   0xf   : > { %s107_s11 = scalar_lea.vmem %s395_s0, %s252_s8  ;;  %s336_s14 = scalar_lea.vmem %s396_s1, %s252_s8 }
  0x10   : > { %v338_v5 = vld [vmem:[%s107_s11] sm:$0x1]  ;;  %v340_v6 = vld [vmem:[%s107_s11 + $0x1] sm:$0x1]  ;;  %v342_v7 = vld [vmem:[%s107_s11 + $0x2] sm:$0x1] }
  0x11   : > { %127 = vst.msk [vmem:[%s336_s14] sm:$0x7] %vm126_vm0, %v307_v8  ;;  %v119_v9 = vmul.f32 %v338_v5, %v338_v5  ;;  %v120_v10 = vmul.f32 %v340_v6, %v340_v6  ;;  %v122_v11 = vmul.f32 %v342_v7, %v342_v7 }
  0x13   : > { %v121_v12 = vadd.f32 %v120_v10, %v119_v9 }
  0x15   : > { %v123_v13 = vadd.f32 %v122_v11, %v121_v12 }
  0x16 LB: >> { %vm137_vm2 = vcmask 1040384   ;;  %vm135_vm3 = vcmp.eq.f32.partialorder %v117_v2, %v300_v14  ;;  %v149_v21 = vstv %s304_s15  ;;  %vm153_vm5 = vcmask 57344   ;;  %v175_v45 = vld [vmem:[#allocation2] sm:$0x1]  ;;  %s133_s15 = sadd.s32 1, %s304_s15   ;;  %s304_s15 = sphi %s351_s15, %s133_s15   ;;  %v300_v14 = vphi %v298_v14, %v185_v14  }
  0x17   : >> { %v136_v15 = vsel %vm135_vm3, %v338_v5, 0.0  ;;  %v141_v16 = vsel %vm135_vm3, %v340_v6, 0.0  ;;  %v145_v17 = vsel %vm135_vm3, %v342_v7, 0.0  ;;  %vm366_vm4 = vcmp.eq.s32.totalorder %v326_v1, %v149_v21  ;;  %p130_p4 = scmp.ge.s32.totalorder %s133_s15, 8  }
  0x18   : >> { %v138_v18 = vsel %vm137_vm2, %v136_v15, 0.0  ;;  %v146_v19 = vsel %vm137_vm2, %v145_v17, 0.0  ;;  %v142_v20 = vsel %vm137_vm2, %v141_v16, 0.0  ;;  %v151_v23 = vld [vmem:[%s336_s14] sm:$0x1] }
  0x19   : >> { %139 = vadd.xlane.f32.xlu0 %v138_v18  ;;  %147 = vadd.xlane.f32.xlu1 %v146_v19  ;;  %v158_v24 = vld [vmem:[%s336_s14 + $0x2] sm:$0x1]  ;;  %v155_v29 = vld [vmem:[%s336_s14 + $0x1] sm:$0x1] }
  0x1d   : >> { %143 = vadd.xlane.f32.xlu0 %v142_v20 }
  0xa6   : >> { %v140_v25 = vpop.xlane.xlu0 %139  ;;  %v148_v26 = vpop.xlane.xlu1 %147 }
  0xa7   : >> { %v152_v27 = vsel %vm366_vm4, %v140_v25, %v151_v23  ;;  %v159_v28 = vsel %vm366_vm4, %v148_v26, %v158_v24  ;;  %v161_v30 = vmul.f32 %v140_v25, %v338_v5  ;;  %v164_v35 = vmul.f32 %v148_v26, %v342_v7 }
  0xa8   : >> { %154 = vst.msk [vmem:[%s336_s14] sm:$0x1] %vm153_vm5, %v152_v27  ;;  %160 = vst.msk [vmem:[%s336_s14 + $0x2] sm:$0x1] %vm153_vm5, %v159_v28  ;;  %v166_v36 = vmul.f32 %v140_v25, %v140_v25  ;;  %v169_v40 = vmul.f32 %v148_v26, %v148_v26 }
  0xaa   : >> { %v144_v31 = vpop.xlane.xlu0 %143 }
  0xab   : >> { %v156_v32 = vsel %vm366_vm4, %v144_v31, %v155_v29  ;;  %v162_v33 = vmul.f32 %v144_v31, %v340_v6  ;;  %v167_v34 = vmul.f32 %v144_v31, %v144_v31 }
  0xac   : >> { %157 = vst.msk [vmem:[%s336_s14 + $0x1] sm:$0x1] %vm153_vm5, %v156_v32 }
  0xad   : >> { %v163_v37 = vadd.f32 %v162_v33, %v161_v30  ;;  %v168_v38 = vadd.f32 %v167_v34, %v166_v36 }
  0xaf   : >> { %v165_v39 = vadd.f32 %v164_v35, %v163_v37  ;;  %v170_v42 = vadd.f32 %v169_v40, %v168_v38 }
  0xb1   : >> { %v171_v41 = vmul.f32 2.0, %v165_v39 }
  0xb3   : >> { %v172_v43 = vsub.f32 %v123_v13, %v171_v41 }
  0xb5   : >> { %v173_v44 = vadd.f32 %v172_v43, %v170_v42 }
  0xb7   : >> { %v174_v46 = vmax.f32 %v173_v44, 0.0 }
  0xb9   : >> { %v176_v47 = vmin.f32 %v175_v45, %v174_v46 }
  0xbb   : >> { %v178_v48 = vsel %vm137_vm2, %v176_v47, -inf  ;;  %177 = vst [vmem:[#allocation2] sm:$0x1] %v176_v47 }
  0xbc   : >> { %179 = vmax.xlane.f32.xlu1 %v178_v48 }
 0x149   : >> { %v180_v49 = vpop.xlane.xlu1 %179 }
 0x14a   : >> { %vm181_vm6 = vcmp.ge.f32.partialorder %v176_v47, %v180_v49 }
 0x14b   : >> { %v182_v50 = vsel %vm181_vm6, %v117_v2, 128.0 }
 0x14c   : >> { %v183_v51 = vsel %vm137_vm2, %v182_v50, inf }
 0x14d   : >> { %184 = vmin.xlane.f32.xlu0 %v183_v51 }
 0x1d4   : > { %132 = sbr.rel (!%p130_p4) target bundleno = 22 (0x16), region = 61 }
 0x1da   : >> { %v185_v14 = vpop.xlane.xlu0 %184  }
 0x1db PF: > { %s11_s6 = sadd.s32 1, %s296_s6  }
 0x1dc   : > { %p8_p5 = scmp.ge.s32.totalorder %s11_s6, 4  }
 0x1de   :  { %10 = sbr.rel (!%p8_p5) target bundleno = 1 (0x1), region = 72 }

// kernel: geo_unet_feature_net.28
= control target key start
LH: loop header
LB: loop body
LE: loop exit
PB: predicated region body
PF: predicated region fallthrough
CT: control target
= control target key end

     0   :  { %s318_s6 = smov 0   ;;  %s395_s0 = inlined_call_operand.vmem [shape: f32[2,3,128], index: 0, kind: input, shape index: {}]   ;;  %s396_s1 = inlined_call_operand.vmem [shape: f32[2,3,4], index: 1, kind: output, shape index: {}]  }
   0x1 LB: > { %s247_s7 = sadd.s32 4294967295, %s296_s6   ;;  %p251_p0 = scmp.ge.s32.totalorder %s296_s6, 1  ;;  %s296_s6 = sphi %s318_s6, %s11_s6  }
   0x2   : > { %p86_p1 = scmp.lt.s32.totalorder %s296_s6, 3 }
   0x4   : > { %p87_p2 = pnand %p251_p0, %p86_p1 }
   0x5   : > { %v115_v0 = vlaneseq (!%p87_p2)  ;;  %p104_p3 = scmp.lt.s32.totalorder (!%p87_p2), %s247_s7, 1  ;;  %vm126_vm0 = vcmask (!%p87_p2), 26624   ;;  %v306_v3 = vmov (!%p87_p2), -1.0   ;;  %v307_v8 = vmov (!%p87_p2), 0.0   ;;  %s351_s15 = smov (!%p87_p2), 0  }
   0x6   : > { %90 = sbr.rel (%p87_p2) target bundleno = 475 (0x1db), region = 24  ;;  %v298_v14 = vmov (!%p87_p2), 0.0  }
   0x7   : > { %v326_v1 = vand.u32 (!%p87_p2), 127, %v115_v0 }
   0x9   : > { %v117_v2 = vcvt.s32.f32 (!%p87_p2), %v326_v1  ;;  %vm118_vm1 = vcmp.lt.s32.totalorder (!%p87_p2), %v326_v1, 8 }
   0xa   : > { %v124_v4 = vsel (!%p87_p2), %vm118_vm1, 1e+30, %v306_v3 }
   0xb   : > { %125 = vst [vmem:[#allocation2] sm:$0x1] (!%p87_p2), %v124_v4 }
   0xd   : > { %s400_s7 = smov (!%p104_p3, %s247_s7), 1 }
   0xe   : > { %s252_s8 = sshll.u32 %s400_s7, 2 }
   0xf   : > { %s107_s11 = scalar_lea.vmem %s395_s0, %s252_s8  ;;  %s336_s14 = scalar_lea.vmem %s396_s1, %s252_s8 }
  0x10   : > { %v338_v5 = vld [vmem:[%s107_s11] sm:$0x1]  ;;  %v340_v6 = vld [vmem:[%s107_s11 + $0x1] sm:$0x1]  ;;  %v342_v7 = vld [vmem:[%s107_s11 + $0x2] sm:$0x1] }
  0x11   : > { %127 = vst.msk [vmem:[%s336_s14] sm:$0x7] %vm126_vm0, %v307_v8  ;;  %v119_v9 = vmul.f32 %v338_v5, %v338_v5  ;;  %v120_v10 = vmul.f32 %v340_v6, %v340_v6  ;;  %v122_v11 = vmul.f32 %v342_v7, %v342_v7 }
  0x13   : > { %v121_v12 = vadd.f32 %v120_v10, %v119_v9 }
  0x15   : > { %v123_v13 = vadd.f32 %v122_v11, %v121_v12 }
  0x16 LB: >> { %vm137_vm2 = vcmask 1040384   ;;  %vm135_vm3 = vcmp.eq.f32.partialorder %v117_v2, %v300_v14  ;;  %v149_v21 = vstv %s304_s15  ;;  %vm153_vm5 = vcmask 24576   ;;  %v175_v45 = vld [vmem:[#allocation2] sm:$0x1]  ;;  %s133_s15 = sadd.s32 1, %s304_s15   ;;  %s304_s15 = sphi %s351_s15, %s133_s15   ;;  %v300_v14 = vphi %v298_v14, %v185_v14  }
  0x17   : >> { %v136_v15 = vsel %vm135_vm3, %v338_v5, 0.0  ;;  %v141_v16 = vsel %vm135_vm3, %v340_v6, 0.0  ;;  %v145_v17 = vsel %vm135_vm3, %v342_v7, 0.0  ;;  %vm366_vm4 = vcmp.eq.s32.totalorder %v326_v1, %v149_v21  ;;  %p130_p4 = scmp.ge.s32.totalorder %s133_s15, 4  }
  0x18   : >> { %v138_v18 = vsel %vm137_vm2, %v136_v15, 0.0  ;;  %v146_v19 = vsel %vm137_vm2, %v145_v17, 0.0  ;;  %v142_v20 = vsel %vm137_vm2, %v141_v16, 0.0  ;;  %v151_v23 = vld [vmem:[%s336_s14] sm:$0x1] }
  0x19   : >> { %139 = vadd.xlane.f32.xlu0 %v138_v18  ;;  %147 = vadd.xlane.f32.xlu1 %v146_v19  ;;  %v158_v24 = vld [vmem:[%s336_s14 + $0x2] sm:$0x1]  ;;  %v155_v29 = vld [vmem:[%s336_s14 + $0x1] sm:$0x1] }
  0x1d   : >> { %143 = vadd.xlane.f32.xlu0 %v142_v20 }
  0xa6   : >> { %v140_v25 = vpop.xlane.xlu0 %139  ;;  %v148_v26 = vpop.xlane.xlu1 %147 }
  0xa7   : >> { %v152_v27 = vsel %vm366_vm4, %v140_v25, %v151_v23  ;;  %v159_v28 = vsel %vm366_vm4, %v148_v26, %v158_v24  ;;  %v161_v30 = vmul.f32 %v140_v25, %v338_v5  ;;  %v164_v35 = vmul.f32 %v148_v26, %v342_v7 }
  0xa8   : >> { %154 = vst.msk [vmem:[%s336_s14] sm:$0x1] %vm153_vm5, %v152_v27  ;;  %160 = vst.msk [vmem:[%s336_s14 + $0x2] sm:$0x1] %vm153_vm5, %v159_v28  ;;  %v166_v36 = vmul.f32 %v140_v25, %v140_v25  ;;  %v169_v40 = vmul.f32 %v148_v26, %v148_v26 }
  0xaa   : >> { %v144_v31 = vpop.xlane.xlu0 %143 }
  0xab   : >> { %v156_v32 = vsel %vm366_vm4, %v144_v31, %v155_v29  ;;  %v162_v33 = vmul.f32 %v144_v31, %v340_v6  ;;  %v167_v34 = vmul.f32 %v144_v31, %v144_v31 }
  0xac   : >> { %157 = vst.msk [vmem:[%s336_s14 + $0x1] sm:$0x1] %vm153_vm5, %v156_v32 }
  0xad   : >> { %v163_v37 = vadd.f32 %v162_v33, %v161_v30  ;;  %v168_v38 = vadd.f32 %v167_v34, %v166_v36 }
  0xaf   : >> { %v165_v39 = vadd.f32 %v164_v35, %v163_v37  ;;  %v170_v42 = vadd.f32 %v169_v40, %v168_v38 }
  0xb1   : >> { %v171_v41 = vmul.f32 2.0, %v165_v39 }
  0xb3   : >> { %v172_v43 = vsub.f32 %v123_v13, %v171_v41 }
  0xb5   : >> { %v173_v44 = vadd.f32 %v172_v43, %v170_v42 }
  0xb7   : >> { %v174_v46 = vmax.f32 %v173_v44, 0.0 }
  0xb9   : >> { %v176_v47 = vmin.f32 %v175_v45, %v174_v46 }
  0xbb   : >> { %v178_v48 = vsel %vm137_vm2, %v176_v47, -inf  ;;  %177 = vst [vmem:[#allocation2] sm:$0x1] %v176_v47 }
  0xbc   : >> { %179 = vmax.xlane.f32.xlu1 %v178_v48 }
 0x149   : >> { %v180_v49 = vpop.xlane.xlu1 %179 }
 0x14a   : >> { %vm181_vm6 = vcmp.ge.f32.partialorder %v176_v47, %v180_v49 }
 0x14b   : >> { %v182_v50 = vsel %vm181_vm6, %v117_v2, 128.0 }
 0x14c   : >> { %v183_v51 = vsel %vm137_vm2, %v182_v50, inf }
 0x14d   : >> { %184 = vmin.xlane.f32.xlu0 %v183_v51 }
 0x1d4   : > { %132 = sbr.rel (!%p130_p4) target bundleno = 22 (0x16), region = 61 }
 0x1da   : >> { %v185_v14 = vpop.xlane.xlu0 %184  }
 0x1db PF: > { %s11_s6 = sadd.s32 1, %s296_s6  }
 0x1dc   : > { %p8_p5 = scmp.ge.s32.totalorder %s11_s6, 4  }
 0x1de   :  { %10 = sbr.rel (!%p8_p5) target bundleno = 1 (0x1), region = 72 }

// kernel: geo_unet_feature_net.20
= control target key start
LH: loop header
LB: loop body
LE: loop exit
PB: predicated region body
PF: predicated region fallthrough
CT: control target
= control target key end

     0   :  { %vm93_vm0 = vcmask 1040384   ;;  %vm44_vm1 = vcmask 7168   ;;  %vm298_vm4 = vcmask 64512   ;;  %s904_s1 = inlined_call_operand.vmem [shape: f32[1,8], index: 1, kind: input, shape index: {}]   ;;  %s905_s0 = inlined_call_operand.vmem [shape: f32[128,1], index: 0, kind: input, shape index: {}]   ;;  %s906_s3 = inlined_call_operand.vmem [shape: f32[8,16], index: 3, kind: input, shape index: {}]   ;;  %s907_s2 = inlined_call_operand.vmem [shape: f32[1,8], index: 2, kind: input, shape index: {}]   ;;  %s908_s4 = inlined_call_operand.vmem [shape: f32[1,16], index: 4, kind: input, shape index: {}]   ;;  %s909_s5 = inlined_call_operand.vmem [shape: f32[128,16], index: 5, kind: output, shape index: {}]  }
   0x1   :  { %v36_v0 = vld [vmem:[%s904_s1] sm:$0x1]  ;;  %v21_v2 = vld [vmem:[%s905_s0 + $0x8] sm:$0xff]  ;;  %v22_v3 = vld [vmem:[%s905_s0 + $0x10] sm:$0xff] }
   0x2   :  { %v20_v1 = vld [vmem:[%s905_s0] sm:$0xff]  ;;  %630 = vmatprep.subr.msk.mxu0 %vm93_vm0, %v36_v0  ;;  %v23_v4 = vld [vmem:[%s905_s0 + $0x18] sm:$0xff]  ;;  %v25_v6 = vld [vmem:[%s905_s0 + $0x28] sm:$0xff] }
   0x3   :  { %632 = vmatprep.mubr.msk.f32.mxu0 %vm44_vm1, %v20_v1  ;;  %631 = vmatpush3.msk.msra.mxu0 %vm93_vm0, %v36_v0  ;;  %v24_v5 = vld [vmem:[%s905_s0 + $0x20] sm:$0xff]  ;;  %v26_v7 = vld [vmem:[%s905_s0 + $0x30] sm:$0xff]  ;;  %v27_v8 = vld [vmem:[%s905_s0 + $0x38] sm:$0xff] }
   0x4   :  { %633 = vmatmul.mubr.msk.f32.vlgmr.msra.gmra.mrb[0].mxu0 %vm44_vm1, %v21_v2  ;;  %v28_v9 = vld [vmem:[%s905_s0 + $0x40] sm:$0xff]  ;;  %v29_v10 = vld [vmem:[%s905_s0 + $0x48] sm:$0xff]  ;;  %v30_v11 = vld [vmem:[%s905_s0 + $0x50] sm:$0xff] }
   0x5   :  { %635 = vmatprep.mubr.msk.f32.mxu0 %vm44_vm1, %v22_v3  ;;  %v31_v12 = vld [vmem:[%s905_s0 + $0x58] sm:$0xff]  ;;  %v32_v13 = vld [vmem:[%s905_s0 + $0x60] sm:$0xff]  ;;  %v33_v14 = vld [vmem:[%s905_s0 + $0x68] sm:$0xff] }
   0x6   :  { %v34_v15 = vld [vmem:[%s905_s0 + $0x70] sm:$0xff]  ;;  %v35_v16 = vld [vmem:[%s905_s0 + $0x78] sm:$0xff]  ;;  %v290_v17 = vld [vmem:[%s906_s3] sm:$0xff] }
   0x7   :  { %656 = vmatprep.subr.mxu1 %v290_v17  ;;  %v785_v18 = vld [vmem:[%s907_s2] ss:$0 sm:$0xff] }
   0x8   :  { %636 = vmatmul.mubr.msk.f32.gmra.mrb[2].mxu0 %vm44_vm1, %v23_v4  ;;  %657 = vmatpush3.msra.mxu1 %v290_v17 }
   0x9   :  { %638 = vmatprep.mubr.msk.f32.mxu0 %vm44_vm1, %v24_v5 }
   0xc   :  { %639 = vmatmul.mubr.msk.f32.gmra.mrb[4].mxu0 %vm44_vm1, %v25_v6 }
   0xd   :  { %641 = vmatprep.mubr.msk.f32.mxu0 %vm44_vm1, %v26_v7 }
  0x10   :  { %642 = vmatmul.mubr.msk.f32.gmra.mrb[6].mxu0 %vm44_vm1, %v27_v8 }
  0x11   :  { %644 = vmatprep.mubr.msk.f32.mxu0 %vm44_vm1, %v28_v9 }
  0x14   :  { %645 = vmatmul.mubr.msk.f32.gmra.mrb[8].mxu0 %vm44_vm1, %v29_v10 }
  0x15   :  { %647 = vmatprep.mubr.msk.f32.mxu0 %vm44_vm1, %v30_v11 }
  0x18   :  { %648 = vmatmul.mubr.msk.f32.gmra.mrb[10].mxu0 %vm44_vm1, %v31_v12 }
  0x19   :  { %650 = vmatprep.mubr.msk.f32.mxu0 %vm44_vm1, %v32_v13 }
  0x1c   :  { %651 = vmatmul.mubr.msk.f32.gmra.mrb[12].mxu0 %vm44_vm1, %v33_v14 }
  0x1d   :  { %653 = vmatprep.mubr.msk.f32.mxu0 %vm44_vm1, %v34_v15 }
  0x20   :  { %654 = vmatmul.mubr.msk.f32.gmra.mrb[14].mxu0 %vm44_vm1, %v35_v16 }
  0xd7   :  { %v634_v19 = vpop.f32.mrb[0].mxu0 }
  0xd8   :  { %v169_v20 = vadd.f32 %v634_v19, %v785_v18  ;;  %v163_v21 = vpop.f32.mrb[1].mxu0 }
  0xd9   :  { %v164_v22 = vadd.f32 %v785_v18, %v163_v21 }
  0xda   :  { %v259_v23 = vmul.f32 0.1, %v169_v20  ;;  %vm243_vm2 = vcmp.ge.f32.partialorder %v169_v20, 0.0 }
  0xdb   :  { %v637_v24 = vpop.f32.mrb[2].mxu0  ;;  %vm242_vm3 = vcmp.ge.f32.partialorder %v164_v22, 0.0  ;;  %v258_v25 = vmul.f32 0.1, %v164_v22 }
  0xdc   :  { %v179_v26 = vadd.f32 %v637_v24, %v785_v18  ;;  %v173_v27 = vpop.f32.mrb[3].mxu0  ;;  %v275_v31 = vsel %vm243_vm2, %v169_v20, %v259_v23 }
  0xdd   :  { %v174_v28 = vadd.f32 %v785_v18, %v173_v27  ;;  %v274_v29 = vsel %vm242_vm3, %v164_v22, %v258_v25 }
  0xde   :  { %v261_v30 = vmul.f32 0.1, %v179_v26  ;;  %658 = vmatprep.mubr.msk.f32.mxu1 %vm298_vm4, %v274_v29  ;;  %vm245_vm5 = vcmp.ge.f32.partialorder %v179_v26, 0.0 }
  0xdf   :  { %vm244_vm6 = vcmp.ge.f32.partialorder %v174_v28, 0.0  ;;  %v260_v32 = vmul.f32 0.1, %v174_v28  ;;  %v640_v33 = vpop.f32.mrb[4].mxu0  ;;  %659 = vmatmul.mubr.msk.f32.vlgmr.msra.gmra.mrb[0].mxu1 %vm298_vm4, %v275_v31 }
  0xe0   :  { %v189_v34 = vadd.f32 %v640_v33, %v785_v18  ;;  %v183_v35 = vpop.f32.mrb[5].mxu0  ;;  %v277_v39 = vsel %vm245_vm5, %v179_v26, %v261_v30  ;;  %vm540_vm5 = vcmask 130048  }
  0xe1   :  { %v184_v36 = vadd.f32 %v785_v18, %v183_v35  ;;  %v276_v37 = vsel %vm244_vm6, %v174_v28, %v260_v32 }
  0xe2   :  { %v263_v38 = vmul.f32 0.1, %v189_v34  ;;  %661 = vmatprep.mubr.msk.f32.mxu1 %vm298_vm4, %v276_v37  ;;  %vm247_vm7 = vcmp.ge.f32.partialorder %v189_v34, 0.0 }
  0xe3   :  { %vm246_vm8 = vcmp.ge.f32.partialorder %v184_v36, 0.0  ;;  %v262_v40 = vmul.f32 0.1, %v184_v36  ;;  %v643_v41 = vpop.f32.mrb[6].mxu0  ;;  %662 = vmatmul.mubr.msk.f32.gmra.mrb[2].mxu1 %vm298_vm4, %v277_v39 }
  0xe4   :  { %v199_v42 = vadd.f32 %v643_v41, %v785_v18  ;;  %v193_v43 = vpop.f32.mrb[7].mxu0  ;;  %v279_v47 = vsel %vm247_vm7, %v189_v34, %v263_v38 }
  0xe5   :  { %v194_v44 = vadd.f32 %v785_v18, %v193_v43  ;;  %v278_v45 = vsel %vm246_vm8, %v184_v36, %v262_v40 }
  0xe6   :  { %v265_v46 = vmul.f32 0.1, %v199_v42  ;;  %664 = vmatprep.mubr.msk.f32.mxu1 %vm298_vm4, %v278_v45  ;;  %vm249_vm9 = vcmp.ge.f32.partialorder %v199_v42, 0.0 }
  0xe7   :  { %vm248_vm10 = vcmp.ge.f32.partialorder %v194_v44, 0.0  ;;  %v264_v48 = vmul.f32 0.1, %v194_v44  ;;  %v646_v49 = vpop.f32.mrb[8].mxu0  ;;  %665 = vmatmul.mubr.msk.f32.gmra.mrb[4].mxu1 %vm298_vm4, %v279_v47 }
  0xe8   :  { %v209_v50 = vadd.f32 %v646_v49, %v785_v18  ;;  %v203_v51 = vpop.f32.mrb[9].mxu0  ;;  %v281_v55 = vsel %vm249_vm9, %v199_v42, %v265_v46 }
  0xe9   :  { %v204_v52 = vadd.f32 %v785_v18, %v203_v51  ;;  %v280_v53 = vsel %vm248_vm10, %v194_v44, %v264_v48 }
  0xea   :  { %v267_v54 = vmul.f32 0.1, %v209_v50  ;;  %667 = vmatprep.mubr.msk.f32.mxu1 %vm298_vm4, %v280_v53  ;;  %vm251_vm11 = vcmp.ge.f32.partialorder %v209_v50, 0.0 }
  0xeb   :  { %vm250_vm12 = vcmp.ge.f32.partialorder %v204_v52, 0.0  ;;  %v266_v56 = vmul.f32 0.1, %v204_v52  ;;  %v649_v57 = vpop.f32.mrb[10].mxu0  ;;  %668 = vmatmul.mubr.msk.f32.gmra.mrb[6].mxu1 %vm298_vm4, %v281_v55 }
  0xec   :  { %v219_v58 = vadd.f32 %v649_v57, %v785_v18  ;;  %v213_v59 = vpop.f32.mrb[11].mxu0  ;;  %v283_v63 = vsel %vm251_vm11, %v209_v50, %v267_v54 }
  0xed   :  { %v214_v60 = vadd.f32 %v785_v18, %v213_v59  ;;  %v282_v61 = vsel %vm250_vm12, %v204_v52, %v266_v56 }
  0xee   :  { %v269_v62 = vmul.f32 0.1, %v219_v58  ;;  %670 = vmatprep.mubr.msk.f32.mxu1 %vm298_vm4, %v282_v61  ;;  %vm253_vm13 = vcmp.ge.f32.partialorder %v219_v58, 0.0 }
  0xef   :  { %vm252_vm14 = vcmp.ge.f32.partialorder %v214_v60, 0.0  ;;  %v268_v0 = vmul.f32 0.1, %v214_v60  ;;  %v652_v1 = vpop.f32.mrb[12].mxu0  ;;  %671 = vmatmul.mubr.msk.f32.gmra.mrb[8].mxu1 %vm298_vm4, %v283_v63 }
  0xf0   :  { %v229_v2 = vadd.f32 %v652_v1, %v785_v18  ;;  %v223_v3 = vpop.f32.mrb[13].mxu0  ;;  %v285_v7 = vsel %vm253_vm13, %v219_v58, %v269_v62 }
  0xf1   :  { %v224_v4 = vadd.f32 %v785_v18, %v223_v3  ;;  %v284_v5 = vsel %vm252_vm14, %v214_v60, %v268_v0 }
  0xf2   :  { %v271_v6 = vmul.f32 0.1, %v229_v2  ;;  %673 = vmatprep.mubr.msk.f32.mxu1 %vm298_vm4, %v284_v5  ;;  %vm255_vm15 = vcmp.ge.f32.partialorder %v229_v2, 0.0 }
  0xf3   :  { %vm254_vm0 = vcmp.ge.f32.partialorder %v224_v4, 0.0  ;;  %v270_v8 = vmul.f32 0.1, %v224_v4  ;;  %v655_v9 = vpop.f32.mrb[14].mxu0  ;;  %674 = vmatmul.mubr.msk.f32.gmra.mrb[10].mxu1 %vm298_vm4, %v285_v7 }
  0xf4   :  { %v239_v10 = vadd.f32 %v655_v9, %v785_v18  ;;  %v233_v11 = vpop.f32.mrb[15].mxu0  ;;  %v287_v15 = vsel %vm255_vm15, %v229_v2, %v271_v6 }
  0xf5   :  { %v234_v12 = vadd.f32 %v785_v18, %v233_v11  ;;  %v286_v13 = vsel %vm254_vm0, %v224_v4, %v270_v8  ;;  %v822_v18 = vld [vmem:[%s908_s4] ss:$0 sm:$0xff] }
  0xf6   :  { %v273_v14 = vmul.f32 0.1, %v239_v10  ;;  %676 = vmatprep.mubr.msk.f32.mxu1 %vm298_vm4, %v286_v13  ;;  %vm257_vm1 = vcmp.ge.f32.partialorder %v239_v10, 0.0 }
  0xf7   :  { %vm256_vm2 = vcmp.ge.f32.partialorder %v234_v12, 0.0  ;;  %v272_v16 = vmul.f32 0.1, %v234_v12  ;;  %677 = vmatmul.mubr.msk.f32.gmra.mrb[12].mxu1 %vm298_vm4, %v287_v15 }
  0xf8   :  { %v289_v19 = vsel %vm257_vm1, %v239_v10, %v273_v14 }
  0xf9   :  { %v288_v17 = vsel %vm256_vm2, %v234_v12, %v272_v16 }
  0xfa   :  { %679 = vmatprep.mubr.msk.f32.mxu1 %vm298_vm4, %v288_v17 }
  0xfb   :  { %680 = vmatmul.mubr.msk.f32.gmra.mrb[14].mxu1 %vm298_vm4, %v289_v19 }
 0x1b2   :  { %v660_v20 = vpop.f32.mrb[0].mxu1 }
 0x1b3   :  { %v419_v21 = vadd.f32 %v660_v20, %v822_v18  ;;  %v413_v22 = vpop.f32.mrb[1].mxu1 }
 0x1b4   :  { %v414_v23 = vadd.f32 %v822_v18, %v413_v22 }
 0x1b5   :  { %vm493_vm3 = vcmp.ge.f32.partialorder %v419_v21, 0.0  ;;  %v509_v24 = vmul.f32 0.1, %v419_v21 }
 0x1b6   :  { %vm492_vm6 = vcmp.ge.f32.partialorder %v414_v23, 0.0  ;;  %v508_v25 = vmul.f32 0.1, %v414_v23  ;;  %v663_v26 = vpop.f32.mrb[2].mxu1 }
 0x1b7   :  { %v525_v27 = vsel %vm493_vm3, %v419_v21, %v509_v24  ;;  %v429_v28 = vadd.f32 %v663_v26, %v822_v18  ;;  %v423_v29 = vpop.f32.mrb[3].mxu1 }
 0x1b8   :  { %542 = vst.msk [vmem:[%s909_s5 + $0x8] sm:$0xff] %vm540_vm5, %v525_v27  ;;  %v524_v30 = vsel %vm492_vm6, %v414_v23, %v508_v25  ;;  %v424_v31 = vadd.f32 %v822_v18, %v423_v29 }
 0x1b9   :  { %541 = vst.msk [vmem:[%s909_s5] sm:$0xff] %vm540_vm5, %v524_v30  ;;  %vm495_vm4 = vcmp.ge.f32.partialorder %v429_v28, 0.0  ;;  %v511_v32 = vmul.f32 0.1, %v429_v28 }
 0x1ba   :  { %vm494_vm7 = vcmp.ge.f32.partialorder %v424_v31, 0.0  ;;  %v510_v33 = vmul.f32 0.1, %v424_v31  ;;  %v666_v34 = vpop.f32.mrb[4].mxu1 }
 0x1bb   :  { %v527_v35 = vsel %vm495_vm4, %v429_v28, %v511_v32  ;;  %v439_v36 = vadd.f32 %v666_v34, %v822_v18  ;;  %v433_v37 = vpop.f32.mrb[5].mxu1 }
 0x1bc   :  { %544 = vst.msk [vmem:[%s909_s5 + $0x18] sm:$0xff] %vm540_vm5, %v527_v35  ;;  %v526_v38 = vsel %vm494_vm7, %v424_v31, %v510_v33  ;;  %v434_v39 = vadd.f32 %v822_v18, %v433_v37 }
 0x1bd   :  { %543 = vst.msk [vmem:[%s909_s5 + $0x10] sm:$0xff] %vm540_vm5, %v526_v38  ;;  %vm497_vm8 = vcmp.ge.f32.partialorder %v439_v36, 0.0  ;;  %v513_v40 = vmul.f32 0.1, %v439_v36 }
 0x1be   :  { %vm496_vm9 = vcmp.ge.f32.partialorder %v434_v39, 0.0  ;;  %v512_v41 = vmul.f32 0.1, %v434_v39  ;;  %v669_v42 = vpop.f32.mrb[6].mxu1 }
 0x1bf   :  { %v529_v43 = vsel %vm497_vm8, %v439_v36, %v513_v40  ;;  %v449_v44 = vadd.f32 %v669_v42, %v822_v18  ;;  %v443_v45 = vpop.f32.mrb[7].mxu1 }
 0x1c0   :  { %546 = vst.msk [vmem:[%s909_s5 + $0x28] sm:$0xff] %vm540_vm5, %v529_v43  ;;  %v528_v46 = vsel %vm496_vm9, %v434_v39, %v512_v41  ;;  %v444_v47 = vadd.f32 %v822_v18, %v443_v45 }
 0x1c1   :  { %545 = vst.msk [vmem:[%s909_s5 + $0x20] sm:$0xff] %vm540_vm5, %v528_v46  ;;  %vm499_vm10 = vcmp.ge.f32.partialorder %v449_v44, 0.0  ;;  %v515_v48 = vmul.f32 0.1, %v449_v44 }
 0x1c2   :  { %vm498_vm11 = vcmp.ge.f32.partialorder %v444_v47, 0.0  ;;  %v514_v49 = vmul.f32 0.1, %v444_v47  ;;  %v672_v50 = vpop.f32.mrb[8].mxu1 }
 0x1c3   :  { %v531_v51 = vsel %vm499_vm10, %v449_v44, %v515_v48  ;;  %v459_v52 = vadd.f32 %v672_v50, %v822_v18  ;;  %v453_v53 = vpop.f32.mrb[9].mxu1 }
 0x1c4   :  { %548 = vst.msk [vmem:[%s909_s5 + $0x38] sm:$0xff] %vm540_vm5, %v531_v51  ;;  %v530_v54 = vsel %vm498_vm11, %v444_v47, %v514_v49  ;;  %v454_v55 = vadd.f32 %v822_v18, %v453_v53 }
 0x1c5   :  { %547 = vst.msk [vmem:[%s909_s5 + $0x30] sm:$0xff] %vm540_vm5, %v530_v54  ;;  %vm501_vm12 = vcmp.ge.f32.partialorder %v459_v52, 0.0  ;;  %v517_v56 = vmul.f32 0.1, %v459_v52 }
 0x1c6   :  { %vm500_vm13 = vcmp.ge.f32.partialorder %v454_v55, 0.0  ;;  %v516_v57 = vmul.f32 0.1, %v454_v55  ;;  %v675_v58 = vpop.f32.mrb[10].mxu1 }
 0x1c7   :  { %v533_v59 = vsel %vm501_vm12, %v459_v52, %v517_v56  ;;  %v469_v60 = vadd.f32 %v675_v58, %v822_v18  ;;  %v463_v61 = vpop.f32.mrb[11].mxu1 }
 0x1c8   :  { %550 = vst.msk [vmem:[%s909_s5 + $0x48] sm:$0xff] %vm540_vm5, %v533_v59  ;;  %v532_v62 = vsel %vm500_vm13, %v454_v55, %v516_v57  ;;  %v464_v63 = vadd.f32 %v822_v18, %v463_v61 }
 0x1c9   :  { %549 = vst.msk [vmem:[%s909_s5 + $0x40] sm:$0xff] %vm540_vm5, %v532_v62  ;;  %vm503_vm14 = vcmp.ge.f32.partialorder %v469_v60, 0.0  ;;  %v519_v0 = vmul.f32 0.1, %v469_v60 }
 0x1ca   :  { %vm502_vm15 = vcmp.ge.f32.partialorder %v464_v63, 0.0  ;;  %v518_v1 = vmul.f32 0.1, %v464_v63  ;;  %v678_v2 = vpop.f32.mrb[12].mxu1 }
 0x1cb   :  { %v535_v3 = vsel %vm503_vm14, %v469_v60, %v519_v0  ;;  %v479_v4 = vadd.f32 %v678_v2, %v822_v18  ;;  %v473_v5 = vpop.f32.mrb[13].mxu1 }
 0x1cc   :  { %552 = vst.msk [vmem:[%s909_s5 + $0x58] sm:$0xff] %vm540_vm5, %v535_v3  ;;  %v534_v6 = vsel %vm502_vm15, %v464_v63, %v518_v1  ;;  %v474_v7 = vadd.f32 %v822_v18, %v473_v5 }
 0x1cd   :  { %551 = vst.msk [vmem:[%s909_s5 + $0x50] sm:$0xff] %vm540_vm5, %v534_v6  ;;  %vm505_vm0 = vcmp.ge.f32.partialorder %v479_v4, 0.0  ;;  %v521_v8 = vmul.f32 0.1, %v479_v4 }
 0x1ce   :  { %vm504_vm1 = vcmp.ge.f32.partialorder %v474_v7, 0.0  ;;  %v520_v9 = vmul.f32 0.1, %v474_v7  ;;  %v681_v10 = vpop.f32.mrb[14].mxu1 }
 0x1cf   :  { %v537_v11 = vsel %vm505_vm0, %v479_v4, %v521_v8  ;;  %v489_v12 = vadd.f32 %v681_v10, %v822_v18  ;;  %v483_v13 = vpop.f32.mrb[15].mxu1 }
 0x1d0   :  { %554 = vst.msk [vmem:[%s909_s5 + $0x68] sm:$0xff] %vm540_vm5, %v537_v11  ;;  %v536_v14 = vsel %vm504_vm1, %v474_v7, %v520_v9  ;;  %v484_v15 = vadd.f32 %v822_v18, %v483_v13 }
 0x1d1   :  { %553 = vst.msk [vmem:[%s909_s5 + $0x60] sm:$0xff] %vm540_vm5, %v536_v14  ;;  %vm507_vm2 = vcmp.ge.f32.partialorder %v489_v12, 0.0  ;;  %v523_v16 = vmul.f32 0.1, %v489_v12 }
 0x1d2   :  { %vm506_vm3 = vcmp.ge.f32.partialorder %v484_v15, 0.0  ;;  %v522_v17 = vmul.f32 0.1, %v484_v15 }
 0x1d3   :  { %v539_v19 = vsel %vm507_vm2, %v489_v12, %v523_v16 }
 0x1d4   :  { %556 = vst.msk [vmem:[%s909_s5 + $0x78] sm:$0xff] %vm540_vm5, %v539_v19  ;;  %v538_v20 = vsel %vm506_vm3, %v484_v15, %v522_v17 }
 0x1d5   :  { %555 = vst.msk [vmem:[%s909_s5 + $0x70] sm:$0xff] %vm540_vm5, %v538_v20 }

// kernel: geo_unet_feature_net.21
= control target key start
LH: loop header
LB: loop body
LE: loop exit
PB: predicated region body
PF: predicated region fallthrough
CT: control target
= control target key end

     0   :  { %s1392_s18 = smov 0   ;;  %s1394_s19 = smov 0   ;;  %s1535_s0 = inlined_call_operand.vmem [shape: f32[2,64,8], index: 0, kind: input, shape index: {}]   ;;  %s1536_s1 = inlined_call_operand.vmem [shape: f32[2,64,8], index: 1, kind: input, shape index: {}]   ;;  %s1537_s2 = inlined_call_operand.vmem [shape: bf16[2,64,17], index: 2, kind: input, shape index: {}]   ;;  %s1538_s3 = inlined_call_operand.vmem [shape: f32[16,16], index: 3, kind: input, shape index: {}]   ;;  %s1539_s4 = inlined_call_operand.vmem [shape: f32[1,16], index: 4, kind: input, shape index: {}]   ;;  %s1540_s5 = inlined_call_operand.vmem [shape: f32[2,64,16], index: 5, kind: output, shape index: {}]  }
   0x1   :  { %s1396_s20 = smov 0  }
   0x2 LB: > { %s34_s21 = sadd.s32 1, %s1354_s19  ;;  %p1102_p0 = scmp.ge.s32.totalorder %s1358_s20, 1  ;;  %s1358_s20 = sphi %s1396_s20, %s15_s20   ;;  %s1354_s19 = sphi %s1394_s19, %s1544_s19   ;;  %s1350_s18 = sphi %s1392_s18, %s1543_s18  }
   0x3   : > { %p36_p1 = scmp.ge.s32.totalorder %s34_s21, 2  ;;  %p235_p2 = scmp.lt.s32.totalorder %s1358_s20, 3 }
   0x5   : > { %s1546_s21 = smov (%p36_p1, %s34_s21), 0  ;;  %p236_p3 = pnand %p1102_p0, %p235_p2 }
   0x6   : > { %p282_p4 = scmp.lt.s32.totalorder (!%p236_p3), %s1350_s18, 1  ;;  %vm349_vm0 = vcmask (!%p236_p3), 64512   ;;  %vm316_vm2 = vcmask (!%p236_p3), 138240   ;;  %v1360_v25 = vmov (!%p236_p3), 0.0   ;;  %vm643_vm3 = vcmask (!%p236_p3), 523264  }
   0x7   : > { %239 = sbr.rel (%p236_p3) target bundleno = 903 (0x387), region = 40  ;;  %vm1421_vm1 = vmpackc.low (!%p236_p3), %vm349_vm0, %vm349_vm0  ;;  %319 = vst.msk [vmem:[#allocation2 + $0x10] sm:$0xff] (!%p236_p3), %vm316_vm2, %v1360_v25  ;;  %vm822_vm4 = vcmask (!%p236_p3), 130048  }
   0x8   : > { %317 = vst.msk [vmem:[#allocation2] sm:$0xff] (!%p236_p3), %vm316_vm2, %v1360_v25  ;;  %318 = vst.msk [vmem:[#allocation2 + $0x8] sm:$0xff] (!%p236_p3), %vm316_vm2, %v1360_v25 }
   0x9   : > { %320 = vst.msk [vmem:[#allocation2 + $0x18] sm:$0xff] (!%p236_p3), %vm316_vm2, %v1360_v25  ;;  %321 = vst.msk [vmem:[#allocation2 + $0x20] sm:$0xff] (!%p236_p3), %vm316_vm2, %v1360_v25 }
   0xa   : > { %322 = vst.msk [vmem:[#allocation2 + $0x28] sm:$0xff] (!%p236_p3), %vm316_vm2, %v1360_v25  ;;  %323 = vst.msk [vmem:[#allocation2 + $0x30] sm:$0xff] (!%p236_p3), %vm316_vm2, %v1360_v25 }
   0xb   : > { %324 = vst.msk [vmem:[#allocation2 + $0x38] sm:$0xff] (!%p236_p3), %vm316_vm2, %v1360_v25 }
   0xe   : > { %s1548_s18 = smov (!%p282_p4, %s1350_s18), 1 }
   0xf   : > { %s1413_s22 = sshll.u32 %s1548_s18, 6  ;;  %s1148_s29 = sshll.u32 %s1548_s18, 5 }
  0x10   : > { %s295_s25 = scalar_lea.vmem %s1536_s1, %s1413_s22  ;;  %s1429_s28 = scalar_lea.vmem %s1535_s0, %s1413_s22 }
  0x11   : > { %v325_v1 = vld [vmem:[%s295_s25] sm:$0xff]  ;;  %v326_v2 = vld [vmem:[%s295_s25 + $0x8] sm:$0xff]  ;;  %v327_v3 = vld [vmem:[%s295_s25 + $0x10] sm:$0xff]  ;;  %s300_s7 = scalar_lea.vmem %s1537_s2, %s1148_s29  ;;  %s1508_s16 = scalar_lea.vmem %s1540_s5, %s1413_s22 }
  0x12   : > { %v1244_v4 = vpack.c.bf16 %v326_v2, %v325_v1  ;;  %v328_v5 = vld [vmem:[%s295_s25 + $0x18] sm:$0xff]  ;;  %v341_v7 = vld [vmem:[%s1429_s28] sm:$0xff]  ;;  %v330_v9 = vld [vmem:[%s295_s25 + $0x28] sm:$0xff] }
  0x13   : > { %v1250_v6 = vpack.c.bf16 %v328_v5, %v327_v3  ;;  %1200 = vmatprep.mubr.msk.f32.mxu0 %vm349_vm0, %v341_v7  ;;  %v329_v8 = vld [vmem:[%s295_s25 + $0x20] sm:$0xff]  ;;  %v331_v11 = vld [vmem:[%s295_s25 + $0x30] sm:$0xff]  ;;  %v332_v12 = vld [vmem:[%s295_s25 + $0x38] sm:$0xff] }
  0x14   : > { %1246 = vmatprep.subr.msk.bf16.mxu0 %vm1421_vm1, %v1244_v4  ;;  %v1256_v10 = vpack.c.bf16 %v330_v9, %v329_v8  ;;  %v1262_v13 = vpack.c.bf16 %v332_v12, %v331_v11  ;;  %v342_v14 = vld [vmem:[%s1429_s28 + $0x8] sm:$0xff]  ;;  %v343_v15 = vld [vmem:[%s1429_s28 + $0x10] sm:$0xff]  ;;  %v344_v16 = vld [vmem:[%s1429_s28 + $0x18] sm:$0xff] }
  0x15   : > { %1249 = vmatpush3.bf16.xpose.msk.msra.mxu0 %vm1421_vm1, %v1244_v4  ;;  %v345_v17 = vld [vmem:[%s1429_s28 + $0x20] sm:$0xff]  ;;  %v346_v18 = vld [vmem:[%s1429_s28 + $0x28] sm:$0xff]  ;;  %v347_v19 = vld [vmem:[%s1429_s28 + $0x30] sm:$0xff] }
  0x16   : > { %1252 = vmatprep.subr.msk.bf16.mxu0 %vm1421_vm1, %v1250_v6  ;;  %v348_v20 = vld [vmem:[%s1429_s28 + $0x38] sm:$0xff]  ;;  %v1300_v21 = vld [vmem:[%s300_s7] sm:$0xff]   ;;  %v1301_v22 = vld [vmem:[%s300_s7 + $0x8] sm:$0xff]  }
  0x17   : > { %1212 = vmatprep.subr.bf16.mxu1 %v1300_v21  ;;  %v1302_v23 = vld [vmem:[%s300_s7 + $0x10] sm:$0xff]   ;;  %v1303_v24 = vld [vmem:[%s300_s7 + $0x18] sm:$0xff]  }
  0x18   : > { %1213 = vmatpush3.bf16.msra.mxu1 %v1300_v21 }
  0x19   : > { %1214 = vmatprep.subr.bf16.mxu1 %v1301_v22 }
  0x1c   : > { %1215 = vmatpush3.bf16.msra.mxu1 %v1301_v22 }
  0x1d   : > { %1255 = vmatpush3.bf16.xpose.msk.msra.mxu0 %vm1421_vm1, %v1250_v6  ;;  %1216 = vmatprep.subr.bf16.mxu1 %v1302_v23 }
  0x1e   : > { %1258 = vmatprep.subr.msk.bf16.mxu0 %vm1421_vm1, %v1256_v10 }
  0x20   : > { %1217 = vmatpush3.bf16.msra.mxu1 %v1302_v23 }
  0x21   : > { %1218 = vmatprep.subr.bf16.mxu1 %v1303_v24 }
  0x24   : > { %1219 = vmatpush3.bf16.msra.mxu1 %v1303_v24 }
  0x25   : > { %1261 = vmatpush3.bf16.xpose.msk.msra.mxu0 %vm1421_vm1, %v1256_v10 }
  0x26   : > { %1264 = vmatprep.subr.msk.bf16.mxu0 %vm1421_vm1, %v1262_v13 }
  0x2d   : > { %1267 = vmatpush3.bf16.xpose.msk.msra.mxu0 %vm1421_vm1, %v1262_v13 }
  0x34   : > { %1201 = vmatmul.mubr.msk.f32.vlgmr.msra.gmra.mrb[0].mxu0 %vm349_vm0, %v342_v14 }
  0x35   : > { %1203 = vmatprep.mubr.msk.f32.mxu0 %vm349_vm0, %v343_v15 }
  0x38   : > { %1204 = vmatmul.mubr.msk.f32.gmra.mrb[2].mxu0 %vm349_vm0, %v344_v16 }
  0x39   : > { %1206 = vmatprep.mubr.msk.f32.mxu0 %vm349_vm0, %v345_v17 }
  0x3c   : > { %1207 = vmatmul.mubr.msk.f32.gmra.mrb[4].mxu0 %vm349_vm0, %v346_v18 }
  0x3d   : > { %1209 = vmatprep.mubr.msk.f32.mxu0 %vm349_vm0, %v347_v19 }
  0x40   : > { %1210 = vmatmul.mubr.msk.f32.gmra.mrb[6].mxu0 %vm349_vm0, %v348_v20 }
 0x107   : > { %v1202_v26 = vpop.f32.mrb[0].mxu0 }
 0x108   : > { %v504_v27 = vmax.f32 %v1202_v26, 0.0  ;;  %v464_v28 = vpop.f32.mrb[1].mxu0 }
 0x109   : > { %v503_v29 = vmax.f32 %v464_v28, 0.0 }
 0x10a   : > { %v512_v30 = vmul.f32 -0.5, %v504_v27 }
 0x10b   : > { %v511_v31 = vmul.f32 -0.5, %v503_v29  ;;  %v1205_v32 = vpop.f32.mrb[2].mxu0 }
 0x10c   : > { %v521_v33 = vmul.f32 1.442695, %v512_v30  ;;  %v506_v34 = vmax.f32 %v1205_v32, 0.0  ;;  %v474_v35 = vpop.f32.mrb[3].mxu0 }
 0x10d   : > { %v519_v36 = vmul.f32 1.442695, %v511_v31  ;;  %v505_v37 = vmax.f32 %v474_v35, 0.0 }
 0x10e   : > { %1304 = vpow2.f32 %v521_v33  ;;  %v514_v38 = vmul.f32 -0.5, %v506_v34 }
 0x10f   : > { %1306 = vpow2.f32 %v519_v36  ;;  %v513_v39 = vmul.f32 -0.5, %v505_v37  ;;  %v1208_v40 = vpop.f32.mrb[4].mxu0 }
 0x110   : > { %v525_v41 = vmul.f32 1.442695, %v514_v38  ;;  %v508_v42 = vmax.f32 %v1208_v40, 0.0  ;;  %v484_v43 = vpop.f32.mrb[5].mxu0 }
 0x111   : > { %v523_v44 = vmul.f32 1.442695, %v513_v39  ;;  %v507_v45 = vmax.f32 %v484_v43, 0.0 }
 0x112   : > { %1308 = vpow2.f32 %v525_v41  ;;  %v516_v46 = vmul.f32 -0.5, %v508_v42 }
 0x113   : > { %1310 = vpow2.f32 %v523_v44  ;;  %v515_v47 = vmul.f32 -0.5, %v507_v45  ;;  %v1211_v48 = vpop.f32.mrb[6].mxu0 }
 0x114   : > { %v529_v49 = vmul.f32 1.442695, %v516_v46  ;;  %v510_v50 = vmax.f32 %v1211_v48, 0.0  ;;  %v494_v51 = vpop.f32.mrb[7].mxu0 }
 0x115   : > { %v527_v52 = vmul.f32 1.442695, %v515_v47  ;;  %v509_v53 = vmax.f32 %v494_v51, 0.0 }
 0x116   : > { %1312 = vpow2.f32 %v529_v49  ;;  %v518_v54 = vmul.f32 -0.5, %v510_v50 }
 0x117   : > { %1314 = vpow2.f32 %v527_v52  ;;  %v517_v55 = vmul.f32 -0.5, %v509_v53 }
 0x118   : > { %v1305_v56 = vpop.eup %1304  ;;  %v533_v57 = vmul.f32 1.442695, %v518_v54 }
 0x119   : > { %v1307_v58 = vpop.eup %1306  ;;  %v531_v59 = vmul.f32 1.442695, %v517_v55  ;;  %v536_v60 = vmul.f32 %v1305_v56, %v1305_v56  ;;  %v592_v8 = vmul.f32 0.34, %v1305_v56 }
 0x11a   : > { %1316 = vpow2.f32 %v533_v57  ;;  %v535_v61 = vmul.f32 %v1307_v58, %v1307_v58  ;;  %v591_v13 = vmul.f32 0.34, %v1307_v58 }
 0x11b   : > { %1318 = vpow2.f32 %v531_v59  ;;  %v544_v62 = vmul.f32 %v536_v60, %v536_v60 }
 0x11c   : > { %v1309_v63 = vpop.eup %1308  ;;  %v543_v0 = vmul.f32 %v535_v61, %v535_v61 }
 0x11d   : > { %v1311_v1 = vpop.eup %1310  ;;  %v538_v2 = vmul.f32 %v1309_v63, %v1309_v63  ;;  %v552_v3 = vmul.f32 %v544_v62, %v544_v62  ;;  %v576_v12 = vmul.f32 0.33, %v544_v62  ;;  %v594_v18 = vmul.f32 0.34, %v1309_v63 }
 0x11e   : > { %v537_v4 = vmul.f32 %v1311_v1, %v1311_v1  ;;  %v551_v5 = vmul.f32 %v543_v0, %v543_v0  ;;  %v575_v21 = vmul.f32 0.33, %v543_v0  ;;  %v593_v43 = vmul.f32 0.34, %v1311_v1 }
 0x11f   : > { %v546_v6 = vmul.f32 %v538_v2, %v538_v2  ;;  %v560_v7 = vmul.f32 %v552_v3, %v552_v3 }
 0x120   : > { %v1313_v9 = vpop.eup %1312  ;;  %v545_v10 = vmul.f32 %v537_v4, %v537_v4  ;;  %v559_v11 = vmul.f32 %v551_v5, %v551_v5 }
 0x121   : > { %v1315_v14 = vpop.eup %1314  ;;  %v540_v15 = vmul.f32 %v1313_v9, %v1313_v9  ;;  %v568_v16 = vmul.f32 0.33, %v560_v7  ;;  %v554_v17 = vmul.f32 %v546_v6, %v546_v6  ;;  %v578_v26 = vmul.f32 0.33, %v546_v6 }
 0x122   : > { %v539_v19 = vmul.f32 %v1315_v14, %v1315_v14  ;;  %v567_v20 = vmul.f32 0.33, %v559_v11  ;;  %v553_v22 = vmul.f32 %v545_v10, %v545_v10  ;;  %v577_v31 = vmul.f32 0.33, %v545_v10 }
 0x123   : > { %v548_v23 = vmul.f32 %v540_v15, %v540_v15  ;;  %v584_v24 = vadd.f32 %v576_v12, %v568_v16  ;;  %v562_v25 = vmul.f32 %v554_v17, %v554_v17  ;;  %v596_v58 = vmul.f32 0.34, %v1313_v9  ;;  %v813_v15 = vld [vmem:[%s1538_s3] sm:$0xff]  ;;  %v814_v16 = vld [vmem:[%s1538_s3 + $0x8] sm:$0xff] }
 0x124   : > { %v1317_v27 = vpop.eup %1316  ;;  %v547_v28 = vmul.f32 %v539_v19, %v539_v19  ;;  %v583_v29 = vadd.f32 %v575_v21, %v567_v20  ;;  %v561_v30 = vmul.f32 %v553_v22, %v553_v22  ;;  %v595_v62 = vmul.f32 0.34, %v1315_v14  ;;  %v607_v19 = vld [vmem:[#allocation2] sm:$0xff]  ;;  %v610_v21 = vld [vmem:[#allocation2 + $0x18] sm:$0xff] }
 0x125   : > { %v1319_v32 = vpop.eup %1318  ;;  %v542_v33 = vmul.f32 %v1317_v27, %v1317_v27  ;;  %v600_v34 = vadd.f32 %v592_v8, %v584_v24  ;;  %v570_v35 = vmul.f32 0.33, %v562_v25  ;;  %v556_v36 = vmul.f32 %v548_v23, %v548_v23  ;;  %v608_v24 = vld [vmem:[#allocation2 + $0x8] sm:$0xff] }
 0x126   : > { %v541_v37 = vmul.f32 %v1319_v32, %v1319_v32  ;;  %v599_v38 = vadd.f32 %v591_v13, %v583_v29  ;;  %v569_v39 = vmul.f32 0.33, %v561_v30  ;;  %v555_v40 = vmul.f32 %v547_v28, %v547_v28  ;;  %v613_v30 = vld [vmem:[#allocation2 + $0x30] sm:$0xff] }
 0x127   : > { %v550_v41 = vmul.f32 %v542_v33, %v542_v33  ;;  %v586_v42 = vadd.f32 %v578_v26, %v570_v35  ;;  %v564_v44 = vmul.f32 %v556_v36, %v556_v36  ;;  %v580_v51 = vmul.f32 0.33, %v548_v23  ;;  %v614_v33 = vld [vmem:[#allocation2 + $0x38] sm:$0xff]  ;;  %v612_v36 = vld [vmem:[#allocation2 + $0x28] sm:$0xff] }
 0x128   : > { %v549_v45 = vmul.f32 %v541_v37, %v541_v37  ;;  %v615_v46 = vpack.c.bf16 %v600_v34, %v599_v38  ;;  %v585_v47 = vadd.f32 %v577_v31, %v569_v39  ;;  %v563_v48 = vmul.f32 %v555_v40, %v555_v40  ;;  %v611_v31 = vld [vmem:[#allocation2 + $0x20] sm:$0xff] }
 0x129   : > { %v602_v49 = vadd.f32 %v594_v18, %v586_v42  ;;  %v572_v50 = vmul.f32 0.33, %v564_v44  ;;  %v558_v52 = vmul.f32 %v550_v41, %v550_v41  ;;  %v579_v55 = vmul.f32 0.33, %v547_v28  ;;  %v609_v18 = vld [vmem:[#allocation2 + $0x10] sm:$0xff] }
 0x12a   : > { %1220 = vmatprep.mubr.msk.bf16.mxu1 %vm643_vm3, %v615_v46  ;;  %v601_v53 = vadd.f32 %v593_v43, %v585_v47  ;;  %v571_v54 = vmul.f32 0.33, %v563_v48  ;;  %v557_v56 = vmul.f32 %v549_v45, %v549_v45  ;;  %v582_v2 = vmul.f32 0.33, %v550_v41 }
 0x12b   : > { %v588_v57 = vadd.f32 %v580_v51, %v572_v50  ;;  %v566_v59 = vmul.f32 %v558_v52, %v558_v52  ;;  %v581_v5 = vmul.f32 0.33, %v549_v45  ;;  %v598_v7 = vmul.f32 0.34, %v1317_v27 }
 0x12c   : > { %v616_v60 = vpack.c.bf16 %v602_v49, %v601_v53  ;;  %v587_v61 = vadd.f32 %v579_v55, %v571_v54  ;;  %v565_v63 = vmul.f32 %v557_v56, %v557_v56  ;;  %v597_v11 = vmul.f32 0.34, %v1319_v32 }
 0x12d   : > { %v604_v0 = vadd.f32 %v596_v58, %v588_v57  ;;  %v574_v1 = vmul.f32 0.33, %v566_v59  ;;  %v1361_v14 = vmov 16   ;;  %v1268_v17 = vpack.c.bf16 %v814_v16, %v813_v15 }
 0x12e   : > { %1221 = vmatmul.mubr.msk.bf16.vlgmr.msra.gmra.mrb[0].mxu1 %vm643_vm3, %v616_v60  ;;  %v603_v3 = vadd.f32 %v595_v62, %v587_v61  ;;  %v573_v4 = vmul.f32 0.33, %v565_v63  ;;  %1299 = vset.pattern.permute.xlu1 %v1361_v14 }
 0x12f   : > { %v590_v6 = vadd.f32 %v582_v2, %v574_v1  ;;  %1298 = vset.pattern.permute.xlu0 %v1361_v14  ;;  %1269 = vmatprep.subr.bf16.mxu1 %v1268_v17 }
 0x130   : > { %v617_v8 = vpack.c.bf16 %v604_v0, %v603_v3  ;;  %v589_v10 = vadd.f32 %v581_v5, %v573_v4  ;;  %1271 = vmatpush3.bf16.msra.mxu1 %v1268_v17 }
 0x131   : > { %v606_v12 = vadd.f32 %v598_v7, %v590_v6 }
 0x132   : > { %1224 = vmatprep.mubr.msk.bf16.mxu1 %vm643_vm3, %v617_v8  ;;  %v605_v9 = vadd.f32 %v597_v11, %v589_v10 }
 0x134   : > { %v618_v13 = vpack.c.bf16 %v606_v12, %v605_v9 }
 0x136   : > { %1225 = vmatmul.mubr.msk.bf16.gmra.mrb[4].mxu1 %vm643_vm3, %v618_v13 }
 0x201   : > { %v1222_v20 = vpop.f32.mrb[0].mxu1 }
 0x202   : > { %v723_v22 = vadd.f32 %v1222_v20, %v609_v18  ;;  %v690_v23 = vpop.f32.mrb[1].mxu1  ;;  %v1135_v18 = vld [vmem:[%s1539_s4] ss:$0 sm:$0xff] }
 0x203   : > { %v721_v25 = vadd.f32 %v690_v23, %v607_v19  ;;  %v1223_v26 = vpop.f32.mrb[2].mxu1 }
 0x204   : > { %732 = vst.msk [vmem:[#allocation2 + $0x10] sm:$0xff] %vm316_vm2, %v723_v22  ;;  %v724_v27 = vadd.f32 %v1223_v26, %v610_v21  ;;  %v693_v28 = vpop.f32.mrb[3].mxu1 }
 0x205   : > { %730 = vst.msk [vmem:[#allocation2] sm:$0xff] %vm316_vm2, %v721_v25  ;;  %v722_v29 = vadd.f32 %v693_v28, %v608_v24 }
 0x206   : > { %733 = vst.msk [vmem:[#allocation2 + $0x18] sm:$0xff] %vm316_vm2, %v724_v27 }
 0x207   : > { %731 = vst.msk [vmem:[#allocation2 + $0x8] sm:$0xff] %vm316_vm2, %v722_v29 }
 0x209   : > { %v1226_v32 = vpop.f32.mrb[4].mxu1 }
 0x20a   : > { %v727_v34 = vadd.f32 %v1226_v32, %v613_v30  ;;  %v706_v35 = vpop.f32.mrb[5].mxu1 }
 0x20b   : > { %v725_v37 = vadd.f32 %v706_v35, %v611_v31  ;;  %v1227_v38 = vpop.f32.mrb[6].mxu1  ;;  %v743_v39 = vld [vmem:[#allocation2 + $0x10] sm:$0xff] }
 0x20c   : > { %736 = vst.msk [vmem:[#allocation2 + $0x30] sm:$0xff] %vm316_vm2, %v727_v34  ;;  %v728_v40 = vadd.f32 %v1227_v38, %v614_v33  ;;  %v709_v41 = vpop.f32.mrb[7].mxu1  ;;  %v751_v42 = vadd.f32 1e-09, %v743_v39  ;;  %v741_v43 = vld [vmem:[#allocation2] sm:$0xff] }
 0x20d   : > { %734 = vst.msk [vmem:[#allocation2 + $0x20] sm:$0xff] %vm316_vm2, %v725_v37  ;;  %v726_v44 = vadd.f32 %v709_v41, %v612_v36  ;;  %v749_v45 = vadd.f32 1e-09, %v741_v43  ;;  %v744_v46 = vld [vmem:[#allocation2 + $0x18] sm:$0xff] }
 0x20e   : > { %737 = vst.msk [vmem:[#allocation2 + $0x38] sm:$0xff] %vm316_vm2, %v728_v40  ;;  %1320 = vrcp.f32 %v751_v42  ;;  %v752_v47 = vadd.f32 1e-09, %v744_v46  ;;  %v742_v48 = vld [vmem:[#allocation2 + $0x8] sm:$0xff] }
 0x20f   : > { %735 = vst.msk [vmem:[#allocation2 + $0x28] sm:$0xff] %vm316_vm2, %v726_v44  ;;  %1322 = vrcp.f32 %v749_v45  ;;  %v750_v49 = vadd.f32 1e-09, %v742_v48 }
 0x210   : > { %1324 = vrcp.f32 %v752_v47 }
 0x211   : > { %1326 = vrcp.f32 %v750_v49 }
 0x213   : > { %v747_v51 = vld [vmem:[#allocation2 + $0x30] sm:$0xff] }
 0x214   : > { %v745_v50 = vld [vmem:[#allocation2 + $0x20] sm:$0xff]  ;;  %v755_v56 = vadd.f32 1e-09, %v747_v51 }
 0x215   : > { %v753_v52 = vadd.f32 1e-09, %v745_v50  ;;  %v748_v54 = vld [vmem:[#allocation2 + $0x38] sm:$0xff] }
 0x216   : > { %v746_v53 = vld [vmem:[#allocation2 + $0x28] sm:$0xff]  ;;  %v756_v59 = vadd.f32 1e-09, %v748_v54 }
 0x217   : > { %1328 = vrcp.f32 %v753_v52  ;;  %v754_v55 = vadd.f32 1e-09, %v746_v53 }
 0x218   : > { %v1321_v57 = vpop.eup %1320 }
 0x219   : > { %v1323_v58 = vpop.eup %1322  ;;  %777 = vperm.xlu1 %1299, %v1321_v57   ;;  %1330 = vrcp.f32 %v754_v55 }
 0x21a   : > { %767 = vperm.xlu0 %1298, %v1323_v58   ;;  %1332 = vrcp.f32 %v755_v56  ;;  %v1325_v60 = vpop.eup %1324 }
 0x21b   : > { %v1327_v61 = vpop.eup %1326  ;;  %1334 = vrcp.f32 %v756_v59 }
 0x21d   : > { %782 = vperm.xlu1 %1299, %v1325_v60  }
 0x21e   : > { %772 = vperm.xlu0 %1298, %v1327_v61  }
 0x221   : > { %v1329_v62 = vpop.eup %1328 }
 0x222   : > { %787 = vperm.xlu0 %1298, %v1329_v62  }
 0x223   : > { %v1331_v63 = vpop.eup %1330 }
 0x224   : > { %792 = vperm.xlu1 %1299, %v1331_v63   ;;  %v1333_v0 = vpop.eup %1332 }
 0x225   : > { %v1335_v1 = vpop.eup %1334 }
 0x226   : > { %797 = vperm.xlu0 %1298, %v1333_v0  }
 0x228   : > { %802 = vperm.xlu1 %1299, %v1335_v1  }
 0x298   : > { %v778_v2 = vpop.permute.xlu1 %777 }
 0x299   : > { %v768_v3 = vpop.permute.xlu0 %767  ;;  %v807_v7 = vmul.f32 %v778_v2, %v743_v39 }
 0x29a   : > { %v805_v4 = vmul.f32 %v768_v3, %v741_v43 }
 0x29c   : > { %1232 = vmatprep.mubr.msk.f32.mxu1 %vm822_vm4, %v805_v4  ;;  %v783_v8 = vpop.permute.xlu1 %782 }
 0x29d   : > { %v773_v5 = vpop.permute.xlu0 %772  ;;  %v808_v11 = vmul.f32 %v783_v8, %v744_v46 }
 0x29e   : > { %v806_v6 = vmul.f32 %v773_v5, %v742_v48 }
 0x2a0   : > { %1233 = vmatmul.mubr.msk.f32.vlgmr.msra.gmra.mrb[8].mxu1 %vm822_vm4, %v806_v6 }
 0x2a1   : > { %1235 = vmatprep.mubr.msk.f32.mxu1 %vm822_vm4, %v807_v7  ;;  %v788_v10 = vpop.permute.xlu0 %787 }
 0x2a2   : > { %v809_v12 = vmul.f32 %v788_v10, %v745_v50 }
 0x2a3   : > { %v793_v9 = vpop.permute.xlu1 %792 }
 0x2a4   : > { %1236 = vmatmul.mubr.msk.f32.gmra.mrb[10].mxu1 %vm822_vm4, %v808_v11  ;;  %v810_v14 = vmul.f32 %v793_v9, %v746_v53 }
 0x2a5   : > { %1238 = vmatprep.mubr.msk.f32.mxu1 %vm822_vm4, %v809_v12  ;;  %v798_v13 = vpop.permute.xlu0 %797 }
 0x2a6   : > { %v811_v15 = vmul.f32 %v798_v13, %v747_v51 }
 0x2a7   : > { %v803_v16 = vpop.permute.xlu1 %802 }
 0x2a8   : > { %1239 = vmatmul.mubr.msk.f32.gmra.mrb[12].mxu1 %vm822_vm4, %v810_v14  ;;  %v812_v17 = vmul.f32 %v803_v16, %v748_v54 }
 0x2a9   : > { %1241 = vmatprep.mubr.msk.f32.mxu1 %vm822_vm4, %v811_v15 }
 0x2ac   : > { %1242 = vmatmul.mubr.msk.f32.gmra.mrb[14].mxu1 %vm822_vm4, %v812_v17 }
 0x373   : > { %v1234_v19 = vpop.f32.mrb[8].mxu1 }
 0x374   : > { %v919_v20 = vadd.f32 %v1234_v19, %v1135_v18  ;;  %v913_v21 = vpop.f32.mrb[9].mxu1 }
 0x375   : > { %v914_v22 = vadd.f32 %v1135_v18, %v913_v21 }
 0x376   : > { %vm953_vm5 = vcmp.ge.f32.partialorder %v919_v20, 0.0  ;;  %v961_v23 = vmul.f32 0.1, %v919_v20 }
 0x377   : > { %vm952_vm6 = vcmp.ge.f32.partialorder %v914_v22, 0.0  ;;  %v960_v24 = vmul.f32 0.1, %v914_v22  ;;  %v1237_v25 = vpop.f32.mrb[10].mxu1 }
 0x378   : > { %v969_v26 = vsel %vm953_vm5, %v919_v20, %v961_v23  ;;  %v929_v27 = vadd.f32 %v1237_v25, %v1135_v18  ;;  %v923_v28 = vpop.f32.mrb[11].mxu1 }
 0x379   : > { %977 = vst.msk [vmem:[%s1508_s16 + $0x8] sm:$0xff] %vm822_vm4, %v969_v26  ;;  %v968_v29 = vsel %vm952_vm6, %v914_v22, %v960_v24  ;;  %v924_v30 = vadd.f32 %v1135_v18, %v923_v28 }
 0x37a   : > { %976 = vst.msk [vmem:[%s1508_s16] sm:$0xff] %vm822_vm4, %v968_v29  ;;  %vm955_vm7 = vcmp.ge.f32.partialorder %v929_v27, 0.0  ;;  %v963_v31 = vmul.f32 0.1, %v929_v27 }
 0x37b   : > { %vm954_vm8 = vcmp.ge.f32.partialorder %v924_v30, 0.0  ;;  %v962_v32 = vmul.f32 0.1, %v924_v30  ;;  %v1240_v33 = vpop.f32.mrb[12].mxu1 }
 0x37c   : > { %v971_v34 = vsel %vm955_vm7, %v929_v27, %v963_v31  ;;  %v939_v35 = vadd.f32 %v1240_v33, %v1135_v18  ;;  %v933_v36 = vpop.f32.mrb[13].mxu1 }
 0x37d   : > { %979 = vst.msk [vmem:[%s1508_s16 + $0x18] sm:$0xff] %vm822_vm4, %v971_v34  ;;  %v970_v37 = vsel %vm954_vm8, %v924_v30, %v962_v32  ;;  %v934_v38 = vadd.f32 %v1135_v18, %v933_v36 }
 0x37e   : > { %978 = vst.msk [vmem:[%s1508_s16 + $0x10] sm:$0xff] %vm822_vm4, %v970_v37  ;;  %vm957_vm9 = vcmp.ge.f32.partialorder %v939_v35, 0.0  ;;  %v965_v39 = vmul.f32 0.1, %v939_v35 }
 0x37f   : > { %vm956_vm10 = vcmp.ge.f32.partialorder %v934_v38, 0.0  ;;  %v964_v40 = vmul.f32 0.1, %v934_v38  ;;  %v1243_v41 = vpop.f32.mrb[14].mxu1 }
 0x380   : > { %v973_v42 = vsel %vm957_vm9, %v939_v35, %v965_v39  ;;  %v949_v43 = vadd.f32 %v1243_v41, %v1135_v18  ;;  %v943_v44 = vpop.f32.mrb[15].mxu1 }
 0x381   : > { %981 = vst.msk [vmem:[%s1508_s16 + $0x28] sm:$0xff] %vm822_vm4, %v973_v42  ;;  %v972_v45 = vsel %vm956_vm10, %v934_v38, %v964_v40  ;;  %v944_v46 = vadd.f32 %v1135_v18, %v943_v44 }
 0x382   : > { %980 = vst.msk [vmem:[%s1508_s16 + $0x20] sm:$0xff] %vm822_vm4, %v972_v45  ;;  %vm959_vm11 = vcmp.ge.f32.partialorder %v949_v43, 0.0  ;;  %v967_v47 = vmul.f32 0.1, %v949_v43 }
 0x383   : > { %vm958_vm12 = vcmp.ge.f32.partialorder %v944_v46, 0.0  ;;  %v966_v48 = vmul.f32 0.1, %v944_v46 }
 0x384   : > { %v975_v49 = vsel %vm959_vm11, %v949_v43, %v967_v47 }
 0x385   : > { %983 = vst.msk [vmem:[%s1508_s16 + $0x38] sm:$0xff] %vm822_vm4, %v975_v49  ;;  %v974_v50 = vsel %vm958_vm12, %v944_v46, %v966_v48 }
 0x386   : > { %982 = vst.msk [vmem:[%s1508_s16 + $0x30] sm:$0xff] %vm822_vm4, %v974_v50 }
 0x387 PF: > { %s15_s20 = sadd.s32 1, %s1358_s20   ;;  %s1543_s18 = smov %s1354_s19 }
 0x388   : > { %p12_p5 = scmp.ge.s32.totalorder %s15_s20, 4   ;;  %s1544_s19 = smov %s1546_s21 }
 0x38a   :  { %14 = sbr.rel (!%p12_p5) target bundleno = 2 (0x2), region = 84 }

// kernel: geo_unet_feature_net.23
= control target key start
LH: loop header
LB: loop body
LE: loop exit
PB: predicated region body
PF: predicated region fallthrough
CT: control target
= control target key end

     0   :  { %s1348_s24 = smov 0   ;;  %s1350_s25 = smov 0   ;;  %s1458_s0 = inlined_call_operand.vmem [shape: f32[2,32,8], index: 0, kind: input, shape index: {}]   ;;  %s1459_s1 = inlined_call_operand.vmem [shape: f32[2,64,8], index: 1, kind: input, shape index: {}]   ;;  %s1460_s2 = inlined_call_operand.vmem [shape: bf16[2,64,17], index: 2, kind: input, shape index: {}]   ;;  %s1461_s3 = inlined_call_operand.vmem [shape: f32[16,32], index: 3, kind: input, shape index: {}]   ;;  %s1462_s4 = inlined_call_operand.vmem [shape: f32[1,32], index: 4, kind: input, shape index: {}]   ;;  %s1463_s5 = inlined_call_operand.vmem [shape: f32[32,32], index: 5, kind: input, shape index: {}]   ;;  %s1464_s6 = inlined_call_operand.vmem [shape: f32[1,32], index: 6, kind: input, shape index: {}]   ;;  %s1465_s7 = inlined_call_operand.vmem [shape: f32[2,32,32], index: 7, kind: output, shape index: {}]  }
   0x1   :  { %s1352_s26 = smov 0  }
   0x2 LB: > { %s36_s27 = sadd.s32 1, %s1300_s25  ;;  %p1065_p0 = scmp.ge.s32.totalorder %s1304_s26, 1  ;;  %s1304_s26 = sphi %s1352_s26, %s17_s26   ;;  %s1300_s25 = sphi %s1350_s25, %s1469_s25   ;;  %s1296_s24 = sphi %s1348_s24, %s1468_s24  }
   0x3   : > { %p38_p1 = scmp.ge.s32.totalorder %s36_s27, 2  ;;  %p285_p2 = scmp.lt.s32.totalorder %s1304_s26, 3 }
   0x5   : > { %s1471_s27 = smov (%p38_p1, %s36_s27), 0  ;;  %p286_p3 = pnand %p1065_p0, %p285_p2 }
   0x6   : > { %p336_p4 = scmp.lt.s32.totalorder (!%p286_p3), %s1296_s24, 1  ;;  %vm395_vm0 = vcmask (!%p286_p3), 64512   ;;  %vm370_vm2 = vcmask (!%p286_p3), 138240   ;;  %v1306_v21 = vmov (!%p286_p3), 0.0   ;;  %vm599_vm3 = vcmask (!%p286_p3), 523264  }
   0x7   : > { %289 = sbr.rel (%p286_p3) target bundleno = 1114 (0x45a), region = 48  ;;  %vm1373_vm1 = vmpackc.low (!%p286_p3), %vm395_vm0, %vm395_vm0  ;;  %373 = vst.msk [vmem:[#allocation2 + $0x10] sm:$0xff] (!%p286_p3), %vm370_vm2, %v1306_v21  ;;  %vm712_vm4 = vcmask (!%p286_p3), 130048   ;;  %vm833_vm7 = vcmask (!%p286_p3), 261120  }
   0x8   : > { %371 = vst.msk [vmem:[#allocation2] sm:$0xff] (!%p286_p3), %vm370_vm2, %v1306_v21  ;;  %372 = vst.msk [vmem:[#allocation2 + $0x8] sm:$0xff] (!%p286_p3), %vm370_vm2, %v1306_v21 }
   0x9   : > { %374 = vst.msk [vmem:[#allocation2 + $0x18] sm:$0xff] (!%p286_p3), %vm370_vm2, %v1306_v21 }
   0xe   : > { %s1473_s24 = smov (!%p336_p4, %s1296_s24), 1 }
   0xf   : > { %s1105_s28 = sshll.u32 %s1473_s24, 6  ;;  %s1366_s29 = sshll.u32 %s1473_s24, 5  ;;  %v569_v21 = vld [vmem:[#allocation2] sm:$0xff] }
  0x10   : > { %s349_s9 = scalar_lea.vmem %s1459_s1, %s1105_s28  ;;  %s343_s12 = scalar_lea.vmem %s1458_s0, %s1366_s29 }
  0x11   : > { %v375_v1 = vld [vmem:[%s349_s9] sm:$0xff]  ;;  %v376_v2 = vld [vmem:[%s349_s9 + $0x8] sm:$0xff]  ;;  %v377_v3 = vld [vmem:[%s349_s9 + $0x10] sm:$0xff]  ;;  %s354_s15 = scalar_lea.vmem %s1460_s2, %s1366_s29 }
  0x12   : > { %v1198_v4 = vpack.c.bf16 %v376_v2, %v375_v1  ;;  %v378_v5 = vld [vmem:[%s349_s9 + $0x18] sm:$0xff]  ;;  %v391_v7 = vld [vmem:[%s343_s12] sm:$0xff]  ;;  %v380_v9 = vld [vmem:[%s349_s9 + $0x28] sm:$0xff] }
  0x13   : > { %v1204_v6 = vpack.c.bf16 %v378_v5, %v377_v3  ;;  %1156 = vmatprep.mubr.msk.f32.mxu0 %vm395_vm0, %v391_v7  ;;  %v379_v8 = vld [vmem:[%s349_s9 + $0x20] sm:$0xff]  ;;  %v381_v11 = vld [vmem:[%s349_s9 + $0x30] sm:$0xff]  ;;  %v382_v12 = vld [vmem:[%s349_s9 + $0x38] sm:$0xff] }
  0x14   : > { %1200 = vmatprep.subr.msk.bf16.mxu0 %vm1373_vm1, %v1198_v4  ;;  %v1210_v10 = vpack.c.bf16 %v380_v9, %v379_v8  ;;  %v1216_v13 = vpack.c.bf16 %v382_v12, %v381_v11  ;;  %v392_v14 = vld [vmem:[%s343_s12 + $0x8] sm:$0xff]  ;;  %v393_v15 = vld [vmem:[%s343_s12 + $0x10] sm:$0xff]  ;;  %v394_v16 = vld [vmem:[%s343_s12 + $0x18] sm:$0xff] }
  0x15   : > { %1203 = vmatpush3.bf16.xpose.msk.msra.mxu0 %vm1373_vm1, %v1198_v4  ;;  %v1262_v17 = vld [vmem:[%s354_s15] sm:$0xff]   ;;  %v1263_v18 = vld [vmem:[%s354_s15 + $0x8] sm:$0xff]   ;;  %v1264_v19 = vld [vmem:[%s354_s15 + $0x10] sm:$0xff]  }
  0x16   : > { %1206 = vmatprep.subr.msk.bf16.mxu0 %vm1373_vm1, %v1204_v6  ;;  %1162 = vmatprep.subr.bf16.mxu1 %v1262_v17  ;;  %v1265_v20 = vld [vmem:[%s354_s15 + $0x18] sm:$0xff]   ;;  %s363_s15 = scalar_lea.vmem %s1465_s7, %s1366_s29 }
  0x17   : > { %1163 = vmatpush3.bf16.msra.mxu1 %v1262_v17  ;;  %v703_v17 = vld [vmem:[%s1461_s3] sm:$0xff] }
  0x18   : > { %1164 = vmatprep.subr.bf16.mxu1 %v1263_v18 }
  0x1b   : > { %1165 = vmatpush3.bf16.msra.mxu1 %v1263_v18  ;;  %v704_v18 = vld [vmem:[%s1461_s3 + $0x8] sm:$0xff] }
  0x1c   : > { %1166 = vmatprep.subr.bf16.mxu1 %v1264_v19 }
  0x1d   : > { %1209 = vmatpush3.bf16.xpose.msk.msra.mxu0 %vm1373_vm1, %v1204_v6 }
  0x1e   : > { %1212 = vmatprep.subr.msk.bf16.mxu0 %vm1373_vm1, %v1210_v10 }
  0x1f   : > { %1167 = vmatpush3.bf16.msra.mxu1 %v1264_v19  ;;  %v1222_v19 = vpack.c.bf16 %v704_v18, %v703_v17 }
  0x20   : > { %1168 = vmatprep.subr.bf16.mxu1 %v1265_v20 }
  0x23   : > { %1169 = vmatpush3.bf16.msra.mxu1 %v1265_v20  ;;  %v571_v20 = vld [vmem:[#allocation2 + $0x10] sm:$0xff] }
  0x24   : > { %1223 = vmatprep.subr.bf16.mxu1 %v1222_v19 }
  0x25   : > { %1215 = vmatpush3.bf16.xpose.msk.msra.mxu0 %vm1373_vm1, %v1210_v10 }
  0x26   : > { %1218 = vmatprep.subr.msk.bf16.mxu0 %vm1373_vm1, %v1216_v13 }
  0x2d   : > { %1221 = vmatpush3.bf16.xpose.msk.msra.mxu0 %vm1373_vm1, %v1216_v13 }
  0x34   : > { %1157 = vmatmul.mubr.msk.f32.vlgmr.msra.gmra.mrb[0].mxu0 %vm395_vm0, %v392_v14 }
  0x35   : > { %1159 = vmatprep.mubr.msk.f32.mxu0 %vm395_vm0, %v393_v15 }
  0x38   : > { %1160 = vmatmul.mubr.msk.f32.gmra.mrb[2].mxu0 %vm395_vm0, %v394_v16  ;;  %v1307_v16 = vmov 16  }
  0x39   : > { %1261 = vset.pattern.permute.xlu1 %v1307_v16  ;;  %1260 = vset.pattern.permute.xlu0 %v1307_v16 }
 0x107   : > { %v1158_v22 = vpop.f32.mrb[0].mxu0 }
 0x108   : > { %v518_v23 = vmax.f32 %v1158_v22, 0.0  ;;  %v498_v24 = vpop.f32.mrb[1].mxu0 }
 0x109   : > { %v517_v25 = vmax.f32 %v498_v24, 0.0 }
 0x10a   : > { %v522_v26 = vmul.f32 -0.03125, %v518_v23  ;;  %v572_v23 = vld [vmem:[#allocation2 + $0x18] sm:$0xff] }
 0x10b   : > { %v521_v27 = vmul.f32 -0.03125, %v517_v25  ;;  %v1161_v28 = vpop.f32.mrb[2].mxu0 }
 0x10c   : > { %v527_v29 = vmul.f32 1.442695, %v522_v26  ;;  %v520_v30 = vmax.f32 %v1161_v28, 0.0  ;;  %v508_v31 = vpop.f32.mrb[3].mxu0  ;;  %v570_v26 = vld [vmem:[#allocation2 + $0x8] sm:$0xff] }
 0x10d   : > { %v525_v32 = vmul.f32 1.442695, %v521_v27  ;;  %v519_v33 = vmax.f32 %v508_v31, 0.0 }
 0x10e   : > { %1266 = vpow2.f32 %v527_v29  ;;  %v524_v34 = vmul.f32 -0.03125, %v520_v30 }
 0x10f   : > { %1268 = vpow2.f32 %v525_v32  ;;  %v523_v35 = vmul.f32 -0.03125, %v519_v33 }
 0x110   : > { %v531_v36 = vmul.f32 1.442695, %v524_v34 }
 0x111   : > { %v529_v37 = vmul.f32 1.442695, %v523_v35 }
 0x112   : > { %1270 = vpow2.f32 %v531_v36 }
 0x113   : > { %1272 = vpow2.f32 %v529_v37 }
 0x118   : > { %v1267_v38 = vpop.eup %1266 }
 0x119   : > { %v1269_v39 = vpop.eup %1268  ;;  %v534_v40 = vmul.f32 %v1267_v38, %v1267_v38  ;;  %v562_v61 = vmul.f32 0.34, %v1267_v38 }
 0x11a   : > { %v533_v41 = vmul.f32 %v1269_v39, %v1269_v39  ;;  %v561_v0 = vmul.f32 0.34, %v1269_v39 }
 0x11b   : > { %v538_v42 = vmul.f32 %v534_v40, %v534_v40 }
 0x11c   : > { %v1271_v43 = vpop.eup %1270  ;;  %v537_v44 = vmul.f32 %v533_v41, %v533_v41 }
 0x11d   : > { %v1273_v45 = vpop.eup %1272  ;;  %v536_v46 = vmul.f32 %v1271_v43, %v1271_v43  ;;  %v542_v47 = vmul.f32 %v538_v42, %v538_v42  ;;  %v554_v55 = vmul.f32 0.33, %v538_v42  ;;  %v564_v9 = vmul.f32 0.34, %v1271_v43 }
 0x11e   : > { %v535_v48 = vmul.f32 %v1273_v45, %v1273_v45  ;;  %v541_v49 = vmul.f32 %v537_v44, %v537_v44  ;;  %v553_v58 = vmul.f32 0.33, %v537_v44  ;;  %v563_v12 = vmul.f32 0.34, %v1273_v45  ;;  %v822_v44 = vld [vmem:[%s1463_s5] sm:$0xff]  ;;  %v823_v45 = vld [vmem:[%s1463_s5 + $0x8] sm:$0xff] }
 0x11f   : > { %v540_v50 = vmul.f32 %v536_v46, %v536_v46  ;;  %v546_v51 = vmul.f32 %v542_v47, %v542_v47  ;;  %v1226_v46 = vpack.c.bf16 %v823_v45, %v822_v44 }
 0x120   : > { %v539_v52 = vmul.f32 %v535_v48, %v535_v48  ;;  %v545_v53 = vmul.f32 %v541_v49, %v541_v49 }
 0x121   : > { %v550_v54 = vmul.f32 0.33, %v546_v51  ;;  %v544_v56 = vmul.f32 %v540_v50, %v540_v50  ;;  %v556_v4 = vmul.f32 0.33, %v540_v50 }
 0x122   : > { %v549_v57 = vmul.f32 0.33, %v545_v53  ;;  %v543_v59 = vmul.f32 %v539_v52, %v539_v52  ;;  %v555_v7 = vmul.f32 0.33, %v539_v52 }
 0x123   : > { %v558_v60 = vadd.f32 %v554_v55, %v550_v54  ;;  %v548_v62 = vmul.f32 %v544_v56, %v544_v56  ;;  %v824_v55 = vld [vmem:[%s1463_s5 + $0x10] sm:$0xff]  ;;  %v825_v56 = vld [vmem:[%s1463_s5 + $0x18] sm:$0xff] }
 0x124   : > { %v557_v63 = vadd.f32 %v553_v58, %v549_v57  ;;  %v547_v1 = vmul.f32 %v543_v59, %v543_v59  ;;  %v1230_v57 = vpack.c.bf16 %v825_v56, %v824_v55  ;;  %v1092_v58 = vld [vmem:[%s1462_s4] ss:$0 sm:$0xff] }
 0x125   : > { %v566_v2 = vadd.f32 %v562_v61, %v558_v60  ;;  %v552_v3 = vmul.f32 0.33, %v548_v62 }
 0x126   : > { %v565_v5 = vadd.f32 %v561_v0, %v557_v63  ;;  %v551_v6 = vmul.f32 0.33, %v547_v1 }
 0x127   : > { %v560_v8 = vadd.f32 %v556_v4, %v552_v3 }
 0x128   : > { %v573_v10 = vpack.c.bf16 %v566_v2, %v565_v5  ;;  %v559_v11 = vadd.f32 %v555_v7, %v551_v6 }
 0x129   : > { %v568_v13 = vadd.f32 %v564_v9, %v560_v8 }
 0x12a   : > { %1170 = vmatprep.mubr.msk.bf16.mxu1 %vm599_vm3, %v573_v10  ;;  %v567_v14 = vadd.f32 %v563_v12, %v559_v11  ;;  %v1097_v11 = vld [vmem:[%s1464_s6] ss:$0 sm:$0xff] }
 0x12c   : > { %v574_v15 = vpack.c.bf16 %v568_v13, %v567_v14 }
 0x12e   : > { %1171 = vmatmul.mubr.msk.bf16.vlgmr.msra.gmra.mrb[0].mxu1 %vm599_vm3, %v574_v15 }
 0x12f   : > { %1225 = vmatpush3.bf16.msra.mxu1 %v1222_v19 }
 0x130   : > { %1227 = vmatprep.subr.bf16.mxu1 %v1226_v46 }
 0x201   : > { %v1172_v22 = vpop.f32.mrb[0].mxu1 }
 0x202   : > { %v657_v24 = vadd.f32 %v1172_v22, %v571_v20  ;;  %v640_v25 = vpop.f32.mrb[1].mxu1 }
 0x203   : > { %v655_v27 = vadd.f32 %v640_v25, %v569_v21  ;;  %v1173_v28 = vpop.f32.mrb[2].mxu1 }
 0x204   : > { %662 = vst.msk [vmem:[#allocation2 + $0x10] sm:$0xff] %vm370_vm2, %v657_v24  ;;  %v658_v29 = vadd.f32 %v1173_v28, %v572_v23  ;;  %v643_v30 = vpop.f32.mrb[3].mxu1 }
 0x205   : > { %660 = vst.msk [vmem:[#allocation2] sm:$0xff] %vm370_vm2, %v655_v27  ;;  %v656_v31 = vadd.f32 %v643_v30, %v570_v26 }
 0x206   : > { %663 = vst.msk [vmem:[#allocation2 + $0x18] sm:$0xff] %vm370_vm2, %v658_v29 }
 0x207   : > { %661 = vst.msk [vmem:[#allocation2 + $0x8] sm:$0xff] %vm370_vm2, %v656_v31 }
 0x20b   : > { %v669_v32 = vld [vmem:[#allocation2 + $0x10] sm:$0xff] }
 0x20c   : > { %v673_v33 = vadd.f32 1e-09, %v669_v32  ;;  %v667_v34 = vld [vmem:[#allocation2] sm:$0xff] }
 0x20d   : > { %v671_v35 = vadd.f32 1e-09, %v667_v34  ;;  %v670_v36 = vld [vmem:[#allocation2 + $0x18] sm:$0xff] }
 0x20e   : > { %1274 = vrcp.f32 %v673_v33  ;;  %v674_v37 = vadd.f32 1e-09, %v670_v36  ;;  %v668_v38 = vld [vmem:[#allocation2 + $0x8] sm:$0xff] }
 0x20f   : > { %1276 = vrcp.f32 %v671_v35  ;;  %v672_v39 = vadd.f32 1e-09, %v668_v38 }
 0x210   : > { %1278 = vrcp.f32 %v674_v37 }
 0x211   : > { %1280 = vrcp.f32 %v672_v39 }
 0x218   : > { %v1275_v40 = vpop.eup %1274 }
 0x219   : > { %v1277_v41 = vpop.eup %1276  ;;  %691 = vperm.xlu1 %1261, %v1275_v40  }
 0x21a   : > { %681 = vperm.xlu0 %1260, %v1277_v41   ;;  %v1279_v42 = vpop.eup %1278 }
 0x21b   : > { %v1281_v43 = vpop.eup %1280 }
 0x21d   : > { %696 = vperm.xlu1 %1261, %v1279_v42  }
 0x21e   : > { %686 = vperm.xlu0 %1260, %v1281_v43  }
 0x298   : > { %v692_v47 = vpop.permute.xlu1 %691 }
 0x299   : > { %v682_v48 = vpop.permute.xlu0 %681  ;;  %v701_v52 = vmul.f32 %v692_v47, %v669_v32 }
 0x29a   : > { %v699_v49 = vmul.f32 %v682_v48, %v667_v34 }
 0x29c   : > { %1178 = vmatprep.mubr.msk.f32.mxu1 %vm712_vm4, %v699_v49  ;;  %v697_v53 = vpop.permute.xlu1 %696 }
 0x29d   : > { %v687_v50 = vpop.permute.xlu0 %686  ;;  %v702_v54 = vmul.f32 %v697_v53, %v670_v36 }
 0x29e   : > { %v700_v51 = vmul.f32 %v687_v50, %v668_v38 }
 0x2a0   : > { %1179 = vmatmul.mubr.msk.f32.vlgmr.msra.gmra.mrb[4].mxu1 %vm712_vm4, %v700_v51 }
 0x2a1   : > { %1181 = vmatprep.mubr.msk.f32.mxu1 %vm712_vm4, %v701_v52  ;;  %1229 = vmatpush3.bf16.msra.mxu1 %v1226_v46 }
 0x2a2   : > { %1231 = vmatprep.subr.bf16.mxu1 %v1230_v57 }
 0x2a4   : > { %1182 = vmatmul.mubr.msk.f32.gmra.mrb[6].mxu1 %vm712_vm4, %v702_v54 }
 0x2a5   : > { %1233 = vmatpush3.bf16.msra.mxu1 %v1230_v57 }
 0x373   : > { %v1180_v59 = vpop.f32.mrb[4].mxu1 }
 0x374   : > { %v797_v60 = vadd.f32 %v1180_v59, %v1092_v58  ;;  %v791_v61 = vpop.f32.mrb[5].mxu1 }
 0x375   : > { %v792_v62 = vadd.f32 %v1092_v58, %v791_v61 }
 0x376   : > { %v815_v63 = vmul.f32 0.1, %v797_v60  ;;  %vm811_vm5 = vcmp.ge.f32.partialorder %v797_v60, 0.0 }
 0x377   : > { %vm810_vm6 = vcmp.ge.f32.partialorder %v792_v62, 0.0  ;;  %v814_v0 = vmul.f32 0.1, %v792_v62  ;;  %v1183_v1 = vpop.f32.mrb[6].mxu1 }
 0x378   : > { %v807_v2 = vadd.f32 %v1183_v1, %v1092_v58  ;;  %v801_v3 = vpop.f32.mrb[7].mxu1  ;;  %v819_v6 = vsel %vm811_vm5, %v797_v60, %v815_v63 }
 0x379   : > { %v802_v4 = vadd.f32 %v1092_v58, %v801_v3  ;;  %v818_v5 = vsel %vm810_vm6, %v792_v62, %v814_v0 }
 0x37a   : > { %v817_v7 = vmul.f32 0.1, %v807_v2  ;;  %1192 = vmatprep.mubr.msk.f32.mxu1 %vm833_vm7, %v818_v5  ;;  %vm813_vm8 = vcmp.ge.f32.partialorder %v807_v2, 0.0 }
 0x37b   : > { %vm812_vm9 = vcmp.ge.f32.partialorder %v802_v4, 0.0  ;;  %v816_v8 = vmul.f32 0.1, %v802_v4  ;;  %1193 = vmatmul.mubr.msk.f32.vlgmr.msra.gmra.mrb[8].mxu1 %vm833_vm7, %v819_v6 }
 0x37c   : > { %v821_v10 = vsel %vm813_vm8, %v807_v2, %v817_v7 }
 0x37d   : > { %v820_v9 = vsel %vm812_vm9, %v802_v4, %v816_v8 }
 0x37e   : > { %1195 = vmatprep.mubr.msk.f32.mxu1 %vm833_vm7, %v820_v9 }
 0x37f   : > { %1196 = vmatmul.mubr.msk.f32.gmra.mrb[10].mxu1 %vm833_vm7, %v821_v10 }
 0x44e   : > { %v1194_v12 = vpop.f32.mrb[8].mxu1 }
 0x44f   : > { %v918_v13 = vadd.f32 %v1194_v12, %v1097_v11  ;;  %v912_v14 = vpop.f32.mrb[9].mxu1 }
 0x450   : > { %v913_v15 = vadd.f32 %v1097_v11, %v912_v14 }
 0x451   : > { %vm932_vm10 = vcmp.ge.f32.partialorder %v918_v13, 0.0  ;;  %v936_v16 = vmul.f32 0.1, %v918_v13 }
 0x452   : > { %vm931_vm11 = vcmp.ge.f32.partialorder %v913_v15, 0.0  ;;  %v935_v17 = vmul.f32 0.1, %v913_v15  ;;  %v1197_v18 = vpop.f32.mrb[10].mxu1 }
 0x453   : > { %v940_v19 = vsel %vm932_vm10, %v918_v13, %v936_v16  ;;  %v928_v20 = vadd.f32 %v1197_v18, %v1097_v11  ;;  %v922_v21 = vpop.f32.mrb[11].mxu1 }
 0x454   : > { %944 = vst.msk [vmem:[%s363_s15 + $0x8] sm:$0xff] %vm833_vm7, %v940_v19  ;;  %v939_v22 = vsel %vm931_vm11, %v913_v15, %v935_v17  ;;  %v923_v23 = vadd.f32 %v1097_v11, %v922_v21 }
 0x455   : > { %943 = vst.msk [vmem:[%s363_s15] sm:$0xff] %vm833_vm7, %v939_v22  ;;  %vm934_vm12 = vcmp.ge.f32.partialorder %v928_v20, 0.0  ;;  %v938_v24 = vmul.f32 0.1, %v928_v20 }
 0x456   : > { %vm933_vm13 = vcmp.ge.f32.partialorder %v923_v23, 0.0  ;;  %v937_v25 = vmul.f32 0.1, %v923_v23 }
 0x457   : > { %v942_v26 = vsel %vm934_vm12, %v928_v20, %v938_v24 }
 0x458   : > { %946 = vst.msk [vmem:[%s363_s15 + $0x18] sm:$0xff] %vm833_vm7, %v942_v26  ;;  %v941_v27 = vsel %vm933_vm13, %v923_v23, %v937_v25 }
 0x459   : > { %945 = vst.msk [vmem:[%s363_s15 + $0x10] sm:$0xff] %vm833_vm7, %v941_v27 }
 0x45a PF: > { %s17_s26 = sadd.s32 1, %s1304_s26   ;;  %s1468_s24 = smov %s1300_s25 }
 0x45b   : > { %p14_p5 = scmp.ge.s32.totalorder %s17_s26, 4   ;;  %s1469_s25 = smov %s1471_s27 }
 0x45d   :  { %16 = sbr.rel (!%p14_p5) target bundleno = 2 (0x2), region = 92 }

// kernel: geo_unet_feature_net.24
= control target key start
LH: loop header
LB: loop body
LE: loop exit
PB: predicated region body
PF: predicated region fallthrough
CT: control target
= control target key end

     0   :  { %s1069_s18 = smov 0   ;;  %s1071_s19 = smov 0   ;;  %s1152_s0 = inlined_call_operand.vmem [shape: f32[2,32,8], index: 0, kind: input, shape index: {}]   ;;  %s1153_s1 = inlined_call_operand.vmem [shape: f32[2,32,8], index: 1, kind: input, shape index: {}]   ;;  %s1154_s2 = inlined_call_operand.vmem [shape: bf16[2,32,33], index: 2, kind: input, shape index: {}]   ;;  %s1155_s3 = inlined_call_operand.vmem [shape: f32[32,32], index: 3, kind: input, shape index: {}]   ;;  %s1156_s4 = inlined_call_operand.vmem [shape: f32[1,32], index: 4, kind: input, shape index: {}]   ;;  %s1157_s5 = inlined_call_operand.vmem [shape: f32[2,32,32], index: 5, kind: output, shape index: {}]  }
   0x1   :  { %s1073_s20 = smov 0  }
   0x2 LB: > { %s34_s21 = sadd.s32 1, %s1031_s19  ;;  %p859_p0 = scmp.ge.s32.totalorder %s1035_s20, 1  ;;  %s1035_s20 = sphi %s1073_s20, %s15_s20   ;;  %s1031_s19 = sphi %s1071_s19, %s1159_s19   ;;  %s1027_s18 = sphi %s1069_s18, %s1158_s18  }
   0x3   : > { %p36_p1 = scmp.ge.s32.totalorder %s34_s21, 2  ;;  %p235_p2 = scmp.lt.s32.totalorder %s1035_s20, 3 }
   0x5   : > { %s1161_s21 = smov (%p36_p1, %s34_s21), 0  ;;  %p236_p3 = pnand %p859_p0, %p235_p2 }
   0x6   : > { %p282_p4 = scmp.lt.s32.totalorder (!%p236_p3), %s1027_s18, 1  ;;  %vm333_vm0 = vcmask (!%p236_p3), 64512   ;;  %vm316_vm2 = vcmask (!%p236_p3), 269312   ;;  %v1037_v12 = vmov (!%p236_p3), 0.0   ;;  %vm513_vm3 = vcmask (!%p236_p3), 261120  }
   0x7   : > { %239 = sbr.rel (%p236_p3) target bundleno = 879 (0x36f), region = 40  ;;  %vm948_vm1 = vmpackc.low (!%p236_p3), %vm333_vm0, %vm333_vm0  ;;  %319 = vst.msk [vmem:[#allocation2 + $0x10] sm:$0xff] (!%p236_p3), %vm316_vm2, %v1037_v12 }
   0x8   : > { %317 = vst.msk [vmem:[#allocation2] sm:$0xff] (!%p236_p3), %vm316_vm2, %v1037_v12  ;;  %318 = vst.msk [vmem:[#allocation2 + $0x8] sm:$0xff] (!%p236_p3), %vm316_vm2, %v1037_v12 }
   0x9   : > { %320 = vst.msk [vmem:[#allocation2 + $0x18] sm:$0xff] (!%p236_p3), %vm316_vm2, %v1037_v12 }
   0xe   : > { %s1163_s18 = smov (!%p282_p4, %s1027_s18), 1 }
   0xf   : > { %s1087_s22 = sshll.u32 %s1163_s18, 5  ;;  %s889_s29 = sshll.u32 %s1163_s18, 4  ;;  %v495_v12 = vld [vmem:[#allocation2] sm:$0xff] }
  0x10   : > { %s295_s25 = scalar_lea.vmem %s1153_s1, %s1087_s22  ;;  %s289_s28 = scalar_lea.vmem %s1152_s0, %s1087_s22 }
  0x11   : > { %v321_v0 = vld [vmem:[%s295_s25] sm:$0xff]  ;;  %v322_v1 = vld [vmem:[%s295_s25 + $0x8] sm:$0xff]  ;;  %v323_v2 = vld [vmem:[%s295_s25 + $0x10] sm:$0xff]  ;;  %s300_s7 = scalar_lea.vmem %s1154_s2, %s889_s29  ;;  %s309_s24 = scalar_lea.vmem %s1157_s5, %s1087_s22 }
  0x12   : > { %v947_v3 = vpack.c.bf16 %v322_v1, %v321_v0  ;;  %v324_v4 = vld [vmem:[%s295_s25 + $0x18] sm:$0xff]  ;;  %v329_v5 = vld [vmem:[%s289_s28] sm:$0xff]  ;;  %v330_v7 = vld [vmem:[%s289_s28 + $0x8] sm:$0xff] }
  0x13   : > { %v953_v6 = vpack.c.bf16 %v324_v4, %v323_v2  ;;  %919 = vmatprep.mubr.msk.f32.mxu0 %vm333_vm0, %v329_v5  ;;  %v331_v8 = vld [vmem:[%s289_s28 + $0x10] sm:$0xff]  ;;  %v332_v9 = vld [vmem:[%s289_s28 + $0x18] sm:$0xff]  ;;  %v995_v10 = vld [vmem:[%s300_s7] sm:$0xff]  }
  0x14   : > { %949 = vmatprep.subr.msk.bf16.mxu0 %vm948_vm1, %v947_v3  ;;  %v996_v11 = vld [vmem:[%s300_s7 + $0x8] sm:$0xff]   ;;  %925 = vmatprep.subr.bf16.mxu1 %v995_v10 }
  0x15   : > { %952 = vmatpush3.bf16.xpose.msk.msra.mxu0 %vm948_vm1, %v947_v3  ;;  %926 = vmatpush3.bf16.msra.mxu1 %v995_v10 }
  0x16   : > { %955 = vmatprep.subr.msk.bf16.mxu0 %vm948_vm1, %v953_v6  ;;  %927 = vmatprep.subr.bf16.mxu1 %v996_v11 }
  0x19   : > { %928 = vmatpush3.bf16.msra.mxu1 %v996_v11  ;;  %v497_v11 = vld [vmem:[#allocation2 + $0x10] sm:$0xff] }
  0x1d   : > { %958 = vmatpush3.bf16.xpose.msk.msra.mxu0 %vm948_vm1, %v953_v6 }
  0x24   : > { %920 = vmatmul.mubr.msk.f32.vlgmr.msra.gmra.mrb[0].mxu0 %vm333_vm0, %v330_v7  ;;  %v1038_v7 = vmov 32  }
  0x25   : > { %922 = vmatprep.mubr.msk.f32.mxu0 %vm333_vm0, %v331_v8  ;;  %994 = vset.pattern.permute.xlu1 %v1038_v7  ;;  %v617_v8 = vld [vmem:[%s1155_s3] sm:$0xff] }
  0x26   : > { %993 = vset.pattern.permute.xlu0 %v1038_v7 }
  0x28   : > { %923 = vmatmul.mubr.msk.f32.gmra.mrb[2].mxu0 %vm333_vm0, %v332_v9  ;;  %v618_v9 = vld [vmem:[%s1155_s3 + $0x8] sm:$0xff] }
  0x29   : > { %v959_v10 = vpack.c.bf16 %v618_v9, %v617_v8 }
  0x2b   : > { %960 = vmatprep.subr.bf16.mxu1 %v959_v10 }
  0xf7   : > { %v921_v13 = vpop.f32.mrb[0].mxu0 }
  0xf8   : > { %v444_v14 = vmax.f32 %v921_v13, 0.0  ;;  %v424_v15 = vpop.f32.mrb[1].mxu0 }
  0xf9   : > { %v443_v16 = vmax.f32 %v424_v15, 0.0 }
  0xfa   : > { %v448_v17 = vmul.f32 -0.03125, %v444_v14  ;;  %v498_v14 = vld [vmem:[#allocation2 + $0x18] sm:$0xff] }
  0xfb   : > { %v447_v18 = vmul.f32 -0.03125, %v443_v16  ;;  %v924_v19 = vpop.f32.mrb[2].mxu0 }
  0xfc   : > { %v453_v20 = vmul.f32 1.442695, %v448_v17  ;;  %v446_v21 = vmax.f32 %v924_v19, 0.0  ;;  %v434_v22 = vpop.f32.mrb[3].mxu0  ;;  %v496_v17 = vld [vmem:[#allocation2 + $0x8] sm:$0xff] }
  0xfd   : > { %v451_v23 = vmul.f32 1.442695, %v447_v18  ;;  %v445_v24 = vmax.f32 %v434_v22, 0.0 }
  0xfe   : > { %997 = vpow2.f32 %v453_v20  ;;  %v450_v25 = vmul.f32 -0.03125, %v446_v21 }
  0xff   : > { %999 = vpow2.f32 %v451_v23  ;;  %v449_v26 = vmul.f32 -0.03125, %v445_v24 }
 0x100   : > { %v457_v27 = vmul.f32 1.442695, %v450_v25 }
 0x101   : > { %v455_v28 = vmul.f32 1.442695, %v449_v26 }
 0x102   : > { %1001 = vpow2.f32 %v457_v27 }
 0x103   : > { %1003 = vpow2.f32 %v455_v28 }
 0x108   : > { %v998_v29 = vpop.eup %997 }
 0x109   : > { %v1000_v30 = vpop.eup %999  ;;  %v460_v31 = vmul.f32 %v998_v29, %v998_v29  ;;  %v488_v52 = vmul.f32 0.34, %v998_v29 }
 0x10a   : > { %v459_v32 = vmul.f32 %v1000_v30, %v1000_v30  ;;  %v487_v55 = vmul.f32 0.34, %v1000_v30 }
 0x10b   : > { %v464_v33 = vmul.f32 %v460_v31, %v460_v31 }
 0x10c   : > { %v1002_v34 = vpop.eup %1001  ;;  %v463_v35 = vmul.f32 %v459_v32, %v459_v32 }
 0x10d   : > { %v1004_v36 = vpop.eup %1003  ;;  %v462_v37 = vmul.f32 %v1002_v34, %v1002_v34  ;;  %v468_v38 = vmul.f32 %v464_v33, %v464_v33  ;;  %v480_v46 = vmul.f32 0.33, %v464_v33  ;;  %v490_v0 = vmul.f32 0.34, %v1002_v34  ;;  %v619_v33 = vld [vmem:[%s1155_s3 + $0x10] sm:$0xff]  ;;  %v620_v34 = vld [vmem:[%s1155_s3 + $0x18] sm:$0xff] }
 0x10e   : > { %v461_v39 = vmul.f32 %v1004_v36, %v1004_v36  ;;  %v467_v40 = vmul.f32 %v463_v35, %v463_v35  ;;  %v479_v49 = vmul.f32 0.33, %v463_v35  ;;  %v489_v3 = vmul.f32 0.34, %v1004_v36 }
 0x10f   : > { %v466_v41 = vmul.f32 %v462_v37, %v462_v37  ;;  %v472_v42 = vmul.f32 %v468_v38, %v468_v38  ;;  %v963_v35 = vpack.c.bf16 %v620_v34, %v619_v33 }
 0x110   : > { %v465_v43 = vmul.f32 %v461_v39, %v461_v39  ;;  %v471_v44 = vmul.f32 %v467_v40, %v467_v40 }
 0x111   : > { %v476_v45 = vmul.f32 0.33, %v472_v42  ;;  %v470_v47 = vmul.f32 %v466_v41, %v466_v41  ;;  %v482_v59 = vmul.f32 0.33, %v466_v41 }
 0x112   : > { %v475_v48 = vmul.f32 0.33, %v471_v44  ;;  %v469_v50 = vmul.f32 %v465_v43, %v465_v43  ;;  %v481_v62 = vmul.f32 0.33, %v465_v43 }
 0x113   : > { %v484_v51 = vadd.f32 %v480_v46, %v476_v45  ;;  %v474_v53 = vmul.f32 %v470_v47, %v470_v47  ;;  %v880_v46 = vld [vmem:[%s1156_s4] ss:$0 sm:$0xff] }
 0x114   : > { %v483_v54 = vadd.f32 %v479_v49, %v475_v48  ;;  %v473_v56 = vmul.f32 %v469_v50, %v469_v50 }
 0x115   : > { %v492_v57 = vadd.f32 %v488_v52, %v484_v51  ;;  %v478_v58 = vmul.f32 0.33, %v474_v53 }
 0x116   : > { %v491_v60 = vadd.f32 %v487_v55, %v483_v54  ;;  %v477_v61 = vmul.f32 0.33, %v473_v56 }
 0x117   : > { %v486_v63 = vadd.f32 %v482_v59, %v478_v58 }
 0x118   : > { %v499_v1 = vpack.c.bf16 %v492_v57, %v491_v60  ;;  %v485_v2 = vadd.f32 %v481_v62, %v477_v61 }
 0x119   : > { %v494_v4 = vadd.f32 %v490_v0, %v486_v63 }
 0x11a   : > { %929 = vmatprep.mubr.msk.bf16.mxu1 %vm513_vm3, %v499_v1  ;;  %v493_v5 = vadd.f32 %v489_v3, %v485_v2 }
 0x11c   : > { %v500_v6 = vpack.c.bf16 %v494_v4, %v493_v5 }
 0x11e   : > { %930 = vmatmul.mubr.msk.bf16.vlgmr.msra.gmra.mrb[0].mxu1 %vm513_vm3, %v500_v6 }
 0x11f   : > { %962 = vmatpush3.bf16.msra.mxu1 %v959_v10 }
 0x120   : > { %964 = vmatprep.subr.bf16.mxu1 %v963_v35 }
 0x123   : > { %966 = vmatpush3.bf16.msra.mxu1 %v963_v35 }
 0x1f1   : > { %v931_v13 = vpop.f32.mrb[0].mxu1 }
 0x1f2   : > { %v571_v15 = vadd.f32 %v931_v13, %v497_v11  ;;  %v554_v16 = vpop.f32.mrb[1].mxu1 }
 0x1f3   : > { %v569_v18 = vadd.f32 %v554_v16, %v495_v12  ;;  %v932_v19 = vpop.f32.mrb[2].mxu1 }
 0x1f4   : > { %576 = vst.msk [vmem:[#allocation2 + $0x10] sm:$0xff] %vm316_vm2, %v571_v15  ;;  %v572_v20 = vadd.f32 %v932_v19, %v498_v14  ;;  %v557_v21 = vpop.f32.mrb[3].mxu1 }
 0x1f5   : > { %574 = vst.msk [vmem:[#allocation2] sm:$0xff] %vm316_vm2, %v569_v18  ;;  %v570_v22 = vadd.f32 %v557_v21, %v496_v17 }
 0x1f6   : > { %577 = vst.msk [vmem:[#allocation2 + $0x18] sm:$0xff] %vm316_vm2, %v572_v20 }
 0x1f7   : > { %575 = vst.msk [vmem:[#allocation2 + $0x8] sm:$0xff] %vm316_vm2, %v570_v22 }
 0x1fb   : > { %v583_v23 = vld [vmem:[#allocation2 + $0x10] sm:$0xff] }
 0x1fc   : > { %v587_v24 = vadd.f32 1e-09, %v583_v23  ;;  %v581_v25 = vld [vmem:[#allocation2] sm:$0xff] }
 0x1fd   : > { %v585_v26 = vadd.f32 1e-09, %v581_v25  ;;  %v584_v27 = vld [vmem:[#allocation2 + $0x18] sm:$0xff] }
 0x1fe   : > { %1005 = vrcp.f32 %v587_v24  ;;  %v588_v28 = vadd.f32 1e-09, %v584_v27  ;;  %v582_v29 = vld [vmem:[#allocation2 + $0x8] sm:$0xff] }
 0x1ff   : > { %1007 = vrcp.f32 %v585_v26  ;;  %v586_v30 = vadd.f32 1e-09, %v582_v29 }
 0x200   : > { %1009 = vrcp.f32 %v588_v28 }
 0x201   : > { %1011 = vrcp.f32 %v586_v30 }
 0x208   : > { %v1006_v31 = vpop.eup %1005 }
 0x209   : > { %v1008_v32 = vpop.eup %1007  ;;  %605 = vperm.xlu1 %994, %v1006_v31  }
 0x20a   : > { %595 = vperm.xlu0 %993, %v1008_v32   ;;  %v1010_v36 = vpop.eup %1009 }
 0x20b   : > { %v1012_v37 = vpop.eup %1011 }
 0x20d   : > { %610 = vperm.xlu1 %994, %v1010_v36  }
 0x20e   : > { %600 = vperm.xlu0 %993, %v1012_v37  }
 0x288   : > { %v606_v38 = vpop.permute.xlu1 %605 }
 0x289   : > { %v596_v39 = vpop.permute.xlu0 %595  ;;  %v615_v43 = vmul.f32 %v606_v38, %v583_v23 }
 0x28a   : > { %v613_v40 = vmul.f32 %v596_v39, %v581_v25 }
 0x28c   : > { %941 = vmatprep.mubr.msk.f32.mxu1 %vm513_vm3, %v613_v40  ;;  %v611_v44 = vpop.permute.xlu1 %610 }
 0x28d   : > { %v601_v41 = vpop.permute.xlu0 %600  ;;  %v616_v45 = vmul.f32 %v611_v44, %v584_v27 }
 0x28e   : > { %v614_v42 = vmul.f32 %v601_v41, %v582_v29 }
 0x290   : > { %942 = vmatmul.mubr.msk.f32.vlgmr.msra.gmra.mrb[4].mxu1 %vm513_vm3, %v614_v42 }
 0x291   : > { %944 = vmatprep.mubr.msk.f32.mxu1 %vm513_vm3, %v615_v43 }
 0x294   : > { %945 = vmatmul.mubr.msk.f32.gmra.mrb[6].mxu1 %vm513_vm3, %v616_v45 }
 0x363   : > { %v943_v47 = vpop.f32.mrb[4].mxu1 }
 0x364   : > { %v712_v48 = vadd.f32 %v943_v47, %v880_v46  ;;  %v706_v49 = vpop.f32.mrb[5].mxu1 }
 0x365   : > { %v707_v50 = vadd.f32 %v880_v46, %v706_v49 }
 0x366   : > { %vm726_vm4 = vcmp.ge.f32.partialorder %v712_v48, 0.0  ;;  %v730_v51 = vmul.f32 0.1, %v712_v48 }
 0x367   : > { %vm725_vm5 = vcmp.ge.f32.partialorder %v707_v50, 0.0  ;;  %v729_v52 = vmul.f32 0.1, %v707_v50  ;;  %v946_v53 = vpop.f32.mrb[6].mxu1 }
 0x368   : > { %v734_v54 = vsel %vm726_vm4, %v712_v48, %v730_v51  ;;  %v722_v55 = vadd.f32 %v946_v53, %v880_v46  ;;  %v716_v56 = vpop.f32.mrb[7].mxu1 }
 0x369   : > { %738 = vst.msk [vmem:[%s309_s24 + $0x8] sm:$0xff] %vm513_vm3, %v734_v54  ;;  %v733_v57 = vsel %vm725_vm5, %v707_v50, %v729_v52  ;;  %v717_v58 = vadd.f32 %v880_v46, %v716_v56 }
 0x36a   : > { %737 = vst.msk [vmem:[%s309_s24] sm:$0xff] %vm513_vm3, %v733_v57  ;;  %vm728_vm6 = vcmp.ge.f32.partialorder %v722_v55, 0.0  ;;  %v732_v59 = vmul.f32 0.1, %v722_v55 }
 0x36b   : > { %vm727_vm7 = vcmp.ge.f32.partialorder %v717_v58, 0.0  ;;  %v731_v60 = vmul.f32 0.1, %v717_v58 }
 0x36c   : > { %v736_v61 = vsel %vm728_vm6, %v722_v55, %v732_v59 }
 0x36d   : > { %740 = vst.msk [vmem:[%s309_s24 + $0x18] sm:$0xff] %vm513_vm3, %v736_v61  ;;  %v735_v62 = vsel %vm727_vm7, %v717_v58, %v731_v60 }
 0x36e   : > { %739 = vst.msk [vmem:[%s309_s24 + $0x10] sm:$0xff] %vm513_vm3, %v735_v62 }
 0x36f PF: > { %s15_s20 = sadd.s32 1, %s1035_s20   ;;  %s1158_s18 = smov %s1031_s19 }
 0x370   : > { %p12_p5 = scmp.ge.s32.totalorder %s15_s20, 4   ;;  %s1159_s19 = smov %s1161_s21 }
 0x372   :  { %14 = sbr.rel (!%p12_p5) target bundleno = 2 (0x2), region = 84 }

// kernel: geo_unet_feature_net.26
= control target key start
LH: loop header
LB: loop body
LE: loop exit
PB: predicated region body
PF: predicated region fallthrough
CT: control target
= control target key end

     0   :  { %s1048_s24 = smov 0   ;;  %s1050_s25 = smov 0   ;;  %s1157_s0 = inlined_call_operand.vmem [shape: f32[2,8,8], index: 0, kind: input, shape index: {}]   ;;  %s1158_s1 = inlined_call_operand.vmem [shape: f32[2,32,8], index: 1, kind: input, shape index: {}]   ;;  %s1159_s2 = inlined_call_operand.vmem [shape: bf16[2,32,33], index: 2, kind: input, shape index: {}]   ;;  %s1160_s3 = inlined_call_operand.vmem [shape: f32[32,64], index: 3, kind: input, shape index: {}]   ;;  %s1161_s4 = inlined_call_operand.vmem [shape: f32[1,64], index: 4, kind: input, shape index: {}]   ;;  %s1162_s5 = inlined_call_operand.vmem [shape: f32[64,64], index: 5, kind: input, shape index: {}]   ;;  %s1163_s6 = inlined_call_operand.vmem [shape: f32[1,64], index: 6, kind: input, shape index: {}]   ;;  %s1164_s7 = inlined_call_operand.vmem [shape: f32[2,8,64], index: 7, kind: output, shape index: {}]  }
   0x1   :  { %s1052_s26 = smov 0  }
   0x2 LB: > { %s36_s27 = sadd.s32 1, %s998_s25  ;;  %p825_p0 = scmp.ge.s32.totalorder %s1002_s26, 1  ;;  %s1002_s26 = sphi %s1052_s26, %s17_s26   ;;  %s998_s25 = sphi %s1050_s25, %s1166_s25   ;;  %s994_s24 = sphi %s1048_s24, %s1165_s24  }
   0x3   : > { %p38_p1 = scmp.ge.s32.totalorder %s36_s27, 2  ;;  %p282_p2 = scmp.lt.s32.totalorder %s1002_s26, 3 }
   0x5   : > { %s1168_s27 = smov (%p38_p1, %s36_s27), 0  ;;  %p283_p3 = pnand %p825_p0, %p282_p2 }
   0x6   : > { %p328_p4 = scmp.lt.s32.totalorder (!%p283_p3), %s994_s24, 1  ;;  %v1004_v0 = vmov (!%p283_p3), 0.0|0.0   ;;  %vm1005_vm0 = vmmov (!%p283_p3), 0   ;;  %v1006_v1 = vmov (!%p283_p3), 0.0   ;;  %vm368_vm1 = vcmask (!%p283_p3), 64512   ;;  %v540_v28 = vld [vmem:[%s1160_s3] sm:$0xff] (!%p283_p3) }
   0x7   : > { %286 = sbr.rel (%p283_p3) target bundleno = 1080 (0x438), region = 48  ;;  %919 = vmatprep.subr.bf16.mxu0 (!%p283_p3), %v1004_v0  ;;  %878 = vmatprep.mubr.msk.f32.mxu0 (!%p283_p3), %vm1005_vm0, %v1006_v1  ;;  %vm921_vm2 = vmpackc.low (!%p283_p3), %vm368_vm1, %vm368_vm1  ;;  %vm357_vm3 = vcmask (!%p283_p3), 269312   ;;  %vm481_vm4 = vcmask (!%p283_p3), 261120   ;;  %v1007_v27 = vmov (!%p283_p3), 32   ;;  %v541_v29 = vld [vmem:[%s1160_s3 + $0x8] sm:$0xff] (!%p283_p3)  ;;  %v542_v30 = vld [vmem:[%s1160_s3 + $0x10] sm:$0xff] (!%p283_p3) }
   0x8   : > { %881 = vmatprep.subr.bf16.mxu1 (!%p283_p3), %v1006_v1  ;;  %885 = vmatprep.mubr.msk.bf16.mxu1 (!%p283_p3), %vm1005_vm0, %v1006_v1  ;;  %358 = vst.msk [vmem:[#allocation2] sm:$0xff] (!%p283_p3), %vm357_vm3, %v1006_v1  ;;  %v928_v31 = vpack.c.bf16 (!%p283_p3), %v541_v29, %v540_v28  ;;  %v543_v32 = vld [vmem:[%s1160_s3 + $0x18] sm:$0xff] (!%p283_p3)  ;;  %v627_v43 = vld [vmem:[%s1162_s5] sm:$0xff] (!%p283_p3)  ;;  %v628_v44 = vld [vmem:[%s1162_s5 + $0x8] sm:$0xff] (!%p283_p3)  ;;  %vm642_vm6 = vcmask (!%p283_p3), 523264  }
   0x9   : > { %973 = vset.pattern.permute.xlu0 (!%p283_p3), %v1007_v27  ;;  %v931_v33 = vpack.c.bf16 (!%p283_p3), %v543_v32, %v542_v30  ;;  %v629_v45 = vld [vmem:[%s1162_s5 + $0x10] sm:$0xff] (!%p283_p3)  ;;  %v934_v46 = vpack.c.bf16 (!%p283_p3), %v628_v44, %v627_v43  ;;  %v630_v47 = vld [vmem:[%s1162_s5 + $0x18] sm:$0xff] (!%p283_p3)  ;;  %v631_v49 = vld [vmem:[%s1162_s5 + $0x20] sm:$0xff] (!%p283_p3) }
   0xa   : > { %v937_v48 = vpack.c.bf16 (!%p283_p3), %v630_v47, %v629_v45  ;;  %v632_v50 = vld [vmem:[%s1162_s5 + $0x28] sm:$0xff] (!%p283_p3)  ;;  %v633_v54 = vld [vmem:[%s1162_s5 + $0x30] sm:$0xff] (!%p283_p3)  ;;  %v634_v55 = vld [vmem:[%s1162_s5 + $0x38] sm:$0xff] (!%p283_p3) }
   0xb   : > { %v940_v51 = vpack.c.bf16 (!%p283_p3), %v632_v50, %v631_v49  ;;  %v943_v56 = vpack.c.bf16 (!%p283_p3), %v634_v55, %v633_v54  ;;  %v840_v57 = vld [vmem:[%s1161_s4] ss:$0 sm:$0xff] (!%p283_p3) }
   0xc   : > { %v842_v63 = vld [vmem:[%s1163_s6] ss:$0 sm:$0xff] (!%p283_p3) }
   0xe   : > { %s1170_s24 = smov (!%p328_p4, %s994_s24), 1 }
   0xf   : > { %s846_s28 = sshll.u32 %s1170_s24, 5  ;;  %s826_s9 = sshll.u32 %s1170_s24, 3  ;;  %v467_v34 = vld [vmem:[#allocation2] sm:$0xff] }
  0x10   : > { %s339_s8 = scalar_lea.vmem %s1158_s1, %s846_s28  ;;  %s334_s12 = scalar_lea.vmem %s1157_s0, %s826_s9 }
  0x11   : > { %v359_v2 = vld [vmem:[%s339_s8] sm:$0xff]  ;;  %v360_v3 = vld [vmem:[%s339_s8 + $0x8] sm:$0xff]  ;;  %v361_v5 = vld [vmem:[%s339_s8 + $0x10] sm:$0xff]  ;;  %s847_s13 = sshll.u32 %s1170_s24, 4  ;;  %s351_s11 = scalar_lea.vmem %s1164_s7, %s826_s9 }
  0x12   : > { %v920_v4 = vpack.c.bf16 %v360_v3, %v359_v2  ;;  %v362_v6 = vld [vmem:[%s339_s8 + $0x18] sm:$0xff]  ;;  %v367_v8 = vld [vmem:[%s334_s12] sm:$0xff]  ;;  %s344_s16 = scalar_lea.vmem %s1159_s2, %s847_s13 }
  0x13   : > { %v924_v7 = vpack.c.bf16 %v362_v6, %v361_v5  ;;  %v974_v9 = vld [vmem:[%s344_s16] sm:$0xff]   ;;  %v975_v10 = vld [vmem:[%s344_s16 + $0x8] sm:$0xff]  }
  0x14   : > { %922 = vmatpush3.bf16.xpose.msk.msra.mxu0 %vm921_vm2, %v920_v4  ;;  %882 = vmatpush3.bf16.msra.mxu1 %v974_v9 }
  0x15   : > { %923 = vmatprep.subr.bf16.mxu0 %v1004_v0  ;;  %883 = vmatprep.subr.bf16.mxu1 %v1006_v1 }
  0x18   : > { %884 = vmatpush3.bf16.msra.mxu1 %v975_v10 }
  0x19   : > { %927 = vmatprep.subr.bf16.mxu1 %v1004_v0 }
  0x1c   : > { %926 = vmatpush3.bf16.xpose.msk.msra.mxu0 %vm921_vm2, %v924_v7 }
  0x1d   : > { %933 = vmatprep.subr.bf16.mxu0 %v1004_v0 }
  0x23   : > { %879 = vmatmul.mubr.msk.f32.vlgmr.msra.gmra.mrb[0].mxu0 %vm368_vm1, %v367_v8 }
  0x24   : > { %916 = vmatprep.mubr.msk.f32.mxu0 %vm1005_vm0, %v1006_v1  ;;  %935 = vmatpush3.bf16.msra.mxu0 %v934_v46 }
  0x25   : > { %936 = vmatprep.subr.bf16.mxu0 %v1004_v0 }
  0x28   : > { %938 = vmatpush3.bf16.msra.mxu0 %v937_v48 }
  0x29   : > { %939 = vmatprep.subr.bf16.mxu0 %v1004_v0 }
  0x2c   : > { %941 = vmatpush3.bf16.msra.mxu0 %v940_v51 }
  0x2d   : > { %942 = vmatprep.subr.bf16.mxu0 %v1004_v0 }
  0x30   : > { %944 = vmatpush3.bf16.msra.mxu0 %v943_v56 }
  0xf6   : > { %v450_v11 = vpop.f32.mrb[0].mxu0 }
  0xf7   : > { %v454_v12 = vmax.f32 %v450_v11, 0.0  ;;  %v880_v13 = vpop.f32.mrb[1].mxu0 }
  0xf9   : > { %v455_v14 = vmul.f32 -0.001953125, %v454_v12 }
  0xfb   : > { %v456_v15 = vmul.f32 1.442695, %v455_v14 }
  0xfd   : > { %976 = vpow2.f32 %v456_v15 }
 0x107   : > { %v977_v16 = vpop.eup %976 }
 0x108   : > { %v458_v17 = vmul.f32 %v977_v16, %v977_v16  ;;  %v465_v24 = vmul.f32 0.34, %v977_v16 }
 0x10a   : > { %v459_v18 = vmul.f32 %v458_v17, %v458_v17 }
 0x10c   : > { %v460_v19 = vmul.f32 %v459_v18, %v459_v18  ;;  %v463_v22 = vmul.f32 0.33, %v459_v18 }
 0x10e   : > { %v461_v20 = vmul.f32 %v460_v19, %v460_v19 }
 0x110   : > { %v462_v21 = vmul.f32 0.33, %v461_v20 }
 0x112   : > { %v464_v23 = vadd.f32 %v463_v22, %v462_v21 }
 0x114   : > { %v466_v25 = vadd.f32 %v465_v24, %v464_v23 }
 0x116   : > { %v468_v26 = vpack.c.bf16 %v466_v25, %v466_v25 }
 0x118   : > { %886 = vmatmul.mubr.msk.bf16.vlgmr.msra.gmra.mrb[0].mxu1 %vm481_vm4, %v468_v26 }
 0x119   : > { %897 = vmatprep.mubr.msk.f32.mxu1 %vm1005_vm0, %v1006_v1  ;;  %929 = vmatpush3.bf16.msra.mxu1 %v928_v31 }
 0x11a   : > { %930 = vmatprep.subr.bf16.mxu1 %v1004_v0 }
 0x11d   : > { %932 = vmatpush3.bf16.msra.mxu1 %v931_v33 }
 0x1eb   : > { %v519_v35 = vpop.f32.mrb[0].mxu1 }
 0x1ec   : > { %v525_v36 = vadd.f32 %v519_v35, %v467_v34  ;;  %v887_v37 = vpop.f32.mrb[1].mxu1 }
 0x1ed   : > { %v522_v38 = vpop.f32.mrb[2].mxu1 }
 0x1ee   : > { %527 = vst.msk [vmem:[#allocation2] sm:$0xff] %vm357_vm3, %v525_v36  ;;  %v888_v39 = vpop.f32.mrb[3].mxu1 }
 0x1f5   : > { %v531_v40 = vld [vmem:[#allocation2] sm:$0xff] }
 0x1f6   : > { %v532_v41 = vadd.f32 1e-09, %v531_v40 }
 0x1f8   : > { %978 = vrcp.f32 %v532_v41 }
 0x202   : > { %v979_v42 = vpop.eup %978 }
 0x203   : > { %536 = vperm.xlu0 %973, %v979_v42  }
 0x282   : > { %v537_v52 = vpop.permute.xlu0 %536 }
 0x283   : > { %v539_v53 = vmul.f32 %v537_v52, %v531_v40 }
 0x285   : > { %898 = vmatmul.mubr.msk.f32.vlgmr.msra.gmra.mrb[4].mxu1 %vm481_vm4, %v539_v53 }
 0x358   : > { %v620_v58 = vpop.f32.mrb[4].mxu1 }
 0x359   : > { %v621_v59 = vadd.f32 %v840_v57, %v620_v58  ;;  %v899_v60 = vpop.f32.mrb[5].mxu1 }
 0x35b   : > { %vm624_vm5 = vcmp.ge.f32.partialorder %v621_v59, 0.0  ;;  %v625_v61 = vmul.f32 0.1, %v621_v59 }
 0x35d   : > { %v626_v62 = vsel %vm624_vm5, %v621_v59, %v625_v61 }
 0x35e   : > { %917 = vmatmul.mubr.msk.f32.vlgmr.msra.gmra.mrb[2].mxu0 %vm642_vm6, %v626_v62 }
 0x431   : > { %v712_v0 = vpop.f32.mrb[2].mxu0 }
 0x432   : > { %v713_v1 = vadd.f32 %v842_v63, %v712_v0  ;;  %v918_v2 = vpop.f32.mrb[3].mxu0 }
 0x434   : > { %vm716_vm7 = vcmp.ge.f32.partialorder %v713_v1, 0.0  ;;  %v717_v3 = vmul.f32 0.1, %v713_v1 }
 0x436   : > { %v718_v4 = vsel %vm716_vm7, %v713_v1, %v717_v3 }
 0x437   : > { %719 = vst.msk [vmem:[%s351_s11] sm:$0xff] %vm642_vm6, %v718_v4 }
 0x438 PF: > { %s17_s26 = sadd.s32 1, %s1002_s26   ;;  %s1165_s24 = smov %s998_s25 }
 0x439   : > { %p14_p5 = scmp.ge.s32.totalorder %s17_s26, 4   ;;  %s1166_s25 = smov %s1168_s27 }
 0x43b   :  { %16 = sbr.rel (!%p14_p5) target bundleno = 2 (0x2), region = 92 }

// kernel: geo_unet_feature_net.27
= control target key start
LH: loop header
LB: loop body
LE: loop exit
PB: predicated region body
PF: predicated region fallthrough
CT: control target
= control target key end

     0   :  { %s812_s18 = smov 0   ;;  %s814_s19 = smov 0   ;;  %s888_s0 = inlined_call_operand.vmem [shape: f32[2,8,8], index: 0, kind: input, shape index: {}]   ;;  %s889_s1 = inlined_call_operand.vmem [shape: f32[2,8,8], index: 1, kind: input, shape index: {}]   ;;  %s890_s2 = inlined_call_operand.vmem [shape: bf16[2,8,65], index: 2, kind: input, shape index: {}]   ;;  %s891_s3 = inlined_call_operand.vmem [shape: f32[64,64], index: 3, kind: input, shape index: {}]   ;;  %s892_s4 = inlined_call_operand.vmem [shape: f32[1,64], index: 4, kind: input, shape index: {}]   ;;  %s893_s5 = inlined_call_operand.vmem [shape: f32[2,8,64], index: 5, kind: output, shape index: {}]  }
   0x1   :  { %s816_s20 = smov 0  }
   0x2 LB: > { %s34_s21 = sadd.s32 1, %s772_s19  ;;  %p654_p0 = scmp.ge.s32.totalorder %s776_s20, 1  ;;  %s776_s20 = sphi %s816_s20, %s15_s20   ;;  %s772_s19 = sphi %s814_s19, %s895_s19   ;;  %s768_s18 = sphi %s812_s18, %s894_s18  }
   0x3   : > { %p36_p1 = scmp.ge.s32.totalorder %s34_s21, 2  ;;  %p230_p2 = scmp.lt.s32.totalorder %s776_s20, 3 }
   0x5   : > { %s897_s21 = smov (%p36_p1, %s34_s21), 0  ;;  %p231_p3 = pnand %p654_p0, %p230_p2 }
   0x6   : > { %p270_p4 = scmp.lt.s32.totalorder (!%p231_p3), %s768_s18, 1  ;;  %v778_v0 = vmov (!%p231_p3), 0.0   ;;  %vm779_vm0 = vmmov (!%p231_p3), 0   ;;  %vm302_vm1 = vcmask (!%p231_p3), 64512   ;;  %vm397_vm2 = vcmask (!%p231_p3), 1043456   ;;  %v456_v22 = vld [vmem:[%s891_s3] sm:$0xff] (!%p231_p3) }
   0x7   : > { %234 = sbr.rel (%p231_p3) target bundleno = 849 (0x351), region = 40  ;;  %679 = vmatprep.subr.mxu1 (!%p231_p3), %v778_v0  ;;  %681 = vmatprep.mubr.msk.f32.mxu1 (!%p231_p3), %vm779_vm0, %v778_v0  ;;  %vm297_vm3 = vcmask (!%p231_p3), 531456   ;;  %v780_v21 = vmov (!%p231_p3), 64   ;;  %v457_v23 = vld [vmem:[%s891_s3 + $0x8] sm:$0xff] (!%p231_p3)  ;;  %v458_v24 = vld [vmem:[%s891_s3 + $0x10] sm:$0xff] (!%p231_p3)  ;;  %v781_v25 = vmov (!%p231_p3), 0.0|0.0  }
   0x8   : > { %706 = vmatprep.mubr.msk.f32.mxu0 (!%p231_p3), %vm779_vm0, %v778_v0  ;;  %298 = vst.msk [vmem:[#allocation2] sm:$0xff] (!%p231_p3), %vm297_vm3, %v778_v0  ;;  %749 = vset.pattern.permute.xlu0 (!%p231_p3), %v780_v21  ;;  %v710_v26 = vpack.c.bf16 (!%p231_p3), %v457_v23, %v456_v22  ;;  %v459_v27 = vld [vmem:[%s891_s3 + $0x18] sm:$0xff] (!%p231_p3)  ;;  %v460_v29 = vld [vmem:[%s891_s3 + $0x20] sm:$0xff] (!%p231_p3)  ;;  %v461_v30 = vld [vmem:[%s891_s3 + $0x28] sm:$0xff] (!%p231_p3)  ;;  %vm471_vm4 = vcmask (!%p231_p3), 523264  }
   0x9   : > { %709 = vmatprep.subr.bf16.mxu0 (!%p231_p3), %v781_v25  ;;  %v713_v28 = vpack.c.bf16 (!%p231_p3), %v459_v27, %v458_v24  ;;  %v716_v31 = vpack.c.bf16 (!%p231_p3), %v461_v30, %v460_v29  ;;  %v462_v32 = vld [vmem:[%s891_s3 + $0x30] sm:$0xff] (!%p231_p3)  ;;  %v463_v33 = vld [vmem:[%s891_s3 + $0x38] sm:$0xff] (!%p231_p3)  ;;  %v662_v46 = vld [vmem:[%s892_s4] ss:$0 sm:$0xff] (!%p231_p3) }
   0xa   : > { %711 = vmatpush3.bf16.msra.mxu0 (!%p231_p3), %v710_v26  ;;  %v719_v34 = vpack.c.bf16 (!%p231_p3), %v463_v33, %v462_v32 }
   0xb   : > { %712 = vmatprep.subr.bf16.mxu0 (!%p231_p3), %v781_v25 }
   0xe   : > { %s899_s18 = smov (!%p270_p4, %s768_s18), 1  ;;  %714 = vmatpush3.bf16.msra.mxu0 %v713_v28 }
   0xf   : > { %s830_s22 = sshll.u32 %s899_s18, 3  ;;  %s657_s29 = sshll.u32 %s899_s18, 2  ;;  %715 = vmatprep.subr.bf16.mxu0 %v781_v25  ;;  %v392_v35 = vld [vmem:[#allocation2] sm:$0xff] }
  0x10   : > { %s280_s25 = scalar_lea.vmem %s889_s1, %s830_s22  ;;  %s276_s28 = scalar_lea.vmem %s888_s0, %s830_s22 }
  0x11   : > { %v299_v1 = vld [vmem:[%s280_s25] sm:$0xff]  ;;  %s284_s7 = scalar_lea.vmem %s890_s2, %s657_s29 }
  0x12   : > { %680 = vmatpush3.xpose.msk.msra.mxu1 %vm302_vm1, %v299_v1  ;;  %v301_v2 = vld [vmem:[%s276_s28] sm:$0xff]  ;;  %717 = vmatpush3.bf16.msra.mxu0 %v716_v31 }
  0x13   : > { %684 = vmatprep.subr.bf16.mxu1 %v778_v0  ;;  %v300_v3 = vld [vmem:[%s284_s7] sm:$0xf]  ;;  %718 = vmatprep.subr.bf16.mxu0 %v781_v25  ;;  %s291_s7 = scalar_lea.vmem %s893_s5, %s830_s22 }
  0x14   : > { %v399_v4 = vsel %vm397_vm2, %v300_v3, 0 }
  0x15   : > { %682 = vmatmul.mubr.msk.f32.vlgmr.msra.gmra.mrb[0].mxu1 %vm302_vm1, %v301_v2 }
  0x16   : > { %686 = vmatprep.mubr.msk.bf16.mxu1 %vm779_vm0, %v778_v0  ;;  %685 = vmatpush3.bf16.msra.mxu1 %v399_v4 }
  0x17   : > { %720 = vmatpush3.bf16.msra.mxu0 %v719_v34 }
  0xe8   : > { %v375_v5 = vpop.f32.mrb[0].mxu1 }
  0xe9   : > { %v379_v6 = vmax.f32 %v375_v5, 0.0  ;;  %v683_v7 = vpop.f32.mrb[1].mxu1 }
  0xeb   : > { %v380_v8 = vmul.f32 -0.001953125, %v379_v6 }
  0xed   : > { %v381_v9 = vmul.f32 1.442695, %v380_v8 }
  0xef   : > { %750 = vpow2.f32 %v381_v9 }
  0xf9   : > { %v751_v10 = vpop.eup %750 }
  0xfa   : > { %v383_v11 = vmul.f32 %v751_v10, %v751_v10  ;;  %v390_v17 = vmul.f32 0.34, %v751_v10 }
  0xfc   : > { %v384_v12 = vmul.f32 %v383_v11, %v383_v11 }
  0xfe   : > { %v385_v13 = vmul.f32 %v384_v12, %v384_v12  ;;  %v388_v15 = vmul.f32 0.33, %v384_v12 }
 0x100   : > { %v386_v14 = vmul.f32 %v385_v13, %v385_v13 }
 0x102   : > { %v387_v16 = vmul.f32 0.33, %v386_v14 }
 0x104   : > { %v389_v18 = vadd.f32 %v388_v15, %v387_v16 }
 0x106   : > { %v391_v19 = vadd.f32 %v390_v17, %v389_v18 }
 0x108   : > { %v393_v20 = vpack.c.bf16 %v391_v19, %v391_v19 }
 0x10a   : > { %687 = vmatmul.mubr.msk.bf16.vlgmr.msra.gmra.mrb[4].mxu1 %vm302_vm1, %v393_v20 }
 0x1dd   : > { %v435_v36 = vpop.f32.mrb[4].mxu1 }
 0x1de   : > { %v441_v37 = vadd.f32 %v435_v36, %v392_v35  ;;  %v688_v38 = vpop.f32.mrb[5].mxu1 }
 0x1df   : > { %v438_v39 = vpop.f32.mrb[6].mxu1 }
 0x1e0   : > { %443 = vst.msk [vmem:[#allocation2] sm:$0xff] %vm297_vm3, %v441_v37  ;;  %v689_v40 = vpop.f32.mrb[7].mxu1 }
 0x1e7   : > { %v447_v41 = vld [vmem:[#allocation2] sm:$0xff] }
 0x1e8   : > { %v448_v42 = vadd.f32 1e-09, %v447_v41 }
 0x1ea   : > { %752 = vrcp.f32 %v448_v42 }
 0x1f4   : > { %v753_v43 = vpop.eup %752 }
 0x1f5   : > { %452 = vperm.xlu0 %749, %v753_v43  }
 0x274   : > { %v453_v44 = vpop.permute.xlu0 %452 }
 0x275   : > { %v455_v45 = vmul.f32 %v453_v44, %v447_v41 }
 0x277   : > { %707 = vmatmul.mubr.msk.f32.vlgmr.msra.gmra.mrb[0].mxu0 %vm471_vm4, %v455_v45 }
 0x34a   : > { %v541_v47 = vpop.f32.mrb[0].mxu0 }
 0x34b   : > { %v542_v48 = vadd.f32 %v662_v46, %v541_v47  ;;  %v708_v49 = vpop.f32.mrb[1].mxu0 }
 0x34d   : > { %vm545_vm5 = vcmp.ge.f32.partialorder %v542_v48, 0.0  ;;  %v546_v50 = vmul.f32 0.1, %v542_v48 }
 0x34f   : > { %v547_v51 = vsel %vm545_vm5, %v542_v48, %v546_v50 }
 0x350   : > { %548 = vst.msk [vmem:[%s291_s7] sm:$0xff] %vm471_vm4, %v547_v51 }
 0x351 PF: > { %s15_s20 = sadd.s32 1, %s776_s20   ;;  %s894_s18 = smov %s772_s19 }
 0x352   : > { %p12_p5 = scmp.ge.s32.totalorder %s15_s20, 4   ;;  %s895_s19 = smov %s897_s21 }
 0x354   :  { %14 = sbr.rel (!%p12_p5) target bundleno = 2 (0x2), region = 84 }

// kernel: geo_unet_feature_net.29
= control target key start
LH: loop header
LB: loop body
LE: loop exit
PB: predicated region body
PF: predicated region fallthrough
CT: control target
= control target key end

     0   :  { %s1033_s24 = smov 0   ;;  %s1035_s25 = smov 0   ;;  %s1152_s0 = inlined_call_operand.vmem [shape: f32[2,4,8], index: 0, kind: input, shape index: {}]   ;;  %s1153_s1 = inlined_call_operand.vmem [shape: f32[2,8,8], index: 1, kind: input, shape index: {}]   ;;  %s1154_s2 = inlined_call_operand.vmem [shape: bf16[2,8,65], index: 2, kind: input, shape index: {}]   ;;  %s1155_s3 = inlined_call_operand.vmem [shape: f32[64,96], index: 3, kind: input, shape index: {}]   ;;  %s1156_s4 = inlined_call_operand.vmem [shape: f32[1,96], index: 4, kind: input, shape index: {}]   ;;  %s1157_s5 = inlined_call_operand.vmem [shape: f32[96,96], index: 5, kind: input, shape index: {}]   ;;  %s1158_s6 = inlined_call_operand.vmem [shape: f32[1,96], index: 6, kind: input, shape index: {}]   ;;  %s1159_s7 = inlined_call_operand.vmem [shape: f32[2,4,96], index: 7, kind: output, shape index: {}]  }
   0x1   :  { %s1037_s26 = smov 0  }
   0x2 LB: > { %s36_s27 = sadd.s32 1, %s983_s25  ;;  %p805_p0 = scmp.ge.s32.totalorder %s987_s26, 1  ;;  %s987_s26 = sphi %s1037_s26, %s17_s26   ;;  %s983_s25 = sphi %s1035_s25, %s1161_s25   ;;  %s979_s24 = sphi %s1033_s24, %s1160_s24  }
   0x3   : > { %p38_p1 = scmp.ge.s32.totalorder %s36_s27, 2  ;;  %p280_p2 = scmp.lt.s32.totalorder %s987_s26, 3 }
   0x5   : > { %s1163_s27 = smov (%p38_p1, %s36_s27), 0  ;;  %p281_p3 = pnand %p805_p0, %p280_p2 }
   0x6   : > { %p324_p4 = scmp.lt.s32.totalorder (!%p281_p3), %s979_s24, 1  ;;  %v989_v0 = vmov (!%p281_p3), 0.0   ;;  %vm990_vm0 = vmmov (!%p281_p3), 0   ;;  %vm356_vm1 = vcmask (!%p281_p3), 64512   ;;  %vm451_vm2 = vcmask (!%p281_p3), 1043456   ;;  %v510_v22 = vld [vmem:[%s1155_s3] sm:$0xff] (!%p281_p3) }
   0x7   : > { %284 = sbr.rel (%p281_p3) target bundleno = 1066 (0x42a), region = 48  ;;  %845 = vmatprep.subr.mxu0 (!%p281_p3), %v989_v0  ;;  %847 = vmatprep.mubr.msk.f32.mxu0 (!%p281_p3), %vm990_vm0, %v989_v0  ;;  %vm351_vm3 = vcmask (!%p281_p3), 527360   ;;  %v991_v21 = vmov (!%p281_p3), 64   ;;  %v511_v23 = vld [vmem:[%s1155_s3 + $0x8] sm:$0xff] (!%p281_p3)  ;;  %v512_v24 = vld [vmem:[%s1155_s3 + $0x10] sm:$0xff] (!%p281_p3)  ;;  %v992_v25 = vmov (!%p281_p3), 0.0|0.0  }
   0x8   : > { %899 = vmatprep.mubr.msk.f32.mxu1 (!%p281_p3), %vm990_vm0, %v989_v0  ;;  %352 = vst.msk [vmem:[#allocation2] sm:$0xf] (!%p281_p3), %vm351_vm3, %v989_v0  ;;  %960 = vset.pattern.permute.xlu0 (!%p281_p3), %v991_v21  ;;  %v903_v26 = vpack.c.bf16 (!%p281_p3), %v511_v23, %v510_v22  ;;  %v513_v27 = vld [vmem:[%s1155_s3 + $0x18] sm:$0xff] (!%p281_p3)  ;;  %v514_v29 = vld [vmem:[%s1155_s3 + $0x20] sm:$0xff] (!%p281_p3)  ;;  %v515_v30 = vld [vmem:[%s1155_s3 + $0x28] sm:$0xff] (!%p281_p3)  ;;  %vm525_vm4 = vcmask (!%p281_p3), 523264  }
   0x9   : > { %914 = vmatprep.subr.bf16.mxu1 (!%p281_p3), %v992_v25  ;;  %v906_v28 = vpack.c.bf16 (!%p281_p3), %v513_v27, %v512_v24  ;;  %v909_v31 = vpack.c.bf16 (!%p281_p3), %v515_v30, %v514_v29  ;;  %v516_v32 = vld [vmem:[%s1155_s3 + $0x30] sm:$0xff] (!%p281_p3)  ;;  %v517_v33 = vld [vmem:[%s1155_s3 + $0x38] sm:$0xff] (!%p281_p3)  ;;  %v602_v44 = vld [vmem:[%s1157_s5] sm:$0xff] (!%p281_p3)  ;;  %vm621_vm6 = vcmask (!%p281_p3), 785408   ;;  %vm698_vm8 = vcmask (!%p281_p3), 781312  }
   0xa   : > { %v912_v34 = vpack.c.bf16 (!%p281_p3), %v517_v33, %v516_v32  ;;  %v603_v45 = vld [vmem:[%s1157_s5 + $0x8] sm:$0xff] (!%p281_p3)  ;;  %v604_v46 = vld [vmem:[%s1157_s5 + $0x10] sm:$0xff] (!%p281_p3)  ;;  %v605_v48 = vld [vmem:[%s1157_s5 + $0x18] sm:$0xff] (!%p281_p3) }
   0xb   : > { %v915_v47 = vpack.c.bf16 (!%p281_p3), %v603_v45, %v602_v44  ;;  %v918_v49 = vpack.c.bf16 (!%p281_p3), %v605_v48, %v604_v46  ;;  %v606_v50 = vld [vmem:[%s1157_s5 + $0x20] sm:$0xff] (!%p281_p3)  ;;  %v607_v51 = vld [vmem:[%s1157_s5 + $0x28] sm:$0xff] (!%p281_p3)  ;;  %v608_v53 = vld [vmem:[%s1157_s5 + $0x30] sm:$0xff] (!%p281_p3) }
   0xc   : > { %v921_v52 = vpack.c.bf16 (!%p281_p3), %v607_v51, %v606_v50  ;;  %v609_v54 = vld [vmem:[%s1157_s5 + $0x38] sm:$0xff] (!%p281_p3)  ;;  %v610_v56 = vld [vmem:[%s1157_s5 + $0x40] sm:$0xff] (!%p281_p3)  ;;  %v611_v57 = vld [vmem:[%s1157_s5 + $0x48] sm:$0xff] (!%p281_p3) }
   0xd   : > { %916 = vmatpush3.bf16.msra.mxu1 (!%p281_p3), %v915_v47  ;;  %v924_v55 = vpack.c.bf16 (!%p281_p3), %v609_v54, %v608_v53  ;;  %v927_v58 = vpack.c.bf16 (!%p281_p3), %v611_v57, %v610_v56  ;;  %v612_v61 = vld [vmem:[%s1157_s5 + $0x50] sm:$0xff] (!%p281_p3)  ;;  %v613_v62 = vld [vmem:[%s1157_s5 + $0x58] sm:$0xff] (!%p281_p3) }
   0xe   : > { %s1165_s24 = smov (!%p324_p4, %s979_s24), 1  ;;  %917 = vmatprep.subr.bf16.mxu1 %v992_v25  ;;  %v930_v63 = vpack.c.bf16 %v613_v62, %v612_v61 }
   0xf   : > { %s807_s28 = sshll.u32 %s1165_s24, 3  ;;  %s1053_s29 = sshll.u32 %s1165_s24, 2  ;;  %v446_v35 = vld [vmem:[#allocation2] sm:$0xf] }
  0x10   : > { %s334_s9 = scalar_lea.vmem %s1153_s1, %s807_s28  ;;  %s330_s12 = scalar_lea.vmem %s1152_s0, %s1053_s29 }
  0x11   : > { %v353_v1 = vld [vmem:[%s334_s9] sm:$0xff]  ;;  %s338_s15 = scalar_lea.vmem %s1154_s2, %s1053_s29  ;;  %919 = vmatpush3.bf16.msra.mxu1 %v918_v49  ;;  %s345_s24 = scalar_lea.vmem %s1159_s7, %s1053_s29 }
  0x12   : > { %846 = vmatpush3.xpose.msk.msra.mxu0 %vm356_vm1, %v353_v1  ;;  %v355_v2 = vld [vmem:[%s330_s12] sm:$0xf]  ;;  %920 = vmatprep.subr.bf16.mxu1 %v992_v25 }
  0x13   : > { %850 = vmatprep.subr.bf16.mxu0 %v989_v0  ;;  %v354_v3 = vld [vmem:[%s338_s15] sm:$0xf] }
  0x14   : > { %v453_v4 = vsel %vm451_vm2, %v354_v3, 0 }
  0x15   : > { %848 = vmatmul.mubr.msk.f32.vlgmr.msra.gmra.mrb[0].mxu0 %vm356_vm1, %v355_v2  ;;  %922 = vmatpush3.bf16.msra.mxu1 %v921_v52 }
  0x16   : > { %852 = vmatprep.mubr.msk.bf16.mxu0 %vm990_vm0, %v989_v0  ;;  %851 = vmatpush3.bf16.msra.mxu0 %v453_v4 }
  0x17   : > { %902 = vmatprep.subr.bf16.mxu0 %v992_v25  ;;  %923 = vmatprep.subr.bf16.mxu1 %v992_v25 }
  0x19   : > { %925 = vmatpush3.bf16.msra.mxu1 %v924_v55 }
  0x1a   : > { %926 = vmatprep.subr.bf16.mxu1 %v992_v25 }
  0x1d   : > { %928 = vmatpush3.bf16.msra.mxu1 %v927_v58 }
  0x1e   : > { %929 = vmatprep.subr.bf16.mxu1 %v992_v25 }
  0x21   : > { %931 = vmatpush3.bf16.msra.mxu1 %v930_v63 }
  0xe8   : > { %v429_v5 = vpop.f32.mrb[0].mxu0 }
  0xe9   : > { %v433_v6 = vmax.f32 %v429_v5, 0.0  ;;  %v849_v7 = vpop.f32.mrb[1].mxu0 }
  0xeb   : > { %v434_v8 = vmul.f32 -0.00048828125, %v433_v6  ;;  %v815_v6 = vld [vmem:[%s1158_s6] ss:$0 sm:$0xff] }
  0xed   : > { %v435_v9 = vmul.f32 1.442695, %v434_v8 }
  0xef   : > { %961 = vpow2.f32 %v435_v9 }
  0xf9   : > { %v962_v10 = vpop.eup %961 }
  0xfa   : > { %v437_v11 = vmul.f32 %v962_v10, %v962_v10  ;;  %v444_v17 = vmul.f32 0.34, %v962_v10 }
  0xfc   : > { %v438_v12 = vmul.f32 %v437_v11, %v437_v11 }
  0xfe   : > { %v439_v13 = vmul.f32 %v438_v12, %v438_v12  ;;  %v442_v15 = vmul.f32 0.33, %v438_v12 }
 0x100   : > { %v440_v14 = vmul.f32 %v439_v13, %v439_v13 }
 0x102   : > { %v441_v16 = vmul.f32 0.33, %v440_v14 }
 0x104   : > { %v443_v18 = vadd.f32 %v442_v15, %v441_v16 }
 0x106   : > { %v445_v19 = vadd.f32 %v444_v17, %v443_v18 }
 0x108   : > { %v447_v20 = vpack.c.bf16 %v445_v19, %v445_v19 }
 0x10a   : > { %853 = vmatmul.mubr.msk.bf16.vlgmr.msra.gmra.mrb[4].mxu0 %vm356_vm1, %v447_v20 }
 0x10b   : > { %872 = vmatprep.mubr.msk.f32.mxu0 %vm990_vm0, %v989_v0  ;;  %904 = vmatpush3.bf16.msra.mxu0 %v903_v26  ;;  %v813_v0 = vld [vmem:[%s1156_s4] ss:$0 sm:$0xff] }
 0x10c   : > { %905 = vmatprep.subr.bf16.mxu0 %v992_v25 }
 0x10f   : > { %907 = vmatpush3.bf16.msra.mxu0 %v906_v28 }
 0x110   : > { %908 = vmatprep.subr.bf16.mxu0 %v992_v25 }
 0x113   : > { %910 = vmatpush3.bf16.msra.mxu0 %v909_v31 }
 0x114   : > { %911 = vmatprep.subr.bf16.mxu0 %v992_v25 }
 0x117   : > { %913 = vmatpush3.bf16.msra.mxu0 %v912_v34 }
 0x1dd   : > { %v489_v36 = vpop.f32.mrb[4].mxu0 }
 0x1de   : > { %v495_v37 = vadd.f32 %v489_v36, %v446_v35  ;;  %v854_v38 = vpop.f32.mrb[5].mxu0 }
 0x1df   : > { %v492_v39 = vpop.f32.mrb[6].mxu0 }
 0x1e0   : > { %497 = vst.msk [vmem:[#allocation2] sm:$0xf] %vm351_vm3, %v495_v37  ;;  %v855_v40 = vpop.f32.mrb[7].mxu0 }
 0x1e7   : > { %v501_v41 = vld [vmem:[#allocation2] sm:$0xf] }
 0x1e8   : > { %v502_v42 = vadd.f32 1e-09, %v501_v41 }
 0x1ea   : > { %963 = vrcp.f32 %v502_v42 }
 0x1f4   : > { %v964_v43 = vpop.eup %963 }
 0x1f5   : > { %506 = vperm.xlu0 %960, %v964_v43  }
 0x274   : > { %v507_v59 = vpop.permute.xlu0 %506 }
 0x275   : > { %v509_v60 = vmul.f32 %v507_v59, %v501_v41 }
 0x277   : > { %873 = vmatmul.mubr.msk.f32.vlgmr.msra.gmra.mrb[2].mxu0 %vm525_vm4, %v509_v60 }
 0x34a   : > { %v595_v1 = vpop.f32.mrb[2].mxu0 }
 0x34b   : > { %v596_v2 = vadd.f32 %v813_v0, %v595_v1  ;;  %v874_v3 = vpop.f32.mrb[3].mxu0 }
 0x34d   : > { %vm599_vm5 = vcmp.ge.f32.partialorder %v596_v2, 0.0  ;;  %v600_v4 = vmul.f32 0.1, %v596_v2 }
 0x34f   : > { %v601_v5 = vsel %vm599_vm5, %v596_v2, %v600_v4 }
 0x350   : > { %900 = vmatmul.mubr.msk.f32.vlgmr.msra.gmra.mrb[0].mxu1 %vm621_vm6, %v601_v5 }
 0x423   : > { %v691_v7 = vpop.f32.mrb[0].mxu1 }
 0x424   : > { %v692_v8 = vadd.f32 %v815_v6, %v691_v7  ;;  %v901_v9 = vpop.f32.mrb[1].mxu1 }
 0x426   : > { %vm695_vm7 = vcmp.ge.f32.partialorder %v692_v8, 0.0  ;;  %v696_v10 = vmul.f32 0.1, %v692_v8 }
 0x428   : > { %v697_v11 = vsel %vm695_vm7, %v692_v8, %v696_v10 }
 0x429   : > { %699 = vst.msk [vmem:[%s345_s24] sm:$0xf] %vm698_vm8, %v697_v11 }
 0x42a PF: > { %s17_s26 = sadd.s32 1, %s987_s26   ;;  %s1160_s24 = smov %s983_s25 }
 0x42b   : > { %p14_p5 = scmp.ge.s32.totalorder %s17_s26, 4   ;;  %s1161_s25 = smov %s1163_s27 }
 0x42d   :  { %16 = sbr.rel (!%p14_p5) target bundleno = 2 (0x2), region = 92 }

// kernel: geo_unet_feature_net.30
= control target key start
LH: loop header
LB: loop body
LE: loop exit
PB: predicated region body
PF: predicated region fallthrough
CT: control target
= control target key end

     0   :  { %s836_s18 = smov 0   ;;  %s838_s19 = smov 0   ;;  %s921_s0 = inlined_call_operand.vmem [shape: f32[2,4,8], index: 0, kind: input, shape index: {}]   ;;  %s922_s1 = inlined_call_operand.vmem [shape: f32[2,4,8], index: 1, kind: input, shape index: {}]   ;;  %s923_s2 = inlined_call_operand.vmem [shape: bf16[2,4,97], index: 2, kind: input, shape index: {}]   ;;  %s924_s3 = inlined_call_operand.vmem [shape: f32[96,96], index: 3, kind: input, shape index: {}]   ;;  %s925_s4 = inlined_call_operand.vmem [shape: f32[1,96], index: 4, kind: input, shape index: {}]   ;;  %s926_s5 = inlined_call_operand.vmem [shape: f32[2,4,96], index: 5, kind: output, shape index: {}]  }
   0x1   :  { %s840_s20 = smov 0  }
   0x2 LB: > { %s34_s21 = sadd.s32 1, %s796_s19  ;;  %p660_p0 = scmp.ge.s32.totalorder %s800_s20, 1  ;;  %s800_s20 = sphi %s840_s20, %s15_s20   ;;  %s796_s19 = sphi %s838_s19, %s928_s19   ;;  %s792_s18 = sphi %s836_s18, %s927_s18  }
   0x3   : > { %p36_p1 = scmp.ge.s32.totalorder %s34_s21, 2  ;;  %p230_p2 = scmp.lt.s32.totalorder %s800_s20, 3 }
   0x5   : > { %s930_s21 = smov (%p36_p1, %s34_s21), 0  ;;  %p231_p3 = pnand %p660_p0, %p230_p2 }
   0x6   : > { %p270_p4 = scmp.lt.s32.totalorder (!%p231_p3), %s792_s18, 1  ;;  %v802_v0 = vmov (!%p231_p3), 0.0   ;;  %vm803_vm0 = vmmov (!%p231_p3), 0   ;;  %vm302_vm1 = vcmask (!%p231_p3), 64512   ;;  %vm398_vm2 = vcmask (!%p231_p3), 1041408   ;;  %v457_v22 = vld [vmem:[%s924_s3] sm:$0xff] (!%p231_p3) }
   0x7   : > { %234 = sbr.rel (%p231_p3) target bundleno = 849 (0x351), region = 40  ;;  %689 = vmatprep.subr.mxu1 (!%p231_p3), %v802_v0  ;;  %691 = vmatprep.mubr.msk.f32.mxu1 (!%p231_p3), %vm803_vm0, %v802_v0  ;;  %vm297_vm3 = vcmask (!%p231_p3), 789504   ;;  %vm394_vm4 = vcmask (!%p231_p3), 31744   ;;  %v804_v21 = vmov (!%p231_p3), 96   ;;  %v458_v23 = vld [vmem:[%s924_s3 + $0x8] sm:$0xff] (!%p231_p3)  ;;  %v459_v24 = vld [vmem:[%s924_s3 + $0x10] sm:$0xff] (!%p231_p3) }
   0x8   : > { %724 = vmatprep.mubr.msk.f32.mxu0 (!%p231_p3), %vm803_vm0, %v802_v0  ;;  %298 = vst.msk [vmem:[#allocation2] sm:$0xf] (!%p231_p3), %vm297_vm3, %v802_v0  ;;  %773 = vset.pattern.permute.xlu0 (!%p231_p3), %v804_v21  ;;  %v805_v25 = vmov (!%p231_p3), 0.0|0.0   ;;  %v728_v26 = vpack.c.bf16 (!%p231_p3), %v458_v23, %v457_v22  ;;  %v460_v27 = vld [vmem:[%s924_s3 + $0x18] sm:$0xff] (!%p231_p3)  ;;  %v461_v29 = vld [vmem:[%s924_s3 + $0x20] sm:$0xff] (!%p231_p3)  ;;  %v462_v30 = vld [vmem:[%s924_s3 + $0x28] sm:$0xff] (!%p231_p3) }
   0x9   : > { %727 = vmatprep.subr.bf16.mxu0 (!%p231_p3), %v805_v25  ;;  %v731_v28 = vpack.c.bf16 (!%p231_p3), %v460_v27, %v459_v24  ;;  %v734_v31 = vpack.c.bf16 (!%p231_p3), %v462_v30, %v461_v29  ;;  %v463_v32 = vld [vmem:[%s924_s3 + $0x30] sm:$0xff] (!%p231_p3)  ;;  %v464_v33 = vld [vmem:[%s924_s3 + $0x38] sm:$0xff] (!%p231_p3)  ;;  %v465_v35 = vld [vmem:[%s924_s3 + $0x40] sm:$0xff] (!%p231_p3)  ;;  %vm476_vm5 = vcmask (!%p231_p3), 785408   ;;  %vm553_vm7 = vcmask (!%p231_p3), 781312  }
   0xa   : > { %729 = vmatpush3.bf16.msra.mxu0 (!%p231_p3), %v728_v26  ;;  %v737_v34 = vpack.c.bf16 (!%p231_p3), %v464_v33, %v463_v32  ;;  %v466_v36 = vld [vmem:[%s924_s3 + $0x48] sm:$0xff] (!%p231_p3)  ;;  %v467_v38 = vld [vmem:[%s924_s3 + $0x50] sm:$0xff] (!%p231_p3)  ;;  %v468_v39 = vld [vmem:[%s924_s3 + $0x58] sm:$0xff] (!%p231_p3) }
   0xb   : > { %730 = vmatprep.subr.bf16.mxu0 (!%p231_p3), %v805_v25  ;;  %v740_v37 = vpack.c.bf16 (!%p231_p3), %v466_v36, %v465_v35  ;;  %v743_v40 = vpack.c.bf16 (!%p231_p3), %v468_v39, %v467_v38  ;;  %v668_v52 = vld [vmem:[%s925_s4] ss:$0 sm:$0xff] (!%p231_p3) }
   0xe   : > { %s932_s18 = smov (!%p270_p4, %s792_s18), 1  ;;  %732 = vmatpush3.bf16.msra.mxu0 %v731_v28 }
   0xf   : > { %s854_s22 = sshll.u32 %s932_s18, 2  ;;  %s663_s29 = sshll.u32 %s932_s18, 1  ;;  %733 = vmatprep.subr.bf16.mxu0 %v805_v25  ;;  %v392_v41 = vld [vmem:[#allocation2] sm:$0xf] }
  0x10   : > { %s280_s25 = scalar_lea.vmem %s922_s1, %s854_s22  ;;  %s276_s28 = scalar_lea.vmem %s921_s0, %s854_s22 }
  0x11   : > { %v299_v1 = vld [vmem:[%s280_s25] sm:$0xf]  ;;  %s284_s7 = scalar_lea.vmem %s923_s2, %s663_s29  ;;  %s291_s15 = scalar_lea.vmem %s926_s5, %s854_s22 }
  0x12   : > { %690 = vmatpush3.xpose.msk.msra.mxu1 %vm302_vm1, %v299_v1  ;;  %v301_v2 = vld [vmem:[%s276_s28] sm:$0xf]  ;;  %735 = vmatpush3.bf16.msra.mxu0 %v734_v31 }
  0x13   : > { %694 = vmatprep.subr.bf16.mxu1 %v802_v0  ;;  %v300_v3 = vld [vmem:[%s284_s7] sm:$0x3]  ;;  %736 = vmatprep.subr.bf16.mxu0 %v805_v25 }
  0x14   : > { %v400_v4 = vsel %vm398_vm2, %v300_v3, 0 }
  0x15   : > { %692 = vmatmul.mubr.msk.f32.vlgmr.msra.gmra.mrb[0].mxu1 %vm302_vm1, %v301_v2 }
  0x16   : > { %696 = vmatprep.mubr.msk.bf16.mxu1 %vm803_vm0, %v802_v0  ;;  %695 = vmatpush3.bf16.msra.mxu1 %v400_v4 }
  0x17   : > { %738 = vmatpush3.bf16.msra.mxu0 %v737_v34 }
  0x18   : > { %739 = vmatprep.subr.bf16.mxu0 %v805_v25 }
  0x1b   : > { %741 = vmatpush3.bf16.msra.mxu0 %v740_v37 }
  0x1c   : > { %742 = vmatprep.subr.bf16.mxu0 %v805_v25 }
  0x1f   : > { %744 = vmatpush3.bf16.msra.mxu0 %v743_v40 }
  0xe8   : > { %v375_v5 = vpop.f32.mrb[0].mxu1 }
  0xe9   : > { %v379_v6 = vmax.f32 %v375_v5, 0.0  ;;  %v693_v7 = vpop.f32.mrb[1].mxu1 }
  0xeb   : > { %v380_v8 = vmul.f32 -0.00048828125, %v379_v6 }
  0xed   : > { %v381_v9 = vmul.f32 1.442695, %v380_v8 }
  0xef   : > { %774 = vpow2.f32 %v381_v9 }
  0xf9   : > { %v775_v10 = vpop.eup %774 }
  0xfa   : > { %v383_v11 = vmul.f32 %v775_v10, %v775_v10  ;;  %v390_v17 = vmul.f32 0.34, %v775_v10 }
  0xfc   : > { %v384_v12 = vmul.f32 %v383_v11, %v383_v11 }
  0xfe   : > { %v385_v13 = vmul.f32 %v384_v12, %v384_v12  ;;  %v388_v15 = vmul.f32 0.33, %v384_v12 }
 0x100   : > { %v386_v14 = vmul.f32 %v385_v13, %v385_v13 }
 0x102   : > { %v387_v16 = vmul.f32 0.33, %v386_v14 }
 0x104   : > { %v389_v18 = vadd.f32 %v388_v15, %v387_v16 }
 0x106   : > { %v391_v19 = vadd.f32 %v390_v17, %v389_v18 }
 0x108   : > { %v393_v20 = vpack.c.bf16 %v391_v19, %v391_v19 }
 0x10a   : > { %697 = vmatmul.mubr.msk.bf16.vlgmr.msra.gmra.mrb[4].mxu1 %vm394_vm4, %v393_v20 }
 0x1dd   : > { %v436_v42 = vpop.f32.mrb[4].mxu1 }
 0x1de   : > { %v442_v43 = vadd.f32 %v436_v42, %v392_v41  ;;  %v698_v44 = vpop.f32.mrb[5].mxu1 }
 0x1df   : > { %v439_v45 = vpop.f32.mrb[6].mxu1 }
 0x1e0   : > { %444 = vst.msk [vmem:[#allocation2] sm:$0xf] %vm297_vm3, %v442_v43  ;;  %v699_v46 = vpop.f32.mrb[7].mxu1 }
 0x1e7   : > { %v448_v47 = vld [vmem:[#allocation2] sm:$0xf] }
 0x1e8   : > { %v449_v48 = vadd.f32 1e-09, %v448_v47 }
 0x1ea   : > { %776 = vrcp.f32 %v449_v48 }
 0x1f4   : > { %v777_v49 = vpop.eup %776 }
 0x1f5   : > { %453 = vperm.xlu0 %773, %v777_v49  }
 0x274   : > { %v454_v50 = vpop.permute.xlu0 %453 }
 0x275   : > { %v456_v51 = vmul.f32 %v454_v50, %v448_v47 }
 0x277   : > { %725 = vmatmul.mubr.msk.f32.vlgmr.msra.gmra.mrb[0].mxu0 %vm476_vm5, %v456_v51 }
 0x34a   : > { %v546_v53 = vpop.f32.mrb[0].mxu0 }
 0x34b   : > { %v547_v54 = vadd.f32 %v668_v52, %v546_v53  ;;  %v726_v55 = vpop.f32.mrb[1].mxu0 }
 0x34d   : > { %vm550_vm6 = vcmp.ge.f32.partialorder %v547_v54, 0.0  ;;  %v551_v56 = vmul.f32 0.1, %v547_v54 }
 0x34f   : > { %v552_v57 = vsel %vm550_vm6, %v547_v54, %v551_v56 }
 0x350   : > { %554 = vst.msk [vmem:[%s291_s15] sm:$0xf] %vm553_vm7, %v552_v57 }
 0x351 PF: > { %s15_s20 = sadd.s32 1, %s800_s20   ;;  %s927_s18 = smov %s796_s19 }
 0x352   : > { %p12_p5 = scmp.ge.s32.totalorder %s15_s20, 4   ;;  %s928_s19 = smov %s930_s21 }
 0x354   :  { %14 = sbr.rel (!%p12_p5) target bundleno = 2 (0x2), region = 84 }

// kernel: geo_unet_feature_net.31
= control target key start
LH: loop header
LB: loop body
LE: loop exit
PB: predicated region body
PF: predicated region fallthrough
CT: control target
= control target key end

     0   :  { %s614_s12 = smov 0   ;;  %s616_s13 = smov 0   ;;  %s664_s0 = inlined_call_operand.vmem [shape: f32[2,8,8], index: 0, kind: input, shape index: {}]   ;;  %s665_s1 = inlined_call_operand.vmem [shape: f32[2,4,8], index: 1, kind: input, shape index: {}]   ;;  %s666_s2 = inlined_call_operand.vmem [shape: bf16[2,4,97], index: 2, kind: input, shape index: {}]   ;;  %s667_s3 = inlined_call_operand.vmem [shape: f32[2,8,96], index: 3, kind: output, shape index: {}]  }
   0x1   :  { %s618_s14 = smov 0  }
   0x2 LB: > { %s32_s15 = sadd.s32 1, %s585_s13  ;;  %p510_p0 = scmp.ge.s32.totalorder %s589_s14, 1  ;;  %s589_s14 = sphi %s618_s14, %s13_s14   ;;  %s585_s13 = sphi %s616_s13, %s669_s13   ;;  %s581_s12 = sphi %s614_s12, %s668_s12  }
   0x3   : > { %p34_p1 = scmp.ge.s32.totalorder %s32_s15, 2  ;;  %p180_p2 = scmp.lt.s32.totalorder %s589_s14, 3 }
   0x5   : > { %s671_s15 = smov (%p34_p1, %s32_s15), 0  ;;  %p181_p3 = pnand %p510_p0, %p180_p2 }
   0x6   : > { %p216_p4 = scmp.lt.s32.totalorder (!%p181_p3), %s581_s12, 1  ;;  %v591_v0 = vmov (!%p181_p3), 0.0   ;;  %vm592_vm0 = vmmov (!%p181_p3), 0   ;;  %vm248_vm1 = vcmask (!%p181_p3), 64512   ;;  %vm344_vm2 = vcmask (!%p181_p3), 1041408  }
   0x7   : > { %184 = sbr.rel (%p181_p3) target bundleno = 632 (0x278), region = 32  ;;  %524 = vmatprep.subr.mxu0 (!%p181_p3), %v591_v0  ;;  %526 = vmatprep.mubr.msk.f32.mxu0 (!%p181_p3), %vm592_vm0, %v591_v0  ;;  %vm243_vm3 = vcmask (!%p181_p3), 793600   ;;  %vm340_vm4 = vcmask (!%p181_p3), 31744   ;;  %v593_v21 = vmov (!%p181_p3), 96   ;;  %vm403_vm5 = vcmask (!%p181_p3), 785408  }
   0x8   : > { %529 = vmatprep.subr.bf16.mxu1 (!%p181_p3), %v591_v0  ;;  %531 = vmatprep.mubr.msk.bf16.mxu1 (!%p181_p3), %vm592_vm0, %v591_v0  ;;  %244 = vst.msk [vmem:[#allocation2] sm:$0xff] (!%p181_p3), %vm243_vm3, %v591_v0 }
   0x9   : > { %562 = vset.pattern.permute.xlu0 (!%p181_p3), %v593_v21 }
   0xe   : > { %s673_s12 = smov (!%p216_p4, %s581_s12), 1 }
   0xf   : > { %s512_s16 = sshll.u32 %s673_s12, 2  ;;  %s511_s17 = sshll.u32 %s673_s12, 3  ;;  %v338_v22 = vld [vmem:[#allocation2] sm:$0xff] }
  0x10   : > { %s226_s20 = scalar_lea.vmem %s665_s1, %s512_s16  ;;  %s222_s23 = scalar_lea.vmem %s664_s0, %s511_s17 }
  0x11   : > { %v245_v1 = vld [vmem:[%s226_s20] sm:$0xf]  ;;  %s513_s24 = sshll.u32 %s673_s12, 1  ;;  %s237_s30 = scalar_lea.vmem %s667_s3, %s511_s17 }
  0x12   : > { %525 = vmatpush3.xpose.msk.msra.mxu0 %vm248_vm1, %v245_v1  ;;  %v247_v2 = vld [vmem:[%s222_s23] sm:$0xff]  ;;  %s230_s27 = scalar_lea.vmem %s666_s2, %s513_s24 }
  0x13   : > { %v246_v3 = vld [vmem:[%s230_s27] sm:$0x3] }
  0x14   : > { %v346_v4 = vsel %vm344_vm2, %v246_v3, 0 }
  0x15   : > { %527 = vmatmul.mubr.msk.f32.vlgmr.msra.gmra.mrb[0].mxu0 %vm248_vm1, %v247_v2  ;;  %530 = vmatpush3.bf16.msra.mxu1 %v346_v4 }
  0xe8   : > { %v321_v5 = vpop.f32.mrb[0].mxu0 }
  0xe9   : > { %v325_v6 = vmax.f32 %v321_v5, 0.0  ;;  %v528_v7 = vpop.f32.mrb[1].mxu0 }
  0xeb   : > { %v326_v8 = vmul.f32 -0.001953125, %v325_v6 }
  0xed   : > { %v327_v9 = vmul.f32 1.442695, %v326_v8 }
  0xef   : > { %563 = vpow2.f32 %v327_v9 }
  0xf9   : > { %v564_v10 = vpop.eup %563 }
  0xfa   : > { %v329_v11 = vmul.f32 %v564_v10, %v564_v10  ;;  %v336_v18 = vmul.f32 0.34, %v564_v10 }
  0xfc   : > { %v330_v12 = vmul.f32 %v329_v11, %v329_v11 }
  0xfe   : > { %v331_v13 = vmul.f32 %v330_v12, %v330_v12  ;;  %v334_v16 = vmul.f32 0.33, %v330_v12 }
 0x100   : > { %v332_v14 = vmul.f32 %v331_v13, %v331_v13 }
 0x102   : > { %v333_v15 = vmul.f32 0.33, %v332_v14 }
 0x104   : > { %v335_v17 = vadd.f32 %v334_v16, %v333_v15 }
 0x106   : > { %v337_v19 = vadd.f32 %v336_v18, %v335_v17 }
 0x108   : > { %v339_v20 = vpack.c.bf16 %v337_v19, %v337_v19 }
 0x10a   : > { %532 = vmatmul.mubr.msk.bf16.vlgmr.msra.gmra.mrb[0].mxu1 %vm340_vm4, %v339_v20 }
 0x1dd   : > { %v382_v23 = vpop.f32.mrb[0].mxu1 }
 0x1de   : > { %v388_v24 = vadd.f32 %v382_v23, %v338_v22  ;;  %v533_v25 = vpop.f32.mrb[1].mxu1 }
 0x1df   : > { %v385_v26 = vpop.f32.mrb[2].mxu1 }
 0x1e0   : > { %390 = vst.msk [vmem:[#allocation2] sm:$0xff] %vm243_vm3, %v388_v24  ;;  %v534_v27 = vpop.f32.mrb[3].mxu1 }
 0x1e7   : > { %v394_v28 = vld [vmem:[#allocation2] sm:$0xff] }
 0x1e8   : > { %v395_v29 = vadd.f32 1e-09, %v394_v28 }
 0x1ea   : > { %565 = vrcp.f32 %v395_v29 }
 0x1f4   : > { %v566_v30 = vpop.eup %565 }
 0x1f5   : > { %399 = vperm.xlu0 %562, %v566_v30  }
 0x274   : > { %v400_v31 = vpop.permute.xlu0 %399 }
 0x275   : > { %v402_v32 = vmul.f32 %v400_v31, %v394_v28 }
 0x277   : > { %404 = vst.msk [vmem:[%s237_s30] sm:$0xff] %vm403_vm5, %v402_v32 }
 0x278 PF: > { %s13_s14 = sadd.s32 1, %s589_s14   ;;  %s668_s12 = smov %s585_s13 }
 0x279   : > { %p10_p5 = scmp.ge.s32.totalorder %s13_s14, 4   ;;  %s669_s13 = smov %s671_s15 }
 0x27b   :  { %12 = sbr.rel (!%p10_p5) target bundleno = 2 (0x2), region = 76 }

// kernel: geo_unet_feature_net.34
= control target key start
LH: loop header
LB: loop body
LE: loop exit
PB: predicated region body
PF: predicated region fallthrough
CT: control target
= control target key end

     0   :  { %s787_s12 = smov 0   ;;  %s789_s13 = smov 0   ;;  %s851_s0 = inlined_call_operand.vmem [shape: f32[2,32,8], index: 0, kind: input, shape index: {}]   ;;  %s852_s1 = inlined_call_operand.vmem [shape: f32[2,8,8], index: 1, kind: input, shape index: {}]   ;;  %s853_s2 = inlined_call_operand.vmem [shape: bf16[2,8,65], index: 2, kind: input, shape index: {}]   ;;  %s854_s3 = inlined_call_operand.vmem [shape: f32[2,32,64], index: 3, kind: output, shape index: {}]  }
   0x1   :  { %s791_s14 = smov 0  }
   0x2 LB: > { %s32_s15 = sadd.s32 1, %s759_s13  ;;  %p656_p0 = scmp.ge.s32.totalorder %s763_s14, 1  ;;  %s763_s14 = sphi %s791_s14, %s13_s14   ;;  %s759_s13 = sphi %s789_s13, %s856_s13   ;;  %s755_s12 = sphi %s787_s12, %s855_s12  }
   0x3   : > { %p34_p1 = scmp.ge.s32.totalorder %s32_s15, 2  ;;  %p183_p2 = scmp.lt.s32.totalorder %s763_s14, 3 }
   0x5   : > { %s858_s15 = smov (%p34_p1, %s32_s15), 0  ;;  %p184_p3 = pnand %p656_p0, %p183_p2 }
   0x6   : > { %p224_p4 = scmp.lt.s32.totalorder (!%p184_p3), %s755_s12, 1  ;;  %vm267_vm0 = vcmask (!%p184_p3), 64512   ;;  %vm432_vm1 = vcmask (!%p184_p3), 1043456   ;;  %vm256_vm2 = vcmask (!%p184_p3), 531456   ;;  %v765_v7 = vmov (!%p184_p3), 0.0  }
   0x7   : > { %187 = sbr.rel (%p184_p3) target bundleno = 643 (0x283), region = 32  ;;  %259 = vst.msk [vmem:[#allocation2 + $0x10] sm:$0xff] (!%p184_p3), %vm256_vm2, %v765_v7  ;;  %257 = vst.msk [vmem:[#allocation2] sm:$0xff] (!%p184_p3), %vm256_vm2, %v765_v7  ;;  %vm533_vm3 = vcmask (!%p184_p3), 523264  }
   0x8   : > { %258 = vst.msk [vmem:[#allocation2 + $0x8] sm:$0xff] (!%p184_p3), %vm256_vm2, %v765_v7  ;;  %260 = vst.msk [vmem:[#allocation2 + $0x18] sm:$0xff] (!%p184_p3), %vm256_vm2, %v765_v7 }
   0xe   : > { %s860_s12 = smov (!%p224_p4, %s755_s12), 1 }
   0xf   : > { %s659_s16 = sshll.u32 %s860_s12, 3  ;;  %s672_s17 = sshll.u32 %s860_s12, 5 }
  0x10   : > { %s236_s20 = scalar_lea.vmem %s852_s1, %s659_s16  ;;  %s231_s23 = scalar_lea.vmem %s851_s0, %s672_s17 }
  0x11   : > { %v261_v0 = vld [vmem:[%s236_s20] sm:$0xff]  ;;  %v264_v2 = vld [vmem:[%s231_s23 + $0x8] sm:$0xff]  ;;  %v265_v3 = vld [vmem:[%s231_s23 + $0x10] sm:$0xff]  ;;  %s660_s24 = sshll.u32 %s860_s12, 2  ;;  %s249_s30 = scalar_lea.vmem %s854_s3, %s672_s17 }
  0x12   : > { %v263_v1 = vld [vmem:[%s231_s23] sm:$0xff]  ;;  %682 = vmatprep.subr.msk.mxu0 %vm267_vm0, %v261_v0  ;;  %v266_v4 = vld [vmem:[%s231_s23 + $0x18] sm:$0xff]  ;;  %s240_s27 = scalar_lea.vmem %s853_s2, %s660_s24 }
  0x13   : > { %684 = vmatprep.mubr.msk.f32.mxu0 %vm267_vm0, %v263_v1  ;;  %683 = vmatpush3.xpose.msk.msra.mxu0 %vm267_vm0, %v261_v0  ;;  %v262_v5 = vld [vmem:[%s240_s27] sm:$0xf] }
  0x14   : > { %696 = vmatprep.subr.msk.bf16.mxu1 %vm432_vm1, %v262_v5  ;;  %v434_v6 = vsel %vm432_vm1, %v262_v5, 0 }
  0x15   : > { %691 = vmatpush3.bf16.msra.mxu1 %v434_v6  ;;  %v423_v6 = vld [vmem:[#allocation2 + $0x18] sm:$0xff] }
  0x16   : > { %685 = vmatmul.mubr.msk.f32.vlgmr.msra.gmra.mrb[0].mxu0 %vm267_vm0, %v264_v2  ;;  %v766_v2 = vmov 64  }
  0x17   : > { %687 = vmatprep.mubr.msk.f32.mxu0 %vm267_vm0, %v265_v3  ;;  %724 = vset.pattern.permute.xlu1 %v766_v2  ;;  %v422_v3 = vld [vmem:[#allocation2 + $0x10] sm:$0xff] }
  0x18   : > { %723 = vset.pattern.permute.xlu0 %v766_v2 }
  0x1a   : > { %688 = vmatmul.mubr.msk.f32.gmra.mrb[2].mxu0 %vm267_vm0, %v266_v4  ;;  %v420_v4 = vld [vmem:[#allocation2] sm:$0xff] }
  0xe9   : > { %v686_v8 = vpop.f32.mrb[0].mxu0 }
  0xea   : > { %v369_v9 = vmax.f32 %v686_v8, 0.0  ;;  %v349_v10 = vpop.f32.mrb[1].mxu0 }
  0xeb   : > { %v368_v11 = vmax.f32 %v349_v10, 0.0 }
  0xec   : > { %v373_v12 = vmul.f32 -0.03125, %v369_v9  ;;  %v421_v9 = vld [vmem:[#allocation2 + $0x8] sm:$0xff] }
  0xed   : > { %v372_v13 = vmul.f32 -0.03125, %v368_v11  ;;  %v689_v14 = vpop.f32.mrb[2].mxu0 }
  0xee   : > { %v378_v15 = vmul.f32 1.442695, %v373_v12  ;;  %v371_v16 = vmax.f32 %v689_v14, 0.0  ;;  %v359_v17 = vpop.f32.mrb[3].mxu0 }
  0xef   : > { %v376_v18 = vmul.f32 1.442695, %v372_v13  ;;  %v370_v19 = vmax.f32 %v359_v17, 0.0 }
  0xf0   : > { %725 = vpow2.f32 %v378_v15  ;;  %v375_v20 = vmul.f32 -0.03125, %v371_v16 }
  0xf1   : > { %727 = vpow2.f32 %v376_v18  ;;  %v374_v21 = vmul.f32 -0.03125, %v370_v19 }
  0xf2   : > { %v382_v22 = vmul.f32 1.442695, %v375_v20 }
  0xf3   : > { %v380_v23 = vmul.f32 1.442695, %v374_v21 }
  0xf4   : > { %729 = vpow2.f32 %v382_v22 }
  0xf5   : > { %731 = vpow2.f32 %v380_v23 }
  0xfa   : > { %v726_v24 = vpop.eup %725 }
  0xfb   : > { %v728_v25 = vpop.eup %727  ;;  %v385_v26 = vmul.f32 %v726_v24, %v726_v24  ;;  %v413_v47 = vmul.f32 0.34, %v726_v24 }
  0xfc   : > { %v384_v27 = vmul.f32 %v728_v25, %v728_v25  ;;  %v412_v50 = vmul.f32 0.34, %v728_v25 }
  0xfd   : > { %v389_v28 = vmul.f32 %v385_v26, %v385_v26 }
  0xfe   : > { %v730_v29 = vpop.eup %729  ;;  %v388_v30 = vmul.f32 %v384_v27, %v384_v27 }
  0xff   : > { %v732_v31 = vpop.eup %731  ;;  %v387_v32 = vmul.f32 %v730_v29, %v730_v29  ;;  %v393_v33 = vmul.f32 %v389_v28, %v389_v28  ;;  %v405_v41 = vmul.f32 0.33, %v389_v28  ;;  %v415_v59 = vmul.f32 0.34, %v730_v29 }
 0x100   : > { %v386_v34 = vmul.f32 %v732_v31, %v732_v31  ;;  %v392_v35 = vmul.f32 %v388_v30, %v388_v30  ;;  %v404_v44 = vmul.f32 0.33, %v388_v30  ;;  %v414_v62 = vmul.f32 0.34, %v732_v31 }
 0x101   : > { %v391_v36 = vmul.f32 %v387_v32, %v387_v32  ;;  %v397_v37 = vmul.f32 %v393_v33, %v393_v33 }
 0x102   : > { %v390_v38 = vmul.f32 %v386_v34, %v386_v34  ;;  %v396_v39 = vmul.f32 %v392_v35, %v392_v35 }
 0x103   : > { %v401_v40 = vmul.f32 0.33, %v397_v37  ;;  %v395_v42 = vmul.f32 %v391_v36, %v391_v36  ;;  %v407_v54 = vmul.f32 0.33, %v391_v36 }
 0x104   : > { %v400_v43 = vmul.f32 0.33, %v396_v39  ;;  %v394_v45 = vmul.f32 %v390_v38, %v390_v38  ;;  %v406_v57 = vmul.f32 0.33, %v390_v38 }
 0x105   : > { %v409_v46 = vadd.f32 %v405_v41, %v401_v40  ;;  %v399_v48 = vmul.f32 %v395_v42, %v395_v42 }
 0x106   : > { %v408_v49 = vadd.f32 %v404_v44, %v400_v43  ;;  %v398_v51 = vmul.f32 %v394_v45, %v394_v45 }
 0x107   : > { %v417_v52 = vadd.f32 %v413_v47, %v409_v46  ;;  %v403_v53 = vmul.f32 0.33, %v399_v48 }
 0x108   : > { %v416_v55 = vadd.f32 %v412_v50, %v408_v49  ;;  %v402_v56 = vmul.f32 0.33, %v398_v51 }
 0x109   : > { %v411_v58 = vadd.f32 %v407_v54, %v403_v53 }
 0x10a   : > { %v424_v60 = vpack.c.bf16 %v417_v52, %v416_v55  ;;  %v410_v61 = vadd.f32 %v406_v57, %v402_v56 }
 0x10b   : > { %v419_v63 = vadd.f32 %v415_v59, %v411_v58 }
 0x10c   : > { %692 = vmatprep.mubr.msk.bf16.mxu1 %vm267_vm0, %v424_v60  ;;  %v418_v0 = vadd.f32 %v414_v62, %v410_v61 }
 0x10e   : > { %v425_v1 = vpack.c.bf16 %v419_v63, %v418_v0 }
 0x110   : > { %693 = vmatmul.mubr.msk.bf16.vlgmr.msra.gmra.mrb[0].mxu1 %vm267_vm0, %v425_v1 }
 0x1e3   : > { %v694_v5 = vpop.f32.mrb[0].mxu1 }
 0x1e4   : > { %v487_v7 = vadd.f32 %v694_v5, %v422_v3  ;;  %v470_v8 = vpop.f32.mrb[1].mxu1 }
 0x1e5   : > { %v485_v10 = vadd.f32 %v470_v8, %v420_v4  ;;  %v695_v11 = vpop.f32.mrb[2].mxu1 }
 0x1e6   : > { %492 = vst.msk [vmem:[#allocation2 + $0x10] sm:$0xff] %vm256_vm2, %v487_v7  ;;  %v488_v12 = vadd.f32 %v695_v11, %v423_v6  ;;  %v473_v13 = vpop.f32.mrb[3].mxu1 }
 0x1e7   : > { %490 = vst.msk [vmem:[#allocation2] sm:$0xff] %vm256_vm2, %v485_v10  ;;  %v486_v14 = vadd.f32 %v473_v13, %v421_v9 }
 0x1e8   : > { %493 = vst.msk [vmem:[#allocation2 + $0x18] sm:$0xff] %vm256_vm2, %v488_v12 }
 0x1e9   : > { %491 = vst.msk [vmem:[#allocation2 + $0x8] sm:$0xff] %vm256_vm2, %v486_v14 }
 0x1ed   : > { %v499_v15 = vld [vmem:[#allocation2 + $0x10] sm:$0xff] }
 0x1ee   : > { %v503_v16 = vadd.f32 1e-09, %v499_v15  ;;  %v497_v17 = vld [vmem:[#allocation2] sm:$0xff] }
 0x1ef   : > { %v501_v18 = vadd.f32 1e-09, %v497_v17  ;;  %v500_v19 = vld [vmem:[#allocation2 + $0x18] sm:$0xff] }
 0x1f0   : > { %733 = vrcp.f32 %v503_v16  ;;  %v504_v20 = vadd.f32 1e-09, %v500_v19  ;;  %v498_v21 = vld [vmem:[#allocation2 + $0x8] sm:$0xff] }
 0x1f1   : > { %735 = vrcp.f32 %v501_v18  ;;  %v502_v22 = vadd.f32 1e-09, %v498_v21 }
 0x1f2   : > { %737 = vrcp.f32 %v504_v20 }
 0x1f3   : > { %739 = vrcp.f32 %v502_v22 }
 0x1fa   : > { %v734_v23 = vpop.eup %733 }
 0x1fb   : > { %v736_v24 = vpop.eup %735  ;;  %521 = vperm.xlu1 %724, %v734_v23  }
 0x1fc   : > { %511 = vperm.xlu0 %723, %v736_v24   ;;  %v738_v25 = vpop.eup %737 }
 0x1fd   : > { %v740_v26 = vpop.eup %739 }
 0x1ff   : > { %526 = vperm.xlu1 %724, %v738_v25  }
 0x200   : > { %516 = vperm.xlu0 %723, %v740_v26  }
 0x27a   : > { %v522_v27 = vpop.permute.xlu1 %521 }
 0x27b   : > { %v531_v28 = vmul.f32 %v522_v27, %v499_v15  ;;  %v512_v29 = vpop.permute.xlu0 %511 }
 0x27c   : > { %v529_v30 = vmul.f32 %v512_v29, %v497_v17 }
 0x27d   : > { %536 = vst.msk [vmem:[%s249_s30 + $0x10] sm:$0xff] %vm533_vm3, %v531_v28 }
 0x27e   : > { %534 = vst.msk [vmem:[%s249_s30] sm:$0xff] %vm533_vm3, %v529_v30  ;;  %v527_v31 = vpop.permute.xlu1 %526 }
 0x27f   : > { %v532_v32 = vmul.f32 %v527_v31, %v500_v19  ;;  %v517_v33 = vpop.permute.xlu0 %516 }
 0x280   : > { %v530_v34 = vmul.f32 %v517_v33, %v498_v21 }
 0x281   : > { %537 = vst.msk [vmem:[%s249_s30 + $0x18] sm:$0xff] %vm533_vm3, %v532_v32 }
 0x282   : > { %535 = vst.msk [vmem:[%s249_s30 + $0x8] sm:$0xff] %vm533_vm3, %v530_v34 }
 0x283 PF: > { %s13_s14 = sadd.s32 1, %s763_s14   ;;  %s855_s12 = smov %s759_s13 }
 0x284   : > { %p10_p5 = scmp.ge.s32.totalorder %s13_s14, 4   ;;  %s856_s13 = smov %s858_s15 }
 0x286   :  { %12 = sbr.rel (!%p10_p5) target bundleno = 2 (0x2), region = 76 }

// kernel: geo_unet_feature_net.32
= control target key start
LH: loop header
LB: loop body
LE: loop exit
PB: predicated region body
PF: predicated region fallthrough
CT: control target
= control target key end

     0   :  { %vm50_vm0 = vcmask 523264   ;;  %vm132_vm1 = vcmask 785408   ;;  %s658_s2 = inlined_call_operand.vmem [shape: f32[96,64], index: 2, kind: input, shape index: {}]   ;;  %s659_s3 = inlined_call_operand.vmem [shape: f32[64,64], index: 3, kind: input, shape index: {}]   ;;  %s660_s1 = inlined_call_operand.vmem [shape: f32[16,64], index: 1, kind: input, shape index: {}]   ;;  %s661_s0 = inlined_call_operand.vmem [shape: f32[16,96], index: 0, kind: input, shape index: {}]   ;;  %s662_s5 = inlined_call_operand.vmem [shape: f32[64,64], index: 5, kind: input, shape index: {}]   ;;  %s663_s4 = inlined_call_operand.vmem [shape: f32[1,64], index: 4, kind: input, shape index: {}]   ;;  %s664_s6 = inlined_call_operand.vmem [shape: f32[1,64], index: 6, kind: input, shape index: {}]   ;;  %s665_s7 = inlined_call_operand.vmem [shape: f32[16,64], index: 7, kind: output, shape index: {}]  }
   0x1   :  { %v28_v0 = vld [vmem:[%s658_s2] sm:$0xff]  ;;  %v29_v1 = vld [vmem:[%s658_s2 + $0x8] sm:$0xff]  ;;  %v30_v2 = vld [vmem:[%s658_s2 + $0x10] sm:$0xff] }
   0x2   :  { %v460_v3 = vpack.c.bf16 %v29_v1, %v28_v0  ;;  %v31_v4 = vld [vmem:[%s658_s2 + $0x18] sm:$0xff]  ;;  %v42_v5 = vld [vmem:[%s659_s3] sm:$0xff]  ;;  %v43_v6 = vld [vmem:[%s659_s3 + $0x8] sm:$0xff] }
   0x3   :  { %v464_v7 = vpack.c.bf16 %v31_v4, %v30_v2  ;;  %v444_v8 = vpack.c.bf16 %v43_v6, %v42_v5  ;;  %v32_v9 = vld [vmem:[%s658_s2 + $0x20] sm:$0xff]  ;;  %v33_v10 = vld [vmem:[%s658_s2 + $0x28] sm:$0xff]  ;;  %v44_v11 = vld [vmem:[%s659_s3 + $0x10] sm:$0xff] }
   0x4   :  { %461 = vmatprep.subr.bf16.mxu0 %v460_v3  ;;  %v45_v12 = vld [vmem:[%s659_s3 + $0x18] sm:$0xff]  ;;  %v46_v14 = vld [vmem:[%s659_s3 + $0x20] sm:$0xff]  ;;  %v47_v15 = vld [vmem:[%s659_s3 + $0x28] sm:$0xff]  ;;  %v468_v16 = vpack.c.bf16 %v33_v10, %v32_v9 }
   0x5   :  { %463 = vmatpush3.bf16.msra.mxu0 %v460_v3  ;;  %445 = vmatprep.subr.bf16.mxu1 %v444_v8  ;;  %v448_v13 = vpack.c.bf16 %v45_v12, %v44_v11  ;;  %v34_v17 = vld [vmem:[%s658_s2 + $0x30] sm:$0xff]  ;;  %v35_v18 = vld [vmem:[%s658_s2 + $0x38] sm:$0xff]  ;;  %v452_v19 = vpack.c.bf16 %v47_v15, %v46_v14  ;;  %v40_v20 = vld [vmem:[%s660_s1] sm:$0xff] }
   0x6   :  { %465 = vmatprep.subr.bf16.mxu0 %v464_v7  ;;  %447 = vmatpush3.bf16.msra.mxu1 %v444_v8  ;;  %v48_v21 = vld [vmem:[%s659_s3 + $0x30] sm:$0xff]  ;;  %v49_v22 = vld [vmem:[%s659_s3 + $0x38] sm:$0xff]  ;;  %v26_v23 = vld [vmem:[%s661_s0] sm:$0xff]  ;;  %v472_v24 = vpack.c.bf16 %v35_v18, %v34_v17 }
   0x7   :  { %449 = vmatprep.subr.bf16.mxu1 %v448_v13  ;;  %395 = vmatprep.mubr.msk.f32.mxu1 %vm50_vm0, %v40_v20  ;;  %v36_v25 = vld [vmem:[%s658_s2 + $0x40] sm:$0xff]  ;;  %v37_v26 = vld [vmem:[%s658_s2 + $0x48] sm:$0xff]  ;;  %v456_v27 = vpack.c.bf16 %v49_v22, %v48_v21  ;;  %v38_v31 = vld [vmem:[%s658_s2 + $0x50] sm:$0xff] }
   0x8   :  { %422 = vmatprep.mubr.msk.f32.mxu0 %vm132_vm1, %v26_v23  ;;  %v229_v28 = vld [vmem:[%s662_s5] sm:$0xff]  ;;  %v230_v29 = vld [vmem:[%s662_s5 + $0x8] sm:$0xff]  ;;  %v476_v30 = vpack.c.bf16 %v37_v26, %v36_v25  ;;  %v39_v32 = vld [vmem:[%s658_s2 + $0x58] sm:$0xff] }
   0x9   :  { %467 = vmatpush3.bf16.msra.mxu0 %v464_v7  ;;  %v484_v33 = vpack.c.bf16 %v230_v29, %v229_v28  ;;  %v231_v34 = vld [vmem:[%s662_s5 + $0x10] sm:$0xff]  ;;  %v232_v35 = vld [vmem:[%s662_s5 + $0x18] sm:$0xff]  ;;  %v480_v36 = vpack.c.bf16 %v39_v32, %v38_v31  ;;  %v41_v37 = vld [vmem:[%s660_s1 + $0x8] sm:$0xff] }
   0xa   :  { %469 = vmatprep.subr.bf16.mxu0 %v468_v16  ;;  %451 = vmatpush3.bf16.msra.mxu1 %v448_v13  ;;  %v488_v38 = vpack.c.bf16 %v232_v35, %v231_v34  ;;  %v27_v39 = vld [vmem:[%s661_s0 + $0x8] sm:$0xff]  ;;  %v233_v40 = vld [vmem:[%s662_s5 + $0x20] sm:$0xff]  ;;  %v235_v43 = vld [vmem:[%s662_s5 + $0x30] sm:$0xff] }
   0xb   :  { %453 = vmatprep.subr.bf16.mxu1 %v452_v19  ;;  %v234_v41 = vld [vmem:[%s662_s5 + $0x28] sm:$0xff]  ;;  %v236_v44 = vld [vmem:[%s662_s5 + $0x38] sm:$0xff]  ;;  %v341_v49 = vld [vmem:[%s663_s4] ss:$0 sm:$0xff] }
   0xc   :  { %v492_v42 = vpack.c.bf16 %v234_v41, %v233_v40  ;;  %v496_v45 = vpack.c.bf16 %v236_v44, %v235_v43  ;;  %v342_v59 = vld [vmem:[%s664_s6] ss:$0 sm:$0xff] }
   0xd   :  { %471 = vmatpush3.bf16.msra.mxu0 %v468_v16 }
   0xe   :  { %473 = vmatprep.subr.bf16.mxu0 %v472_v24  ;;  %455 = vmatpush3.bf16.msra.mxu1 %v452_v19 }
   0xf   :  { %457 = vmatprep.subr.bf16.mxu1 %v456_v27 }
  0x11   :  { %475 = vmatpush3.bf16.msra.mxu0 %v472_v24 }
  0x12   :  { %477 = vmatprep.subr.bf16.mxu0 %v476_v30  ;;  %459 = vmatpush3.bf16.msra.mxu1 %v456_v27 }
  0x13   :  { %485 = vmatprep.subr.bf16.mxu1 %v484_v33 }
  0x15   :  { %479 = vmatpush3.bf16.msra.mxu0 %v476_v30  ;;  %396 = vmatmul.mubr.msk.f32.vlgmr.msra.gmra.mrb[0].mxu1 %vm50_vm0, %v41_v37 }
  0x16   :  { %481 = vmatprep.subr.bf16.mxu0 %v480_v36  ;;  %487 = vmatpush3.bf16.msra.mxu1 %v484_v33 }
  0x17   :  { %489 = vmatprep.subr.bf16.mxu1 %v488_v38 }
  0x19   :  { %483 = vmatpush3.bf16.msra.mxu0 %v480_v36 }
  0x1a   :  { %491 = vmatpush3.bf16.msra.mxu1 %v488_v38 }
  0x1b   :  { %493 = vmatprep.subr.bf16.mxu1 %v492_v42 }
  0x1c   :  { %423 = vmatmul.mubr.msk.f32.vlgmr.msra.gmra.mrb[0].mxu0 %vm132_vm1, %v27_v39 }
  0x1e   :  { %495 = vmatpush3.bf16.msra.mxu1 %v492_v42 }
  0x1f   :  { %497 = vmatprep.subr.bf16.mxu1 %v496_v45 }
  0x22   :  { %499 = vmatpush3.bf16.msra.mxu1 %v496_v45 }
  0xe8   :  { %v397_v46 = vpop.f32.mrb[0].mxu1 }
  0xe9   :  { %v123_v47 = vpop.f32.mrb[1].mxu1 }
  0xef   :  { %v424_v48 = vpop.f32.mrb[0].mxu0 }
  0xf0   :  { %v211_v50 = vadd.f32 %v424_v48, %v397_v46  ;;  %v205_v51 = vpop.f32.mrb[1].mxu0 }
  0xf1   :  { %v206_v52 = vadd.f32 %v205_v51, %v123_v47 }
  0xf2   :  { %v222_v53 = vadd.f32 %v341_v49, %v211_v50 }
  0xf3   :  { %v221_v54 = vadd.f32 %v341_v49, %v206_v52 }
  0xf4   :  { %v226_v55 = vmul.f32 0.1, %v222_v53  ;;  %vm224_vm2 = vcmp.ge.f32.partialorder %v222_v53, 0.0 }
  0xf5   :  { %v225_v56 = vmul.f32 0.1, %v221_v54  ;;  %vm223_vm3 = vcmp.ge.f32.partialorder %v221_v54, 0.0 }
  0xf6   :  { %v228_v58 = vsel %vm224_vm2, %v222_v53, %v226_v55 }
  0xf7   :  { %v227_v57 = vsel %vm223_vm3, %v221_v54, %v225_v56 }
  0xf8   :  { %441 = vmatprep.mubr.msk.f32.mxu1 %vm50_vm0, %v227_v57 }
  0xf9   :  { %442 = vmatmul.mubr.msk.f32.vlgmr.msra.gmra.mrb[2].mxu1 %vm50_vm0, %v228_v58 }
 0x1cc   :  { %v443_v60 = vpop.f32.mrb[2].mxu1 }
 0x1cd   :  { %v322_v61 = vadd.f32 %v443_v60, %v342_v59  ;;  %v316_v62 = vpop.f32.mrb[3].mxu1 }
 0x1ce   :  { %v317_v63 = vadd.f32 %v342_v59, %v316_v62 }
 0x1cf   :  { %vm326_vm4 = vcmp.ge.f32.partialorder %v322_v61, 0.0  ;;  %v328_v0 = vmul.f32 0.1, %v322_v61 }
 0x1d0   :  { %vm325_vm5 = vcmp.ge.f32.partialorder %v317_v63, 0.0  ;;  %v327_v1 = vmul.f32 0.1, %v317_v63 }
 0x1d1   :  { %v330_v2 = vsel %vm326_vm4, %v322_v61, %v328_v0 }
 0x1d2   :  { %332 = vst.msk [vmem:[%s665_s7 + $0x8] sm:$0xff] %vm50_vm0, %v330_v2  ;;  %v329_v3 = vsel %vm325_vm5, %v317_v63, %v327_v1 }
 0x1d3   :  { %331 = vst.msk [vmem:[%s665_s7] sm:$0xff] %vm50_vm0, %v329_v3 }

// kernel: geo_unet_feature_net.35
= control target key start
LH: loop header
LB: loop body
LE: loop exit
PB: predicated region body
PF: predicated region fallthrough
CT: control target
= control target key end

     0   :  { %vm54_vm0 = vcmask 261120   ;;  %vm184_vm1 = vcmask 523264   ;;  %s937_s3 = inlined_call_operand.vmem [shape: f32[32,64], index: 3, kind: input, shape index: {}]   ;;  %s938_s1 = inlined_call_operand.vmem [shape: f32[64,32], index: 1, kind: input, shape index: {}]   ;;  %s939_s2 = inlined_call_operand.vmem [shape: f32[64,64], index: 2, kind: input, shape index: {}]   ;;  %s940_s5 = inlined_call_operand.vmem [shape: f32[64,64], index: 5, kind: input, shape index: {}]   ;;  %s941_s0 = inlined_call_operand.vmem [shape: f32[64,64], index: 0, kind: input, shape index: {}]   ;;  %s942_s4 = inlined_call_operand.vmem [shape: f32[1,64], index: 4, kind: input, shape index: {}]   ;;  %s943_s6 = inlined_call_operand.vmem [shape: f32[1,64], index: 6, kind: input, shape index: {}]   ;;  %s944_s7 = inlined_call_operand.vmem [shape: f32[64,64], index: 7, kind: output, shape index: {}]  }
   0x1   :  { %v50_v0 = vld [vmem:[%s937_s3] sm:$0xff]  ;;  %v51_v1 = vld [vmem:[%s937_s3 + $0x8] sm:$0xff]  ;;  %v52_v2 = vld [vmem:[%s937_s3 + $0x10] sm:$0xff] }
   0x2   :  { %v679_v3 = vpack.c.bf16 %v51_v1, %v50_v0  ;;  %v53_v4 = vld [vmem:[%s937_s3 + $0x18] sm:$0xff]  ;;  %v42_v5 = vld [vmem:[%s938_s1] sm:$0xff]  ;;  %v35_v8 = vld [vmem:[%s939_s2 + $0x8] sm:$0xff] }
   0x3   :  { %v683_v6 = vpack.c.bf16 %v53_v4, %v52_v2  ;;  %611 = vmatprep.mubr.msk.f32.mxu0 %vm54_vm0, %v42_v5  ;;  %v34_v7 = vld [vmem:[%s939_s2] sm:$0xff]  ;;  %v36_v10 = vld [vmem:[%s939_s2 + $0x10] sm:$0xff]  ;;  %v37_v11 = vld [vmem:[%s939_s2 + $0x18] sm:$0xff] }
   0x4   :  { %680 = vmatprep.subr.bf16.mxu0 %v679_v3  ;;  %v687_v9 = vpack.c.bf16 %v35_v8, %v34_v7  ;;  %v43_v12 = vld [vmem:[%s938_s1 + $0x8] sm:$0xff]  ;;  %v44_v13 = vld [vmem:[%s938_s1 + $0x10] sm:$0xff]  ;;  %v691_v14 = vpack.c.bf16 %v37_v11, %v36_v10  ;;  %v38_v15 = vld [vmem:[%s939_s2 + $0x20] sm:$0xff] }
   0x5   :  { %682 = vmatpush3.bf16.msra.mxu0 %v679_v3  ;;  %v353_v16 = vld [vmem:[%s940_s5] sm:$0xff]  ;;  %v354_v17 = vld [vmem:[%s940_s5 + $0x8] sm:$0xff]  ;;  %v355_v20 = vld [vmem:[%s940_s5 + $0x10] sm:$0xff] }
   0x6   :  { %684 = vmatprep.subr.bf16.mxu0 %v683_v6  ;;  %v39_v18 = vld [vmem:[%s939_s2 + $0x28] sm:$0xff]  ;;  %v703_v19 = vpack.c.bf16 %v354_v17, %v353_v16  ;;  %v356_v21 = vld [vmem:[%s940_s5 + $0x18] sm:$0xff]  ;;  %v46_v24 = vld [vmem:[%s938_s1 + $0x20] sm:$0xff] }
   0x7   :  { %v707_v22 = vpack.c.bf16 %v356_v21, %v355_v20  ;;  %v45_v23 = vld [vmem:[%s938_s1 + $0x18] sm:$0xff]  ;;  %v695_v25 = vpack.c.bf16 %v39_v18, %v38_v15  ;;  %v40_v26 = vld [vmem:[%s939_s2 + $0x30] sm:$0xff]  ;;  %v47_v28 = vld [vmem:[%s938_s1 + $0x28] sm:$0xff] }
   0x8   :  { %704 = vmatprep.subr.bf16.mxu1 %v703_v19  ;;  %v41_v27 = vld [vmem:[%s939_s2 + $0x38] sm:$0xff]  ;;  %v48_v29 = vld [vmem:[%s938_s1 + $0x30] sm:$0xff]  ;;  %v26_v32 = vld [vmem:[%s941_s0] sm:$0xff] }
   0x9   :  { %686 = vmatpush3.bf16.msra.mxu0 %v683_v6  ;;  %706 = vmatpush3.bf16.msra.mxu1 %v703_v19  ;;  %v699_v30 = vpack.c.bf16 %v41_v27, %v40_v26  ;;  %v49_v31 = vld [vmem:[%s938_s1 + $0x38] sm:$0xff]  ;;  %v27_v33 = vld [vmem:[%s941_s0 + $0x8] sm:$0xff]  ;;  %v28_v34 = vld [vmem:[%s941_s0 + $0x10] sm:$0xff] }
   0xa   :  { %688 = vmatprep.subr.bf16.mxu0 %v687_v9  ;;  %708 = vmatprep.subr.bf16.mxu1 %v707_v22  ;;  %v29_v35 = vld [vmem:[%s941_s0 + $0x18] sm:$0xff]  ;;  %v30_v36 = vld [vmem:[%s941_s0 + $0x20] sm:$0xff]  ;;  %v31_v37 = vld [vmem:[%s941_s0 + $0x28] sm:$0xff] }
   0xb   :  { %v32_v38 = vld [vmem:[%s941_s0 + $0x30] sm:$0xff]  ;;  %v33_v39 = vld [vmem:[%s941_s0 + $0x38] sm:$0xff]  ;;  %v357_v40 = vld [vmem:[%s940_s5 + $0x20] sm:$0xff] }
   0xc   :  { %612 = vmatmul.mubr.msk.f32.vlgmr.msra.gmra.mrb[0].mxu0 %vm54_vm0, %v43_v12  ;;  %v358_v41 = vld [vmem:[%s940_s5 + $0x28] sm:$0xff]  ;;  %v359_v43 = vld [vmem:[%s940_s5 + $0x30] sm:$0xff]  ;;  %v360_v44 = vld [vmem:[%s940_s5 + $0x38] sm:$0xff] }
   0xd   :  { %690 = vmatpush3.bf16.msra.mxu0 %v687_v9  ;;  %614 = vmatprep.mubr.msk.f32.mxu0 %vm54_vm0, %v44_v13  ;;  %v711_v42 = vpack.c.bf16 %v358_v41, %v357_v40  ;;  %v715_v45 = vpack.c.bf16 %v360_v44, %v359_v43  ;;  %v549_v46 = vld [vmem:[%s942_s4] ss:$0 sm:$0xff] }
   0xe   :  { %692 = vmatprep.subr.bf16.mxu0 %v691_v14  ;;  %710 = vmatpush3.bf16.msra.mxu1 %v707_v22  ;;  %v550_v15 = vld [vmem:[%s943_s6] ss:$0 sm:$0xff] }
   0xf   :  { %712 = vmatprep.subr.bf16.mxu1 %v711_v42 }
  0x10   :  { %615 = vmatmul.mubr.msk.f32.gmra.mrb[2].mxu0 %vm54_vm0, %v45_v23 }
  0x11   :  { %694 = vmatpush3.bf16.msra.mxu0 %v691_v14  ;;  %617 = vmatprep.mubr.msk.f32.mxu0 %vm54_vm0, %v46_v24 }
  0x12   :  { %696 = vmatprep.subr.bf16.mxu0 %v695_v25  ;;  %714 = vmatpush3.bf16.msra.mxu1 %v711_v42 }
  0x13   :  { %716 = vmatprep.subr.bf16.mxu1 %v715_v45 }
  0x14   :  { %618 = vmatmul.mubr.msk.f32.gmra.mrb[4].mxu0 %vm54_vm0, %v47_v28 }
  0x15   :  { %698 = vmatpush3.bf16.msra.mxu0 %v695_v25  ;;  %620 = vmatprep.mubr.msk.f32.mxu0 %vm54_vm0, %v48_v29 }
  0x16   :  { %700 = vmatprep.subr.bf16.mxu0 %v699_v30  ;;  %718 = vmatpush3.bf16.msra.mxu1 %v715_v45 }
  0x18   :  { %621 = vmatmul.mubr.msk.f32.gmra.mrb[6].mxu0 %vm54_vm0, %v49_v31 }
  0x19   :  { %702 = vmatpush3.bf16.msra.mxu0 %v699_v30  ;;  %639 = vmatprep.mubr.msk.f32.mxu0 %vm184_vm1, %v26_v32 }
  0x1c   :  { %640 = vmatmul.mubr.msk.f32.vlgmr.msra.gmra.mrb[0].mxu0 %vm184_vm1, %v27_v33 }
  0x1d   :  { %642 = vmatprep.mubr.msk.f32.mxu0 %vm184_vm1, %v28_v34 }
  0x20   :  { %643 = vmatmul.mubr.msk.f32.gmra.mrb[2].mxu0 %vm184_vm1, %v29_v35 }
  0x21   :  { %645 = vmatprep.mubr.msk.f32.mxu0 %vm184_vm1, %v30_v36 }
  0x24   :  { %646 = vmatmul.mubr.msk.f32.gmra.mrb[4].mxu0 %vm184_vm1, %v31_v37 }
  0x25   :  { %648 = vmatprep.mubr.msk.f32.mxu0 %vm184_vm1, %v32_v38 }
  0x28   :  { %649 = vmatmul.mubr.msk.f32.gmra.mrb[6].mxu0 %vm184_vm1, %v33_v39 }
  0xef   :  { %v641_v47 = vpop.f32.mrb[0].mxu0 }
  0xf0   :  { %v322_v48 = vadd.f32 %v641_v47, %v549_v46  ;;  %v275_v49 = vpop.f32.mrb[1].mxu0 }
  0xf1   :  { %v321_v50 = vadd.f32 %v549_v46, %v275_v49 }
  0xf2   :  { %v338_v51 = vmul.f32 0.1, %v322_v48  ;;  %vm330_vm2 = vcmp.ge.f32.partialorder %v322_v48, 0.0 }
  0xf3   :  { %v644_v52 = vpop.f32.mrb[2].mxu0  ;;  %vm329_vm3 = vcmp.ge.f32.partialorder %v321_v50, 0.0  ;;  %v337_v53 = vmul.f32 0.1, %v321_v50 }
  0xf4   :  { %v324_v54 = vadd.f32 %v644_v52, %v549_v46  ;;  %v285_v55 = vpop.f32.mrb[3].mxu0  ;;  %v346_v59 = vsel %vm330_vm2, %v322_v48, %v338_v51 }
  0xf5   :  { %v323_v56 = vadd.f32 %v549_v46, %v285_v55  ;;  %v345_v57 = vsel %vm329_vm3, %v321_v50, %v337_v53 }
  0xf6   :  { %v340_v58 = vmul.f32 0.1, %v324_v54  ;;  %667 = vmatprep.mubr.msk.f32.mxu1 %vm184_vm1, %v345_v57  ;;  %vm332_vm4 = vcmp.ge.f32.partialorder %v324_v54, 0.0 }
  0xf7   :  { %vm331_vm5 = vcmp.ge.f32.partialorder %v323_v56, 0.0  ;;  %v339_v60 = vmul.f32 0.1, %v323_v56  ;;  %v647_v61 = vpop.f32.mrb[4].mxu0  ;;  %668 = vmatmul.mubr.msk.f32.vlgmr.msra.gmra.mrb[0].mxu1 %vm184_vm1, %v346_v59 }
  0xf8   :  { %v326_v62 = vadd.f32 %v647_v61, %v549_v46  ;;  %v295_v63 = vpop.f32.mrb[5].mxu0  ;;  %v348_v3 = vsel %vm332_vm4, %v324_v54, %v340_v58 }
  0xf9   :  { %v325_v0 = vadd.f32 %v549_v46, %v295_v63  ;;  %v347_v1 = vsel %vm331_vm5, %v323_v56, %v339_v60 }
  0xfa   :  { %v342_v2 = vmul.f32 0.1, %v326_v62  ;;  %670 = vmatprep.mubr.msk.f32.mxu1 %vm184_vm1, %v347_v1  ;;  %vm334_vm6 = vcmp.ge.f32.partialorder %v326_v62, 0.0 }
  0xfb   :  { %vm333_vm7 = vcmp.ge.f32.partialorder %v325_v0, 0.0  ;;  %v341_v4 = vmul.f32 0.1, %v325_v0  ;;  %v650_v5 = vpop.f32.mrb[6].mxu0  ;;  %671 = vmatmul.mubr.msk.f32.gmra.mrb[2].mxu1 %vm184_vm1, %v348_v3 }
  0xfc   :  { %v328_v6 = vadd.f32 %v650_v5, %v549_v46  ;;  %v305_v7 = vpop.f32.mrb[7].mxu0  ;;  %v350_v11 = vsel %vm334_vm6, %v326_v62, %v342_v2 }
  0xfd   :  { %v327_v8 = vadd.f32 %v549_v46, %v305_v7  ;;  %v349_v9 = vsel %vm333_vm7, %v325_v0, %v341_v4 }
  0xfe   :  { %v344_v10 = vmul.f32 0.1, %v328_v6  ;;  %673 = vmatprep.mubr.msk.f32.mxu1 %vm184_vm1, %v349_v9  ;;  %vm336_vm8 = vcmp.ge.f32.partialorder %v328_v6, 0.0 }
  0xff   :  { %vm335_vm9 = vcmp.ge.f32.partialorder %v327_v8, 0.0  ;;  %v343_v12 = vmul.f32 0.1, %v327_v8  ;;  %674 = vmatmul.mubr.msk.f32.gmra.mrb[4].mxu1 %vm184_vm1, %v350_v11 }
 0x100   :  { %v352_v14 = vsel %vm336_vm8, %v328_v6, %v344_v10 }
 0x101   :  { %v351_v13 = vsel %vm335_vm9, %v327_v8, %v343_v12 }
 0x102   :  { %676 = vmatprep.mubr.msk.f32.mxu1 %vm184_vm1, %v351_v13 }
 0x103   :  { %677 = vmatmul.mubr.msk.f32.gmra.mrb[6].mxu1 %vm184_vm1, %v352_v14 }
 0x1ca   :  { %v669_v16 = vpop.f32.mrb[0].mxu1 }
 0x1cb   :  { %v464_v17 = vadd.f32 %v669_v16, %v550_v15  ;;  %v458_v18 = vpop.f32.mrb[1].mxu1 }
 0x1cc   :  { %v459_v19 = vadd.f32 %v550_v15, %v458_v18 }
 0x1cd   :  { %vm498_vm10 = vcmp.ge.f32.partialorder %v464_v17, 0.0  ;;  %v506_v20 = vmul.f32 0.1, %v464_v17 }
 0x1ce   :  { %vm497_vm11 = vcmp.ge.f32.partialorder %v459_v19, 0.0  ;;  %v505_v21 = vmul.f32 0.1, %v459_v19  ;;  %v672_v22 = vpop.f32.mrb[2].mxu1 }
 0x1cf   :  { %v514_v23 = vsel %vm498_vm10, %v464_v17, %v506_v20  ;;  %v474_v24 = vadd.f32 %v672_v22, %v550_v15  ;;  %v468_v25 = vpop.f32.mrb[3].mxu1 }
 0x1d0   :  { %522 = vst.msk [vmem:[%s944_s7 + $0x8] sm:$0xff] %vm184_vm1, %v514_v23  ;;  %v513_v26 = vsel %vm497_vm11, %v459_v19, %v505_v21  ;;  %v469_v27 = vadd.f32 %v550_v15, %v468_v25 }
 0x1d1   :  { %521 = vst.msk [vmem:[%s944_s7] sm:$0xff] %vm184_vm1, %v513_v26  ;;  %vm500_vm12 = vcmp.ge.f32.partialorder %v474_v24, 0.0  ;;  %v508_v28 = vmul.f32 0.1, %v474_v24 }
 0x1d2   :  { %vm499_vm13 = vcmp.ge.f32.partialorder %v469_v27, 0.0  ;;  %v507_v29 = vmul.f32 0.1, %v469_v27  ;;  %v675_v30 = vpop.f32.mrb[4].mxu1 }
 0x1d3   :  { %v516_v31 = vsel %vm500_vm12, %v474_v24, %v508_v28  ;;  %v484_v32 = vadd.f32 %v675_v30, %v550_v15  ;;  %v478_v33 = vpop.f32.mrb[5].mxu1 }
 0x1d4   :  { %524 = vst.msk [vmem:[%s944_s7 + $0x18] sm:$0xff] %vm184_vm1, %v516_v31  ;;  %v515_v34 = vsel %vm499_vm13, %v469_v27, %v507_v29  ;;  %v479_v35 = vadd.f32 %v550_v15, %v478_v33 }
 0x1d5   :  { %523 = vst.msk [vmem:[%s944_s7 + $0x10] sm:$0xff] %vm184_vm1, %v515_v34  ;;  %vm502_vm14 = vcmp.ge.f32.partialorder %v484_v32, 0.0  ;;  %v510_v36 = vmul.f32 0.1, %v484_v32 }
 0x1d6   :  { %vm501_vm15 = vcmp.ge.f32.partialorder %v479_v35, 0.0  ;;  %v509_v37 = vmul.f32 0.1, %v479_v35  ;;  %v678_v38 = vpop.f32.mrb[6].mxu1 }
 0x1d7   :  { %v518_v39 = vsel %vm502_vm14, %v484_v32, %v510_v36  ;;  %v494_v40 = vadd.f32 %v678_v38, %v550_v15  ;;  %v488_v41 = vpop.f32.mrb[7].mxu1 }
 0x1d8   :  { %526 = vst.msk [vmem:[%s944_s7 + $0x28] sm:$0xff] %vm184_vm1, %v518_v39  ;;  %v517_v42 = vsel %vm501_vm15, %v479_v35, %v509_v37  ;;  %v489_v43 = vadd.f32 %v550_v15, %v488_v41 }
 0x1d9   :  { %525 = vst.msk [vmem:[%s944_s7 + $0x20] sm:$0xff] %vm184_vm1, %v517_v42  ;;  %vm504_vm0 = vcmp.ge.f32.partialorder %v494_v40, 0.0  ;;  %v512_v44 = vmul.f32 0.1, %v494_v40 }
 0x1da   :  { %vm503_vm2 = vcmp.ge.f32.partialorder %v489_v43, 0.0  ;;  %v511_v45 = vmul.f32 0.1, %v489_v43 }
 0x1db   :  { %v520_v46 = vsel %vm504_vm0, %v494_v40, %v512_v44 }
 0x1dc   :  { %528 = vst.msk [vmem:[%s944_s7 + $0x38] sm:$0xff] %vm184_vm1, %v520_v46  ;;  %v519_v47 = vsel %vm503_vm2, %v489_v43, %v511_v45 }
 0x1dd   :  { %527 = vst.msk [vmem:[%s944_s7 + $0x30] sm:$0xff] %vm184_vm1, %v519_v47 }

// kernel: geo_unet_feature_net.36
= control target key start
LH: loop header
LB: loop body
LE: loop exit
PB: predicated region body
PF: predicated region fallthrough
CT: control target
= control target key end

     0   :  { %s1094_s18 = smov 0   ;;  %s1096_s19 = smov 0   ;;  %s1187_s0 = inlined_call_operand.vmem [shape: f32[2,32,8], index: 0, kind: input, shape index: {}]   ;;  %s1188_s1 = inlined_call_operand.vmem [shape: f32[2,32,8], index: 1, kind: input, shape index: {}]   ;;  %s1189_s2 = inlined_call_operand.vmem [shape: bf16[2,32,65], index: 2, kind: input, shape index: {}]   ;;  %s1190_s3 = inlined_call_operand.vmem [shape: f32[64,64], index: 3, kind: input, shape index: {}]   ;;  %s1191_s4 = inlined_call_operand.vmem [shape: f32[1,64], index: 4, kind: input, shape index: {}]   ;;  %s1192_s5 = inlined_call_operand.vmem [shape: f32[2,32,64], index: 5, kind: output, shape index: {}]  }
   0x1   :  { %s1098_s20 = smov 0  }
   0x2 LB: > { %s34_s21 = sadd.s32 1, %s1056_s19  ;;  %p864_p0 = scmp.ge.s32.totalorder %s1060_s20, 1  ;;  %s1060_s20 = sphi %s1098_s20, %s15_s20   ;;  %s1056_s19 = sphi %s1096_s19, %s1194_s19   ;;  %s1052_s18 = sphi %s1094_s18, %s1193_s18  }
   0x3   : > { %p36_p1 = scmp.ge.s32.totalorder %s34_s21, 2  ;;  %p235_p2 = scmp.lt.s32.totalorder %s1060_s20, 3 }
   0x5   : > { %s1196_s21 = smov (%p36_p1, %s34_s21), 0  ;;  %p236_p3 = pnand %p864_p0, %p235_p2 }
   0x6   : > { %p282_p4 = scmp.lt.s32.totalorder (!%p236_p3), %s1052_s18, 1  ;;  %vm333_vm0 = vcmask (!%p236_p3), 64512   ;;  %vm316_vm2 = vcmask (!%p236_p3), 531456   ;;  %v1062_v12 = vmov (!%p236_p3), 0.0   ;;  %vm513_vm3 = vcmask (!%p236_p3), 261120  }
   0x7   : > { %239 = sbr.rel (%p236_p3) target bundleno = 879 (0x36f), region = 40  ;;  %vm965_vm1 = vmpackc.low (!%p236_p3), %vm333_vm0, %vm333_vm0  ;;  %319 = vst.msk [vmem:[#allocation2 + $0x10] sm:$0xff] (!%p236_p3), %vm316_vm2, %v1062_v12  ;;  %vm632_vm4 = vcmask (!%p236_p3), 523264  }
   0x8   : > { %317 = vst.msk [vmem:[#allocation2] sm:$0xff] (!%p236_p3), %vm316_vm2, %v1062_v12  ;;  %318 = vst.msk [vmem:[#allocation2 + $0x8] sm:$0xff] (!%p236_p3), %vm316_vm2, %v1062_v12 }
   0x9   : > { %320 = vst.msk [vmem:[#allocation2 + $0x18] sm:$0xff] (!%p236_p3), %vm316_vm2, %v1062_v12  ;;  %v620_v12 = vld [vmem:[%s1190_s3 + $0x18] sm:$0xff] (!%p236_p3) }
   0xe   : > { %s1198_s18 = smov (!%p282_p4, %s1052_s18), 1 }
   0xf   : > { %s1112_s22 = sshll.u32 %s1198_s18, 5  ;;  %s894_s29 = sshll.u32 %s1198_s18, 4 }
  0x10   : > { %s295_s25 = scalar_lea.vmem %s1188_s1, %s1112_s22  ;;  %s289_s28 = scalar_lea.vmem %s1187_s0, %s1112_s22 }
  0x11   : > { %v321_v0 = vld [vmem:[%s295_s25] sm:$0xff]  ;;  %v322_v1 = vld [vmem:[%s295_s25 + $0x8] sm:$0xff]  ;;  %v323_v2 = vld [vmem:[%s295_s25 + $0x10] sm:$0xff]  ;;  %s300_s7 = scalar_lea.vmem %s1189_s2, %s894_s29 }
  0x12   : > { %v964_v3 = vpack.c.bf16 %v322_v1, %v321_v0  ;;  %v324_v4 = vld [vmem:[%s295_s25 + $0x18] sm:$0xff]  ;;  %v329_v5 = vld [vmem:[%s289_s28] sm:$0xff]  ;;  %v330_v7 = vld [vmem:[%s289_s28 + $0x8] sm:$0xff] }
  0x13   : > { %v970_v6 = vpack.c.bf16 %v324_v4, %v323_v2  ;;  %928 = vmatprep.mubr.msk.f32.mxu0 %vm333_vm0, %v329_v5  ;;  %v331_v8 = vld [vmem:[%s289_s28 + $0x10] sm:$0xff]  ;;  %v332_v9 = vld [vmem:[%s289_s28 + $0x18] sm:$0xff]  ;;  %v1020_v10 = vld [vmem:[%s300_s7] sm:$0xff]  }
  0x14   : > { %966 = vmatprep.subr.msk.bf16.mxu0 %vm965_vm1, %v964_v3  ;;  %v1021_v11 = vld [vmem:[%s300_s7 + $0x8] sm:$0xff]   ;;  %934 = vmatprep.subr.bf16.mxu1 %v1020_v10  ;;  %s309_s7 = scalar_lea.vmem %s1192_s5, %s1112_s22 }
  0x15   : > { %969 = vmatpush3.bf16.xpose.msk.msra.mxu0 %vm965_vm1, %v964_v3  ;;  %935 = vmatpush3.bf16.msra.mxu1 %v1020_v10  ;;  %v619_v10 = vld [vmem:[%s1190_s3 + $0x10] sm:$0xff] }
  0x16   : > { %972 = vmatprep.subr.msk.bf16.mxu0 %vm965_vm1, %v970_v6  ;;  %936 = vmatprep.subr.bf16.mxu1 %v1021_v11 }
  0x19   : > { %937 = vmatpush3.bf16.msra.mxu1 %v1021_v11 }
  0x1d   : > { %975 = vmatpush3.bf16.xpose.msk.msra.mxu0 %vm965_vm1, %v970_v6 }
  0x24   : > { %929 = vmatmul.mubr.msk.f32.vlgmr.msra.gmra.mrb[0].mxu0 %vm333_vm0, %v330_v7  ;;  %v1063_v7 = vmov 64  }
  0x25   : > { %931 = vmatprep.mubr.msk.f32.mxu0 %vm333_vm0, %v331_v8  ;;  %1019 = vset.pattern.permute.xlu1 %v1063_v7  ;;  %v617_v8 = vld [vmem:[%s1190_s3] sm:$0xff] }
  0x26   : > { %1018 = vset.pattern.permute.xlu0 %v1063_v7 }
  0x28   : > { %932 = vmatmul.mubr.msk.f32.gmra.mrb[2].mxu0 %vm333_vm0, %v332_v9  ;;  %v618_v9 = vld [vmem:[%s1190_s3 + $0x8] sm:$0xff] }
  0x29   : > { %v976_v11 = vpack.c.bf16 %v618_v9, %v617_v8 }
  0x2b   : > { %977 = vmatprep.subr.bf16.mxu1 %v976_v11 }
  0xf7   : > { %v930_v13 = vpop.f32.mrb[0].mxu0 }
  0xf8   : > { %v444_v14 = vmax.f32 %v930_v13, 0.0  ;;  %v424_v15 = vpop.f32.mrb[1].mxu0  ;;  %v980_v13 = vpack.c.bf16 %v620_v12, %v619_v10 }
  0xf9   : > { %v443_v16 = vmax.f32 %v424_v15, 0.0  ;;  %v622_v15 = vld [vmem:[%s1190_s3 + $0x28] sm:$0xff] }
  0xfa   : > { %v448_v17 = vmul.f32 -0.03125, %v444_v14  ;;  %v621_v14 = vld [vmem:[%s1190_s3 + $0x20] sm:$0xff] }
  0xfb   : > { %v447_v18 = vmul.f32 -0.03125, %v443_v16  ;;  %v933_v19 = vpop.f32.mrb[2].mxu0  ;;  %v984_v16 = vpack.c.bf16 %v622_v15, %v621_v14 }
  0xfc   : > { %v453_v20 = vmul.f32 1.442695, %v448_v17  ;;  %v446_v21 = vmax.f32 %v933_v19, 0.0  ;;  %v434_v22 = vpop.f32.mrb[3].mxu0  ;;  %v497_v17 = vld [vmem:[#allocation2 + $0x10] sm:$0xff] }
  0xfd   : > { %v451_v23 = vmul.f32 1.442695, %v447_v18  ;;  %v445_v24 = vmax.f32 %v434_v22, 0.0  ;;  %v495_v18 = vld [vmem:[#allocation2] sm:$0xff] }
  0xfe   : > { %1022 = vpow2.f32 %v453_v20  ;;  %v450_v25 = vmul.f32 -0.03125, %v446_v21  ;;  %v498_v20 = vld [vmem:[#allocation2 + $0x18] sm:$0xff] }
  0xff   : > { %1024 = vpow2.f32 %v451_v23  ;;  %v449_v26 = vmul.f32 -0.03125, %v445_v24  ;;  %v496_v23 = vld [vmem:[#allocation2 + $0x8] sm:$0xff] }
 0x100   : > { %v457_v27 = vmul.f32 1.442695, %v450_v25 }
 0x101   : > { %v455_v28 = vmul.f32 1.442695, %v449_v26 }
 0x102   : > { %1026 = vpow2.f32 %v457_v27 }
 0x103   : > { %1028 = vpow2.f32 %v455_v28 }
 0x108   : > { %v1023_v29 = vpop.eup %1022 }
 0x109   : > { %v1025_v30 = vpop.eup %1024  ;;  %v460_v31 = vmul.f32 %v1023_v29, %v1023_v29  ;;  %v488_v52 = vmul.f32 0.34, %v1023_v29 }
 0x10a   : > { %v459_v32 = vmul.f32 %v1025_v30, %v1025_v30  ;;  %v487_v55 = vmul.f32 0.34, %v1025_v30 }
 0x10b   : > { %v464_v33 = vmul.f32 %v460_v31, %v460_v31 }
 0x10c   : > { %v1027_v34 = vpop.eup %1026  ;;  %v463_v35 = vmul.f32 %v459_v32, %v459_v32 }
 0x10d   : > { %v1029_v36 = vpop.eup %1028  ;;  %v462_v37 = vmul.f32 %v1027_v34, %v1027_v34  ;;  %v468_v38 = vmul.f32 %v464_v33, %v464_v33  ;;  %v480_v46 = vmul.f32 0.33, %v464_v33  ;;  %v490_v0 = vmul.f32 0.34, %v1027_v34 }
 0x10e   : > { %v461_v39 = vmul.f32 %v1029_v36, %v1029_v36  ;;  %v467_v40 = vmul.f32 %v463_v35, %v463_v35  ;;  %v479_v49 = vmul.f32 0.33, %v463_v35  ;;  %v489_v3 = vmul.f32 0.34, %v1029_v36 }
 0x10f   : > { %v466_v41 = vmul.f32 %v462_v37, %v462_v37  ;;  %v472_v42 = vmul.f32 %v468_v38, %v468_v38 }
 0x110   : > { %v465_v43 = vmul.f32 %v461_v39, %v461_v39  ;;  %v471_v44 = vmul.f32 %v467_v40, %v467_v40  ;;  %v623_v39 = vld [vmem:[%s1190_s3 + $0x30] sm:$0xff]  ;;  %v624_v40 = vld [vmem:[%s1190_s3 + $0x38] sm:$0xff] }
 0x111   : > { %v476_v45 = vmul.f32 0.33, %v472_v42  ;;  %v470_v47 = vmul.f32 %v466_v41, %v466_v41  ;;  %v482_v59 = vmul.f32 0.33, %v466_v41  ;;  %v988_v41 = vpack.c.bf16 %v624_v40, %v623_v39 }
 0x112   : > { %v475_v48 = vmul.f32 0.33, %v471_v44  ;;  %v469_v50 = vmul.f32 %v465_v43, %v465_v43  ;;  %v481_v62 = vmul.f32 0.33, %v465_v43 }
 0x113   : > { %v484_v51 = vadd.f32 %v480_v46, %v476_v45  ;;  %v474_v53 = vmul.f32 %v470_v47, %v470_v47 }
 0x114   : > { %v483_v54 = vadd.f32 %v479_v49, %v475_v48  ;;  %v473_v56 = vmul.f32 %v469_v50, %v469_v50 }
 0x115   : > { %v492_v57 = vadd.f32 %v488_v52, %v484_v51  ;;  %v478_v58 = vmul.f32 0.33, %v474_v53  ;;  %v885_v52 = vld [vmem:[%s1191_s4] ss:$0 sm:$0xff] }
 0x116   : > { %v491_v60 = vadd.f32 %v487_v55, %v483_v54  ;;  %v477_v61 = vmul.f32 0.33, %v473_v56 }
 0x117   : > { %v486_v63 = vadd.f32 %v482_v59, %v478_v58 }
 0x118   : > { %v499_v1 = vpack.c.bf16 %v492_v57, %v491_v60  ;;  %v485_v2 = vadd.f32 %v481_v62, %v477_v61 }
 0x119   : > { %v494_v4 = vadd.f32 %v490_v0, %v486_v63 }
 0x11a   : > { %938 = vmatprep.mubr.msk.bf16.mxu1 %vm513_vm3, %v499_v1  ;;  %v493_v5 = vadd.f32 %v489_v3, %v485_v2 }
 0x11c   : > { %v500_v6 = vpack.c.bf16 %v494_v4, %v493_v5 }
 0x11e   : > { %939 = vmatmul.mubr.msk.bf16.vlgmr.msra.gmra.mrb[0].mxu1 %vm513_vm3, %v500_v6 }
 0x11f   : > { %979 = vmatpush3.bf16.msra.mxu1 %v976_v11 }
 0x120   : > { %981 = vmatprep.subr.bf16.mxu1 %v980_v13 }
 0x123   : > { %983 = vmatpush3.bf16.msra.mxu1 %v980_v13 }
 0x124   : > { %985 = vmatprep.subr.bf16.mxu1 %v984_v16 }
 0x127   : > { %987 = vmatpush3.bf16.msra.mxu1 %v984_v16 }
 0x128   : > { %989 = vmatprep.subr.bf16.mxu1 %v988_v41 }
 0x12b   : > { %991 = vmatpush3.bf16.msra.mxu1 %v988_v41 }
 0x1f1   : > { %v940_v19 = vpop.f32.mrb[0].mxu1 }
 0x1f2   : > { %v571_v21 = vadd.f32 %v940_v19, %v497_v17  ;;  %v554_v22 = vpop.f32.mrb[1].mxu1 }
 0x1f3   : > { %v569_v24 = vadd.f32 %v554_v22, %v495_v18  ;;  %v941_v25 = vpop.f32.mrb[2].mxu1 }
 0x1f4   : > { %576 = vst.msk [vmem:[#allocation2 + $0x10] sm:$0xff] %vm316_vm2, %v571_v21  ;;  %v572_v26 = vadd.f32 %v941_v25, %v498_v20  ;;  %v557_v27 = vpop.f32.mrb[3].mxu1 }
 0x1f5   : > { %574 = vst.msk [vmem:[#allocation2] sm:$0xff] %vm316_vm2, %v569_v24  ;;  %v570_v28 = vadd.f32 %v557_v27, %v496_v23 }
 0x1f6   : > { %577 = vst.msk [vmem:[#allocation2 + $0x18] sm:$0xff] %vm316_vm2, %v572_v26 }
 0x1f7   : > { %575 = vst.msk [vmem:[#allocation2 + $0x8] sm:$0xff] %vm316_vm2, %v570_v28 }
 0x1fb   : > { %v583_v29 = vld [vmem:[#allocation2 + $0x10] sm:$0xff] }
 0x1fc   : > { %v587_v30 = vadd.f32 1e-09, %v583_v29  ;;  %v581_v31 = vld [vmem:[#allocation2] sm:$0xff] }
 0x1fd   : > { %v585_v32 = vadd.f32 1e-09, %v581_v31  ;;  %v584_v33 = vld [vmem:[#allocation2 + $0x18] sm:$0xff] }
 0x1fe   : > { %1030 = vrcp.f32 %v587_v30  ;;  %v588_v34 = vadd.f32 1e-09, %v584_v33  ;;  %v582_v35 = vld [vmem:[#allocation2 + $0x8] sm:$0xff] }
 0x1ff   : > { %1032 = vrcp.f32 %v585_v32  ;;  %v586_v36 = vadd.f32 1e-09, %v582_v35 }
 0x200   : > { %1034 = vrcp.f32 %v588_v34 }
 0x201   : > { %1036 = vrcp.f32 %v586_v36 }
 0x208   : > { %v1031_v37 = vpop.eup %1030 }
 0x209   : > { %v1033_v38 = vpop.eup %1032  ;;  %605 = vperm.xlu1 %1019, %v1031_v37  }
 0x20a   : > { %595 = vperm.xlu0 %1018, %v1033_v38   ;;  %v1035_v42 = vpop.eup %1034 }
 0x20b   : > { %v1037_v43 = vpop.eup %1036 }
 0x20d   : > { %610 = vperm.xlu1 %1019, %v1035_v42  }
 0x20e   : > { %600 = vperm.xlu0 %1018, %v1037_v43  }
 0x288   : > { %v606_v44 = vpop.permute.xlu1 %605 }
 0x289   : > { %v596_v45 = vpop.permute.xlu0 %595  ;;  %v615_v49 = vmul.f32 %v606_v44, %v583_v29 }
 0x28a   : > { %v613_v46 = vmul.f32 %v596_v45, %v581_v31 }
 0x28c   : > { %958 = vmatprep.mubr.msk.f32.mxu1 %vm632_vm4, %v613_v46  ;;  %v611_v50 = vpop.permute.xlu1 %610 }
 0x28d   : > { %v601_v47 = vpop.permute.xlu0 %600  ;;  %v616_v51 = vmul.f32 %v611_v50, %v584_v33 }
 0x28e   : > { %v614_v48 = vmul.f32 %v601_v47, %v582_v35 }
 0x290   : > { %959 = vmatmul.mubr.msk.f32.vlgmr.msra.gmra.mrb[4].mxu1 %vm632_vm4, %v614_v48 }
 0x291   : > { %961 = vmatprep.mubr.msk.f32.mxu1 %vm632_vm4, %v615_v49 }
 0x294   : > { %962 = vmatmul.mubr.msk.f32.gmra.mrb[6].mxu1 %vm632_vm4, %v616_v51 }
 0x363   : > { %v960_v53 = vpop.f32.mrb[4].mxu1 }
 0x364   : > { %v717_v54 = vadd.f32 %v960_v53, %v885_v52  ;;  %v711_v55 = vpop.f32.mrb[5].mxu1 }
 0x365   : > { %v712_v56 = vadd.f32 %v885_v52, %v711_v55 }
 0x366   : > { %vm731_vm5 = vcmp.ge.f32.partialorder %v717_v54, 0.0  ;;  %v735_v57 = vmul.f32 0.1, %v717_v54 }
 0x367   : > { %vm730_vm6 = vcmp.ge.f32.partialorder %v712_v56, 0.0  ;;  %v734_v58 = vmul.f32 0.1, %v712_v56  ;;  %v963_v59 = vpop.f32.mrb[6].mxu1 }
 0x368   : > { %v739_v60 = vsel %vm731_vm5, %v717_v54, %v735_v57  ;;  %v727_v61 = vadd.f32 %v963_v59, %v885_v52  ;;  %v721_v62 = vpop.f32.mrb[7].mxu1 }
 0x369   : > { %743 = vst.msk [vmem:[%s309_s7 + $0x8] sm:$0xff] %vm632_vm4, %v739_v60  ;;  %v738_v63 = vsel %vm730_vm6, %v712_v56, %v734_v58  ;;  %v722_v0 = vadd.f32 %v885_v52, %v721_v62 }
 0x36a   : > { %742 = vst.msk [vmem:[%s309_s7] sm:$0xff] %vm632_vm4, %v738_v63  ;;  %vm733_vm7 = vcmp.ge.f32.partialorder %v727_v61, 0.0  ;;  %v737_v1 = vmul.f32 0.1, %v727_v61 }
 0x36b   : > { %vm732_vm8 = vcmp.ge.f32.partialorder %v722_v0, 0.0  ;;  %v736_v2 = vmul.f32 0.1, %v722_v0 }
 0x36c   : > { %v741_v3 = vsel %vm733_vm7, %v727_v61, %v737_v1 }
 0x36d   : > { %745 = vst.msk [vmem:[%s309_s7 + $0x18] sm:$0xff] %vm632_vm4, %v741_v3  ;;  %v740_v4 = vsel %vm732_vm8, %v722_v0, %v736_v2 }
 0x36e   : > { %744 = vst.msk [vmem:[%s309_s7 + $0x10] sm:$0xff] %vm632_vm4, %v740_v4 }
 0x36f PF: > { %s15_s20 = sadd.s32 1, %s1060_s20   ;;  %s1193_s18 = smov %s1056_s19 }
 0x370   : > { %p12_p5 = scmp.ge.s32.totalorder %s15_s20, 4   ;;  %s1194_s19 = smov %s1196_s21 }
 0x372   :  { %14 = sbr.rel (!%p12_p5) target bundleno = 2 (0x2), region = 84 }

// kernel: geo_unet_feature_net.37
= control target key start
LH: loop header
LB: loop body
LE: loop exit
PB: predicated region body
PF: predicated region fallthrough
CT: control target
= control target key end

     0   :  { %s1057_s12 = smov 0   ;;  %s1059_s13 = smov 0   ;;  %s1143_s0 = inlined_call_operand.vmem [shape: f32[2,64,8], index: 0, kind: input, shape index: {}]   ;;  %s1144_s1 = inlined_call_operand.vmem [shape: f32[2,32,8], index: 1, kind: input, shape index: {}]   ;;  %s1145_s2 = inlined_call_operand.vmem [shape: bf16[2,32,65], index: 2, kind: input, shape index: {}]   ;;  %s1146_s3 = inlined_call_operand.vmem [shape: f32[2,64,64], index: 3, kind: output, shape index: {}]  }
   0x1   :  { %s1061_s14 = smov 0  }
   0x2 LB: > { %s32_s15 = sadd.s32 1, %s1029_s13  ;;  %p854_p0 = scmp.ge.s32.totalorder %s1033_s14, 1  ;;  %s1033_s14 = sphi %s1061_s14, %s13_s14   ;;  %s1029_s13 = sphi %s1059_s13, %s1148_s13   ;;  %s1025_s12 = sphi %s1057_s12, %s1147_s12  }
   0x3   : > { %p34_p1 = scmp.ge.s32.totalorder %s32_s15, 2  ;;  %p185_p2 = scmp.lt.s32.totalorder %s1033_s14, 3 }
   0x5   : > { %s1150_s15 = smov (%p34_p1, %s32_s15), 0  ;;  %p186_p3 = pnand %p854_p0, %p185_p2 }
   0x6   : > { %p228_p4 = scmp.lt.s32.totalorder (!%p186_p3), %s1025_s12, 1  ;;  %vm287_vm0 = vcmask (!%p186_p3), 64512   ;;  %vm262_vm2 = vcmask (!%p186_p3), 531456   ;;  %v1035_v16 = vmov (!%p186_p3), 0.0   ;;  %vm557_vm3 = vcmask (!%p186_p3), 261120  }
   0x7   : > { %189 = sbr.rel (%p186_p3) target bundleno = 667 (0x29b), region = 32  ;;  %vm938_vm1 = vmpackc.low (!%p186_p3), %vm287_vm0, %vm287_vm0  ;;  %265 = vst.msk [vmem:[#allocation2 + $0x10] sm:$0xff] (!%p186_p3), %vm262_vm2, %v1035_v16  ;;  %vm727_vm4 = vcmask (!%p186_p3), 523264  }
   0x8   : > { %263 = vst.msk [vmem:[#allocation2] sm:$0xff] (!%p186_p3), %vm262_vm2, %v1035_v16  ;;  %264 = vst.msk [vmem:[#allocation2 + $0x8] sm:$0xff] (!%p186_p3), %vm262_vm2, %v1035_v16 }
   0x9   : > { %266 = vst.msk [vmem:[#allocation2 + $0x18] sm:$0xff] (!%p186_p3), %vm262_vm2, %v1035_v16  ;;  %267 = vst.msk [vmem:[#allocation2 + $0x20] sm:$0xff] (!%p186_p3), %vm262_vm2, %v1035_v16 }
   0xa   : > { %268 = vst.msk [vmem:[#allocation2 + $0x28] sm:$0xff] (!%p186_p3), %vm262_vm2, %v1035_v16  ;;  %269 = vst.msk [vmem:[#allocation2 + $0x30] sm:$0xff] (!%p186_p3), %vm262_vm2, %v1035_v16 }
   0xb   : > { %270 = vst.msk [vmem:[#allocation2 + $0x38] sm:$0xff] (!%p186_p3), %vm262_vm2, %v1035_v16 }
   0xe   : > { %s1152_s12 = smov (!%p228_p4, %s1025_s12), 1 }
   0xf   : > { %s883_s16 = sshll.u32 %s1152_s12, 6  ;;  %s884_s17 = sshll.u32 %s1152_s12, 5 }
  0x10   : > { %s241_s20 = scalar_lea.vmem %s1144_s1, %s884_s17  ;;  %s235_s23 = scalar_lea.vmem %s1143_s0, %s883_s16 }
  0x11   : > { %v271_v0 = vld [vmem:[%s241_s20] sm:$0xff]  ;;  %v272_v1 = vld [vmem:[%s241_s20 + $0x8] sm:$0xff]  ;;  %v273_v2 = vld [vmem:[%s241_s20 + $0x10] sm:$0xff]  ;;  %s885_s24 = sshll.u32 %s1152_s12, 4  ;;  %s255_s30 = scalar_lea.vmem %s1146_s3, %s883_s16 }
  0x12   : > { %v937_v3 = vpack.c.bf16 %v272_v1, %v271_v0  ;;  %v274_v4 = vld [vmem:[%s241_s20 + $0x18] sm:$0xff]  ;;  %v279_v5 = vld [vmem:[%s235_s23] sm:$0xff]  ;;  %v280_v7 = vld [vmem:[%s235_s23 + $0x8] sm:$0xff]  ;;  %s246_s27 = scalar_lea.vmem %s1145_s2, %s885_s24 }
  0x13   : > { %v943_v6 = vpack.c.bf16 %v274_v4, %v273_v2  ;;  %913 = vmatprep.mubr.msk.f32.mxu0 %vm287_vm0, %v279_v5  ;;  %v281_v8 = vld [vmem:[%s235_s23 + $0x10] sm:$0xff]  ;;  %v282_v9 = vld [vmem:[%s235_s23 + $0x18] sm:$0xff]  ;;  %v283_v10 = vld [vmem:[%s235_s23 + $0x20] sm:$0xff] }
  0x14   : > { %939 = vmatprep.subr.msk.bf16.mxu0 %vm938_vm1, %v937_v3  ;;  %v284_v11 = vld [vmem:[%s235_s23 + $0x28] sm:$0xff]  ;;  %v285_v12 = vld [vmem:[%s235_s23 + $0x30] sm:$0xff]  ;;  %v286_v13 = vld [vmem:[%s235_s23 + $0x38] sm:$0xff] }
  0x15   : > { %942 = vmatpush3.bf16.xpose.msk.msra.mxu0 %vm938_vm1, %v937_v3  ;;  %v977_v14 = vld [vmem:[%s246_s27] sm:$0xff]   ;;  %v978_v15 = vld [vmem:[%s246_s27 + $0x8] sm:$0xff]  }
  0x16   : > { %945 = vmatprep.subr.msk.bf16.mxu0 %vm938_vm1, %v943_v6  ;;  %925 = vmatprep.subr.bf16.mxu1 %v977_v14 }
  0x17   : > { %926 = vmatpush3.bf16.msra.mxu1 %v977_v14 }
  0x18   : > { %927 = vmatprep.subr.bf16.mxu1 %v978_v15 }
  0x1b   : > { %928 = vmatpush3.bf16.msra.mxu1 %v978_v15 }
  0x1d   : > { %948 = vmatpush3.bf16.xpose.msk.msra.mxu0 %vm938_vm1, %v943_v6 }
  0x24   : > { %914 = vmatmul.mubr.msk.f32.vlgmr.msra.gmra.mrb[0].mxu0 %vm287_vm0, %v280_v7 }
  0x25   : > { %916 = vmatprep.mubr.msk.f32.mxu0 %vm287_vm0, %v281_v8 }
  0x28   : > { %917 = vmatmul.mubr.msk.f32.gmra.mrb[2].mxu0 %vm287_vm0, %v282_v9 }
  0x29   : > { %919 = vmatprep.mubr.msk.f32.mxu0 %vm287_vm0, %v283_v10 }
  0x2c   : > { %920 = vmatmul.mubr.msk.f32.gmra.mrb[4].mxu0 %vm287_vm0, %v284_v11 }
  0x2d   : > { %922 = vmatprep.mubr.msk.f32.mxu0 %vm287_vm0, %v285_v12 }
  0x30   : > { %923 = vmatmul.mubr.msk.f32.gmra.mrb[6].mxu0 %vm287_vm0, %v286_v13 }
  0xf7   : > { %v915_v17 = vpop.f32.mrb[0].mxu0 }
  0xf8   : > { %v430_v18 = vmax.f32 %v915_v17, 0.0  ;;  %v390_v19 = vpop.f32.mrb[1].mxu0 }
  0xf9   : > { %v429_v20 = vmax.f32 %v390_v19, 0.0 }
  0xfa   : > { %v438_v21 = vmul.f32 -0.5, %v430_v18 }
  0xfb   : > { %v437_v22 = vmul.f32 -0.5, %v429_v20  ;;  %v918_v23 = vpop.f32.mrb[2].mxu0 }
  0xfc   : > { %v447_v24 = vmul.f32 1.442695, %v438_v21  ;;  %v432_v25 = vmax.f32 %v918_v23, 0.0  ;;  %v400_v26 = vpop.f32.mrb[3].mxu0 }
  0xfd   : > { %v445_v27 = vmul.f32 1.442695, %v437_v22  ;;  %v431_v28 = vmax.f32 %v400_v26, 0.0 }
  0xfe   : > { %979 = vpow2.f32 %v447_v24  ;;  %v440_v29 = vmul.f32 -0.5, %v432_v25 }
  0xff   : > { %981 = vpow2.f32 %v445_v27  ;;  %v439_v30 = vmul.f32 -0.5, %v431_v28  ;;  %v921_v31 = vpop.f32.mrb[4].mxu0 }
 0x100   : > { %v451_v32 = vmul.f32 1.442695, %v440_v29  ;;  %v434_v33 = vmax.f32 %v921_v31, 0.0  ;;  %v410_v34 = vpop.f32.mrb[5].mxu0 }
 0x101   : > { %v449_v35 = vmul.f32 1.442695, %v439_v30  ;;  %v433_v36 = vmax.f32 %v410_v34, 0.0 }
 0x102   : > { %983 = vpow2.f32 %v451_v32  ;;  %v442_v37 = vmul.f32 -0.5, %v434_v33 }
 0x103   : > { %985 = vpow2.f32 %v449_v35  ;;  %v441_v38 = vmul.f32 -0.5, %v433_v36  ;;  %v924_v39 = vpop.f32.mrb[6].mxu0 }
 0x104   : > { %v455_v40 = vmul.f32 1.442695, %v442_v37  ;;  %v436_v41 = vmax.f32 %v924_v39, 0.0  ;;  %v420_v42 = vpop.f32.mrb[7].mxu0 }
 0x105   : > { %v453_v43 = vmul.f32 1.442695, %v441_v38  ;;  %v435_v44 = vmax.f32 %v420_v42, 0.0 }
 0x106   : > { %987 = vpow2.f32 %v455_v40  ;;  %v444_v45 = vmul.f32 -0.5, %v436_v41 }
 0x107   : > { %989 = vpow2.f32 %v453_v43  ;;  %v443_v46 = vmul.f32 -0.5, %v435_v44 }
 0x108   : > { %v980_v47 = vpop.eup %979  ;;  %v459_v48 = vmul.f32 1.442695, %v444_v45 }
 0x109   : > { %v982_v49 = vpop.eup %981  ;;  %v457_v50 = vmul.f32 1.442695, %v443_v46  ;;  %v462_v51 = vmul.f32 %v980_v47, %v980_v47  ;;  %v518_v63 = vmul.f32 0.34, %v980_v47 }
 0x10a   : > { %991 = vpow2.f32 %v459_v48  ;;  %v461_v52 = vmul.f32 %v982_v49, %v982_v49  ;;  %v517_v4 = vmul.f32 0.34, %v982_v49 }
 0x10b   : > { %993 = vpow2.f32 %v457_v50  ;;  %v470_v53 = vmul.f32 %v462_v51, %v462_v51 }
 0x10c   : > { %v984_v54 = vpop.eup %983  ;;  %v469_v55 = vmul.f32 %v461_v52, %v461_v52 }
 0x10d   : > { %v986_v56 = vpop.eup %985  ;;  %v464_v57 = vmul.f32 %v984_v54, %v984_v54  ;;  %v478_v58 = vmul.f32 %v470_v53, %v470_v53  ;;  %v502_v3 = vmul.f32 0.33, %v470_v53  ;;  %v520_v9 = vmul.f32 0.34, %v984_v54 }
 0x10e   : > { %v463_v59 = vmul.f32 %v986_v56, %v986_v56  ;;  %v477_v60 = vmul.f32 %v469_v55, %v469_v55  ;;  %v501_v12 = vmul.f32 0.33, %v469_v55  ;;  %v519_v34 = vmul.f32 0.34, %v986_v56 }
 0x10f   : > { %v472_v61 = vmul.f32 %v464_v57, %v464_v57  ;;  %v486_v62 = vmul.f32 %v478_v58, %v478_v58 }
 0x110   : > { %v988_v0 = vpop.eup %987  ;;  %v471_v1 = vmul.f32 %v463_v59, %v463_v59  ;;  %v485_v2 = vmul.f32 %v477_v60, %v477_v60 }
 0x111   : > { %v990_v5 = vpop.eup %989  ;;  %v466_v6 = vmul.f32 %v988_v0, %v988_v0  ;;  %v494_v7 = vmul.f32 0.33, %v486_v62  ;;  %v480_v8 = vmul.f32 %v472_v61, %v472_v61  ;;  %v504_v17 = vmul.f32 0.33, %v472_v61 }
 0x112   : > { %v465_v10 = vmul.f32 %v990_v5, %v990_v5  ;;  %v493_v11 = vmul.f32 0.33, %v485_v2  ;;  %v479_v13 = vmul.f32 %v471_v1, %v471_v1  ;;  %v503_v22 = vmul.f32 0.33, %v471_v1 }
 0x113   : > { %v474_v14 = vmul.f32 %v466_v6, %v466_v6  ;;  %v510_v15 = vadd.f32 %v502_v3, %v494_v7  ;;  %v488_v16 = vmul.f32 %v480_v8, %v480_v8  ;;  %v522_v49 = vmul.f32 0.34, %v988_v0  ;;  %v535_v6 = vld [vmem:[#allocation2 + $0x10] sm:$0xff]  ;;  %v533_v7 = vld [vmem:[#allocation2] sm:$0xff] }
 0x114   : > { %v992_v18 = vpop.eup %991  ;;  %v473_v19 = vmul.f32 %v465_v10, %v465_v10  ;;  %v509_v20 = vadd.f32 %v501_v12, %v493_v11  ;;  %v487_v21 = vmul.f32 %v479_v13, %v479_v13  ;;  %v521_v53 = vmul.f32 0.34, %v990_v5  ;;  %v534_v12 = vld [vmem:[#allocation2 + $0x8] sm:$0xff] }
 0x115   : > { %v994_v23 = vpop.eup %993  ;;  %v468_v24 = vmul.f32 %v992_v18, %v992_v18  ;;  %v526_v25 = vadd.f32 %v518_v63, %v510_v15  ;;  %v496_v26 = vmul.f32 0.33, %v488_v16  ;;  %v482_v27 = vmul.f32 %v474_v14, %v474_v14 }
 0x116   : > { %v467_v28 = vmul.f32 %v994_v23, %v994_v23  ;;  %v525_v29 = vadd.f32 %v517_v4, %v509_v20  ;;  %v495_v30 = vmul.f32 0.33, %v487_v21  ;;  %v481_v31 = vmul.f32 %v473_v19, %v473_v19  ;;  %v540_v21 = vld [vmem:[#allocation2 + $0x38] sm:$0xff] }
 0x117   : > { %v476_v32 = vmul.f32 %v468_v24, %v468_v24  ;;  %v512_v33 = vadd.f32 %v504_v17, %v496_v26  ;;  %v490_v35 = vmul.f32 %v482_v27, %v482_v27  ;;  %v506_v42 = vmul.f32 0.33, %v474_v14  ;;  %v538_v24 = vld [vmem:[#allocation2 + $0x28] sm:$0xff] }
 0x118   : > { %v475_v36 = vmul.f32 %v467_v28, %v467_v28  ;;  %v541_v37 = vpack.c.bf16 %v526_v25, %v525_v29  ;;  %v511_v38 = vadd.f32 %v503_v22, %v495_v30  ;;  %v489_v39 = vmul.f32 %v481_v31, %v481_v31 }
 0x119   : > { %v528_v40 = vadd.f32 %v520_v9, %v512_v33  ;;  %v498_v41 = vmul.f32 0.33, %v490_v35  ;;  %v484_v43 = vmul.f32 %v476_v32, %v476_v32  ;;  %v505_v46 = vmul.f32 0.33, %v473_v19  ;;  %v536_v9 = vld [vmem:[#allocation2 + $0x18] sm:$0xff]  ;;  %v537_v19 = vld [vmem:[#allocation2 + $0x20] sm:$0xff] }
 0x11a   : > { %929 = vmatprep.mubr.msk.bf16.mxu1 %vm557_vm3, %v541_v37  ;;  %v527_v44 = vadd.f32 %v519_v34, %v511_v38  ;;  %v497_v45 = vmul.f32 0.33, %v489_v39  ;;  %v483_v47 = vmul.f32 %v475_v36, %v475_v36  ;;  %v508_v57 = vmul.f32 0.33, %v476_v32 }
 0x11b   : > { %v514_v48 = vadd.f32 %v506_v42, %v498_v41  ;;  %v492_v50 = vmul.f32 %v484_v43, %v484_v43  ;;  %v507_v60 = vmul.f32 0.33, %v475_v36  ;;  %v524_v62 = vmul.f32 0.34, %v992_v18  ;;  %v539_v18 = vld [vmem:[#allocation2 + $0x30] sm:$0xff] }
 0x11c   : > { %v542_v51 = vpack.c.bf16 %v528_v40, %v527_v44  ;;  %v513_v52 = vadd.f32 %v505_v46, %v497_v45  ;;  %v491_v54 = vmul.f32 %v483_v47, %v483_v47  ;;  %v523_v2 = vmul.f32 0.34, %v994_v23 }
 0x11d   : > { %v530_v55 = vadd.f32 %v522_v49, %v514_v48  ;;  %v500_v56 = vmul.f32 0.33, %v492_v50  ;;  %v1036_v5 = vmov 64  }
 0x11e   : > { %930 = vmatmul.mubr.msk.bf16.vlgmr.msra.gmra.mrb[0].mxu1 %vm557_vm3, %v542_v51  ;;  %v529_v58 = vadd.f32 %v521_v53, %v513_v52  ;;  %v499_v59 = vmul.f32 0.33, %v491_v54  ;;  %975 = vset.pattern.permute.xlu1 %v1036_v5 }
 0x11f   : > { %v516_v61 = vadd.f32 %v508_v57, %v500_v56  ;;  %976 = vset.pattern.permute.xlu0 %v1036_v5 }
 0x120   : > { %v543_v63 = vpack.c.bf16 %v530_v55, %v529_v58  ;;  %v515_v1 = vadd.f32 %v507_v60, %v499_v59 }
 0x121   : > { %v532_v3 = vadd.f32 %v524_v62, %v516_v61 }
 0x122   : > { %933 = vmatprep.mubr.msk.bf16.mxu1 %vm557_vm3, %v543_v63  ;;  %v531_v0 = vadd.f32 %v523_v2, %v515_v1 }
 0x124   : > { %v544_v4 = vpack.c.bf16 %v532_v3, %v531_v0 }
 0x126   : > { %934 = vmatmul.mubr.msk.bf16.gmra.mrb[4].mxu1 %vm557_vm3, %v544_v4 }
 0x1f1   : > { %v931_v8 = vpop.f32.mrb[0].mxu1 }
 0x1f2   : > { %v637_v10 = vadd.f32 %v931_v8, %v535_v6  ;;  %v604_v11 = vpop.f32.mrb[1].mxu1 }
 0x1f3   : > { %v635_v13 = vadd.f32 %v604_v11, %v533_v7  ;;  %v932_v14 = vpop.f32.mrb[2].mxu1 }
 0x1f4   : > { %646 = vst.msk [vmem:[#allocation2 + $0x10] sm:$0xff] %vm262_vm2, %v637_v10  ;;  %v638_v15 = vadd.f32 %v932_v14, %v536_v9  ;;  %v607_v16 = vpop.f32.mrb[3].mxu1 }
 0x1f5   : > { %644 = vst.msk [vmem:[#allocation2] sm:$0xff] %vm262_vm2, %v635_v13  ;;  %v636_v17 = vadd.f32 %v607_v16, %v534_v12 }
 0x1f6   : > { %647 = vst.msk [vmem:[#allocation2 + $0x18] sm:$0xff] %vm262_vm2, %v638_v15 }
 0x1f7   : > { %645 = vst.msk [vmem:[#allocation2 + $0x8] sm:$0xff] %vm262_vm2, %v636_v17 }
 0x1f9   : > { %v935_v20 = vpop.f32.mrb[4].mxu1 }
 0x1fa   : > { %v641_v22 = vadd.f32 %v935_v20, %v539_v18  ;;  %v620_v23 = vpop.f32.mrb[5].mxu1 }
 0x1fb   : > { %v639_v25 = vadd.f32 %v620_v23, %v537_v19  ;;  %v936_v26 = vpop.f32.mrb[6].mxu1  ;;  %v657_v27 = vld [vmem:[#allocation2 + $0x10] sm:$0xff] }
 0x1fc   : > { %650 = vst.msk [vmem:[#allocation2 + $0x30] sm:$0xff] %vm262_vm2, %v641_v22  ;;  %v642_v28 = vadd.f32 %v936_v26, %v540_v21  ;;  %v623_v29 = vpop.f32.mrb[7].mxu1  ;;  %v665_v30 = vadd.f32 1e-09, %v657_v27  ;;  %v655_v31 = vld [vmem:[#allocation2] sm:$0xff] }
 0x1fd   : > { %648 = vst.msk [vmem:[#allocation2 + $0x20] sm:$0xff] %vm262_vm2, %v639_v25  ;;  %v640_v32 = vadd.f32 %v623_v29, %v538_v24  ;;  %v663_v33 = vadd.f32 1e-09, %v655_v31  ;;  %v658_v34 = vld [vmem:[#allocation2 + $0x18] sm:$0xff] }
 0x1fe   : > { %651 = vst.msk [vmem:[#allocation2 + $0x38] sm:$0xff] %vm262_vm2, %v642_v28  ;;  %995 = vrcp.f32 %v665_v30  ;;  %v666_v35 = vadd.f32 1e-09, %v658_v34  ;;  %v656_v36 = vld [vmem:[#allocation2 + $0x8] sm:$0xff] }
 0x1ff   : > { %649 = vst.msk [vmem:[#allocation2 + $0x28] sm:$0xff] %vm262_vm2, %v640_v32  ;;  %997 = vrcp.f32 %v663_v33  ;;  %v664_v37 = vadd.f32 1e-09, %v656_v36 }
 0x200   : > { %999 = vrcp.f32 %v666_v35 }
 0x201   : > { %1001 = vrcp.f32 %v664_v37 }
 0x203   : > { %v661_v39 = vld [vmem:[#allocation2 + $0x30] sm:$0xff] }
 0x204   : > { %v659_v38 = vld [vmem:[#allocation2 + $0x20] sm:$0xff]  ;;  %v669_v44 = vadd.f32 1e-09, %v661_v39 }
 0x205   : > { %v667_v40 = vadd.f32 1e-09, %v659_v38  ;;  %v662_v42 = vld [vmem:[#allocation2 + $0x38] sm:$0xff] }
 0x206   : > { %v660_v41 = vld [vmem:[#allocation2 + $0x28] sm:$0xff]  ;;  %v670_v47 = vadd.f32 1e-09, %v662_v42 }
 0x207   : > { %1003 = vrcp.f32 %v667_v40  ;;  %v668_v43 = vadd.f32 1e-09, %v660_v41 }
 0x208   : > { %v996_v45 = vpop.eup %995 }
 0x209   : > { %v998_v46 = vpop.eup %997  ;;  %691 = vperm.xlu1 %975, %v996_v45   ;;  %1005 = vrcp.f32 %v668_v43 }
 0x20a   : > { %681 = vperm.xlu0 %976, %v998_v46   ;;  %1007 = vrcp.f32 %v669_v44  ;;  %v1000_v48 = vpop.eup %999 }
 0x20b   : > { %v1002_v49 = vpop.eup %1001  ;;  %1009 = vrcp.f32 %v670_v47 }
 0x20d   : > { %696 = vperm.xlu1 %975, %v1000_v48  }
 0x20e   : > { %686 = vperm.xlu0 %976, %v1002_v49  }
 0x211   : > { %v1004_v50 = vpop.eup %1003 }
 0x212   : > { %701 = vperm.xlu0 %976, %v1004_v50  }
 0x213   : > { %v1006_v51 = vpop.eup %1005 }
 0x214   : > { %706 = vperm.xlu1 %975, %v1006_v51   ;;  %v1008_v52 = vpop.eup %1007 }
 0x215   : > { %v1010_v53 = vpop.eup %1009 }
 0x216   : > { %711 = vperm.xlu0 %976, %v1008_v52  }
 0x218   : > { %716 = vperm.xlu1 %975, %v1010_v53  }
 0x288   : > { %v692_v54 = vpop.permute.xlu1 %691 }
 0x289   : > { %v721_v55 = vmul.f32 %v692_v54, %v657_v27  ;;  %v682_v56 = vpop.permute.xlu0 %681 }
 0x28a   : > { %v719_v57 = vmul.f32 %v682_v56, %v655_v31 }
 0x28b   : > { %730 = vst.msk [vmem:[%s255_s30 + $0x10] sm:$0xff] %vm727_vm4, %v721_v55 }
 0x28c   : > { %728 = vst.msk [vmem:[%s255_s30] sm:$0xff] %vm727_vm4, %v719_v57  ;;  %v697_v58 = vpop.permute.xlu1 %696 }
 0x28d   : > { %v722_v59 = vmul.f32 %v697_v58, %v658_v34  ;;  %v687_v60 = vpop.permute.xlu0 %686 }
 0x28e   : > { %v720_v61 = vmul.f32 %v687_v60, %v656_v36 }
 0x28f   : > { %731 = vst.msk [vmem:[%s255_s30 + $0x18] sm:$0xff] %vm727_vm4, %v722_v59 }
 0x290   : > { %729 = vst.msk [vmem:[%s255_s30 + $0x8] sm:$0xff] %vm727_vm4, %v720_v61 }
 0x291   : > { %v702_v62 = vpop.permute.xlu0 %701 }
 0x292   : > { %v723_v63 = vmul.f32 %v702_v62, %v659_v38 }
 0x293   : > { %v707_v1 = vpop.permute.xlu1 %706 }
 0x294   : > { %732 = vst.msk [vmem:[%s255_s30 + $0x20] sm:$0xff] %vm727_vm4, %v723_v63  ;;  %v724_v2 = vmul.f32 %v707_v1, %v660_v41 }
 0x295   : > { %v712_v3 = vpop.permute.xlu0 %711 }
 0x296   : > { %733 = vst.msk [vmem:[%s255_s30 + $0x28] sm:$0xff] %vm727_vm4, %v724_v2  ;;  %v725_v0 = vmul.f32 %v712_v3, %v661_v39 }
 0x297   : > { %v717_v4 = vpop.permute.xlu1 %716 }
 0x298   : > { %734 = vst.msk [vmem:[%s255_s30 + $0x30] sm:$0xff] %vm727_vm4, %v725_v0  ;;  %v726_v5 = vmul.f32 %v717_v4, %v662_v42 }
 0x29a   : > { %735 = vst.msk [vmem:[%s255_s30 + $0x38] sm:$0xff] %vm727_vm4, %v726_v5 }
 0x29b PF: > { %s13_s14 = sadd.s32 1, %s1033_s14   ;;  %s1147_s12 = smov %s1029_s13 }
 0x29c   : > { %p10_p5 = scmp.ge.s32.totalorder %s13_s14, 4   ;;  %s1148_s13 = smov %s1150_s15 }
 0x29e   :  { %12 = sbr.rel (!%p10_p5) target bundleno = 2 (0x2), region = 76 }

// kernel: geo_unet_feature_net.38
= control target key start
LH: loop header
LB: loop body
LE: loop exit
PB: predicated region body
PF: predicated region fallthrough
CT: control target
= control target key end

     0   :  { %vm68_vm0 = vcmask 130048   ;;  %vm262_vm1 = vcmask 523264   ;;  %vm538_vm4 = vcmask 261120   ;;  %s1408_s3 = inlined_call_operand.vmem [shape: f32[16,32], index: 3, kind: input, shape index: {}]   ;;  %s1409_s1 = inlined_call_operand.vmem [shape: f32[128,16], index: 1, kind: input, shape index: {}]   ;;  %s1410_s2 = inlined_call_operand.vmem [shape: f32[64,32], index: 2, kind: input, shape index: {}]   ;;  %s1411_s5 = inlined_call_operand.vmem [shape: f32[32,32], index: 5, kind: input, shape index: {}]   ;;  %s1412_s0 = inlined_call_operand.vmem [shape: f32[128,64], index: 0, kind: input, shape index: {}]   ;;  %s1413_s4 = inlined_call_operand.vmem [shape: f32[1,32], index: 4, kind: input, shape index: {}]   ;;  %s1414_s6 = inlined_call_operand.vmem [shape: f32[1,32], index: 6, kind: input, shape index: {}]   ;;  %s1415_s7 = inlined_call_operand.vmem [shape: f32[128,32], index: 7, kind: output, shape index: {}]  }
   0x1   :  { %v66_v0 = vld [vmem:[%s1408_s3] sm:$0xff]  ;;  %v67_v1 = vld [vmem:[%s1408_s3 + $0x8] sm:$0xff]  ;;  %v44_v7 = vld [vmem:[%s1410_s2 + $0x10] sm:$0xff] }
   0x2   :  { %v50_v2 = vld [vmem:[%s1409_s1] sm:$0xff]  ;;  %v1012_v3 = vpack.c.bf16 %v67_v1, %v66_v0  ;;  %v43_v5 = vld [vmem:[%s1410_s2 + $0x8] sm:$0xff]  ;;  %v45_v8 = vld [vmem:[%s1410_s2 + $0x18] sm:$0xff] }
   0x3   :  { %916 = vmatprep.mubr.msk.f32.mxu0 %vm68_vm0, %v50_v2  ;;  %v42_v4 = vld [vmem:[%s1410_s2] sm:$0xff]  ;;  %v51_v9 = vld [vmem:[%s1409_s1 + $0x8] sm:$0xff]  ;;  %v52_v10 = vld [vmem:[%s1409_s1 + $0x10] sm:$0xff]  ;;  %v1020_v11 = vpack.c.bf16 %v45_v8, %v44_v7 }
   0x4   :  { %v1016_v6 = vpack.c.bf16 %v43_v5, %v42_v4  ;;  %1013 = vmatprep.subr.bf16.mxu0 %v1012_v3  ;;  %1040 = vmatprep.subr.bf16.mxu1 %v1012_v3  ;;  %v46_v12 = vld [vmem:[%s1410_s2 + $0x20] sm:$0xff]  ;;  %v47_v13 = vld [vmem:[%s1410_s2 + $0x28] sm:$0xff]  ;;  %v53_v14 = vld [vmem:[%s1409_s1 + $0x18] sm:$0xff] }
   0x5   :  { %1015 = vmatpush3.bf16.msra.mxu0 %v1012_v3  ;;  %1041 = vmatpush3.bf16.msra.mxu1 %v1012_v3  ;;  %v58_v15 = vld [vmem:[%s1409_s1 + $0x40] sm:$0xff]  ;;  %v1024_v17 = vpack.c.bf16 %v47_v13, %v46_v12  ;;  %v59_v18 = vld [vmem:[%s1409_s1 + $0x48] sm:$0xff]  ;;  %v48_v19 = vld [vmem:[%s1410_s2 + $0x30] sm:$0xff] }
   0x6   :  { %1017 = vmatprep.subr.bf16.mxu0 %v1016_v6  ;;  %v54_v16 = vld [vmem:[%s1409_s1 + $0x20] sm:$0xff]  ;;  %928 = vmatprep.mubr.msk.f32.mxu1 %vm68_vm0, %v58_v15  ;;  %v49_v20 = vld [vmem:[%s1410_s2 + $0x38] sm:$0xff]  ;;  %v60_v21 = vld [vmem:[%s1409_s1 + $0x50] sm:$0xff] }
   0x7   :  { %v61_v22 = vld [vmem:[%s1409_s1 + $0x58] sm:$0xff]  ;;  %v55_v23 = vld [vmem:[%s1409_s1 + $0x28] sm:$0xff]  ;;  %v62_v24 = vld [vmem:[%s1409_s1 + $0x60] sm:$0xff]  ;;  %v1028_v26 = vpack.c.bf16 %v49_v20, %v48_v19 }
   0x8   :  { %917 = vmatmul.mubr.msk.f32.vlgmr.msra.gmra.mrb[0].mxu0 %vm68_vm0, %v51_v9  ;;  %929 = vmatmul.mubr.msk.f32.vlgmr.msra.gmra.mrb[0].mxu1 %vm68_vm0, %v59_v18  ;;  %v56_v25 = vld [vmem:[%s1409_s1 + $0x30] sm:$0xff]  ;;  %v527_v27 = vld [vmem:[%s1411_s5] sm:$0xff]  ;;  %v528_v28 = vld [vmem:[%s1411_s5 + $0x8] sm:$0xff] }
   0x9   :  { %1019 = vmatpush3.bf16.msra.mxu0 %v1016_v6  ;;  %919 = vmatprep.mubr.msk.f32.mxu0 %vm68_vm0, %v52_v10  ;;  %v63_v29 = vld [vmem:[%s1409_s1 + $0x68] sm:$0xff]  ;;  %v1032_v30 = vpack.c.bf16 %v528_v28, %v527_v27  ;;  %v57_v31 = vld [vmem:[%s1409_s1 + $0x38] sm:$0xff]  ;;  %v64_v32 = vld [vmem:[%s1409_s1 + $0x70] sm:$0xff] }
   0xa   :  { %1021 = vmatprep.subr.bf16.mxu0 %v1020_v11  ;;  %931 = vmatprep.mubr.msk.f32.mxu1 %vm68_vm0, %v60_v21  ;;  %v26_v33 = vld [vmem:[%s1412_s0] sm:$0xff]  ;;  %v65_v34 = vld [vmem:[%s1409_s1 + $0x78] sm:$0xff]  ;;  %v27_v35 = vld [vmem:[%s1412_s0 + $0x8] sm:$0xff] }
   0xb   :  { %1033 = vmatprep.subr.bf16.mxu1 %v1032_v30  ;;  %v28_v36 = vld [vmem:[%s1412_s0 + $0x10] sm:$0xff]  ;;  %v29_v37 = vld [vmem:[%s1412_s0 + $0x18] sm:$0xff]  ;;  %v30_v38 = vld [vmem:[%s1412_s0 + $0x20] sm:$0xff] }
   0xc   :  { %920 = vmatmul.mubr.msk.f32.gmra.mrb[2].mxu0 %vm68_vm0, %v53_v14  ;;  %932 = vmatmul.mubr.msk.f32.gmra.mrb[2].mxu1 %vm68_vm0, %v61_v22  ;;  %v31_v39 = vld [vmem:[%s1412_s0 + $0x28] sm:$0xff]  ;;  %v32_v40 = vld [vmem:[%s1412_s0 + $0x30] sm:$0xff]  ;;  %v33_v41 = vld [vmem:[%s1412_s0 + $0x38] sm:$0xff] }
   0xd   :  { %1023 = vmatpush3.bf16.msra.mxu0 %v1020_v11  ;;  %922 = vmatprep.mubr.msk.f32.mxu0 %vm68_vm0, %v54_v16  ;;  %v34_v42 = vld [vmem:[%s1412_s0 + $0x40] sm:$0xff]  ;;  %v35_v43 = vld [vmem:[%s1412_s0 + $0x48] sm:$0xff]  ;;  %v36_v44 = vld [vmem:[%s1412_s0 + $0x50] sm:$0xff] }
   0xe   :  { %1025 = vmatprep.subr.bf16.mxu0 %v1024_v17  ;;  %934 = vmatprep.mubr.msk.f32.mxu1 %vm68_vm0, %v62_v24  ;;  %v37_v45 = vld [vmem:[%s1412_s0 + $0x58] sm:$0xff]  ;;  %v38_v46 = vld [vmem:[%s1412_s0 + $0x60] sm:$0xff]  ;;  %v39_v47 = vld [vmem:[%s1412_s0 + $0x68] sm:$0xff] }
   0xf   :  { %1035 = vmatpush3.bf16.msra.mxu1 %v1032_v30  ;;  %v40_v48 = vld [vmem:[%s1412_s0 + $0x70] sm:$0xff]  ;;  %v41_v49 = vld [vmem:[%s1412_s0 + $0x78] sm:$0xff]  ;;  %v1279_v59 = vld [vmem:[%s1413_s4] ss:$0 sm:$0xff] }
  0x10   :  { %923 = vmatmul.mubr.msk.f32.gmra.mrb[4].mxu0 %vm68_vm0, %v55_v23  ;;  %935 = vmatmul.mubr.msk.f32.gmra.mrb[4].mxu1 %vm68_vm0, %v63_v29  ;;  %v529_v50 = vld [vmem:[%s1411_s5 + $0x10] sm:$0xff]  ;;  %v530_v51 = vld [vmem:[%s1411_s5 + $0x18] sm:$0xff] }
  0x11   :  { %1027 = vmatpush3.bf16.msra.mxu0 %v1024_v17  ;;  %925 = vmatprep.mubr.msk.f32.mxu0 %vm68_vm0, %v56_v25  ;;  %v1036_v52 = vpack.c.bf16 %v530_v51, %v529_v50 }
  0x12   :  { %1029 = vmatprep.subr.bf16.mxu0 %v1028_v26  ;;  %937 = vmatprep.mubr.msk.f32.mxu1 %vm68_vm0, %v64_v32 }
  0x13   :  { %1037 = vmatprep.subr.bf16.mxu1 %v1036_v52 }
  0x14   :  { %926 = vmatmul.mubr.msk.f32.gmra.mrb[6].mxu0 %vm68_vm0, %v57_v31  ;;  %938 = vmatmul.mubr.msk.f32.gmra.mrb[6].mxu1 %vm68_vm0, %v65_v34 }
  0x15   :  { %1031 = vmatpush3.bf16.msra.mxu0 %v1028_v26  ;;  %956 = vmatprep.mubr.msk.f32.mxu0 %vm262_vm1, %v26_v33 }
  0x16   :  { %1039 = vmatpush3.bf16.msra.mxu1 %v1036_v52 }
  0x18   :  { %957 = vmatmul.mubr.msk.f32.vlgmr.msra.gmra.mrb[0].mxu0 %vm262_vm1, %v27_v35 }
  0x19   :  { %959 = vmatprep.mubr.msk.f32.mxu0 %vm262_vm1, %v28_v36 }
  0x1c   :  { %960 = vmatmul.mubr.msk.f32.gmra.mrb[2].mxu0 %vm262_vm1, %v29_v37 }
  0x1d   :  { %962 = vmatprep.mubr.msk.f32.mxu0 %vm262_vm1, %v30_v38 }
  0x20   :  { %963 = vmatmul.mubr.msk.f32.gmra.mrb[4].mxu0 %vm262_vm1, %v31_v39 }
  0x21   :  { %965 = vmatprep.mubr.msk.f32.mxu0 %vm262_vm1, %v32_v40 }
  0x24   :  { %966 = vmatmul.mubr.msk.f32.gmra.mrb[6].mxu0 %vm262_vm1, %v33_v41 }
  0x25   :  { %968 = vmatprep.mubr.msk.f32.mxu0 %vm262_vm1, %v34_v42 }
  0x28   :  { %969 = vmatmul.mubr.msk.f32.gmra.mrb[8].mxu0 %vm262_vm1, %v35_v43 }
  0x29   :  { %971 = vmatprep.mubr.msk.f32.mxu0 %vm262_vm1, %v36_v44 }
  0x2c   :  { %972 = vmatmul.mubr.msk.f32.gmra.mrb[10].mxu0 %vm262_vm1, %v37_v45 }
  0x2d   :  { %974 = vmatprep.mubr.msk.f32.mxu0 %vm262_vm1, %v38_v46 }
  0x30   :  { %975 = vmatmul.mubr.msk.f32.gmra.mrb[12].mxu0 %vm262_vm1, %v39_v47 }
  0x31   :  { %977 = vmatprep.mubr.msk.f32.mxu0 %vm262_vm1, %v40_v48 }
  0x34   :  { %978 = vmatmul.mubr.msk.f32.gmra.mrb[14].mxu0 %vm262_vm1, %v41_v49 }
  0xdb   :  { %v930_v53 = vpop.f32.mrb[0].mxu1 }
  0xdc   :  { %v223_v54 = vpop.f32.mrb[1].mxu1 }
  0xdf   :  { %v1268_v55 = vpop.f32.mrb[2].mxu1 }
  0xe0   :  { %v1270_v56 = vpop.f32.mrb[3].mxu1 }
  0xe3   :  { %v1272_v57 = vpop.f32.mrb[4].mxu1 }
  0xe4   :  { %v1274_v58 = vpop.f32.mrb[5].mxu1 }
  0xe7   :  { %v1281_v60 = vpop.f32.mrb[6].mxu1 }
  0xe8   :  { %v1283_v62 = vpop.f32.mrb[7].mxu1 }
  0xeb   :  { %v958_v61 = vpop.f32.mrb[0].mxu0 }
  0xec   :  { %v464_v63 = vadd.f32 %v958_v61, %v1279_v59  ;;  %v377_v0 = vpop.f32.mrb[1].mxu0 }
  0xed   :  { %v463_v1 = vadd.f32 %v1279_v59, %v377_v0 }
  0xee   :  { %v496_v2 = vmul.f32 0.1, %v464_v63  ;;  %vm480_vm2 = vcmp.ge.f32.partialorder %v464_v63, 0.0 }
  0xef   :  { %vm479_vm3 = vcmp.ge.f32.partialorder %v463_v1, 0.0  ;;  %v495_v3 = vmul.f32 0.1, %v463_v1  ;;  %v961_v4 = vpop.f32.mrb[2].mxu0 }
  0xf0   :  { %v466_v5 = vadd.f32 %v961_v4, %v1279_v59  ;;  %v387_v6 = vpop.f32.mrb[3].mxu0  ;;  %v512_v9 = vsel %vm480_vm2, %v464_v63, %v496_v2 }
  0xf1   :  { %v465_v7 = vadd.f32 %v1279_v59, %v387_v6  ;;  %v511_v8 = vsel %vm479_vm3, %v463_v1, %v495_v3 }
  0xf2   :  { %v498_v10 = vmul.f32 0.1, %v466_v5  ;;  %988 = vmatprep.mubr.msk.f32.mxu1 %vm538_vm4, %v511_v8  ;;  %vm482_vm5 = vcmp.ge.f32.partialorder %v466_v5, 0.0 }
  0xf3   :  { %vm481_vm6 = vcmp.ge.f32.partialorder %v465_v7, 0.0  ;;  %v497_v11 = vmul.f32 0.1, %v465_v7  ;;  %v964_v12 = vpop.f32.mrb[4].mxu0  ;;  %989 = vmatmul.mubr.msk.f32.vlgmr.msra.gmra.mrb[8].mxu1 %vm538_vm4, %v512_v9 }
  0xf4   :  { %v468_v13 = vadd.f32 %v964_v12, %v1279_v59  ;;  %v397_v14 = vpop.f32.mrb[5].mxu0  ;;  %v514_v18 = vsel %vm482_vm5, %v466_v5, %v498_v10 }
  0xf5   :  { %v467_v15 = vadd.f32 %v1279_v59, %v397_v14  ;;  %v513_v16 = vsel %vm481_vm6, %v465_v7, %v497_v11 }
  0xf6   :  { %v500_v17 = vmul.f32 0.1, %v468_v13  ;;  %991 = vmatprep.mubr.msk.f32.mxu1 %vm538_vm4, %v513_v16  ;;  %vm484_vm7 = vcmp.ge.f32.partialorder %v468_v13, 0.0 }
  0xf7   :  { %vm483_vm8 = vcmp.ge.f32.partialorder %v467_v15, 0.0  ;;  %v499_v19 = vmul.f32 0.1, %v467_v15  ;;  %v967_v20 = vpop.f32.mrb[6].mxu0  ;;  %992 = vmatmul.mubr.msk.f32.gmra.mrb[10].mxu1 %vm538_vm4, %v514_v18 }
  0xf8   :  { %v470_v21 = vadd.f32 %v967_v20, %v1279_v59  ;;  %v407_v22 = vpop.f32.mrb[7].mxu0  ;;  %v516_v26 = vsel %vm484_vm7, %v468_v13, %v500_v17 }
  0xf9   :  { %v469_v23 = vadd.f32 %v1279_v59, %v407_v22  ;;  %v515_v24 = vsel %vm483_vm8, %v467_v15, %v499_v19 }
  0xfa   :  { %v502_v25 = vmul.f32 0.1, %v470_v21  ;;  %994 = vmatprep.mubr.msk.f32.mxu1 %vm538_vm4, %v515_v24  ;;  %vm486_vm9 = vcmp.ge.f32.partialorder %v470_v21, 0.0 }
  0xfb   :  { %vm485_vm10 = vcmp.ge.f32.partialorder %v469_v23, 0.0  ;;  %v501_v27 = vmul.f32 0.1, %v469_v23  ;;  %v970_v28 = vpop.f32.mrb[8].mxu0  ;;  %995 = vmatmul.mubr.msk.f32.gmra.mrb[12].mxu1 %vm538_vm4, %v516_v26 }
  0xfc   :  { %v423_v29 = vadd.f32 %v970_v28, %v930_v53  ;;  %v417_v30 = vpop.f32.mrb[9].mxu0  ;;  %v518_v34 = vsel %vm486_vm9, %v470_v21, %v502_v25 }
  0xfd   :  { %v418_v31 = vadd.f32 %v417_v30, %v223_v54  ;;  %v517_v32 = vsel %vm485_vm10, %v469_v23, %v501_v27 }
  0xfe   :  { %v472_v33 = vadd.f32 %v1279_v59, %v423_v29  ;;  %997 = vmatprep.mubr.msk.f32.mxu1 %vm538_vm4, %v517_v32 }
  0xff   :  { %v471_v35 = vadd.f32 %v1279_v59, %v418_v31  ;;  %v973_v36 = vpop.f32.mrb[10].mxu0  ;;  %998 = vmatmul.mubr.msk.f32.gmra.mrb[14].mxu1 %vm538_vm4, %v518_v34 }
 0x100   :  { %v504_v37 = vmul.f32 0.1, %v472_v33  ;;  %v433_v38 = vadd.f32 %v973_v36, %v1268_v55  ;;  %v427_v39 = vpop.f32.mrb[11].mxu0  ;;  %vm488_vm12 = vcmp.ge.f32.partialorder %v472_v33, 0.0 }
 0x101   :  { %v503_v40 = vmul.f32 0.1, %v471_v35  ;;  %v428_v41 = vadd.f32 %v427_v39, %v1270_v56  ;;  %vm487_vm11 = vcmp.ge.f32.partialorder %v471_v35, 0.0 }
 0x102   :  { %v474_v42 = vadd.f32 %v1279_v59, %v433_v38  ;;  %v520_v49 = vsel %vm488_vm12, %v472_v33, %v504_v37 }
 0x103   :  { %v473_v43 = vadd.f32 %v1279_v59, %v428_v41  ;;  %v976_v44 = vpop.f32.mrb[12].mxu0  ;;  %v519_v45 = vsel %vm487_vm11, %v471_v35, %v503_v40 }
 0x104   :  { %v506_v46 = vmul.f32 0.1, %v474_v42  ;;  %v443_v47 = vadd.f32 %v976_v44, %v1272_v57  ;;  %v437_v48 = vpop.f32.mrb[13].mxu0  ;;  %1000 = vmatprep.mubr.msk.f32.mxu1 %vm538_vm4, %v519_v45  ;;  %vm490_vm14 = vcmp.ge.f32.partialorder %v474_v42, 0.0 }
 0x105   :  { %v505_v50 = vmul.f32 0.1, %v473_v43  ;;  %v438_v51 = vadd.f32 %v437_v48, %v1274_v58  ;;  %1001 = vmatmul.mubr.msk.f32.gmra.mrb[16].mxu1 %vm538_vm4, %v520_v49  ;;  %vm489_vm13 = vcmp.ge.f32.partialorder %v473_v43, 0.0 }
 0x106   :  { %v476_v52 = vadd.f32 %v1279_v59, %v443_v47  ;;  %v522_v63 = vsel %vm490_vm14, %v474_v42, %v506_v46 }
 0x107   :  { %v475_v53 = vadd.f32 %v1279_v59, %v438_v51  ;;  %v979_v54 = vpop.f32.mrb[14].mxu0  ;;  %v521_v55 = vsel %vm489_vm13, %v473_v43, %v505_v50 }
 0x108   :  { %v508_v56 = vmul.f32 0.1, %v476_v52  ;;  %v453_v57 = vadd.f32 %v979_v54, %v1281_v60  ;;  %v447_v61 = vpop.f32.mrb[15].mxu0  ;;  %1003 = vmatprep.mubr.msk.f32.mxu1 %vm538_vm4, %v521_v55  ;;  %vm492_vm0 = vcmp.ge.f32.partialorder %v476_v52, 0.0 }
 0x109   :  { %v507_v0 = vmul.f32 0.1, %v475_v53  ;;  %v448_v58 = vadd.f32 %v447_v61, %v1283_v62  ;;  %1004 = vmatmul.mubr.msk.f32.gmra.mrb[18].mxu1 %vm538_vm4, %v522_v63  ;;  %vm491_vm15 = vcmp.ge.f32.partialorder %v475_v53, 0.0 }
 0x10a   :  { %v478_v1 = vadd.f32 %v1279_v59, %v453_v57  ;;  %v524_v60 = vsel %vm492_vm0, %v476_v52, %v508_v56 }
 0x10b   :  { %v477_v2 = vadd.f32 %v1279_v59, %v448_v58  ;;  %v523_v3 = vsel %vm491_vm15, %v475_v53, %v507_v0  ;;  %v1326_v59 = vld [vmem:[%s1414_s6] ss:$0 sm:$0xff] }
 0x10c   :  { %v510_v4 = vmul.f32 0.1, %v478_v1  ;;  %1006 = vmatprep.mubr.msk.f32.mxu1 %vm538_vm4, %v523_v3  ;;  %vm494_vm2 = vcmp.ge.f32.partialorder %v478_v1, 0.0 }
 0x10d   :  { %v509_v5 = vmul.f32 0.1, %v477_v2  ;;  %1007 = vmatmul.mubr.msk.f32.gmra.mrb[20].mxu1 %vm538_vm4, %v524_v60  ;;  %vm493_vm1 = vcmp.ge.f32.partialorder %v477_v2, 0.0 }
 0x10e   :  { %v526_v62 = vsel %vm494_vm2, %v478_v1, %v510_v4 }
 0x10f   :  { %v525_v6 = vsel %vm493_vm1, %v477_v2, %v509_v5 }
 0x110   :  { %1009 = vmatprep.mubr.msk.f32.mxu1 %vm538_vm4, %v525_v6 }
 0x111   :  { %1010 = vmatmul.mubr.msk.f32.gmra.mrb[22].mxu1 %vm538_vm4, %v526_v62 }
 0x1c6   :  { %v990_v7 = vpop.f32.mrb[8].mxu1 }
 0x1c7   :  { %v659_v8 = vadd.f32 %v990_v7, %v1326_v59  ;;  %v653_v9 = vpop.f32.mrb[9].mxu1 }
 0x1c8   :  { %v654_v10 = vadd.f32 %v1326_v59, %v653_v9 }
 0x1c9   :  { %vm733_vm3 = vcmp.ge.f32.partialorder %v659_v8, 0.0  ;;  %v749_v11 = vmul.f32 0.1, %v659_v8 }
 0x1ca   :  { %vm732_vm5 = vcmp.ge.f32.partialorder %v654_v10, 0.0  ;;  %v748_v12 = vmul.f32 0.1, %v654_v10  ;;  %v993_v13 = vpop.f32.mrb[10].mxu1 }
 0x1cb   :  { %v765_v14 = vsel %vm733_vm3, %v659_v8, %v749_v11  ;;  %v669_v15 = vadd.f32 %v993_v13, %v1326_v59  ;;  %v663_v16 = vpop.f32.mrb[11].mxu1 }
 0x1cc   :  { %781 = vst.msk [vmem:[%s1415_s7 + $0x8] sm:$0xff] %vm538_vm4, %v765_v14  ;;  %v764_v17 = vsel %vm732_vm5, %v654_v10, %v748_v12  ;;  %v664_v18 = vadd.f32 %v1326_v59, %v663_v16 }
 0x1cd   :  { %780 = vst.msk [vmem:[%s1415_s7] sm:$0xff] %vm538_vm4, %v764_v17  ;;  %vm735_vm6 = vcmp.ge.f32.partialorder %v669_v15, 0.0  ;;  %v751_v19 = vmul.f32 0.1, %v669_v15 }
 0x1ce   :  { %vm734_vm7 = vcmp.ge.f32.partialorder %v664_v18, 0.0  ;;  %v750_v20 = vmul.f32 0.1, %v664_v18  ;;  %v996_v21 = vpop.f32.mrb[12].mxu1 }
 0x1cf   :  { %v767_v22 = vsel %vm735_vm6, %v669_v15, %v751_v19  ;;  %v679_v23 = vadd.f32 %v996_v21, %v1326_v59  ;;  %v673_v24 = vpop.f32.mrb[13].mxu1 }
 0x1d0   :  { %783 = vst.msk [vmem:[%s1415_s7 + $0x18] sm:$0xff] %vm538_vm4, %v767_v22  ;;  %v766_v25 = vsel %vm734_vm7, %v664_v18, %v750_v20  ;;  %v674_v26 = vadd.f32 %v1326_v59, %v673_v24 }
 0x1d1   :  { %782 = vst.msk [vmem:[%s1415_s7 + $0x10] sm:$0xff] %vm538_vm4, %v766_v25  ;;  %vm737_vm8 = vcmp.ge.f32.partialorder %v679_v23, 0.0  ;;  %v753_v27 = vmul.f32 0.1, %v679_v23 }
 0x1d2   :  { %vm736_vm9 = vcmp.ge.f32.partialorder %v674_v26, 0.0  ;;  %v752_v28 = vmul.f32 0.1, %v674_v26  ;;  %v999_v29 = vpop.f32.mrb[14].mxu1 }
 0x1d3   :  { %v769_v30 = vsel %vm737_vm8, %v679_v23, %v753_v27  ;;  %v689_v31 = vadd.f32 %v999_v29, %v1326_v59  ;;  %v683_v32 = vpop.f32.mrb[15].mxu1 }
 0x1d4   :  { %785 = vst.msk [vmem:[%s1415_s7 + $0x28] sm:$0xff] %vm538_vm4, %v769_v30  ;;  %v768_v33 = vsel %vm736_vm9, %v674_v26, %v752_v28  ;;  %v684_v34 = vadd.f32 %v1326_v59, %v683_v32 }
 0x1d5   :  { %784 = vst.msk [vmem:[%s1415_s7 + $0x20] sm:$0xff] %vm538_vm4, %v768_v33  ;;  %vm739_vm10 = vcmp.ge.f32.partialorder %v689_v31, 0.0  ;;  %v755_v35 = vmul.f32 0.1, %v689_v31 }
 0x1d6   :  { %vm738_vm11 = vcmp.ge.f32.partialorder %v684_v34, 0.0  ;;  %v754_v36 = vmul.f32 0.1, %v684_v34 }
 0x1d7   :  { %v771_v37 = vsel %vm739_vm10, %v689_v31, %v755_v35 }
 0x1d8   :  { %787 = vst.msk [vmem:[%s1415_s7 + $0x38] sm:$0xff] %vm538_vm4, %v771_v37  ;;  %v770_v38 = vsel %vm738_vm11, %v684_v34, %v754_v36  ;;  %v1002_v39 = vpop.f32.mrb[16].mxu1 }
 0x1d9   :  { %786 = vst.msk [vmem:[%s1415_s7 + $0x30] sm:$0xff] %vm538_vm4, %v770_v38  ;;  %v699_v40 = vadd.f32 %v1002_v39, %v1326_v59  ;;  %v693_v41 = vpop.f32.mrb[17].mxu1 }
 0x1da   :  { %v694_v42 = vadd.f32 %v1326_v59, %v693_v41 }
 0x1db   :  { %vm741_vm12 = vcmp.ge.f32.partialorder %v699_v40, 0.0  ;;  %v757_v43 = vmul.f32 0.1, %v699_v40 }
 0x1dc   :  { %vm740_vm13 = vcmp.ge.f32.partialorder %v694_v42, 0.0  ;;  %v756_v44 = vmul.f32 0.1, %v694_v42  ;;  %v1005_v45 = vpop.f32.mrb[18].mxu1 }
 0x1dd   :  { %v773_v46 = vsel %vm741_vm12, %v699_v40, %v757_v43  ;;  %v709_v47 = vadd.f32 %v1005_v45, %v1326_v59  ;;  %v703_v48 = vpop.f32.mrb[19].mxu1 }
 0x1de   :  { %789 = vst.msk [vmem:[%s1415_s7 + $0x48] sm:$0xff] %vm538_vm4, %v773_v46  ;;  %v772_v49 = vsel %vm740_vm13, %v694_v42, %v756_v44  ;;  %v704_v50 = vadd.f32 %v1326_v59, %v703_v48 }
 0x1df   :  { %788 = vst.msk [vmem:[%s1415_s7 + $0x40] sm:$0xff] %vm538_vm4, %v772_v49  ;;  %vm743_vm14 = vcmp.ge.f32.partialorder %v709_v47, 0.0  ;;  %v759_v51 = vmul.f32 0.1, %v709_v47 }
 0x1e0   :  { %vm742_vm15 = vcmp.ge.f32.partialorder %v704_v50, 0.0  ;;  %v758_v52 = vmul.f32 0.1, %v704_v50  ;;  %v1008_v53 = vpop.f32.mrb[20].mxu1 }
 0x1e1   :  { %v775_v54 = vsel %vm743_vm14, %v709_v47, %v759_v51  ;;  %v719_v55 = vadd.f32 %v1008_v53, %v1326_v59  ;;  %v713_v56 = vpop.f32.mrb[21].mxu1 }
 0x1e2   :  { %791 = vst.msk [vmem:[%s1415_s7 + $0x58] sm:$0xff] %vm538_vm4, %v775_v54  ;;  %v774_v57 = vsel %vm742_vm15, %v704_v50, %v758_v52  ;;  %v714_v61 = vadd.f32 %v1326_v59, %v713_v56 }
 0x1e3   :  { %790 = vst.msk [vmem:[%s1415_s7 + $0x50] sm:$0xff] %vm538_vm4, %v774_v57  ;;  %vm745_vm0 = vcmp.ge.f32.partialorder %v719_v55, 0.0  ;;  %v761_v63 = vmul.f32 0.1, %v719_v55 }
 0x1e4   :  { %vm744_vm1 = vcmp.ge.f32.partialorder %v714_v61, 0.0  ;;  %v760_v0 = vmul.f32 0.1, %v714_v61  ;;  %v1011_v58 = vpop.f32.mrb[22].mxu1 }
 0x1e5   :  { %v777_v1 = vsel %vm745_vm0, %v719_v55, %v761_v63  ;;  %v729_v2 = vadd.f32 %v1011_v58, %v1326_v59  ;;  %v723_v3 = vpop.f32.mrb[23].mxu1 }
 0x1e6   :  { %793 = vst.msk [vmem:[%s1415_s7 + $0x68] sm:$0xff] %vm538_vm4, %v777_v1  ;;  %v776_v4 = vsel %vm744_vm1, %v714_v61, %v760_v0  ;;  %v724_v60 = vadd.f32 %v1326_v59, %v723_v3 }
 0x1e7   :  { %792 = vst.msk [vmem:[%s1415_s7 + $0x60] sm:$0xff] %vm538_vm4, %v776_v4  ;;  %vm747_vm2 = vcmp.ge.f32.partialorder %v729_v2, 0.0  ;;  %v763_v5 = vmul.f32 0.1, %v729_v2 }
 0x1e8   :  { %vm746_vm3 = vcmp.ge.f32.partialorder %v724_v60, 0.0  ;;  %v762_v6 = vmul.f32 0.1, %v724_v60 }
 0x1e9   :  { %v779_v62 = vsel %vm747_vm2, %v729_v2, %v763_v5 }
 0x1ea   :  { %795 = vst.msk [vmem:[%s1415_s7 + $0x78] sm:$0xff] %vm538_vm4, %v779_v62  ;;  %v778_v7 = vsel %vm746_vm3, %v724_v60, %v762_v6 }
 0x1eb   :  { %794 = vst.msk [vmem:[%s1415_s7 + $0x70] sm:$0xff] %vm538_vm4, %v778_v7 }

// kernel: geo_unet_feature_net.39
= control target key start
LH: loop header
LB: loop body
LE: loop exit
PB: predicated region body
PF: predicated region fallthrough
CT: control target
= control target key end

     0   :  { %s1661_s24 = smov 0   ;;  %s1663_s25 = smov 0   ;;  %s1823_s0 = inlined_call_operand.vmem [shape: f32[2,64,8], index: 0, kind: input, shape index: {}]   ;;  %s1824_s1 = inlined_call_operand.vmem [shape: f32[2,64,8], index: 1, kind: input, shape index: {}]   ;;  %s1825_s2 = inlined_call_operand.vmem [shape: bf16[2,64,33], index: 2, kind: input, shape index: {}]   ;;  %s1826_s3 = inlined_call_operand.vmem [shape: f32[32,32], index: 3, kind: input, shape index: {}]   ;;  %s1827_s4 = inlined_call_operand.vmem [shape: f32[1,32], index: 4, kind: input, shape index: {}]   ;;  %s1828_s5 = inlined_call_operand.vmem [shape: f32[32,32], index: 5, kind: input, shape index: {}]   ;;  %s1829_s6 = inlined_call_operand.vmem [shape: f32[1,32], index: 6, kind: input, shape index: {}]   ;;  %s1830_s7 = inlined_call_operand.vmem [shape: f32[2,64,32], index: 7, kind: output, shape index: {}]  }
   0x1   :  { %s1665_s26 = smov 0  }
   0x2 LB: > { %s36_s27 = sadd.s32 1, %s1613_s25  ;;  %p1298_p0 = scmp.ge.s32.totalorder %s1617_s26, 1  ;;  %s1617_s26 = sphi %s1665_s26, %s17_s26   ;;  %s1613_s25 = sphi %s1663_s25, %s1834_s25   ;;  %s1609_s24 = sphi %s1661_s24, %s1833_s24  }
   0x3   : > { %p38_p1 = scmp.ge.s32.totalorder %s36_s27, 2  ;;  %p285_p2 = scmp.lt.s32.totalorder %s1617_s26, 3 }
   0x5   : > { %s1836_s27 = smov (%p38_p1, %s36_s27), 0  ;;  %p286_p3 = pnand %p1298_p0, %p285_p2 }
   0x6   : > { %p336_p4 = scmp.lt.s32.totalorder (!%p286_p3), %s1609_s24, 1  ;;  %vm403_vm0 = vcmask (!%p286_p3), 64512   ;;  %vm370_vm2 = vcmask (!%p286_p3), 269312   ;;  %v1619_v25 = vmov (!%p286_p3), 0.0   ;;  %vm697_vm3 = vcmask (!%p286_p3), 523264  }
   0x7   : > { %289 = sbr.rel (%p286_p3) target bundleno = 1119 (0x45f), region = 48  ;;  %vm1690_vm1 = vmpackc.low (!%p286_p3), %vm403_vm0, %vm403_vm0  ;;  %373 = vst.msk [vmem:[#allocation2 + $0x10] sm:$0xff] (!%p286_p3), %vm370_vm2, %v1619_v25  ;;  %vm878_vm4 = vcmask (!%p286_p3), 261120  }
   0x8   : > { %371 = vst.msk [vmem:[#allocation2] sm:$0xff] (!%p286_p3), %vm370_vm2, %v1619_v25  ;;  %372 = vst.msk [vmem:[#allocation2 + $0x8] sm:$0xff] (!%p286_p3), %vm370_vm2, %v1619_v25 }
   0x9   : > { %374 = vst.msk [vmem:[#allocation2 + $0x18] sm:$0xff] (!%p286_p3), %vm370_vm2, %v1619_v25  ;;  %375 = vst.msk [vmem:[#allocation2 + $0x20] sm:$0xff] (!%p286_p3), %vm370_vm2, %v1619_v25 }
   0xa   : > { %376 = vst.msk [vmem:[#allocation2 + $0x28] sm:$0xff] (!%p286_p3), %vm370_vm2, %v1619_v25  ;;  %377 = vst.msk [vmem:[#allocation2 + $0x30] sm:$0xff] (!%p286_p3), %vm370_vm2, %v1619_v25 }
   0xb   : > { %378 = vst.msk [vmem:[#allocation2 + $0x38] sm:$0xff] (!%p286_p3), %vm370_vm2, %v1619_v25 }
   0xe   : > { %s1838_s24 = smov (!%p336_p4, %s1609_s24), 1 }
   0xf   : > { %s1682_s28 = sshll.u32 %s1838_s24, 6  ;;  %s1353_s12 = sshll.u32 %s1838_s24, 5 }
  0x10   : > { %s349_s8 = scalar_lea.vmem %s1824_s1, %s1682_s28  ;;  %s1698_s11 = scalar_lea.vmem %s1823_s0, %s1682_s28 }
  0x11   : > { %v379_v1 = vld [vmem:[%s349_s8] sm:$0xff]  ;;  %v380_v2 = vld [vmem:[%s349_s8 + $0x8] sm:$0xff]  ;;  %v381_v3 = vld [vmem:[%s349_s8 + $0x10] sm:$0xff]  ;;  %s354_s15 = scalar_lea.vmem %s1825_s2, %s1353_s12  ;;  %s363_s19 = scalar_lea.vmem %s1830_s7, %s1682_s28 }
  0x12   : > { %v1487_v4 = vpack.c.bf16 %v380_v2, %v379_v1  ;;  %v382_v5 = vld [vmem:[%s349_s8 + $0x18] sm:$0xff]  ;;  %v395_v7 = vld [vmem:[%s1698_s11] sm:$0xff]  ;;  %v384_v9 = vld [vmem:[%s349_s8 + $0x28] sm:$0xff] }
  0x13   : > { %v1493_v6 = vpack.c.bf16 %v382_v5, %v381_v3  ;;  %1419 = vmatprep.mubr.msk.f32.mxu0 %vm403_vm0, %v395_v7  ;;  %v383_v8 = vld [vmem:[%s349_s8 + $0x20] sm:$0xff]  ;;  %v385_v11 = vld [vmem:[%s349_s8 + $0x30] sm:$0xff]  ;;  %v386_v12 = vld [vmem:[%s349_s8 + $0x38] sm:$0xff] }
  0x14   : > { %1489 = vmatprep.subr.msk.bf16.mxu0 %vm1690_vm1, %v1487_v4  ;;  %v1499_v10 = vpack.c.bf16 %v384_v9, %v383_v8  ;;  %v1505_v13 = vpack.c.bf16 %v386_v12, %v385_v11  ;;  %v396_v14 = vld [vmem:[%s1698_s11 + $0x8] sm:$0xff]  ;;  %v397_v15 = vld [vmem:[%s1698_s11 + $0x10] sm:$0xff]  ;;  %v398_v16 = vld [vmem:[%s1698_s11 + $0x18] sm:$0xff] }
  0x15   : > { %1492 = vmatpush3.bf16.xpose.msk.msra.mxu0 %vm1690_vm1, %v1487_v4  ;;  %v399_v17 = vld [vmem:[%s1698_s11 + $0x20] sm:$0xff]  ;;  %v400_v18 = vld [vmem:[%s1698_s11 + $0x28] sm:$0xff]  ;;  %v401_v19 = vld [vmem:[%s1698_s11 + $0x30] sm:$0xff] }
  0x16   : > { %1495 = vmatprep.subr.msk.bf16.mxu0 %vm1690_vm1, %v1493_v6  ;;  %v402_v20 = vld [vmem:[%s1698_s11 + $0x38] sm:$0xff]  ;;  %v1559_v21 = vld [vmem:[%s354_s15] sm:$0xff]   ;;  %v1560_v22 = vld [vmem:[%s354_s15 + $0x8] sm:$0xff]  }
  0x17   : > { %1431 = vmatprep.subr.bf16.mxu1 %v1559_v21  ;;  %v1561_v23 = vld [vmem:[%s354_s15 + $0x10] sm:$0xff]   ;;  %v1562_v24 = vld [vmem:[%s354_s15 + $0x18] sm:$0xff]  }
  0x18   : > { %1432 = vmatpush3.bf16.msra.mxu1 %v1559_v21 }
  0x19   : > { %1433 = vmatprep.subr.bf16.mxu1 %v1560_v22 }
  0x1c   : > { %1434 = vmatpush3.bf16.msra.mxu1 %v1560_v22 }
  0x1d   : > { %1498 = vmatpush3.bf16.xpose.msk.msra.mxu0 %vm1690_vm1, %v1493_v6  ;;  %1435 = vmatprep.subr.bf16.mxu1 %v1561_v23 }
  0x1e   : > { %1501 = vmatprep.subr.msk.bf16.mxu0 %vm1690_vm1, %v1499_v10 }
  0x20   : > { %1436 = vmatpush3.bf16.msra.mxu1 %v1561_v23 }
  0x21   : > { %1437 = vmatprep.subr.bf16.mxu1 %v1562_v24 }
  0x24   : > { %1438 = vmatpush3.bf16.msra.mxu1 %v1562_v24 }
  0x25   : > { %1504 = vmatpush3.bf16.xpose.msk.msra.mxu0 %vm1690_vm1, %v1499_v10 }
  0x26   : > { %1507 = vmatprep.subr.msk.bf16.mxu0 %vm1690_vm1, %v1505_v13 }
  0x2d   : > { %1510 = vmatpush3.bf16.xpose.msk.msra.mxu0 %vm1690_vm1, %v1505_v13 }
  0x34   : > { %1420 = vmatmul.mubr.msk.f32.vlgmr.msra.gmra.mrb[0].mxu0 %vm403_vm0, %v396_v14 }
  0x35   : > { %1422 = vmatprep.mubr.msk.f32.mxu0 %vm403_vm0, %v397_v15 }
  0x38   : > { %1423 = vmatmul.mubr.msk.f32.gmra.mrb[2].mxu0 %vm403_vm0, %v398_v16 }
  0x39   : > { %1425 = vmatprep.mubr.msk.f32.mxu0 %vm403_vm0, %v399_v17 }
  0x3c   : > { %1426 = vmatmul.mubr.msk.f32.gmra.mrb[4].mxu0 %vm403_vm0, %v400_v18 }
  0x3d   : > { %1428 = vmatprep.mubr.msk.f32.mxu0 %vm403_vm0, %v401_v19 }
  0x40   : > { %1429 = vmatmul.mubr.msk.f32.gmra.mrb[6].mxu0 %vm403_vm0, %v402_v20 }
 0x107   : > { %v1421_v26 = vpop.f32.mrb[0].mxu0 }
 0x108   : > { %v558_v27 = vmax.f32 %v1421_v26, 0.0  ;;  %v518_v28 = vpop.f32.mrb[1].mxu0 }
 0x109   : > { %v557_v29 = vmax.f32 %v518_v28, 0.0 }
 0x10a   : > { %v566_v30 = vmul.f32 -0.5, %v558_v27 }
 0x10b   : > { %v565_v31 = vmul.f32 -0.5, %v557_v29  ;;  %v1424_v32 = vpop.f32.mrb[2].mxu0 }
 0x10c   : > { %v575_v33 = vmul.f32 1.442695, %v566_v30  ;;  %v560_v34 = vmax.f32 %v1424_v32, 0.0  ;;  %v528_v35 = vpop.f32.mrb[3].mxu0 }
 0x10d   : > { %v573_v36 = vmul.f32 1.442695, %v565_v31  ;;  %v559_v37 = vmax.f32 %v528_v35, 0.0 }
 0x10e   : > { %1563 = vpow2.f32 %v575_v33  ;;  %v568_v38 = vmul.f32 -0.5, %v560_v34 }
 0x10f   : > { %1565 = vpow2.f32 %v573_v36  ;;  %v567_v39 = vmul.f32 -0.5, %v559_v37  ;;  %v1427_v40 = vpop.f32.mrb[4].mxu0 }
 0x110   : > { %v579_v41 = vmul.f32 1.442695, %v568_v38  ;;  %v562_v42 = vmax.f32 %v1427_v40, 0.0  ;;  %v538_v43 = vpop.f32.mrb[5].mxu0 }
 0x111   : > { %v577_v44 = vmul.f32 1.442695, %v567_v39  ;;  %v561_v45 = vmax.f32 %v538_v43, 0.0 }
 0x112   : > { %1567 = vpow2.f32 %v579_v41  ;;  %v570_v46 = vmul.f32 -0.5, %v562_v42 }
 0x113   : > { %1569 = vpow2.f32 %v577_v44  ;;  %v569_v47 = vmul.f32 -0.5, %v561_v45  ;;  %v1430_v48 = vpop.f32.mrb[6].mxu0 }
 0x114   : > { %v583_v49 = vmul.f32 1.442695, %v570_v46  ;;  %v564_v50 = vmax.f32 %v1430_v48, 0.0  ;;  %v548_v51 = vpop.f32.mrb[7].mxu0 }
 0x115   : > { %v581_v52 = vmul.f32 1.442695, %v569_v47  ;;  %v563_v53 = vmax.f32 %v548_v51, 0.0 }
 0x116   : > { %1571 = vpow2.f32 %v583_v49  ;;  %v572_v54 = vmul.f32 -0.5, %v564_v50 }
 0x117   : > { %1573 = vpow2.f32 %v581_v52  ;;  %v571_v55 = vmul.f32 -0.5, %v563_v53 }
 0x118   : > { %v1564_v56 = vpop.eup %1563  ;;  %v587_v57 = vmul.f32 1.442695, %v572_v54 }
 0x119   : > { %v1566_v58 = vpop.eup %1565  ;;  %v585_v59 = vmul.f32 1.442695, %v571_v55  ;;  %v590_v60 = vmul.f32 %v1564_v56, %v1564_v56  ;;  %v646_v8 = vmul.f32 0.34, %v1564_v56 }
 0x11a   : > { %1575 = vpow2.f32 %v587_v57  ;;  %v589_v61 = vmul.f32 %v1566_v58, %v1566_v58  ;;  %v645_v13 = vmul.f32 0.34, %v1566_v58 }
 0x11b   : > { %1577 = vpow2.f32 %v585_v59  ;;  %v598_v62 = vmul.f32 %v590_v60, %v590_v60 }
 0x11c   : > { %v1568_v63 = vpop.eup %1567  ;;  %v597_v0 = vmul.f32 %v589_v61, %v589_v61 }
 0x11d   : > { %v1570_v1 = vpop.eup %1569  ;;  %v592_v2 = vmul.f32 %v1568_v63, %v1568_v63  ;;  %v606_v3 = vmul.f32 %v598_v62, %v598_v62  ;;  %v630_v12 = vmul.f32 0.33, %v598_v62  ;;  %v648_v18 = vmul.f32 0.34, %v1568_v63 }
 0x11e   : > { %v591_v4 = vmul.f32 %v1570_v1, %v1570_v1  ;;  %v605_v5 = vmul.f32 %v597_v0, %v597_v0  ;;  %v629_v21 = vmul.f32 0.33, %v597_v0  ;;  %v647_v43 = vmul.f32 0.34, %v1570_v1 }
 0x11f   : > { %v600_v6 = vmul.f32 %v592_v2, %v592_v2  ;;  %v614_v7 = vmul.f32 %v606_v3, %v606_v3 }
 0x120   : > { %v1572_v9 = vpop.eup %1571  ;;  %v599_v10 = vmul.f32 %v591_v4, %v591_v4  ;;  %v613_v11 = vmul.f32 %v605_v5, %v605_v5 }
 0x121   : > { %v1574_v14 = vpop.eup %1573  ;;  %v594_v15 = vmul.f32 %v1572_v9, %v1572_v9  ;;  %v622_v16 = vmul.f32 0.33, %v614_v7  ;;  %v608_v17 = vmul.f32 %v600_v6, %v600_v6  ;;  %v632_v26 = vmul.f32 0.33, %v600_v6 }
 0x122   : > { %v593_v19 = vmul.f32 %v1574_v14, %v1574_v14  ;;  %v621_v20 = vmul.f32 0.33, %v613_v11  ;;  %v607_v22 = vmul.f32 %v599_v10, %v599_v10  ;;  %v631_v31 = vmul.f32 0.33, %v599_v10 }
 0x123   : > { %v602_v23 = vmul.f32 %v594_v15, %v594_v15  ;;  %v638_v24 = vadd.f32 %v630_v12, %v622_v16  ;;  %v616_v25 = vmul.f32 %v608_v17, %v608_v17  ;;  %v650_v58 = vmul.f32 0.34, %v1572_v9  ;;  %v867_v15 = vld [vmem:[%s1826_s3] sm:$0xff]  ;;  %v868_v16 = vld [vmem:[%s1826_s3 + $0x8] sm:$0xff]  ;;  %v869_v17 = vld [vmem:[%s1826_s3 + $0x10] sm:$0xff] }
 0x124   : > { %v1576_v27 = vpop.eup %1575  ;;  %v601_v28 = vmul.f32 %v593_v19, %v593_v19  ;;  %v637_v29 = vadd.f32 %v629_v21, %v621_v20  ;;  %v615_v30 = vmul.f32 %v607_v22, %v607_v22  ;;  %v649_v62 = vmul.f32 0.34, %v1574_v14  ;;  %v870_v19 = vld [vmem:[%s1826_s3 + $0x18] sm:$0xff]  ;;  %v663_v21 = vld [vmem:[#allocation2 + $0x10] sm:$0xff]  ;;  %v661_v22 = vld [vmem:[#allocation2] sm:$0xff] }
 0x125   : > { %v1578_v32 = vpop.eup %1577  ;;  %v596_v33 = vmul.f32 %v1576_v27, %v1576_v27  ;;  %v654_v34 = vadd.f32 %v646_v8, %v638_v24  ;;  %v624_v35 = vmul.f32 0.33, %v616_v25  ;;  %v610_v36 = vmul.f32 %v602_v23, %v602_v23  ;;  %v664_v24 = vld [vmem:[#allocation2 + $0x18] sm:$0xff] }
 0x126   : > { %v595_v37 = vmul.f32 %v1578_v32, %v1578_v32  ;;  %v653_v38 = vadd.f32 %v645_v13, %v637_v29  ;;  %v623_v39 = vmul.f32 0.33, %v615_v30  ;;  %v609_v40 = vmul.f32 %v601_v28, %v601_v28 }
 0x127   : > { %v604_v41 = vmul.f32 %v596_v33, %v596_v33  ;;  %v640_v42 = vadd.f32 %v632_v26, %v624_v35  ;;  %v618_v44 = vmul.f32 %v610_v36, %v610_v36  ;;  %v634_v51 = vmul.f32 0.33, %v602_v23  ;;  %v667_v33 = vld [vmem:[#allocation2 + $0x30] sm:$0xff]  ;;  %v668_v36 = vld [vmem:[#allocation2 + $0x38] sm:$0xff] }
 0x128   : > { %v603_v45 = vmul.f32 %v595_v37, %v595_v37  ;;  %v669_v46 = vpack.c.bf16 %v654_v34, %v653_v38  ;;  %v639_v47 = vadd.f32 %v631_v31, %v623_v39  ;;  %v617_v48 = vmul.f32 %v609_v40, %v609_v40  ;;  %v665_v34 = vld [vmem:[#allocation2 + $0x20] sm:$0xff]  ;;  %v666_v39 = vld [vmem:[#allocation2 + $0x28] sm:$0xff] }
 0x129   : > { %v656_v49 = vadd.f32 %v648_v18, %v640_v42  ;;  %v626_v50 = vmul.f32 0.33, %v618_v44  ;;  %v612_v52 = vmul.f32 %v604_v41, %v604_v41  ;;  %v633_v55 = vmul.f32 0.33, %v601_v28 }
 0x12a   : > { %1439 = vmatprep.mubr.msk.bf16.mxu1 %vm697_vm3, %v669_v46  ;;  %v655_v53 = vadd.f32 %v647_v43, %v639_v47  ;;  %v625_v54 = vmul.f32 0.33, %v617_v48  ;;  %v611_v56 = vmul.f32 %v603_v45, %v603_v45  ;;  %v636_v2 = vmul.f32 0.33, %v604_v41 }
 0x12b   : > { %v642_v57 = vadd.f32 %v634_v51, %v626_v50  ;;  %v620_v59 = vmul.f32 %v612_v52, %v612_v52  ;;  %v635_v5 = vmul.f32 0.33, %v603_v45  ;;  %v652_v7 = vmul.f32 0.34, %v1576_v27  ;;  %v662_v27 = vld [vmem:[#allocation2 + $0x8] sm:$0xff] }
 0x12c   : > { %v670_v60 = vpack.c.bf16 %v656_v49, %v655_v53  ;;  %v641_v61 = vadd.f32 %v633_v55, %v625_v54  ;;  %v619_v63 = vmul.f32 %v611_v56, %v611_v56  ;;  %v651_v11 = vmul.f32 0.34, %v1578_v32 }
 0x12d   : > { %v658_v0 = vadd.f32 %v650_v58, %v642_v57  ;;  %v628_v1 = vmul.f32 0.33, %v620_v59  ;;  %v1620_v14 = vmov 32   ;;  %v1511_v18 = vpack.c.bf16 %v868_v16, %v867_v15 }
 0x12e   : > { %1440 = vmatmul.mubr.msk.bf16.vlgmr.msra.gmra.mrb[0].mxu1 %vm697_vm3, %v670_v60  ;;  %v657_v3 = vadd.f32 %v649_v62, %v641_v61  ;;  %v627_v4 = vmul.f32 0.33, %v619_v63  ;;  %1558 = vset.pattern.permute.xlu1 %v1620_v14  ;;  %v1515_v20 = vpack.c.bf16 %v870_v19, %v869_v17 }
 0x12f   : > { %v644_v6 = vadd.f32 %v636_v2, %v628_v1  ;;  %1557 = vset.pattern.permute.xlu0 %v1620_v14  ;;  %1512 = vmatprep.subr.bf16.mxu1 %v1511_v18 }
 0x130   : > { %v671_v8 = vpack.c.bf16 %v658_v0, %v657_v3  ;;  %v643_v10 = vadd.f32 %v635_v5, %v627_v4  ;;  %1514 = vmatpush3.bf16.msra.mxu1 %v1511_v18  ;;  %v1032_v5 = vld [vmem:[%s1828_s5] sm:$0xff] }
 0x131   : > { %v660_v12 = vadd.f32 %v652_v7, %v644_v6  ;;  %1516 = vmatprep.subr.bf16.mxu1 %v1515_v20  ;;  %v1033_v6 = vld [vmem:[%s1828_s5 + $0x8] sm:$0xff] }
 0x132   : > { %1443 = vmatprep.mubr.msk.bf16.mxu1 %vm697_vm3, %v671_v8  ;;  %v659_v9 = vadd.f32 %v651_v11, %v643_v10  ;;  %v1519_v7 = vpack.c.bf16 %v1033_v6, %v1032_v5 }
 0x134   : > { %v672_v13 = vpack.c.bf16 %v660_v12, %v659_v9  ;;  %1518 = vmatpush3.bf16.msra.mxu1 %v1515_v20  ;;  %1520 = vmatprep.subr.bf16.mxu0 %v1519_v7 }
 0x135   : > { %1527 = vmatprep.subr.bf16.mxu1 %v1519_v7  ;;  %1522 = vmatpush3.bf16.msra.mxu0 %v1519_v7 }
 0x136   : > { %1444 = vmatmul.mubr.msk.bf16.gmra.mrb[4].mxu1 %vm697_vm3, %v672_v13 }
 0x201   : > { %v1441_v23 = vpop.f32.mrb[0].mxu1 }
 0x202   : > { %v777_v25 = vadd.f32 %v1441_v23, %v663_v21  ;;  %v744_v26 = vpop.f32.mrb[1].mxu1 }
 0x203   : > { %v775_v28 = vadd.f32 %v744_v26, %v661_v22  ;;  %v1442_v29 = vpop.f32.mrb[2].mxu1 }
 0x204   : > { %786 = vst.msk [vmem:[#allocation2 + $0x10] sm:$0xff] %vm370_vm2, %v777_v25  ;;  %v778_v30 = vadd.f32 %v1442_v29, %v664_v24  ;;  %v747_v31 = vpop.f32.mrb[3].mxu1  ;;  %v1034_v24 = vld [vmem:[%s1828_s5 + $0x10] sm:$0xff]  ;;  %v1035_v25 = vld [vmem:[%s1828_s5 + $0x18] sm:$0xff] }
 0x205   : > { %784 = vst.msk [vmem:[#allocation2] sm:$0xff] %vm370_vm2, %v775_v28  ;;  %v776_v32 = vadd.f32 %v747_v31, %v662_v27  ;;  %v1523_v26 = vpack.c.bf16 %v1035_v25, %v1034_v24  ;;  %v1331_v27 = vld [vmem:[%s1827_s4] ss:$0 sm:$0xff] }
 0x206   : > { %787 = vst.msk [vmem:[#allocation2 + $0x18] sm:$0xff] %vm370_vm2, %v778_v30 }
 0x207   : > { %785 = vst.msk [vmem:[#allocation2 + $0x8] sm:$0xff] %vm370_vm2, %v776_v32  ;;  %1524 = vmatprep.subr.bf16.mxu0 %v1523_v26 }
 0x208   : > { %1526 = vmatpush3.bf16.msra.mxu0 %v1523_v26 }
 0x209   : > { %v1445_v35 = vpop.f32.mrb[4].mxu1 }
 0x20a   : > { %v781_v37 = vadd.f32 %v1445_v35, %v667_v33  ;;  %v760_v38 = vpop.f32.mrb[5].mxu1 }
 0x20b   : > { %v779_v40 = vadd.f32 %v760_v38, %v665_v34  ;;  %v1446_v41 = vpop.f32.mrb[6].mxu1  ;;  %v797_v42 = vld [vmem:[#allocation2 + $0x10] sm:$0xff] }
 0x20c   : > { %790 = vst.msk [vmem:[#allocation2 + $0x30] sm:$0xff] %vm370_vm2, %v781_v37  ;;  %v782_v43 = vadd.f32 %v1446_v41, %v668_v36  ;;  %v763_v44 = vpop.f32.mrb[7].mxu1  ;;  %v805_v45 = vadd.f32 1e-09, %v797_v42  ;;  %v795_v46 = vld [vmem:[#allocation2] sm:$0xff] }
 0x20d   : > { %788 = vst.msk [vmem:[#allocation2 + $0x20] sm:$0xff] %vm370_vm2, %v779_v40  ;;  %v780_v47 = vadd.f32 %v763_v44, %v666_v39  ;;  %v803_v48 = vadd.f32 1e-09, %v795_v46  ;;  %v798_v49 = vld [vmem:[#allocation2 + $0x18] sm:$0xff] }
 0x20e   : > { %791 = vst.msk [vmem:[#allocation2 + $0x38] sm:$0xff] %vm370_vm2, %v782_v43  ;;  %1579 = vrcp.f32 %v805_v45  ;;  %v806_v50 = vadd.f32 1e-09, %v798_v49  ;;  %v796_v51 = vld [vmem:[#allocation2 + $0x8] sm:$0xff] }
 0x20f   : > { %789 = vst.msk [vmem:[#allocation2 + $0x28] sm:$0xff] %vm370_vm2, %v780_v47  ;;  %1581 = vrcp.f32 %v803_v48  ;;  %v804_v52 = vadd.f32 1e-09, %v796_v51 }
 0x210   : > { %1583 = vrcp.f32 %v806_v50 }
 0x211   : > { %1585 = vrcp.f32 %v804_v52 }
 0x213   : > { %v801_v54 = vld [vmem:[#allocation2 + $0x30] sm:$0xff] }
 0x214   : > { %v799_v53 = vld [vmem:[#allocation2 + $0x20] sm:$0xff]  ;;  %v809_v59 = vadd.f32 1e-09, %v801_v54 }
 0x215   : > { %v807_v55 = vadd.f32 1e-09, %v799_v53  ;;  %v802_v57 = vld [vmem:[#allocation2 + $0x38] sm:$0xff] }
 0x216   : > { %v800_v56 = vld [vmem:[#allocation2 + $0x28] sm:$0xff]  ;;  %v810_v62 = vadd.f32 1e-09, %v802_v57 }
 0x217   : > { %1587 = vrcp.f32 %v807_v55  ;;  %v808_v58 = vadd.f32 1e-09, %v800_v56 }
 0x218   : > { %v1580_v60 = vpop.eup %1579 }
 0x219   : > { %v1582_v61 = vpop.eup %1581  ;;  %831 = vperm.xlu1 %1558, %v1580_v60   ;;  %1589 = vrcp.f32 %v808_v58  ;;  %v1340_v60 = vld [vmem:[%s1829_s6] ss:$0 sm:$0xff] }
 0x21a   : > { %821 = vperm.xlu0 %1557, %v1582_v61   ;;  %1591 = vrcp.f32 %v809_v59  ;;  %v1584_v63 = vpop.eup %1583 }
 0x21b   : > { %v1586_v0 = vpop.eup %1585  ;;  %1593 = vrcp.f32 %v810_v62 }
 0x21d   : > { %836 = vperm.xlu1 %1558, %v1584_v63  }
 0x21e   : > { %826 = vperm.xlu0 %1557, %v1586_v0  }
 0x221   : > { %v1588_v1 = vpop.eup %1587 }
 0x222   : > { %841 = vperm.xlu0 %1557, %v1588_v1  }
 0x223   : > { %v1590_v2 = vpop.eup %1589 }
 0x224   : > { %846 = vperm.xlu1 %1558, %v1590_v2   ;;  %v1592_v3 = vpop.eup %1591 }
 0x225   : > { %v1594_v4 = vpop.eup %1593 }
 0x226   : > { %851 = vperm.xlu0 %1557, %v1592_v3  }
 0x228   : > { %856 = vperm.xlu1 %1558, %v1594_v4  }
 0x298   : > { %v832_v8 = vpop.permute.xlu1 %831 }
 0x299   : > { %v822_v10 = vpop.permute.xlu0 %821  ;;  %v861_v13 = vmul.f32 %v832_v8, %v797_v42 }
 0x29a   : > { %v859_v11 = vmul.f32 %v822_v10, %v795_v46 }
 0x29c   : > { %1455 = vmatprep.mubr.msk.f32.mxu1 %vm878_vm4, %v859_v11  ;;  %v837_v14 = vpop.permute.xlu1 %836 }
 0x29d   : > { %v827_v12 = vpop.permute.xlu0 %826  ;;  %v862_v16 = vmul.f32 %v837_v14, %v798_v49 }
 0x29e   : > { %v860_v9 = vmul.f32 %v827_v12, %v796_v51 }
 0x2a0   : > { %1456 = vmatmul.mubr.msk.f32.vlgmr.msra.gmra.mrb[8].mxu1 %vm878_vm4, %v860_v9 }
 0x2a1   : > { %1458 = vmatprep.mubr.msk.f32.mxu1 %vm878_vm4, %v861_v13  ;;  %v842_v15 = vpop.permute.xlu0 %841  ;;  %1529 = vmatpush3.bf16.msra.mxu1 %v1519_v7 }
 0x2a2   : > { %v863_v17 = vmul.f32 %v842_v15, %v799_v53  ;;  %1528 = vmatprep.subr.bf16.mxu1 %v1523_v26 }
 0x2a3   : > { %v847_v18 = vpop.permute.xlu1 %846 }
 0x2a4   : > { %1459 = vmatmul.mubr.msk.f32.gmra.mrb[10].mxu1 %vm878_vm4, %v862_v16  ;;  %v864_v20 = vmul.f32 %v847_v18, %v800_v56 }
 0x2a5   : > { %1461 = vmatprep.mubr.msk.f32.mxu1 %vm878_vm4, %v863_v17  ;;  %v852_v19 = vpop.permute.xlu0 %851  ;;  %1530 = vmatpush3.bf16.msra.mxu1 %v1523_v26 }
 0x2a6   : > { %v865_v21 = vmul.f32 %v852_v19, %v801_v54 }
 0x2a7   : > { %v857_v22 = vpop.permute.xlu1 %856 }
 0x2a8   : > { %1462 = vmatmul.mubr.msk.f32.gmra.mrb[12].mxu1 %vm878_vm4, %v864_v20  ;;  %v866_v23 = vmul.f32 %v857_v22, %v802_v57 }
 0x2a9   : > { %1464 = vmatprep.mubr.msk.f32.mxu1 %vm878_vm4, %v865_v21 }
 0x2ac   : > { %1465 = vmatmul.mubr.msk.f32.gmra.mrb[14].mxu1 %vm878_vm4, %v866_v23 }
 0x373   : > { %v1457_v28 = vpop.f32.mrb[8].mxu1 }
 0x374   : > { %v975_v29 = vadd.f32 %v1457_v28, %v1331_v27  ;;  %v969_v30 = vpop.f32.mrb[9].mxu1 }
 0x375   : > { %v970_v31 = vadd.f32 %v1331_v27, %v969_v30 }
 0x376   : > { %v1017_v32 = vmul.f32 0.1, %v975_v29  ;;  %vm1009_vm5 = vcmp.ge.f32.partialorder %v975_v29, 0.0 }
 0x377   : > { %vm1008_vm6 = vcmp.ge.f32.partialorder %v970_v31, 0.0  ;;  %v1016_v33 = vmul.f32 0.1, %v970_v31  ;;  %v1460_v34 = vpop.f32.mrb[10].mxu1 }
 0x378   : > { %v985_v35 = vadd.f32 %v1460_v34, %v1331_v27  ;;  %v979_v36 = vpop.f32.mrb[11].mxu1  ;;  %v1025_v39 = vsel %vm1009_vm5, %v975_v29, %v1017_v32 }
 0x379   : > { %v980_v37 = vadd.f32 %v1331_v27, %v979_v36  ;;  %v1024_v38 = vsel %vm1008_vm6, %v970_v31, %v1016_v33 }
 0x37a   : > { %v1019_v40 = vmul.f32 0.1, %v985_v35  ;;  %1475 = vmatprep.mubr.msk.f32.mxu0 %vm878_vm4, %v1024_v38  ;;  %vm1011_vm7 = vcmp.ge.f32.partialorder %v985_v35, 0.0 }
 0x37b   : > { %vm1010_vm8 = vcmp.ge.f32.partialorder %v980_v37, 0.0  ;;  %v1018_v41 = vmul.f32 0.1, %v980_v37  ;;  %v1463_v42 = vpop.f32.mrb[12].mxu1  ;;  %1476 = vmatmul.mubr.msk.f32.vlgmr.msra.gmra.mrb[8].mxu0 %vm878_vm4, %v1025_v39 }
 0x37c   : > { %v995_v43 = vadd.f32 %v1463_v42, %v1331_v27  ;;  %v989_v44 = vpop.f32.mrb[13].mxu1  ;;  %v1027_v48 = vsel %vm1011_vm7, %v985_v35, %v1019_v40 }
 0x37d   : > { %v990_v45 = vadd.f32 %v1331_v27, %v989_v44  ;;  %v1026_v46 = vsel %vm1010_vm8, %v980_v37, %v1018_v41 }
 0x37e   : > { %v1021_v47 = vmul.f32 0.1, %v995_v43  ;;  %1478 = vmatprep.mubr.msk.f32.mxu0 %vm878_vm4, %v1026_v46  ;;  %vm1013_vm9 = vcmp.ge.f32.partialorder %v995_v43, 0.0 }
 0x37f   : > { %vm1012_vm10 = vcmp.ge.f32.partialorder %v990_v45, 0.0  ;;  %v1020_v49 = vmul.f32 0.1, %v990_v45  ;;  %v1466_v50 = vpop.f32.mrb[14].mxu1  ;;  %1479 = vmatmul.mubr.msk.f32.gmra.mrb[10].mxu0 %vm878_vm4, %v1027_v48 }
 0x380   : > { %v1005_v51 = vadd.f32 %v1466_v50, %v1331_v27  ;;  %v999_v52 = vpop.f32.mrb[15].mxu1  ;;  %v1029_v55 = vsel %vm1013_vm9, %v995_v43, %v1021_v47 }
 0x381   : > { %v1000_v53 = vadd.f32 %v1331_v27, %v999_v52  ;;  %v1028_v54 = vsel %vm1012_vm10, %v990_v45, %v1020_v49 }
 0x382   : > { %v1023_v56 = vmul.f32 0.1, %v1005_v51  ;;  %1481 = vmatprep.mubr.msk.f32.mxu1 %vm878_vm4, %v1028_v54  ;;  %vm1015_vm11 = vcmp.ge.f32.partialorder %v1005_v51, 0.0 }
 0x383   : > { %vm1014_vm12 = vcmp.ge.f32.partialorder %v1000_v53, 0.0  ;;  %v1022_v57 = vmul.f32 0.1, %v1000_v53  ;;  %1482 = vmatmul.mubr.msk.f32.vlgmr.msra.gmra.mrb[16].mxu1 %vm878_vm4, %v1029_v55 }
 0x384   : > { %v1031_v59 = vsel %vm1015_vm11, %v1005_v51, %v1023_v56 }
 0x385   : > { %v1030_v58 = vsel %vm1014_vm12, %v1000_v53, %v1022_v57 }
 0x386   : > { %1484 = vmatprep.mubr.msk.f32.mxu1 %vm878_vm4, %v1030_v58 }
 0x387   : > { %1485 = vmatmul.mubr.msk.f32.gmra.mrb[18].mxu1 %vm878_vm4, %v1031_v59 }
 0x44e   : > { %v1477_v61 = vpop.f32.mrb[8].mxu0 }
 0x44f   : > { %v1139_v62 = vadd.f32 %v1477_v61, %v1340_v60  ;;  %v1133_v63 = vpop.f32.mrb[9].mxu0 }
 0x450   : > { %v1134_v0 = vadd.f32 %v1340_v60, %v1133_v63 }
 0x451   : > { %1173 = vst.msk [vmem:[%s363_s19 + $0x8] sm:$0xff] %vm878_vm4, %v1139_v62 }
 0x452   : > { %1172 = vst.msk [vmem:[%s363_s19] sm:$0xff] %vm878_vm4, %v1134_v0  ;;  %v1480_v1 = vpop.f32.mrb[10].mxu0 }
 0x453   : > { %v1149_v2 = vadd.f32 %v1480_v1, %v1340_v60  ;;  %v1143_v3 = vpop.f32.mrb[11].mxu0 }
 0x454   : > { %v1144_v4 = vadd.f32 %v1340_v60, %v1143_v3 }
 0x455   : > { %1175 = vst.msk [vmem:[%s363_s19 + $0x18] sm:$0xff] %vm878_vm4, %v1149_v2 }
 0x456   : > { %1174 = vst.msk [vmem:[%s363_s19 + $0x10] sm:$0xff] %vm878_vm4, %v1144_v4  ;;  %v1483_v5 = vpop.f32.mrb[16].mxu1 }
 0x457   : > { %v1159_v6 = vadd.f32 %v1483_v5, %v1340_v60  ;;  %v1153_v7 = vpop.f32.mrb[17].mxu1 }
 0x458   : > { %v1154_v8 = vadd.f32 %v1340_v60, %v1153_v7 }
 0x459   : > { %1177 = vst.msk [vmem:[%s363_s19 + $0x28] sm:$0xff] %vm878_vm4, %v1159_v6 }
 0x45a   : > { %1176 = vst.msk [vmem:[%s363_s19 + $0x20] sm:$0xff] %vm878_vm4, %v1154_v8  ;;  %v1486_v10 = vpop.f32.mrb[18].mxu1 }
 0x45b   : > { %v1169_v11 = vadd.f32 %v1486_v10, %v1340_v60  ;;  %v1163_v12 = vpop.f32.mrb[19].mxu1 }
 0x45c   : > { %v1164_v9 = vadd.f32 %v1340_v60, %v1163_v12 }
 0x45d   : > { %1179 = vst.msk [vmem:[%s363_s19 + $0x38] sm:$0xff] %vm878_vm4, %v1169_v11 }
 0x45e   : > { %1178 = vst.msk [vmem:[%s363_s19 + $0x30] sm:$0xff] %vm878_vm4, %v1164_v9 }
 0x45f PF: > { %s17_s26 = sadd.s32 1, %s1617_s26   ;;  %s1833_s24 = smov %s1613_s25 }
 0x460   : > { %p14_p5 = scmp.ge.s32.totalorder %s17_s26, 4   ;;  %s1834_s25 = smov %s1836_s27 }
 0x462   :  { %16 = sbr.rel (!%p14_p5) target bundleno = 2 (0x2), region = 92 }

</bundles_post_ra>
